<compile_context>
chip_gen: v6e
topology: v6e:2x2x1
jax: 0.10.0
libtpu: 0.0.40
codegen_flags: <defaults>
</compile_context>

<pallas_src>
import jax
import jax.numpy as jnp
from jax.experimental import pallas as pl
from jax.experimental.pallas import tpu as pltpu

# ----------------------- scaled-down synthetic config ----------------------
C_IN = 22              # forward hard-codes 22 input channels
H = W = 32             # scaled down from the original 200 x 200 BEV grid
HP = WP = H + 2        # zero-padded spatial extent for the 3x3 / pad=1 conv
C_MID = 64             # synthetic pts_backbone width
C_NECK = 64            # synthetic pts_neck width
NUM_CLASSES = 10
NUM_ANCHORS = 2        # anchors per BEV location
BOX_CODE_SIZE = 9      # (x, y, z, w, l, h, r, vx, vy)
NMS_PRE = 1000
USE_SIGMOID_CLS = True  # cfg['pts_bbox_head']['loss_cls']['use_sigmoid']

N_LOCS = H * W                       # 1024 valid BEV locations
N_PAD = HP * WP                      # 1156 padded positions (computed in-kernel)
SHIFT_PAD = HP + 1                   # 35: zero-extension so all 9 shifts are in range
N_EXT = N_PAD + 2 * SHIFT_PAD        # 1226 columns of the extended flat input
N_ANCH = N_LOCS * NUM_ANCHORS        # 2048
X_NUMEL = C_IN * H * W
ANCH_NUMEL = N_ANCH * BOX_CODE_SIZE

CLS_OUT = NUM_ANCHORS * NUM_CLASSES      # 20
BOX_OUT = NUM_ANCHORS * BOX_CODE_SIZE    # 18
DIR_OUT = NUM_ANCHORS * 2                # 4
HEAD_OUT = CLS_OUT + BOX_OUT + DIR_OUT   # 42 (fused head weight width)
OUT_ROWS = 48                            # packed output rows (42 + dir(2) + max(2) + pad)


# ------------------------------ fused kernel --------------------------------
def _fused_kernel(xe_ref, wc_ref, bc_ref, wn_ref, bn_ref, wh_ref, bh_ref, o_ref):
    # ---- pts_backbone: 3x3 conv (pad=1) + ReLU -----------------------------
    # xe_ref: (C_IN, N_EXT) bf16, flattened zero-padded grid with SHIFT_PAD
    # extra zero columns on each side.  For tap (di, dj) the contribution to
    # padded position q is xe[:, q + SHIFT_PAD + (di-1)*WP + (dj-1)], so each
    # tap is one shifted (C_MID, C_IN) @ (C_IN, N_PAD) matmul on the MXU.
    acc = jnp.zeros((C_MID, N_PAD), jnp.float32)
    for di in range(3):
        for dj in range(3):
            k = di * 3 + dj
            start = SHIFT_PAD + (di - 1) * WP + (dj - 1)
            xs = xe_ref[:, start:start + N_PAD]                 # (22, 1156) bf16
            acc = acc + jnp.dot(wc_ref[k], xs,
                                preferred_element_type=jnp.float32)
    feat = jnp.maximum(acc + bc_ref[...], 0.0)                   # (64, 1156) f32

    # ---- pts_neck: 1x1 conv + ReLU ------------------------------------------
    feat = jnp.dot(wn_ref[...], feat.astype(jnp.bfloat16),
                   preferred_element_type=jnp.float32) + bn_ref[...]
    feat = jnp.maximum(feat, 0.0)                                # (64, 1156) f32

    # ---- pts_bbox_head: fused cls|box|dir 1x1 conv (one 42-wide matmul) -----
    y = jnp.dot(wh_ref[...], feat.astype(jnp.bfloat16),
                preferred_element_type=jnp.float32) + bh_ref[...]  # (42, 1156)

    cls_t = y[0:CLS_OUT, :]                                      # (20, 1156)
    box_t = y[CLS_OUT:CLS_OUT + BOX_OUT, :]                      # (18, 1156)
    dir_t = y[CLS_OUT + BOX_OUT:HEAD_OUT, :]                     # (4, 1156)

    # sigmoid scores, per-anchor max score, dir argmax (torch.max(dim=-1)[1])
    s = jax.nn.sigmoid(cls_t)
    m0 = jnp.max(s[0:NUM_CLASSES, :], axis=0, keepdims=True)
    m1 = jnp.max(s[NUM_CLASSES:CLS_OUT, :], axis=0, keepdims=True)
    d0 = (dir_t[1:2, :] > dir_t[0:1, :]).astype(jnp.float32)
    d1 = (dir_t[3:4, :] > dir_t[2:3, :]).astype(jnp.float32)

    # pack one lane-dense (48, 1156) f32 output
    o_ref[0:CLS_OUT, :] = s
    o_ref[CLS_OUT:CLS_OUT + BOX_OUT, :] = box_t
    o_ref[38:39, :] = d0
    o_ref[39:40, :] = d1
    o_ref[40:41, :] = m0
    o_ref[41:42, :] = m1
    o_ref[42:OUT_ROWS, :] = jnp.zeros((OUT_ROWS - 42, N_PAD), jnp.float32)


def _fused_call(xe, wc, bc, wn, bn, wh, bh):
    def full(shape):
        n = len(shape)
        return pl.BlockSpec(tuple(shape), lambda i, _n=n: (0,) * _n)

    return pl.pallas_call(
        _fused_kernel,
        out_shape=jax.ShapeDtypeStruct((OUT_ROWS, N_PAD), jnp.float32),
        grid=(1,),
        in_specs=[full(xe.shape), full(wc.shape), full(bc.shape),
                  full(wn.shape), full(bn.shape), full(wh.shape), full(bh.shape)],
        out_specs=full((OUT_ROWS, N_PAD)),
        compiler_params=pltpu.CompilerParams(
            dimension_semantics=("arbitrary",)),
    )(xe, wc, bc, wn, bn, wh, bh)


# --------------------------- params & forward glue --------------------------
def init_params(key):
    ks = jax.random.split(key, 6)

    def wgen(k, shape, scale=0.05):
        return jax.random.normal(k, shape, jnp.float32) * scale

    return dict(
        conv_w=wgen(ks[0], (9, C_MID, C_IN)),     # 3x3 conv taps, (out, in)
        conv_b=wgen(ks[1], (C_MID,)),
        neck_w=wgen(ks[2], (C_NECK, C_MID)),
        neck_b=wgen(ks[3], (C_NECK,)),
        head_w=wgen(ks[4], (HEAD_OUT, C_NECK)),   # [cls(20) | box(18) | dir(4)]
        head_b=wgen(ks[5], (HEAD_OUT,)),
    )


def decode_boxes(anchors, deltas):
    # Standard delta decode; tiny (1000 x 9) elementwise -> plain JAX per review.
    xa, ya, za, wa, la, ha, ra = [anchors[:, i:i + 1] for i in range(7)]
    ca = anchors[:, 7:]
    xt, yt, zt, wt, lt, ht, rt = [deltas[:, i:i + 1] for i in range(7)]
    ct = deltas[:, 7:]
    za = za + ha * 0.5
    diag = jnp.sqrt(la * la + wa * wa)
    xg = xt * diag + xa
    yg = yt * diag + ya
    zg = zt * ha + za
    lg = jnp.exp(lt) * la
    wg = jnp.exp(wt) * wa
    hg = jnp.exp(ht) * ha
    rg = rt + ra
    zg = zg - hg * 0.5
    return jnp.concatenate([xg, yg, zg, wg, lg, hg, rg, ct + ca], axis=-1)


def backbone_forward(flat_input, params):
    # --- split, as in torch: x = input[:C*H*W]; anchors = input[C*H*W:] ---
    x = flat_input[:X_NUMEL].reshape(C_IN, H, W)                 # channels-major
    anchors = flat_input[X_NUMEL:].reshape(N_ANCH, BOX_CODE_SIZE)

    # zero-pad spatially, flatten H*W onto the lane axis and extend with zero
    # columns so all 9 shifted conv views are in range; cast to bf16 for MXU.
    xp = jnp.pad(x, ((0, 0), (1, 1), (1, 1)))                    # (22, 34, 34)
    xe = xp.reshape(C_IN, N_PAD)
    xe = jnp.pad(xe, ((0, 0), (SHIFT_PAD, SHIFT_PAD)))           # (22, 1226)
    xe = xe.astype(jnp.bfloat16)

    wc = params['conv_w'].astype(jnp.bfloat16)
    wn = params['neck_w'].astype(jnp.bfloat16)
    wh = params['head_w'].astype(jnp.bfloat16)
    bc = params['conv_b'].reshape(C_MID, 1)
    bn = params['neck_b'].reshape(C_NECK, 1)
    bh = params['head_b'].reshape(HEAD_OUT, 1)

    out = _fused_call(xe, wc, bc, wn, bn, wh, bh)                # (48, 1156) f32

    # drop the padded border positions -> columns ordered as loc = h*W + w
    out = out.reshape(OUT_ROWS, HP, WP)[:, 1:1 + H, 1:1 + W]
    out = out.reshape(OUT_ROWS, N_LOCS)

    # anchor-major views: row = loc*NUM_ANCHORS + a  (== permute(1,2,0).reshape)
    scores = out[0:CLS_OUT, :].T.reshape(N_ANCH, NUM_CLASSES)
    box_pred = out[CLS_OUT:CLS_OUT + BOX_OUT, :].T.reshape(N_ANCH, BOX_CODE_SIZE)
    dir_cls_score = out[38:40, :].T.reshape(N_ANCH)
    max_scores = out[40:42, :].T.reshape(N_ANCH)

    # TODO(synk): top-k selection (sort) has no clean Pallas TPU equivalent;
    # done with jax.lax.top_k + a single fused row gather in XLA.
    _, topk_inds = jax.lax.top_k(max_scores, NMS_PRE)
    combined = jnp.concatenate(
        [anchors, box_pred, scores, dir_cls_score[:, None]], axis=-1)  # (2048, 29)
    g = combined[topk_inds]                                            # one gather

    anchors_k = g[:, :BOX_CODE_SIZE]
    deltas_k = g[:, BOX_CODE_SIZE:2 * BOX_CODE_SIZE]
    scores_k = g[:, 2 * BOX_CODE_SIZE:2 * BOX_CODE_SIZE + NUM_CLASSES]
    labels_k = g[:, -1].astype(jnp.int32)   # dir score, as in the original return

    bboxes = decode_boxes(anchors_k, deltas_k)
    return bboxes, scores_k, labels_k


# ---------------------------------- main -------------------------------------
if __name__ == "__main__":
    key = jax.random.PRNGKey(0)
    k_in, k_param = jax.random.split(key)

    total = X_NUMEL + ANCH_NUMEL
    flat_input = jax.random.normal(k_in, (total,), jnp.float32)
    params = init_params(k_param)

    bboxes, scores, labels = jax.jit(backbone_forward)(flat_input, params)
    jax.block_until_ready((bboxes, scores, labels))

    assert bboxes.shape == (NMS_PRE, BOX_CODE_SIZE)
    assert scores.shape == (NMS_PRE, NUM_CLASSES)
    assert labels.shape == (NMS_PRE,)
    print("KERNEL_OK")
</pallas_src>

<mosaic_0001>
module attributes {stable_mosaic.version = 11 : i64} {
  func.func @_fused_kernel(%arg0: i32, %arg1: memref<22x1226xbf16, #tpu.memory_space<vmem>>, %arg2: memref<9x64x22xbf16, #tpu.memory_space<vmem>>, %arg3: memref<64x1xf32, #tpu.memory_space<vmem>>, %arg4: memref<64x64xbf16, #tpu.memory_space<vmem>>, %arg5: memref<64x1xf32, #tpu.memory_space<vmem>>, %arg6: memref<42x64xbf16, #tpu.memory_space<vmem>>, %arg7: memref<42x1xf32, #tpu.memory_space<vmem>>, %arg8: memref<48x1156xf32, #tpu.memory_space<vmem>>) attributes {dimension_semantics = [#tpu.dimension_semantics<arbitrary>], iteration_bounds = array<i64: 1>, scalar_prefetch = 0 : i64, scratch_operands = 0 : i64, tpu.core_type = #tpu.core_type<tc>, window_params = [{pipeline_mode = #tpu.pipeline_mode<synchronous>, transform_indices = @transform_0, window_bounds = array<i64: 22, 1226>}, {pipeline_mode = #tpu.pipeline_mode<synchronous>, transform_indices = @transform_1, window_bounds = array<i64: 9, 64, 22>}, {pipeline_mode = #tpu.pipeline_mode<synchronous>, transform_indices = @transform_2, window_bounds = array<i64: 64, 1>}, {pipeline_mode = #tpu.pipeline_mode<synchronous>, transform_indices = @transform_3, window_bounds = array<i64: 64, 64>}, {pipeline_mode = #tpu.pipeline_mode<synchronous>, transform_indices = @transform_4, window_bounds = array<i64: 64, 1>}, {pipeline_mode = #tpu.pipeline_mode<synchronous>, transform_indices = @transform_5, window_bounds = array<i64: 42, 64>}, {pipeline_mode = #tpu.pipeline_mode<synchronous>, transform_indices = @transform_6, window_bounds = array<i64: 42, 1>}, {pipeline_mode = #tpu.pipeline_mode<synchronous>, transform_indices = @transform_7, window_bounds = array<i64: 48, 1156>}]} {
    %cst = arith.constant 0.000000e+00 : f32
    %0 = vector.broadcast %cst : f32 to vector<64x1156xf32>
    %c0 = arith.constant 0 : index
    %c0_0 = arith.constant 0 : index
    %1 = vector.load %arg1[%c0, %c0_0] : memref<22x1226xbf16, #tpu.memory_space<vmem>>, vector<22x1156xbf16>
    %c0_1 = arith.constant 0 : index
    %c0_2 = arith.constant 0 : index
    %c0_3 = arith.constant 0 : index
    %2 = vector.load %arg2[%c0_1, %c0_2, %c0_3] : memref<9x64x22xbf16, #tpu.memory_space<vmem>>, vector<1x64x22xbf16>
    %3 = vector.shape_cast %2 : vector<1x64x22xbf16> to vector<64x22xbf16>
    %cst_4 = arith.constant dense<0.000000e+00> : vector<64x1156xf32>
    %4 = tpu.matmul %3, %1, %cst_4 {dimension_numbers = #tpu.dot_dimension_numbers<[1], [0], [0], [1], [0, 0, 1, 1], [], []>} : vector<64x22xbf16>, vector<22x1156xbf16>, vector<64x1156xf32> -> vector<64x1156xf32>
    %5 = arith.addf %0, %4 : vector<64x1156xf32>
    %c0_5 = arith.constant 0 : index
    %c1 = arith.constant 1 : index
    %6 = vector.load %arg1[%c0_5, %c1] : memref<22x1226xbf16, #tpu.memory_space<vmem>>, vector<22x1156xbf16>
    %c1_6 = arith.constant 1 : index
    %c0_7 = arith.constant 0 : index
    %c0_8 = arith.constant 0 : index
    %7 = vector.load %arg2[%c1_6, %c0_7, %c0_8] : memref<9x64x22xbf16, #tpu.memory_space<vmem>>, vector<1x64x22xbf16>
    %8 = vector.shape_cast %7 : vector<1x64x22xbf16> to vector<64x22xbf16>
    %cst_9 = arith.constant dense<0.000000e+00> : vector<64x1156xf32>
    %9 = tpu.matmul %8, %6, %cst_9 {dimension_numbers = #tpu.dot_dimension_numbers<[1], [0], [0], [1], [0, 0, 1, 1], [], []>} : vector<64x22xbf16>, vector<22x1156xbf16>, vector<64x1156xf32> -> vector<64x1156xf32>
    %10 = arith.addf %5, %9 : vector<64x1156xf32>
    %c0_10 = arith.constant 0 : index
    %c2 = arith.constant 2 : index
    %11 = vector.load %arg1[%c0_10, %c2] : memref<22x1226xbf16, #tpu.memory_space<vmem>>, vector<22x1156xbf16>
    %c2_11 = arith.constant 2 : index
    %c0_12 = arith.constant 0 : index
    %c0_13 = arith.constant 0 : index
    %12 = vector.load %arg2[%c2_11, %c0_12, %c0_13] : memref<9x64x22xbf16, #tpu.memory_space<vmem>>, vector<1x64x22xbf16>
    %13 = vector.shape_cast %12 : vector<1x64x22xbf16> to vector<64x22xbf16>
    %cst_14 = arith.constant dense<0.000000e+00> : vector<64x1156xf32>
    %14 = tpu.matmul %13, %11, %cst_14 {dimension_numbers = #tpu.dot_dimension_numbers<[1], [0], [0], [1], [0, 0, 1, 1], [], []>} : vector<64x22xbf16>, vector<22x1156xbf16>, vector<64x1156xf32> -> vector<64x1156xf32>
    %15 = arith.addf %10, %14 : vector<64x1156xf32>
    %c0_15 = arith.constant 0 : index
    %c34 = arith.constant 34 : index
    %16 = vector.load %arg1[%c0_15, %c34] : memref<22x1226xbf16, #tpu.memory_space<vmem>>, vector<22x1156xbf16>
    %c3 = arith.constant 3 : index
    %c0_16 = arith.constant 0 : index
    %c0_17 = arith.constant 0 : index
    %17 = vector.load %arg2[%c3, %c0_16, %c0_17] : memref<9x64x22xbf16, #tpu.memory_space<vmem>>, vector<1x64x22xbf16>
    %18 = vector.shape_cast %17 : vector<1x64x22xbf16> to vector<64x22xbf16>
    %cst_18 = arith.constant dense<0.000000e+00> : vector<64x1156xf32>
    %19 = tpu.matmul %18, %16, %cst_18 {dimension_numbers = #tpu.dot_dimension_numbers<[1], [0], [0], [1], [0, 0, 1, 1], [], []>} : vector<64x22xbf16>, vector<22x1156xbf16>, vector<64x1156xf32> -> vector<64x1156xf32>
    %20 = arith.addf %15, %19 : vector<64x1156xf32>
    %c0_19 = arith.constant 0 : index
    %c35 = arith.constant 35 : index
    %21 = vector.load %arg1[%c0_19, %c35] : memref<22x1226xbf16, #tpu.memory_space<vmem>>, vector<22x1156xbf16>
    %c4 = arith.constant 4 : index
    %c0_20 = arith.constant 0 : index
    %c0_21 = arith.constant 0 : index
    %22 = vector.load %arg2[%c4, %c0_20, %c0_21] : memref<9x64x22xbf16, #tpu.memory_space<vmem>>, vector<1x64x22xbf16>
    %23 = vector.shape_cast %22 : vector<1x64x22xbf16> to vector<64x22xbf16>
    %cst_22 = arith.constant dense<0.000000e+00> : vector<64x1156xf32>
    %24 = tpu.matmul %23, %21, %cst_22 {dimension_numbers = #tpu.dot_dimension_numbers<[1], [0], [0], [1], [0, 0, 1, 1], [], []>} : vector<64x22xbf16>, vector<22x1156xbf16>, vector<64x1156xf32> -> vector<64x1156xf32>
    %25 = arith.addf %20, %24 : vector<64x1156xf32>
    %c0_23 = arith.constant 0 : index
    %c36 = arith.constant 36 : index
    %26 = vector.load %arg1[%c0_23, %c36] : memref<22x1226xbf16, #tpu.memory_space<vmem>>, vector<22x1156xbf16>
    %c5 = arith.constant 5 : index
    %c0_24 = arith.constant 0 : index
    %c0_25 = arith.constant 0 : index
    %27 = vector.load %arg2[%c5, %c0_24, %c0_25] : memref<9x64x22xbf16, #tpu.memory_space<vmem>>, vector<1x64x22xbf16>
    %28 = vector.shape_cast %27 : vector<1x64x22xbf16> to vector<64x22xbf16>
    %cst_26 = arith.constant dense<0.000000e+00> : vector<64x1156xf32>
    %29 = tpu.matmul %28, %26, %cst_26 {dimension_numbers = #tpu.dot_dimension_numbers<[1], [0], [0], [1], [0, 0, 1, 1], [], []>} : vector<64x22xbf16>, vector<22x1156xbf16>, vector<64x1156xf32> -> vector<64x1156xf32>
    %30 = arith.addf %25, %29 : vector<64x1156xf32>
    %c0_27 = arith.constant 0 : index
    %c68 = arith.constant 68 : index
    %31 = vector.load %arg1[%c0_27, %c68] : memref<22x1226xbf16, #tpu.memory_space<vmem>>, vector<22x1156xbf16>
    %c6 = arith.constant 6 : index
    %c0_28 = arith.constant 0 : index
    %c0_29 = arith.constant 0 : index
    %32 = vector.load %arg2[%c6, %c0_28, %c0_29] : memref<9x64x22xbf16, #tpu.memory_space<vmem>>, vector<1x64x22xbf16>
    %33 = vector.shape_cast %32 : vector<1x64x22xbf16> to vector<64x22xbf16>
    %cst_30 = arith.constant dense<0.000000e+00> : vector<64x1156xf32>
    %34 = tpu.matmul %33, %31, %cst_30 {dimension_numbers = #tpu.dot_dimension_numbers<[1], [0], [0], [1], [0, 0, 1, 1], [], []>} : vector<64x22xbf16>, vector<22x1156xbf16>, vector<64x1156xf32> -> vector<64x1156xf32>
    %35 = arith.addf %30, %34 : vector<64x1156xf32>
    %c0_31 = arith.constant 0 : index
    %c69 = arith.constant 69 : index
    %36 = vector.load %arg1[%c0_31, %c69] : memref<22x1226xbf16, #tpu.memory_space<vmem>>, vector<22x1156xbf16>
    %c7 = arith.constant 7 : index
    %c0_32 = arith.constant 0 : index
    %c0_33 = arith.constant 0 : index
    %37 = vector.load %arg2[%c7, %c0_32, %c0_33] : memref<9x64x22xbf16, #tpu.memory_space<vmem>>, vector<1x64x22xbf16>
    %38 = vector.shape_cast %37 : vector<1x64x22xbf16> to vector<64x22xbf16>
    %cst_34 = arith.constant dense<0.000000e+00> : vector<64x1156xf32>
    %39 = tpu.matmul %38, %36, %cst_34 {dimension_numbers = #tpu.dot_dimension_numbers<[1], [0], [0], [1], [0, 0, 1, 1], [], []>} : vector<64x22xbf16>, vector<22x1156xbf16>, vector<64x1156xf32> -> vector<64x1156xf32>
    %40 = arith.addf %35, %39 : vector<64x1156xf32>
    %c0_35 = arith.constant 0 : index
    %c70 = arith.constant 70 : index
    %41 = vector.load %arg1[%c0_35, %c70] : memref<22x1226xbf16, #tpu.memory_space<vmem>>, vector<22x1156xbf16>
    %c8 = arith.constant 8 : index
    %c0_36 = arith.constant 0 : index
    %c0_37 = arith.constant 0 : index
    %42 = vector.load %arg2[%c8, %c0_36, %c0_37] : memref<9x64x22xbf16, #tpu.memory_space<vmem>>, vector<1x64x22xbf16>
    %43 = vector.shape_cast %42 : vector<1x64x22xbf16> to vector<64x22xbf16>
    %cst_38 = arith.constant dense<0.000000e+00> : vector<64x1156xf32>
    %44 = tpu.matmul %43, %41, %cst_38 {dimension_numbers = #tpu.dot_dimension_numbers<[1], [0], [0], [1], [0, 0, 1, 1], [], []>} : vector<64x22xbf16>, vector<22x1156xbf16>, vector<64x1156xf32> -> vector<64x1156xf32>
    %45 = arith.addf %40, %44 : vector<64x1156xf32>
    %c0_39 = arith.constant 0 : index
    %c0_40 = arith.constant 0 : index
    %46 = vector.load %arg3[%c0_39, %c0_40] : memref<64x1xf32, #tpu.memory_space<vmem>>, vector<64x1xf32>
    %47 = vector.broadcast %46 : vector<64x1xf32> to vector<64x1156xf32>
    %48 = arith.addf %45, %47 : vector<64x1156xf32>
    %cst_41 = arith.constant 0.000000e+00 : f32
    %49 = vector.broadcast %cst_41 : f32 to vector<64x1156xf32>
    %50 = arith.maximumf %48, %49 : vector<64x1156xf32>
    %c0_42 = arith.constant 0 : index
    %c0_43 = arith.constant 0 : index
    %51 = vector.load %arg4[%c0_42, %c0_43] : memref<64x64xbf16, #tpu.memory_space<vmem>>, vector<64x64xbf16>
    %52 = arith.truncf %50 : vector<64x1156xf32> to vector<64x1156xbf16>
    %cst_44 = arith.constant dense<0.000000e+00> : vector<64x1156xf32>
    %53 = tpu.matmul %51, %52, %cst_44 {dimension_numbers = #tpu.dot_dimension_numbers<[1], [0], [0], [1], [0, 0, 1, 1], [], []>} : vector<64x64xbf16>, vector<64x1156xbf16>, vector<64x1156xf32> -> vector<64x1156xf32>
    %c0_45 = arith.constant 0 : index
    %c0_46 = arith.constant 0 : index
    %54 = vector.load %arg5[%c0_45, %c0_46] : memref<64x1xf32, #tpu.memory_space<vmem>>, vector<64x1xf32>
    %55 = vector.broadcast %54 : vector<64x1xf32> to vector<64x1156xf32>
    %56 = arith.addf %53, %55 : vector<64x1156xf32>
    %cst_47 = arith.constant 0.000000e+00 : f32
    %57 = vector.broadcast %cst_47 : f32 to vector<64x1156xf32>
    %58 = arith.maximumf %56, %57 : vector<64x1156xf32>
    %c0_48 = arith.constant 0 : index
    %c0_49 = arith.constant 0 : index
    %59 = vector.load %arg6[%c0_48, %c0_49] : memref<42x64xbf16, #tpu.memory_space<vmem>>, vector<42x64xbf16>
    %60 = arith.truncf %58 : vector<64x1156xf32> to vector<64x1156xbf16>
    %cst_50 = arith.constant dense<0.000000e+00> : vector<42x1156xf32>
    %61 = tpu.matmul %59, %60, %cst_50 {dimension_numbers = #tpu.dot_dimension_numbers<[1], [0], [0], [1], [0, 0, 1, 1], [], []>} : vector<42x64xbf16>, vector<64x1156xbf16>, vector<42x1156xf32> -> vector<42x1156xf32>
    %c0_51 = arith.constant 0 : index
    %c0_52 = arith.constant 0 : index
    %62 = vector.load %arg7[%c0_51, %c0_52] : memref<42x1xf32, #tpu.memory_space<vmem>>, vector<42x1xf32>
    %63 = vector.broadcast %62 : vector<42x1xf32> to vector<42x1156xf32>
    %64 = arith.addf %61, %63 : vector<42x1156xf32>
    %65 = vector.extract_strided_slice %64 {offsets = [0, 0], sizes = [20, 1156], strides = [1, 1]} : vector<42x1156xf32> to vector<20x1156xf32>
    %66 = vector.extract_strided_slice %64 {offsets = [20, 0], sizes = [18, 1156], strides = [1, 1]} : vector<42x1156xf32> to vector<18x1156xf32>
    %67 = vector.extract_strided_slice %64 {offsets = [38, 0], sizes = [4, 1156], strides = [1, 1]} : vector<42x1156xf32> to vector<4x1156xf32>
    %68 = arith.negf %65 : vector<20x1156xf32>
    %69 = math.exp %68 : vector<20x1156xf32>
    %cst_53 = arith.constant 1.000000e+00 : f32
    %70 = vector.broadcast %cst_53 : f32 to vector<20x1156xf32>
    %71 = arith.addf %70, %69 : vector<20x1156xf32>
    %72 = arith.divf %70, %71 : vector<20x1156xf32>
    %73 = vector.extract_strided_slice %72 {offsets = [0, 0], sizes = [10, 1156], strides = [1, 1]} : vector<20x1156xf32> to vector<10x1156xf32>
    %cst_54 = arith.constant dense<0xFF800000> : vector<1156xf32>
    %74 = vector.multi_reduction <maximumf>, %73, %cst_54 [0] : vector<10x1156xf32> to vector<1156xf32>
    %75 = vector.shape_cast %74 : vector<1156xf32> to vector<1x1156xf32>
    %76 = vector.extract_strided_slice %72 {offsets = [10, 0], sizes = [10, 1156], strides = [1, 1]} : vector<20x1156xf32> to vector<10x1156xf32>
    %cst_55 = arith.constant dense<0xFF800000> : vector<1156xf32>
    %77 = vector.multi_reduction <maximumf>, %76, %cst_55 [0] : vector<10x1156xf32> to vector<1156xf32>
    %78 = vector.shape_cast %77 : vector<1156xf32> to vector<1x1156xf32>
    %79 = vector.extract_strided_slice %67 {offsets = [1, 0], sizes = [1, 1156], strides = [1, 1]} : vector<4x1156xf32> to vector<1x1156xf32>
    %80 = vector.extract_strided_slice %67 {offsets = [0, 0], sizes = [1, 1156], strides = [1, 1]} : vector<4x1156xf32> to vector<1x1156xf32>
    %81 = arith.cmpf ogt, %79, %80 : vector<1x1156xf32>
    %82 = arith.extui %81 : vector<1x1156xi1> to vector<1x1156xi32>
    %83 = arith.sitofp %82 : vector<1x1156xi32> to vector<1x1156xf32>
    %84 = vector.extract_strided_slice %67 {offsets = [3, 0], sizes = [1, 1156], strides = [1, 1]} : vector<4x1156xf32> to vector<1x1156xf32>
    %85 = vector.extract_strided_slice %67 {offsets = [2, 0], sizes = [1, 1156], strides = [1, 1]} : vector<4x1156xf32> to vector<1x1156xf32>
    %86 = arith.cmpf ogt, %84, %85 : vector<1x1156xf32>
    %87 = arith.extui %86 : vector<1x1156xi1> to vector<1x1156xi32>
    %88 = arith.sitofp %87 : vector<1x1156xi32> to vector<1x1156xf32>
    %c0_56 = arith.constant 0 : index
    %c0_57 = arith.constant 0 : index
    %89 = vector.load %arg8[%c0_56, %c0_57] : memref<48x1156xf32, #tpu.memory_space<vmem>>, vector<20x1156xf32>
    tpu.vector_store %arg8[%c0_56, %c0_57], %72 {strides = array<i32>} : memref<48x1156xf32, #tpu.memory_space<vmem>>, vector<20x1156xf32>,
    %c20 = arith.constant 20 : index
    %c0_58 = arith.constant 0 : index
    %90 = vector.load %arg8[%c20, %c0_58] : memref<48x1156xf32, #tpu.memory_space<vmem>>, vector<18x1156xf32>
    tpu.vector_store %arg8[%c20, %c0_58], %66 {strides = array<i32>} : memref<48x1156xf32, #tpu.memory_space<vmem>>, vector<18x1156xf32>,
    %c38 = arith.constant 38 : index
    %c0_59 = arith.constant 0 : index
    %91 = vector.load %arg8[%c38, %c0_59] : memref<48x1156xf32, #tpu.memory_space<vmem>>, vector<1x1156xf32>
    tpu.vector_store %arg8[%c38, %c0_59], %83 {strides = array<i32>} : memref<48x1156xf32, #tpu.memory_space<vmem>>, vector<1x1156xf32>,
    %c39 = arith.constant 39 : index
    %c0_60 = arith.constant 0 : index
    %92 = vector.load %arg8[%c39, %c0_60] : memref<48x1156xf32, #tpu.memory_space<vmem>>, vector<1x1156xf32>
    tpu.vector_store %arg8[%c39, %c0_60], %88 {strides = array<i32>} : memref<48x1156xf32, #tpu.memory_space<vmem>>, vector<1x1156xf32>,
    %c40 = arith.constant 40 : index
    %c0_61 = arith.constant 0 : index
    %93 = vector.load %arg8[%c40, %c0_61] : memref<48x1156xf32, #tpu.memory_space<vmem>>, vector<1x1156xf32>
    tpu.vector_store %arg8[%c40, %c0_61], %75 {strides = array<i32>} : memref<48x1156xf32, #tpu.memory_space<vmem>>, vector<1x1156xf32>,
    %c41 = arith.constant 41 : index
    %c0_62 = arith.constant 0 : index
    %94 = vector.load %arg8[%c41, %c0_62] : memref<48x1156xf32, #tpu.memory_space<vmem>>, vector<1x1156xf32>
    tpu.vector_store %arg8[%c41, %c0_62], %78 {strides = array<i32>} : memref<48x1156xf32, #tpu.memory_space<vmem>>, vector<1x1156xf32>,
    %cst_63 = arith.constant 0.000000e+00 : f32
    %95 = vector.broadcast %cst_63 : f32 to vector<6x1156xf32>
    %c42 = arith.constant 42 : index
    %c0_64 = arith.constant 0 : index
    %96 = vector.load %arg8[%c42, %c0_64] : memref<48x1156xf32, #tpu.memory_space<vmem>>, vector<6x1156xf32>
    tpu.vector_store %arg8[%c42, %c0_64], %95 {strides = array<i32>} : memref<48x1156xf32, #tpu.memory_space<vmem>>, vector<6x1156xf32>,
    return
  }
  func.func @transform_0(%arg0: i32) -> (i32, i32) {
    %c0_i32 = arith.constant 0 : i32
    %c0_i32_0 = arith.constant 0 : i32
    %c0_i32_1 = arith.constant 0 : i32
    return %c0_i32, %c0_i32_0 : i32, i32
  }
  func.func @transform_1(%arg0: i32) -> (i32, i32, i32) {
    %c0_i32 = arith.constant 0 : i32
    %c0_i32_0 = arith.constant 0 : i32
    %c0_i32_1 = arith.constant 0 : i32
    %c0_i32_2 = arith.constant 0 : i32
    return %c0_i32, %c0_i32_0, %c0_i32_1 : i32, i32, i32
  }
  func.func @transform_2(%arg0: i32) -> (i32, i32) {
    %c0_i32 = arith.constant 0 : i32
    %c0_i32_0 = arith.constant 0 : i32
    %c0_i32_1 = arith.constant 0 : i32
    return %c0_i32, %c0_i32_0 : i32, i32
  }
  func.func @transform_3(%arg0: i32) -> (i32, i32) {
    %c0_i32 = arith.constant 0 : i32
    %c0_i32_0 = arith.constant 0 : i32
    %c0_i32_1 = arith.constant 0 : i32
    return %c0_i32, %c0_i32_0 : i32, i32
  }
  func.func @transform_4(%arg0: i32) -> (i32, i32) {
    %c0_i32 = arith.constant 0 : i32
    %c0_i32_0 = arith.constant 0 : i32
    %c0_i32_1 = arith.constant 0 : i32
    return %c0_i32, %c0_i32_0 : i32, i32
  }
  func.func @transform_5(%arg0: i32) -> (i32, i32) {
    %c0_i32 = arith.constant 0 : i32
    %c0_i32_0 = arith.constant 0 : i32
    %c0_i32_1 = arith.constant 0 : i32
    return %c0_i32, %c0_i32_0 : i32, i32
  }
  func.func @transform_6(%arg0: i32) -> (i32, i32) {
    %c0_i32 = arith.constant 0 : i32
    %c0_i32_0 = arith.constant 0 : i32
    %c0_i32_1 = arith.constant 0 : i32
    return %c0_i32, %c0_i32_0 : i32, i32
  }
  func.func @transform_7(%arg0: i32) -> (i32, i32) {
    %c0_i32 = arith.constant 0 : i32
    %c0_i32_0 = arith.constant 0 : i32
    %c0_i32_1 = arith.constant 0 : i32
    return %c0_i32, %c0_i32_0 : i32, i32
  }
}

</mosaic_0001>

<bundles_post_ra>
// kernel: backbone_forward.1
= control target key start
LH: loop header
LB: loop body
LE: loop exit
PB: predicated region body
PF: predicated region fallthrough
CT: control target
= control target key end

     0   :  { %s7910_s28 = smov 127   ;;  %v13047_v6 = vmov 0   ;;  %s7912_s10 = smov 126   ;;  %vm184_vm0 = vcmask 1039360   ;;  %vm226_vm1 = vcmask 1042432   ;;  %vm213_vm2 = vcmask 179200   ;;  %s13039_s0 = inlined_call_operand.vmem [shape: bf16[22,1226], index: 0, kind: input, shape index: {}]   ;;  %s13040_s1 = inlined_call_operand.vmem [shape: bf16[9,64,22], index: 1, kind: input, shape index: {}]   ;;  %s13041_s2 = inlined_call_operand.vmem [shape: f32[64,1], index: 2, kind: input, shape index: {}]   ;;  %s13042_s4 = inlined_call_operand.vmem [shape: f32[64,1], index: 4, kind: input, shape index: {}]   ;;  %s13043_s6 = inlined_call_operand.vmem [shape: f32[42,1], index: 6, kind: input, shape index: {}]   ;;  %s13044_s3 = inlined_call_operand.vmem [shape: bf16[64,64], index: 3, kind: input, shape index: {}]   ;;  %s13045_s5 = inlined_call_operand.vmem [shape: bf16[42,64], index: 5, kind: input, shape index: {}]   ;;  %s13046_s7 = inlined_call_operand.vmem [shape: f32[48,1156], index: 7, kind: output, shape index: {}]  }
   0x1   :  { %v38_v0 = vld [vmem:[%s13039_s0 + $0x58] sm:$0x77]  ;;  %v37_v1 = vld [vmem:[%s13039_s0 + $0x50] sm:$0x77]  ;;  %v7980_v5 = vld [vmem:[%s13039_s0 + $0x4] ss:$40 sps:$4 sm:$0xff]   ;;  %289 = vmatprep.mubr.bf16.mxu0 %v13047_v6  ;;  %319 = vmatprep.mubr.bf16.mxu1 %v13047_v6 }
   0x2   :  { %v7967_v2 = vcombine.low %v38_v0, %v38_v0  ;;  %v7969_v3 = vcombine.low %v37_v1, %v37_v1  ;;  %v7975_v4 = vcombine.high %v37_v1, %v37_v1  ;;  %7711 = vset.pattern.permute.xlu1 %v13047_v6  ;;  %7710 = vset.pattern.permute.xlu0 %v13047_v6  ;;  %v7989_v7 = vld [vmem:[%s13039_s0 + $0x8] ss:$40 sps:$4 sm:$0xff]   ;;  %v39_v9 = vld [vmem:[%s13039_s0 + $0x60] sm:$0x77]  ;;  %v8014_v12 = vld [vmem:[%s13039_s0 + $0xc] ss:$40 sps:$4 sm:$0xff]  }
   0x3   :  { %v7998_v8 = vld [vmem:[%s13039_s0] ss:$40 sps:$4 sm:$0xff]   ;;  %v8007_v10 = vcombine.high %v38_v0, %v38_v0  ;;  %v8009_v11 = vcombine.low %v39_v9, %v39_v9  ;;  %v8019_v13 = vld [vmem:[%s13039_s0 + $0x10] ss:$40 sps:$4 sm:$0xff]   ;;  %v8032_v15 = vcombine.high %v39_v9, %v39_v9  ;;  %v8039_v17 = vld [vmem:[%s13039_s0 + $0x14] ss:$40 sps:$4 sm:$0xff]  }
   0x4   :  { %168 = vrot.lane.b32.xlu1 %v7967_v2, %s7910_s28  ;;  %164 = vrot.lane.b32.xlu0 %v7969_v3, %s7910_s28  ;;  %v40_v14 = vld [vmem:[%s13039_s0 + $0x68] sm:$0x77]  ;;  %v8044_v18 = vld [vmem:[%s13039_s0 + $0x18] ss:$40 sps:$4 sm:$0xff]   ;;  %s7914_s19 = smov 93   ;;  %vm1128_vm3 = vcmask 1031168  }
   0x5   :  { %v8034_v16 = vcombine.low %v40_v14, %v40_v14  ;;  %v41_v19 = vld [vmem:[%s13039_s0 + $0x70] sm:$0x77]  ;;  %v8057_v20 = vcombine.high %v40_v14, %v40_v14  ;;  %v8064_v22 = vld [vmem:[%s13039_s0 + $0x1c] ss:$40 sps:$4 sm:$0xff]   ;;  %v8069_v23 = vld [vmem:[%s13039_s0 + $0x20] ss:$40 sps:$4 sm:$0xff]  }
   0x6   :  { %v8059_v21 = vcombine.low %v41_v19, %v41_v19  ;;  %v8078_v24 = vld [vmem:[%s13039_s0 + $0x24] ss:$40 sps:$4 sm:$0xff]   ;;  %v8084_v25 = vcombine.high %v41_v19, %v41_v19  ;;  %v8161_v38 = vld [vmem:[%s13040_s1 + $0x38] sm:$0xff]   ;;  %v8197_v58 = vld [vmem:[%s13040_s1 + $0x30] sm:$0xff]   ;;  %s7915_s29 = smov 92   ;;  %vm1713_vm4 = vcmask 769024  }
   0x7   :  { %13059 = vst [vmem:[#allocation2_spill] sm:$0xff] %v8034_v16  ;;  %13060 = vst [vmem:[#allocation3_spill] sm:$0xff] %v8057_v20  ;;  %v8156_v37 = vld [vmem:[%s13040_s1 + $0x20] sm:$0xff]   ;;  %v8180_v48 = vld [vmem:[%s13040_s1 + $0x28] sm:$0xff]   ;;  %s7916_s14 = smov 60   ;;  %vm2298_vm5 = vcmask 760832  }
   0x8   :  { %166 = vrot.lane.b32.xlu0 %v7975_v4, %s7910_s28  ;;  %146 = vrot.lane.b32.xlu1 %v7980_v5, %s7910_s28  ;;  %13061 = vst [vmem:[#allocation4_spill] sm:$0xff] %v8059_v21  ;;  %13062 = vst [vmem:[#allocation5_spill] sm:$0xff] %v8084_v25  ;;  %s7917_s23 = smov 59   ;;  %vm2883_vm6 = vcmask 752640   ;;  %vm3468_vm7 = vcmask 490496   ;;  %vm4053_vm8 = vcmask 482304  }
   0x9   :  { %vm4638_vm9 = vcmask 474112   ;;  %vm5478_vm10 = vcmask 523264   ;;  %vm6704_vm11 = vcmask 31746  }
   0xc   :  { %148 = vrot.lane.b32.xlu0 %v7989_v7, %s7910_s28  ;;  %144 = vrot.lane.b32.xlu1 %v7998_v8, %s7910_s28 }
  0x10   :  { %170 = vrot.lane.b32.xlu0 %v8007_v10, %s7910_s28  ;;  %172 = vrot.lane.b32.xlu1 %v8009_v11, %s7910_s28 }
  0x14   :  { %150 = vrot.lane.b32.xlu0 %v8014_v12, %s7910_s28  ;;  %152 = vrot.lane.b32.xlu1 %v8019_v13, %s7910_s28 }
  0x18   :  { %174 = vrot.lane.b32.xlu0 %v8032_v15, %s7910_s28  ;;  %176 = vrot.lane.b32.xlu1 %v8034_v16, %s7910_s28 }
  0x1c   :  { %154 = vrot.lane.b32.xlu0 %v8039_v17, %s7910_s28  ;;  %156 = vrot.lane.b32.xlu1 %v8044_v18, %s7910_s28 }
  0x20   :  { %178 = vrot.lane.b32.xlu0 %v8057_v20, %s7910_s28  ;;  %180 = vrot.lane.b32.xlu1 %v8059_v21, %s7910_s28 }
  0x24   :  { %158 = vrot.lane.b32.xlu0 %v8064_v22, %s7910_s28  ;;  %160 = vrot.lane.b32.xlu1 %v8069_v23, %s7910_s28 }
  0x28   :  { %182 = vrot.lane.b32.xlu0 %v8084_v25, %s7910_s28  ;;  %162 = vrot.lane.b32.xlu1 %v8078_v24, %s7910_s28  ;;  %s7913_s28 = smov 94  }
  0x2c   :  { %1108 = vrot.lane.b32.xlu0 %v7969_v3, %s7912_s10  ;;  %1110 = vrot.lane.b32.xlu1 %v7975_v4, %s7912_s10 }
  0x30   :  { %1112 = vrot.lane.b32.xlu0 %v7967_v2, %s7912_s10  ;;  %1090 = vrot.lane.b32.xlu1 %v7980_v5, %s7912_s10 }
  0x34   :  { %1092 = vrot.lane.b32.xlu0 %v7989_v7, %s7912_s10  ;;  %1088 = vrot.lane.b32.xlu1 %v7998_v8, %s7912_s10 }
  0x38   :  { %1114 = vrot.lane.b32.xlu0 %v8007_v10, %s7912_s10  ;;  %1116 = vrot.lane.b32.xlu1 %v8009_v11, %s7912_s10 }
  0x3c   :  { %1094 = vrot.lane.b32.xlu0 %v8014_v12, %s7912_s10  ;;  %1096 = vrot.lane.b32.xlu1 %v8019_v13, %s7912_s10 }
  0x40   :  { %1118 = vrot.lane.b32.xlu0 %v8032_v15, %s7912_s10  ;;  %1120 = vrot.lane.b32.xlu1 %v8034_v16, %s7912_s10 }
  0x44   :  { %1098 = vrot.lane.b32.xlu0 %v8039_v17, %s7912_s10  ;;  %1100 = vrot.lane.b32.xlu1 %v8044_v18, %s7912_s10 }
  0x48   :  { %1122 = vrot.lane.b32.xlu0 %v8057_v20, %s7912_s10  ;;  %1124 = vrot.lane.b32.xlu1 %v8059_v21, %s7912_s10 }
  0x4c   :  { %1102 = vrot.lane.b32.xlu0 %v8064_v22, %s7912_s10  ;;  %1104 = vrot.lane.b32.xlu1 %v8069_v23, %s7912_s10 }
  0x50   :  { %1126 = vrot.lane.b32.xlu0 %v8084_v25, %s7912_s10  ;;  %1106 = vrot.lane.b32.xlu1 %v8078_v24, %s7912_s10 }
  0x54   :  { %1693 = vrot.lane.b32.xlu0 %v7969_v3, %s7913_s28  ;;  %1695 = vrot.lane.b32.xlu1 %v7975_v4, %s7913_s28 }
  0x58   :  { %1697 = vrot.lane.b32.xlu0 %v7967_v2, %s7913_s28  ;;  %1675 = vrot.lane.b32.xlu1 %v7980_v5, %s7913_s28 }
  0x5c   :  { %1677 = vrot.lane.b32.xlu0 %v7989_v7, %s7913_s28  ;;  %1699 = vrot.lane.b32.xlu1 %v8007_v10, %s7913_s28 }
  0x60   :  { %1701 = vrot.lane.b32.xlu0 %v8009_v11, %s7913_s28  ;;  %1673 = vrot.lane.b32.xlu1 %v7998_v8, %s7913_s28 }
  0x64   :  { %1679 = vrot.lane.b32.xlu0 %v8014_v12, %s7913_s28  ;;  %1681 = vrot.lane.b32.xlu1 %v8019_v13, %s7913_s28 }
  0x68   :  { %1703 = vrot.lane.b32.xlu0 %v8032_v15, %s7913_s28  ;;  %1705 = vrot.lane.b32.xlu1 %v8034_v16, %s7913_s28 }
  0x6c   :  { %1683 = vrot.lane.b32.xlu0 %v8039_v17, %s7913_s28  ;;  %1685 = vrot.lane.b32.xlu1 %v8044_v18, %s7913_s28 }
  0x70   :  { %1707 = vrot.lane.b32.xlu0 %v8057_v20, %s7913_s28  ;;  %1709 = vrot.lane.b32.xlu1 %v8059_v21, %s7913_s28 }
  0x74   :  { %1687 = vrot.lane.b32.xlu0 %v8064_v22, %s7913_s28  ;;  %1689 = vrot.lane.b32.xlu1 %v8069_v23, %s7913_s28 }
  0x76   :  { %v169_v26 = vpop.permute.xlu1 %168  ;;  %v165_v27 = vpop.permute.xlu0 %164 }
  0x78   :  { %1711 = vrot.lane.b32.xlu0 %v8084_v25, %s7913_s28  ;;  %2278 = vrot.lane.b32.xlu1 %v7969_v3, %s7914_s19 }
  0x7a   :  { %v167_v28 = vpop.permute.xlu0 %166  ;;  %v147_v29 = vpop.permute.xlu1 %146 }
  0x7b   :  { %v195_v30 = vsel %vm184_vm0, %v167_v28, %v169_v26  ;;  %v194_v31 = vsel %vm184_vm0, %v165_v27, %v167_v28 }
  0x7c   :  { %7278 = vmatprep.subr.msk.bf16.mxu0 %vm226_vm1, %v195_v30  ;;  %7695 = vmatprep.subr.msk.bf16.mxu1 %vm226_vm1, %v195_v30  ;;  %v228_v32 = vsel %vm226_vm1, %v194_v31, 0  ;;  %v665_v30 = vsel %vm226_vm1, %v7969_v3, 0  ;;  %v671_v31 = vsel %vm226_vm1, %v7967_v2, 0 }
  0x7d   :  { %270 = vmatpush1.bf16.msra.mxu0 %v228_v32  ;;  %7697 = vmatpush1.bf16.msra.mxu1 %v228_v32  ;;  %v8312_v32 = vld [vmem:[%s13040_s1] sm:$0xff]  }
  0x7e   :  { %v149_v33 = vpop.permute.xlu0 %148  ;;  %v145_v34 = vpop.permute.xlu1 %144  ;;  %2280 = vrot.lane.b32.xlu0 %v7975_v4, %s7914_s19  ;;  %2282 = vrot.lane.b32.xlu1 %v7967_v2, %s7914_s19 }
  0x7f   :  { %v186_v35 = vsel %vm184_vm0, %v147_v29, %v149_v33  ;;  %v185_v36 = vsel %vm184_vm0, %v145_v34, %v147_v29  ;;  %v8326_v34 = vld [vmem:[%s13040_s1 + $0x8] sm:$0xff]  }
  0x80   :  { %271 = vmatprep.subr.bf16.mxu0 %v186_v35  ;;  %7696 = vmatprep.subr.bf16.mxu1 %v186_v35  ;;  %v8340_v35 = vld [vmem:[%s13040_s1 + $0x10] sm:$0xff]  }
  0x81   :  { %272 = vmatpush1.bf16.msra.mxu0 %v185_v36  ;;  %7698 = vmatpush1.bf16.msra.mxu1 %v185_v36 }
  0x82   :  { %v171_v39 = vpop.permute.xlu0 %170  ;;  %v173_v40 = vpop.permute.xlu1 %172  ;;  %1691 = vrot.lane.b32.xlu0 %v8078_v24, %s7913_s28  ;;  %2260 = vrot.lane.b32.xlu1 %v7980_v5, %s7914_s19 }
  0x83   :  { %v196_v41 = vsel %vm184_vm0, %v169_v26, %v171_v39  ;;  %v197_v42 = vsel %vm184_vm0, %v171_v39, %v173_v40 }
  0x84   :  { %7279 = vmatmul.mubr.msk.bf16.vlgmr.msra.gmra.mxu0 %vm213_vm2, %v8156_v37  ;;  %7282 = vmatmul.mubr.msk.bf16.vlgmr.msra.gmra.mxu1 %vm213_vm2, %v8161_v38  ;;  %v234_v43 = vsel %vm226_vm1, %v196_v41, 0  ;;  %v8355_v41 = vld [vmem:[%s13040_s1 + $0x18] sm:$0xff]  }
  0x85   :  { %7283 = vmatprep.subr.msk.bf16.mxu1 %vm226_vm1, %v197_v42  ;;  %299 = vmatprep.mubr.bf16.mxu0 %v13047_v6 }
  0x86   :  { %343 = vmatpush1.bf16.msra.mxu1 %v234_v43  ;;  %v151_v44 = vpop.permute.xlu0 %150  ;;  %v153_v45 = vpop.permute.xlu1 %152  ;;  %362 = vmatprep.mubr.bf16.mxu1 %v13047_v6 }
  0x87   :  { %v188_v46 = vsel %vm184_vm0, %v151_v44, %v153_v45  ;;  %v187_v47 = vsel %vm184_vm0, %v149_v33, %v151_v44  ;;  %2262 = vrot.lane.b32.xlu0 %v7989_v7, %s7914_s19  ;;  %2258 = vrot.lane.b32.xlu1 %v7998_v8, %s7914_s19  ;;  %v677_v33 = vsel %vm226_vm1, %v8009_v11, 0 }
  0x88   :  { %344 = vmatprep.subr.bf16.mxu1 %v188_v46 }
  0x8a   :  { %345 = vmatpush1.bf16.msra.mxu1 %v187_v47  ;;  %v175_v49 = vpop.permute.xlu0 %174  ;;  %v177_v50 = vpop.permute.xlu1 %176 }
  0x8b   :  { %v198_v51 = vsel %vm184_vm0, %v173_v40, %v175_v49  ;;  %v199_v52 = vsel %vm184_vm0, %v175_v49, %v177_v50  ;;  %2284 = vrot.lane.b32.xlu0 %v8007_v10, %s7914_s19  ;;  %2286 = vrot.lane.b32.xlu1 %v8009_v11, %s7914_s19 }
  0x8c   :  { %7280 = vmatmul.mubr.msk.bf16.gmra.mxu0 %vm213_vm2, %v8180_v48  ;;  %7288 = vmatprep.subr.msk.bf16.mxu0 %vm226_vm1, %v199_v52  ;;  %v240_v53 = vsel %vm226_vm1, %v198_v51, 0 }
  0x8d   :  { %7284 = vmatmul.mubr.msk.bf16.vlgmr.msra.gmra.mxu1 %vm213_vm2, %v8156_v37  ;;  %416 = vmatpush1.bf16.msra.mxu0 %v240_v53 }
  0x8e   :  { %v155_v54 = vpop.permute.xlu0 %154  ;;  %v157_v55 = vpop.permute.xlu1 %156  ;;  %309 = vmatprep.mubr.bf16.mxu0 %v13047_v6  ;;  %372 = vmatprep.mubr.bf16.mxu1 %v13047_v6 }
  0x8f   :  { %v190_v56 = vsel %vm184_vm0, %v155_v54, %v157_v55  ;;  %v189_v57 = vsel %vm184_vm0, %v153_v45, %v155_v54  ;;  %2264 = vrot.lane.b32.xlu0 %v8014_v12, %s7914_s19  ;;  %2266 = vrot.lane.b32.xlu1 %v8019_v13, %s7914_s19  ;;  %v689_v45 = vsel %vm226_vm1, %v8059_v21, 0 }
  0x90   :  { %417 = vmatprep.subr.bf16.mxu0 %v190_v56 }
  0x91   :  { %418 = vmatpush1.bf16.msra.mxu0 %v189_v57 }
  0x92   :  { %v179_v59 = vpop.permute.xlu0 %178  ;;  %v181_v60 = vpop.permute.xlu1 %180 }
  0x93   :  { %v200_v61 = vsel %vm184_vm0, %v177_v50, %v179_v59  ;;  %v201_v62 = vsel %vm184_vm0, %v179_v59, %v181_v60  ;;  %2288 = vrot.lane.b32.xlu0 %v8032_v15, %s7914_s19  ;;  %2290 = vrot.lane.b32.xlu1 %v8034_v16, %s7914_s19 }
  0x94   :  { %7281 = vmatmul.mubr.msk.bf16.gmra.mxu0 %vm213_vm2, %v8197_v58  ;;  %7293 = vmatprep.subr.msk.bf16.mxu1 %vm226_vm1, %v201_v62  ;;  %v246_v63 = vsel %vm226_vm1, %v200_v61, 0 }
  0x95   :  { %7285 = vmatmul.mubr.msk.bf16.gmra.mxu1 %vm213_vm2, %v8180_v48  ;;  %435 = vmatprep.mubr.bf16.mxu0 %v13047_v6 }
  0x96   :  { %489 = vmatpush1.bf16.msra.mxu1 %v246_v63  ;;  %v159_v0 = vpop.permute.xlu0 %158  ;;  %v161_v1 = vpop.permute.xlu1 %160  ;;  %382 = vmatprep.mubr.bf16.mxu1 %v13047_v6 }
  0x97   :  { %v192_v9 = vsel %vm184_vm0, %v159_v0, %v161_v1  ;;  %v191_v14 = vsel %vm184_vm0, %v157_v55, %v159_v0  ;;  %2268 = vrot.lane.b32.xlu0 %v8039_v17, %s7914_s19  ;;  %2270 = vrot.lane.b32.xlu1 %v8044_v18, %s7914_s19 }
  0x98   :  { %490 = vmatprep.subr.bf16.mxu1 %v192_v9 }
  0x9a   :  { %491 = vmatpush1.bf16.msra.mxu1 %v191_v14  ;;  %v183_v19 = vpop.permute.xlu0 %182  ;;  %v163_v28 = vpop.permute.xlu1 %162  ;;  %v8456_v14 = vld [vmem:[%s13040_s1 + $0x40] sm:$0xff]  }
  0x9b   :  { %v202_v26 = vsel %vm184_vm0, %v181_v60, %v183_v19  ;;  %7298 = vmatprep.subr.msk.bf16.mxu0 %vm226_vm1, %v183_v19  ;;  %7307 = vmatprep.subr.msk.bf16.mxu1 %vm226_vm1, %v7975_v4  ;;  %v193_v29 = vsel %vm184_vm0, %v161_v1, %v163_v28  ;;  %vm6537_vm0 = vcmask 1041408  }
  0x9c   :  { %7289 = vmatmul.mubr.msk.bf16.vlgmr.msra.gmra.mxu0 %vm213_vm2, %v8156_v37  ;;  %v252_v27 = vsel %vm226_vm1, %v202_v26, 0  ;;  %2292 = vrot.lane.b32.xlu0 %v8057_v20, %s7914_s19 }
  0x9d   :  { %7286 = vmatmul.mubr.msk.bf16.gmra.mxu1 %vm213_vm2, %v8197_v58  ;;  %445 = vmatprep.mubr.bf16.mxu0 %v13047_v6 }
  0x9e   :  { %392 = vmatprep.mubr.bf16.mxu1 %v13047_v6  ;;  %562 = vmatpush1.bf16.msra.mxu0 %v252_v27  ;;  %v1109_v36 = vpop.permute.xlu0 %1108  ;;  %v1111_v39 = vpop.permute.xlu1 %1110 }
  0x9f   :  { %563 = vmatprep.subr.bf16.mxu0 %v163_v28  ;;  %2294 = vrot.lane.b32.xlu1 %v8059_v21, %s7914_s19  ;;  %v1138_v49 = vsel %vm1128_vm3, %v1109_v36, %v1111_v39 }
  0xa0   :  { %2272 = vrot.lane.b32.xlu0 %v8064_v22, %s7914_s19  ;;  %v1170_v52 = vsel %vm226_vm1, %v1138_v49, 0 }
  0xa2   :  { %564 = vmatpush1.bf16.msra.mxu0 %v193_v29  ;;  %v1091_v42 = vpop.permute.xlu1 %1090 }
  0xa3   :  { %7312 = vmatprep.subr.msk.bf16.mxu0 %vm226_vm1, %v8007_v10  ;;  %2274 = vrot.lane.b32.xlu1 %v8069_v23, %s7914_s19 }
  0xa4   :  { %7290 = vmatmul.mubr.msk.bf16.gmra.mxu0 %vm213_vm2, %v8180_v48  ;;  %2296 = vrot.lane.b32.xlu0 %v8084_v25, %s7914_s19 }
  0xa5   :  { %7287 = vmatmul.mubr.msk.bf16.gmra.mxu1 %vm213_vm2, %v8161_v38  ;;  %455 = vmatprep.mubr.bf16.mxu0 %v13047_v6 }
  0xa6   :  { %508 = vmatprep.mubr.bf16.mxu1 %v13047_v6  ;;  %v1089_v44 = vpop.permute.xlu1 %1088 }
  0xa7   :  { %2276 = vrot.lane.b32.xlu1 %v8078_v24, %s7914_s19  ;;  %v1129_v56 = vsel %vm1128_vm3, %v1089_v44, %v1091_v42 }
  0xa8   :  { %2863 = vrot.lane.b32.xlu0 %v7969_v3, %s7915_s29 }
  0xaa   :  { %v8372_v47 = vpop.permute.xlu1 %1116 }
  0xab   :  { %2865 = vrot.lane.b32.xlu1 %v7975_v4, %s7915_s29 }
  0xac   :  { %7291 = vmatmul.mubr.msk.bf16.gmra.mxu0 %vm213_vm2, %v8197_v58  ;;  %2867 = vrot.lane.b32.xlu0 %v7967_v2, %s7915_s29 }
  0xad   :  { %7294 = vmatmul.mubr.msk.bf16.vlgmr.msra.gmra.mxu1 %vm213_vm2, %v8156_v37  ;;  %465 = vmatprep.mubr.bf16.mxu0 %v13047_v6 }
  0xae   :  { %518 = vmatprep.mubr.bf16.mxu1 %v13047_v6  ;;  %707 = vmatpush1.bf16.msra.mxu1 %v665_v30  ;;  %v8387_v51 = vpop.permute.xlu1 %1096  ;;  %v8482_v30 = vld [vmem:[%s13040_s1 + $0x48] sm:$0xff]  }
  0xaf   :  { %708 = vmatprep.subr.bf16.mxu1 %v7980_v5  ;;  %2845 = vrot.lane.b32.xlu1 %v7980_v5, %s7915_s29 }
  0xb0   :  { %2847 = vrot.lane.b32.xlu0 %v7989_v7, %s7915_s29 }
  0xb2   :  { %709 = vmatpush1.bf16.msra.mxu1 %v7998_v8  ;;  %v8396_v55 = vpop.permute.xlu1 %1120 }
  0xb3   :  { %7317 = vmatprep.subr.msk.bf16.mxu1 %vm226_vm1, %v8032_v15  ;;  %2869 = vrot.lane.b32.xlu1 %v8007_v10, %s7915_s29 }
  0xb4   :  { %7292 = vmatmul.mubr.msk.bf16.gmra.mxu0 %vm213_vm2, %v8161_v38  ;;  %2871 = vrot.lane.b32.xlu0 %v8009_v11, %s7915_s29 }
  0xb5   :  { %7295 = vmatmul.mubr.msk.bf16.gmra.mxu1 %vm213_vm2, %v8180_v48  ;;  %581 = vmatprep.mubr.bf16.mxu0 %v13047_v6 }
  0xb6   :  { %528 = vmatprep.mubr.bf16.mxu1 %v13047_v6  ;;  %v8413_v59 = vpop.permute.xlu1 %1100 }
  0xb7   :  { %2843 = vrot.lane.b32.xlu1 %v7998_v8, %s7915_s29 }
  0xb8   :  { %2849 = vrot.lane.b32.xlu0 %v8014_v12, %s7915_s29 }
  0xba   :  { %v8430_v0 = vpop.permute.xlu1 %1124 }
  0xbb   :  { %2851 = vrot.lane.b32.xlu1 %v8019_v13, %s7915_s29 }
  0xbc   :  { %7299 = vmatmul.mubr.msk.bf16.vlgmr.msra.gmra.mxu0 %vm213_vm2, %v8156_v37  ;;  %v683_v37 = vsel %vm226_vm1, %v8034_v16, 0  ;;  %2873 = vrot.lane.b32.xlu0 %v8032_v15, %s7915_s29 }
  0xbd   :  { %7296 = vmatmul.mubr.msk.bf16.gmra.mxu1 %vm213_vm2, %v8197_v58  ;;  %591 = vmatprep.mubr.bf16.mxu0 %v13047_v6 }
  0xbe   :  { %538 = vmatprep.mubr.bf16.mxu1 %v13047_v6  ;;  %780 = vmatpush1.bf16.msra.mxu0 %v671_v31 }
  0xbf   :  { %781 = vmatprep.subr.bf16.mxu0 %v8014_v12  ;;  %2875 = vrot.lane.b32.xlu1 %v8034_v16, %s7915_s29 }
  0xc0   :  { %2853 = vrot.lane.b32.xlu0 %v8039_v17, %s7915_s29 }
  0xc2   :  { %782 = vmatpush1.bf16.msra.mxu0 %v7989_v7 }
  0xc3   :  { %7322 = vmatprep.subr.msk.bf16.mxu0 %vm226_vm1, %v8057_v20  ;;  %2855 = vrot.lane.b32.xlu1 %v8044_v18, %s7915_s29 }
  0xc4   :  { %7300 = vmatmul.mubr.msk.bf16.gmra.mxu0 %vm213_vm2, %v8180_v48  ;;  %2877 = vrot.lane.b32.xlu0 %v8057_v20, %s7915_s29 }
  0xc5   :  { %7297 = vmatmul.mubr.msk.bf16.gmra.mxu1 %vm213_vm2, %v8161_v38  ;;  %601 = vmatprep.mubr.bf16.mxu0 %v13047_v6 }
  0xc6   :  { %726 = vmatprep.mubr.bf16.mxu1 %v13047_v6 }
  0xc7   :  { %2879 = vrot.lane.b32.xlu1 %v8059_v21, %s7915_s29 }
  0xc8   :  { %2857 = vrot.lane.b32.xlu0 %v8064_v22, %s7915_s29 }
  0xcb   :  { %2859 = vrot.lane.b32.xlu1 %v8069_v23, %s7915_s29 }
  0xcc   :  { %7301 = vmatmul.mubr.msk.bf16.gmra.mxu0 %vm213_vm2, %v8197_v58  ;;  %2881 = vrot.lane.b32.xlu0 %v8084_v25, %s7915_s29 }
  0xcd   :  { %7308 = vmatmul.mubr.msk.bf16.vlgmr.msra.gmra.mxu1 %vm213_vm2, %v8312_v32  ;;  %611 = vmatprep.mubr.bf16.mxu0 %v13047_v6 }
  0xce   :  { %736 = vmatprep.mubr.bf16.mxu1 %v13047_v6  ;;  %853 = vmatpush1.bf16.msra.mxu1 %v677_v33 }
  0xcf   :  { %854 = vmatprep.subr.bf16.mxu1 %v8039_v17  ;;  %3448 = vrot.lane.b32.xlu1 %v7969_v3, %s7916_s14 }
  0xd0   :  { %3450 = vrot.lane.b32.xlu0 %v7975_v4, %s7916_s14 }
  0xd2   :  { %855 = vmatpush1.bf16.msra.mxu1 %v8019_v13 }
  0xd3   :  { %7327 = vmatprep.subr.msk.bf16.mxu1 %vm226_vm1, %v8084_v25  ;;  %3452 = vrot.lane.b32.xlu1 %v7967_v2, %s7916_s14 }
  0xd4   :  { %7302 = vmatmul.mubr.msk.bf16.gmra.mxu0 %vm213_vm2, %v8161_v38  ;;  %v1113_v38 = vpop.permute.xlu0 %1112  ;;  %2861 = vrot.lane.b32.xlu0 %v8078_v24, %s7915_s29  ;;  %s7918_s29 = smov 58  }
  0xd5   :  { %7309 = vmatmul.mubr.msk.bf16.gmra.mxu1 %vm213_vm2, %v8326_v34  ;;  %799 = vmatprep.mubr.bf16.mxu0 %v13047_v6  ;;  %v1139_v40 = vsel %vm1128_vm3, %v1111_v39, %v1113_v38 }
  0xd6   :  { %746 = vmatprep.mubr.bf16.mxu1 %v13047_v6 }
  0xd7   :  { %3430 = vrot.lane.b32.xlu1 %v7980_v5, %s7916_s14 }
  0xd8   :  { %v1093_v43 = vpop.permute.xlu0 %1092  ;;  %3432 = vrot.lane.b32.xlu0 %v7989_v7, %s7916_s14 }
  0xd9   :  { %v1130_v53 = vsel %vm1128_vm3, %v1091_v42, %v1093_v43  ;;  %v8523_v42 = vld [vmem:[%s13040_s1 + $0x58] sm:$0xff]  }
  0xdb   :  { %3428 = vrot.lane.b32.xlu1 %v7998_v8, %s7916_s14 }
  0xdc   :  { %7313 = vmatmul.mubr.msk.bf16.vlgmr.msra.gmra.mxu0 %vm213_vm2, %v8312_v32  ;;  %v1115_v46 = vpop.permute.xlu0 %1114  ;;  %3454 = vrot.lane.b32.xlu0 %v8007_v10, %s7916_s14 }
  0xdd   :  { %7310 = vmatmul.mubr.msk.bf16.gmra.mxu1 %vm213_vm2, %v8340_v35  ;;  %809 = vmatprep.mubr.bf16.mxu0 %v13047_v6  ;;  %v1141_v48 = vsel %vm1128_vm3, %v1115_v46, %v8372_v47  ;;  %v1140_v60 = vsel %vm1128_vm3, %v1113_v38, %v1115_v46 }
  0xde   :  { %756 = vmatprep.mubr.bf16.mxu1 %v13047_v6  ;;  %926 = vmatpush1.bf16.msra.mxu0 %v683_v37  ;;  %v1176_v61 = vsel %vm226_vm1, %v1140_v60, 0 }
  0xdf   :  { %927 = vmatprep.subr.bf16.mxu0 %v8064_v22  ;;  %3456 = vrot.lane.b32.xlu1 %v8009_v11, %s7916_s14 }
  0xe0   :  { %v1095_v50 = vpop.permute.xlu0 %1094  ;;  %3434 = vrot.lane.b32.xlu0 %v8014_v12, %s7916_s14 }
  0xe1   :  { %v1132_v62 = vsel %vm1128_vm3, %v1095_v50, %v8387_v51  ;;  %v1131_v1 = vsel %vm1128_vm3, %v1093_v43, %v1095_v50 }
  0xe2   :  { %928 = vmatpush1.bf16.msra.mxu0 %v8044_v18 }
  0xe3   :  { %7344 = vmatprep.subr.msk.bf16.mxu0 %vm226_vm1, %v1139_v40  ;;  %3436 = vrot.lane.b32.xlu1 %v8019_v13, %s7916_s14 }
  0xe4   :  { %7314 = vmatmul.mubr.msk.bf16.gmra.mxu0 %vm213_vm2, %v8326_v34  ;;  %v1119_v54 = vpop.permute.xlu0 %1118  ;;  %3458 = vrot.lane.b32.xlu0 %v8032_v15, %s7916_s14 }
  0xe5   :  { %7311 = vmatmul.mubr.msk.bf16.gmra.mxu1 %vm213_vm2, %v8355_v41  ;;  %819 = vmatprep.mubr.bf16.mxu0 %v13047_v6  ;;  %v1143_v57 = vsel %vm1128_vm3, %v1119_v54, %v8396_v55  ;;  %v1142_v19 = vsel %vm1128_vm3, %v8372_v47, %v1119_v54 }
  0xe6   :  { %872 = vmatprep.mubr.bf16.mxu1 %v13047_v6  ;;  %v1182_v26 = vsel %vm226_vm1, %v1142_v19, 0 }
  0xe7   :  { %3460 = vrot.lane.b32.xlu1 %v8034_v16, %s7916_s14 }
  0xe8   :  { %v1099_v58 = vpop.permute.xlu0 %1098  ;;  %3438 = vrot.lane.b32.xlu0 %v8039_v17, %s7916_s14 }
  0xe9   :  { %v1134_v27 = vsel %vm1128_vm3, %v1099_v58, %v8413_v59  ;;  %v1133_v29 = vsel %vm1128_vm3, %v8387_v51, %v1099_v58 }
  0xeb   :  { %3440 = vrot.lane.b32.xlu1 %v8044_v18, %s7916_s14 }
  0xec   :  { %7315 = vmatmul.mubr.msk.bf16.gmra.mxu0 %vm213_vm2, %v8340_v35  ;;  %v1123_v63 = vpop.permute.xlu0 %1122  ;;  %3462 = vrot.lane.b32.xlu0 %v8057_v20, %s7916_s14 }
  0xed   :  { %7318 = vmatmul.mubr.msk.bf16.vlgmr.msra.gmra.mxu1 %vm213_vm2, %v8312_v32  ;;  %829 = vmatprep.mubr.bf16.mxu0 %v13047_v6  ;;  %v1145_v9 = vsel %vm1128_vm3, %v1123_v63, %v8430_v0 }
  0xee   :  { %882 = vmatprep.mubr.bf16.mxu1 %v13047_v6  ;;  %999 = vmatpush1.bf16.msra.mxu1 %v689_v45 }
  0xef   :  { %1000 = vmatprep.subr.bf16.mxu1 %v8078_v24  ;;  %3464 = vrot.lane.b32.xlu1 %v8059_v21, %s7916_s14 }
  0xf0   :  { %v1103_v28 = vpop.permute.xlu0 %1102  ;;  %3442 = vrot.lane.b32.xlu0 %v8064_v22, %s7916_s14 }
  0xf1   :  { %v1135_v40 = vsel %vm1128_vm3, %v8413_v59, %v1103_v28 }
  0xf2   :  { %1001 = vmatpush1.bf16.msra.mxu1 %v8069_v23 }
  0xf3   :  { %7349 = vmatprep.subr.msk.bf16.mxu1 %vm226_vm1, %v1141_v48  ;;  %3444 = vrot.lane.b32.xlu1 %v8069_v23, %s7916_s14 }
  0xf4   :  { %7316 = vmatmul.mubr.msk.bf16.gmra.mxu0 %vm213_vm2, %v8355_v41  ;;  %v1127_v31 = vpop.permute.xlu0 %1126  ;;  %3466 = vrot.lane.b32.xlu0 %v8084_v25, %s7916_s14 }
  0xf5   :  { %7319 = vmatmul.mubr.msk.bf16.gmra.mxu1 %vm213_vm2, %v8326_v34  ;;  %945 = vmatprep.mubr.bf16.mxu0 %v13047_v6  ;;  %v1146_v46 = vsel %vm1128_vm3, %v8430_v0, %v1127_v31 }
  0xf6   :  { %892 = vmatprep.mubr.bf16.mxu1 %v13047_v6  ;;  %v1194_v47 = vsel %vm226_vm1, %v1146_v46, 0 }
  0xf7   :  { %3446 = vrot.lane.b32.xlu1 %v8078_v24, %s7916_s14 }
  0xf8   :  { %v1694_v33 = vpop.permute.xlu0 %1693  ;;  %4033 = vrot.lane.b32.xlu0 %v7969_v3, %s7917_s23 }
  0xfb   :  { %4035 = vrot.lane.b32.xlu1 %v7975_v4, %s7917_s23 }
  0xfc   :  { %7323 = vmatmul.mubr.msk.bf16.vlgmr.msra.gmra.mxu0 %vm213_vm2, %v8312_v32  ;;  %v8515_v38 = vpop.permute.xlu0 %1697  ;;  %4037 = vrot.lane.b32.xlu0 %v7967_v2, %s7917_s23 }
  0xfd   :  { %7320 = vmatmul.mubr.msk.bf16.gmra.mxu1 %vm213_vm2, %v8340_v35  ;;  %955 = vmatprep.mubr.bf16.mxu0 %v13047_v6 }
  0xfe   :  { %902 = vmatprep.mubr.bf16.mxu1 %v13047_v6  ;;  %1212 = vmatpush1.bf16.msra.mxu0 %v1170_v52 }
  0xff   :  { %1213 = vmatprep.subr.bf16.mxu0 %v1130_v53 }
 0x100   :  { %v8534_v45 = vpop.permute.xlu0 %1677 }
 0x102   :  { %1214 = vmatpush1.bf16.msra.mxu0 %v1129_v56 }
 0x103   :  { %7354 = vmatprep.subr.msk.bf16.mxu0 %vm226_vm1, %v1143_v57 }
 0x104   :  { %7324 = vmatmul.mubr.msk.bf16.gmra.mxu0 %vm213_vm2, %v8326_v34  ;;  %v8546_v49 = vpop.permute.xlu0 %1701 }
 0x105   :  { %7321 = vmatmul.mubr.msk.bf16.gmra.mxu1 %vm213_vm2, %v8355_v41  ;;  %965 = vmatprep.mubr.bf16.mxu0 %v13047_v6 }
 0x106   :  { %1018 = vmatprep.mubr.bf16.mxu1 %v13047_v6 }
 0x10c   :  { %7325 = vmatmul.mubr.msk.bf16.gmra.mxu0 %vm213_vm2, %v8340_v35 }
 0x10d   :  { %7328 = vmatmul.mubr.msk.bf16.vlgmr.msra.gmra.mxu1 %vm213_vm2, %v8312_v32  ;;  %975 = vmatprep.mubr.bf16.mxu0 %v13047_v6  ;;  %v1105_v32 = vpop.permute.xlu1 %1104 }
 0x10e   :  { %1285 = vmatpush1.bf16.msra.mxu1 %v1176_v61  ;;  %1028 = vmatprep.mubr.bf16.mxu1 %v13047_v6  ;;  %v1136_v39 = vsel %vm1128_vm3, %v1103_v28, %v1105_v32 }
 0x10f   :  { %1286 = vmatprep.subr.bf16.mxu1 %v1132_v62 }
 0x111   :  { %v1107_v37 = vpop.permute.xlu1 %1106 }
 0x112   :  { %1287 = vmatpush1.bf16.msra.mxu1 %v1131_v1  ;;  %v1137_v50 = vsel %vm1128_vm3, %v1105_v32, %v1107_v37 }
 0x113   :  { %7359 = vmatprep.subr.msk.bf16.mxu1 %vm226_vm1, %v1145_v9 }
 0x114   :  { %7326 = vmatmul.mubr.msk.bf16.gmra.mxu0 %vm213_vm2, %v8355_v41 }
 0x115   :  { %7329 = vmatmul.mubr.msk.bf16.gmra.mxu1 %vm213_vm2, %v8326_v34  ;;  %1231 = vmatprep.mubr.bf16.mxu0 %v13047_v6  ;;  %v1144_v34 = vsel %vm1128_vm3, %v8396_v55, %v1123_v63  ;;  %v8567_v55 = vpop.permute.xlu0 %1679 }
 0x116   :  { %1038 = vmatprep.mubr.bf16.mxu1 %v13047_v6  ;;  %v1188_v36 = vsel %vm226_vm1, %v1144_v34, 0  ;;  %v1716_v17 = vsel %vm1713_vm4, %v8534_v45, %v8567_v55 }
 0x119   :  { %v8600_v19 = vpop.permute.xlu0 %1703 }
 0x11a   :  { %v1727_v22 = vsel %vm1713_vm4, %v8546_v49, %v8600_v19 }
 0x11b   :  { %v1767_v23 = vsel %vm226_vm1, %v1727_v22, 0 }
 0x11c   :  { %7345 = vmatmul.mubr.msk.bf16.vlgmr.msra.gmra.mxu0 %vm213_vm2, %v8456_v14 }
 0x11d   :  { %7330 = vmatmul.mubr.msk.bf16.gmra.mxu1 %vm213_vm2, %v8340_v35  ;;  %1241 = vmatprep.mubr.bf16.mxu0 %v13047_v6  ;;  %v8504_v35 = vld [vmem:[%s13040_s1 + $0x50] sm:$0xff]   ;;  %v1684_v13 = vpop.permute.xlu0 %1683 }
 0x11e   :  { %1048 = vmatprep.mubr.bf16.mxu1 %v13047_v6  ;;  %1358 = vmatpush1.bf16.msra.mxu0 %v1182_v26 }
 0x11f   :  { %1359 = vmatprep.subr.bf16.mxu0 %v1134_v27 }
 0x122   :  { %1360 = vmatpush1.bf16.msra.mxu0 %v1133_v29 }
 0x123   :  { %7364 = vmatprep.subr.msk.bf16.mxu0 %vm226_vm1, %v1127_v31 }
 0x124   :  { %7346 = vmatmul.mubr.msk.bf16.gmra.mxu0 %vm213_vm2, %v8482_v30 }
 0x125   :  { %7331 = vmatmul.mubr.msk.bf16.gmra.mxu1 %vm213_vm2, %v8355_v41  ;;  %1251 = vmatprep.mubr.bf16.mxu0 %v13047_v6  ;;  %v1696_v41 = vpop.permute.xlu1 %1695 }
 0x126   :  { %1304 = vmatprep.mubr.bf16.mxu1 %v13047_v6  ;;  %v1724_v43 = vsel %vm1713_vm4, %v1696_v41, %v8515_v38  ;;  %v1723_v61 = vsel %vm1713_vm4, %v1694_v33, %v1696_v41 }
 0x127   :  { %v1755_v0 = vsel %vm226_vm1, %v1723_v61, 0  ;;  %v8693_v61 = vpop.permute.xlu0 %1707 }
 0x129   :  { %v1676_v44 = vpop.permute.xlu1 %1675 }
 0x12a   :  { %v1715_v9 = vsel %vm1713_vm4, %v1676_v44, %v8534_v45 }
 0x12c   :  { %7347 = vmatmul.mubr.msk.bf16.gmra.mxu0 %vm213_vm2, %v8504_v35 }
 0x12d   :  { %7350 = vmatmul.mubr.msk.bf16.vlgmr.msra.gmra.mxu1 %vm213_vm2, %v8456_v14  ;;  %1261 = vmatprep.mubr.bf16.mxu0 %v13047_v6  ;;  %v8544_v48 = vpop.permute.xlu1 %1699 }
 0x12e   :  { %1431 = vmatpush1.bf16.msra.mxu1 %v1188_v36  ;;  %1314 = vmatprep.mubr.bf16.mxu1 %v13047_v6  ;;  %v1726_v51 = vsel %vm1713_vm4, %v8544_v48, %v8546_v49  ;;  %v1725_v12 = vsel %vm1713_vm4, %v8515_v38, %v8544_v48 }
 0x12f   :  { %1432 = vmatprep.subr.bf16.mxu1 %v1136_v39 }
 0x131   :  { %v1674_v52 = vpop.permute.xlu1 %1673 }
 0x132   :  { %1433 = vmatpush1.bf16.msra.mxu1 %v1135_v40  ;;  %v1714_v28 = vsel %vm1713_vm4, %v1674_v52, %v1676_v44 }
 0x133   :  { %7381 = vmatprep.subr.msk.bf16.mxu1 %vm226_vm1, %v1724_v43 }
 0x134   :  { %7348 = vmatmul.mubr.msk.bf16.gmra.mxu0 %vm213_vm2, %v8523_v42 }
 0x135   :  { %7351 = vmatmul.mubr.msk.bf16.gmra.mxu1 %vm213_vm2, %v8482_v30  ;;  %1377 = vmatprep.mubr.bf16.mxu0 %v13047_v6  ;;  %v8576_v58 = vpop.permute.xlu1 %1681 }
 0x136   :  { %1324 = vmatprep.mubr.bf16.mxu1 %v13047_v6  ;;  %v1717_v38 = vsel %vm1713_vm4, %v8567_v55, %v8576_v58 }
 0x139   :  { %v8607_v7 = vpop.permute.xlu1 %1705 }
 0x13a   :  { %v1728_v31 = vsel %vm1713_vm4, %v8600_v19, %v8607_v7 }
 0x13c   :  { %7355 = vmatmul.mubr.msk.bf16.vlgmr.msra.gmra.mxu0 %vm213_vm2, %v8456_v14 }
 0x13d   :  { %7352 = vmatmul.mubr.msk.bf16.gmra.mxu1 %vm213_vm2, %v8504_v35  ;;  %1387 = vmatprep.mubr.bf16.mxu0 %v13047_v6  ;;  %v8660_v43 = vpop.permute.xlu1 %1685 }
 0x13e   :  { %1334 = vmatprep.mubr.bf16.mxu1 %v13047_v6  ;;  %1504 = vmatpush1.bf16.msra.mxu0 %v1194_v47  ;;  %v1761_v47 = vsel %vm226_vm1, %v1725_v12, 0  ;;  %v1719_v19 = vsel %vm1713_vm4, %v1684_v13, %v8660_v43 }
 0x13f   :  { %1505 = vmatprep.subr.bf16.mxu0 %v1107_v37 }
 0x142   :  { %1506 = vmatpush1.bf16.msra.mxu0 %v1137_v50 }
 0x143   :  { %7386 = vmatprep.subr.msk.bf16.mxu0 %vm226_vm1, %v1726_v51  ;;  %v8683_v51 = vpop.permute.xlu1 %1709 }
 0x144   :  { %v8558_v53 = vpop.f32.mrf.mxu0  ;;  %v8560_v54 = vpop.f32.mrf.mxu1  ;;  %7356 = vmatmul.mubr.msk.bf16.gmra.mxu0 %vm213_vm2, %v8482_v30 }
 0x145   :  { %13063 = vst [vmem:[#allocation6_spill] sm:$0xff] %v8560_v54  ;;  %7353 = vmatmul.mubr.msk.bf16.gmra.mxu1 %vm213_vm2, %v8523_v42  ;;  %1397 = vmatprep.mubr.bf16.mxu0 %v13047_v6  ;;  %v9023_v54 = vld [vmem:[%s13039_s0 + $0x4] ss:$40 sps:$4 sm:$0xff]  }
 0x146   :  { %v8569_v56 = vpop.f32.mrf.mxu0  ;;  %v8571_v57 = vpop.f32.mrf.mxu1  ;;  %1450 = vmatprep.mubr.bf16.mxu1 %v13047_v6  ;;  %4015 = vrot.lane.b32.xlu1 %v9023_v54, %s7917_s23 }
 0x147   :  { %13064 = vst [vmem:[#allocation7_spill] sm:$0xff] %v8571_v57 }
 0x148   :  { %v8580_v59 = vpop.f32.mrf.mxu0  ;;  %v8582_v60 = vpop.f32.mrf.mxu1 }
 0x149   :  { %13065 = vst [vmem:[#allocation8_spill] sm:$0xff] %v8582_v60 }
 0x14a   :  { %v8585_v62 = vpop.f32.mrf.mxu0  ;;  %v8587_v63 = vpop.f32.mrf.mxu1  ;;  %4039 = vrot.lane.b32.xlu1 %v8007_v10, %s7917_s23 }
 0x14b   :  { %13066 = vst [vmem:[#allocation9_spill] sm:$0xff] %v8587_v63 }
 0x14c   :  { %v8594_v1 = vpop.f32.mrf.mxu0  ;;  %7357 = vmatmul.mubr.msk.bf16.gmra.mxu0 %vm213_vm2, %v8504_v35 }
 0x14d   :  { %v8602_v26 = vpop.f32.mrf.mxu1  ;;  %7360 = vmatmul.mubr.msk.bf16.vlgmr.msra.gmra.mxu1 %vm213_vm2, %v8456_v14  ;;  %1407 = vmatprep.mubr.bf16.mxu0 %v13047_v6 }
 0x14e   :  { %v8609_v5 = vpop.f32.mrf.mxu0  ;;  %1460 = vmatprep.mubr.bf16.mxu1 %v13047_v6  ;;  %1797 = vmatpush1.bf16.msra.mxu1 %v1755_v0 }
 0x14f   :  { %v8612_v27 = vpop.f32.mrf.mxu1  ;;  %1798 = vmatprep.subr.bf16.mxu1 %v1715_v9  ;;  %v1730_v9 = vsel %vm1713_vm4, %v8693_v61, %v8683_v51 }
 0x150   :  { %v8617_v29 = vpop.f32.mrf.mxu0 }
 0x151   :  { %v8624_v32 = vpop.f32.mrf.mxu1 }
 0x152   :  { %v8626_v33 = vpop.f32.mrf.mxu0  ;;  %1799 = vmatpush1.bf16.msra.mxu1 %v1714_v28 }
 0x153   :  { %v8628_v34 = vpop.f32.mrf.mxu1  ;;  %7391 = vmatprep.subr.msk.bf16.mxu1 %vm226_vm1, %v1728_v31 }
 0x154   :  { %v8633_v8 = vpop.f32.mrf.mxu0  ;;  %7358 = vmatmul.mubr.msk.bf16.gmra.mxu0 %vm213_vm2, %v8523_v42 }
 0x155   :  { %v8639_v36 = vpop.f32.mrf.mxu1  ;;  %7361 = vmatmul.mubr.msk.bf16.gmra.mxu1 %vm213_vm2, %v8482_v30  ;;  %1523 = vmatprep.mubr.bf16.mxu0 %v13047_v6 }
 0x156   :  { %13067 = vst [vmem:[#allocation10_spill] sm:$0xff] %v8639_v36  ;;  %v8644_v37 = vpop.f32.mrf.mxu0  ;;  %1470 = vmatprep.mubr.bf16.mxu1 %v13047_v6 }
 0x157   :  { %v8647_v39 = vpop.f32.mrf.mxu1 }
 0x158   :  { %13068 = vst [vmem:[#allocation11_spill] sm:$0xff] %v8647_v39  ;;  %v8651_v40 = vpop.f32.mrf.mxu0 }
 0x159   :  { %v8658_v41 = vpop.f32.mrf.mxu1 }
 0x15a   :  { %13069 = vst [vmem:[#allocation12_spill] sm:$0xff] %v8658_v41  ;;  %v8662_v44 = vpop.f32.mrf.mxu0 }
 0x15b   :  { %v8664_v46 = vpop.f32.mrf.mxu1 }
 0x15c   :  { %13070 = vst [vmem:[#allocation13_spill] sm:$0xff] %v8664_v46  ;;  %v8669_v50 = vpop.f32.mrf.mxu0  ;;  %7365 = vmatmul.mubr.msk.bf16.vlgmr.msra.gmra.mxu0 %vm213_vm2, %v8456_v14 }
 0x15d   :  { %13071 = vst [vmem:[#allocation14_spill] sm:$0xff] %v8669_v50  ;;  %v8678_v48 = vpop.f32.mrf.mxu1  ;;  %7362 = vmatmul.mubr.msk.bf16.gmra.mxu1 %vm213_vm2, %v8504_v35  ;;  %1533 = vmatprep.mubr.bf16.mxu0 %v13047_v6 }
 0x15e   :  { %13072 = vst [vmem:[#allocation15_spill] sm:$0xff] %v8678_v48  ;;  %v8685_v52 = vpop.f32.mrf.mxu0  ;;  %1480 = vmatprep.mubr.bf16.mxu1 %v13047_v6  ;;  %1870 = vmatpush1.bf16.msra.mxu0 %v1761_v47 }
 0x15f   :  { %13073 = vst [vmem:[#allocation16_spill] sm:$0xff] %v8685_v52  ;;  %v8688_v14 = vpop.f32.mrf.mxu1  ;;  %1871 = vmatprep.subr.bf16.mxu0 %v1717_v38 }
 0x160   :  { %13074 = vst [vmem:[#allocation17_spill] sm:$0xff] %v8688_v14  ;;  %v8697_v0 = vpop.f32.mrf.mxu0 }
 0x161   :  { %13075 = vst [vmem:[#allocation18_spill] sm:$0xff] %v8697_v0  ;;  %v8704_v28 = vpop.f32.mrf.mxu1 }
 0x162   :  { %13076 = vst [vmem:[#allocation19_spill] sm:$0xff] %v8704_v28  ;;  %v8706_v31 = vpop.f32.mrf.mxu0  ;;  %1872 = vmatpush1.bf16.msra.mxu0 %v1716_v17  ;;  %v8743_v17 = vld [vmem:[%s13040_s1 + $0x60] sm:$0xff]  }
 0x163   :  { %13077 = vst [vmem:[#allocation20_spill] sm:$0xff] %v8706_v31  ;;  %v8708_v45 = vpop.f32.mrf.mxu1  ;;  %7396 = vmatprep.subr.msk.bf16.mxu0 %vm226_vm1, %v1730_v9 }
 0x164   :  { %13078 = vst [vmem:[#allocation21_spill] sm:$0xff] %v8708_v45  ;;  %v8713_v18 = vpop.f32.mrf.mxu0  ;;  %7366 = vmatmul.mubr.msk.bf16.gmra.mxu0 %vm213_vm2, %v8482_v30 }
 0x165   :  { %13079 = vst [vmem:[#allocation22_spill] sm:$0xff] %v8713_v18  ;;  %v8719_v55 = vpop.f32.mrf.mxu1  ;;  %7363 = vmatmul.mubr.msk.bf16.gmra.mxu1 %vm213_vm2, %v8523_v42  ;;  %1543 = vmatprep.mubr.bf16.mxu0 %v13047_v6 }
 0x166   :  { %13080 = vst [vmem:[#allocation23_spill] sm:$0xff] %v8719_v55  ;;  %v8724_v12 = vpop.f32.mrf.mxu0  ;;  %1816 = vmatprep.mubr.bf16.mxu1 %v13047_v6 }
 0x167   :  { %13081 = vst [vmem:[#allocation24_spill] sm:$0xff] %v8724_v12  ;;  %v8727_v47 = vpop.f32.mrf.mxu1 }
 0x168   :  { %13082 = vst [vmem:[#allocation25_spill] sm:$0xff] %v8727_v47  ;;  %v8731_v30 = vpop.f32.mrf.mxu0 }
 0x169   :  { %13083 = vst [vmem:[#allocation26_spill] sm:$0xff] %v8731_v30  ;;  %v8738_v38 = vpop.f32.mrf.mxu1 }
 0x16a   :  { %13084 = vst [vmem:[#allocation27_spill] sm:$0xff] %v8738_v38  ;;  %v8745_v9 = vpop.f32.mrf.mxu0  ;;  %v1688_v38 = vpop.permute.xlu0 %1687 }
 0x16b   :  { %13085 = vst [vmem:[#allocation28_spill] sm:$0xff] %v8745_v9  ;;  %v8747_v6 = vpop.f32.mrf.mxu1 }
 0x16c   :  { %13086 = vst [vmem:[#allocation29_spill] sm:$0xff] %v8747_v6  ;;  %v8752_v49 = vpop.f32.mrf.mxu0  ;;  %7367 = vmatmul.mubr.msk.bf16.gmra.mxu0 %vm213_vm2, %v8504_v35  ;;  %v13089_v6 = vmov 0   ;;  %v1718_v35 = vsel %vm1713_vm4, %v8576_v58, %v1684_v13 }
 0x16d   :  { %13087 = vst [vmem:[#allocation30_spill] sm:$0xff] %v8752_v49  ;;  %v8758_v30 = vpop.f32.mrf.mxu1  ;;  %7382 = vmatmul.mubr.msk.bf16.vlgmr.msra.gmra.mxu1 %vm213_vm2, %v8743_v17  ;;  %1553 = vmatprep.mubr.bf16.mxu0 %v13089_v6 }
 0x16e   :  { %13088 = vst [vmem:[#allocation31_spill] sm:$0xff] %v8758_v30  ;;  %1943 = vmatpush1.bf16.msra.mxu1 %v1767_v23  ;;  %v8763_v22 = vpop.f32.mrf.mxu0  ;;  %1826 = vmatprep.mubr.bf16.mxu1 %v13089_v6  ;;  %v8777_v30 = vld [vmem:[%s13040_s1 + $0x68] sm:$0xff]   ;;  %v8779_v23 = vpop.permute.xlu1 %1689 }
 0x16f   :  { %13090 = vst [vmem:[#allocation32_spill] sm:$0xff] %v8763_v22  ;;  %v8766_v24 = vpop.f32.mrf.mxu1  ;;  %1944 = vmatprep.subr.bf16.mxu1 %v1719_v19  ;;  %v1712_v47 = vpop.permute.xlu0 %1711 }
 0x170   :  { %13091 = vst [vmem:[#allocation33_spill] sm:$0xff] %v8766_v24  ;;  %v8770_v49 = vpop.f32.mrf.mxu0 }
 0x171   :  { %13092 = vst [vmem:[#allocation34_spill] sm:$0xff] %v8770_v49  ;;  %v8772_v9 = vpop.f32.mrf.mxu1 }
 0x172   :  { %13093 = vst [vmem:[#allocation35_spill] sm:$0xff] %v8772_v9  ;;  %v8781_v22 = vpop.f32.mrf.mxu0  ;;  %1945 = vmatpush1.bf16.msra.mxu1 %v1718_v35  ;;  %v8795_v19 = vpop.permute.xlu1 %2278 }
 0x173   :  { %13094 = vst [vmem:[#allocation36_spill] sm:$0xff] %v8781_v22  ;;  %v8783_v24 = vpop.f32.mrf.mxu1  ;;  %7401 = vmatprep.subr.msk.bf16.mxu1 %vm226_vm1, %v1712_v47 }
 0x174   :  { %13095 = vst [vmem:[#allocation37_spill] sm:$0xff] %v8783_v24  ;;  %v8786_v58 = vpop.f32.mrf.mxu0  ;;  %7368 = vmatmul.mubr.msk.bf16.gmra.mxu0 %vm213_vm2, %v8523_v42  ;;  %v1729_v42 = vsel %vm1713_vm4, %v8607_v7, %v8693_v61  ;;  %v1721_v7 = vsel %vm1713_vm4, %v1688_v38, %v8779_v23  ;;  %v8827_v61 = vpop.permute.xlu0 %2280 }
 0x175   :  { %13096 = vst [vmem:[#allocation38_spill] sm:$0xff] %v8786_v58  ;;  %v8790_v13 = vpop.f32.mrf.mxu1  ;;  %7383 = vmatmul.mubr.msk.bf16.gmra.mxu1 %vm213_vm2, %v8777_v30  ;;  %1889 = vmatprep.mubr.bf16.mxu0 %v13089_v6  ;;  %v8812_v58 = vld [vmem:[%s13040_s1 + $0x70] sm:$0xff]   ;;  %v1773_v49 = vsel %vm226_vm1, %v1729_v42, 0 }
 0x176   :  { %13097 = vst [vmem:[#allocation39_spill] sm:$0xff] %v8790_v13  ;;  %v8797_v35 = vpop.f32.mrf.mxu0  ;;  %1836 = vmatprep.mubr.bf16.mxu1 %v13089_v6 }
 0x177   :  { %13098 = vst [vmem:[#allocation40_spill] sm:$0xff] %v8797_v35  ;;  %v8800_v24 = vpop.f32.mrf.mxu1 }
 0x178   :  { %13099 = vst [vmem:[#allocation41_spill] sm:$0xff] %v8800_v24  ;;  %v8802_v22 = vpop.f32.mrf.mxu0  ;;  %v8819_v24 = vpop.permute.xlu1 %2282 }
 0x179   :  { %13100 = vst [vmem:[#allocation42_spill] sm:$0xff] %v8802_v22  ;;  %v8807_v13 = vpop.f32.mrf.mxu1 }
 0x17a   :  { %13101 = vst [vmem:[#allocation43_spill] sm:$0xff] %v8807_v13  ;;  %v8814_v9 = vpop.f32.mrf.mxu0 }
 0x17b   :  { %13102 = vst [vmem:[#allocation44_spill] sm:$0xff] %v8814_v9  ;;  %v8816_v35 = vpop.f32.mrf.mxu1 }
 0x17c   :  { %13103 = vst [vmem:[#allocation45_spill] sm:$0xff] %v8816_v35  ;;  %v8821_v22 = vpop.f32.mrf.mxu0  ;;  %7387 = vmatmul.mubr.msk.bf16.vlgmr.msra.gmra.mxu0 %vm213_vm2, %v8743_v17  ;;  %v1720_v35 = vsel %vm1713_vm4, %v8660_v43, %v1688_v38 }
 0x17d   :  { %13104 = vst [vmem:[#allocation46_spill] sm:$0xff] %v8821_v22  ;;  %v8829_v13 = vpop.f32.mrf.mxu1  ;;  %7384 = vmatmul.mubr.msk.bf16.gmra.mxu1 %vm213_vm2, %v8812_v58  ;;  %1899 = vmatprep.mubr.bf16.mxu0 %v13089_v6 }
 0x17e   :  { %13105 = vst [vmem:[#allocation47_spill] sm:$0xff] %v8829_v13  ;;  %v8834_v42 = vpop.f32.mrf.mxu0  ;;  %1846 = vmatprep.mubr.bf16.mxu1 %v13089_v6  ;;  %2016 = vmatpush1.bf16.msra.mxu0 %v1773_v49  ;;  %v2309_v13 = vsel %vm2298_vm5, %v8827_v61, %v8819_v24  ;;  %v8853_v49 = vpop.permute.xlu1 %2260 }
 0x17f   :  { %13106 = vst [vmem:[#allocation48_spill] sm:$0xff] %v8834_v42  ;;  %v8837_v22 = vpop.f32.mrf.mxu1  ;;  %2017 = vmatprep.subr.bf16.mxu0 %v1721_v7  ;;  %v8851_v42 = vld [vmem:[%s13040_s1 + $0x78] sm:$0xff]   ;;  %v1692_v7 = vpop.permute.xlu0 %1691 }
 0x180   :  { %13107 = vst [vmem:[#allocation49_spill] sm:$0xff] %v8837_v22  ;;  %v8841_v9 = vpop.f32.mrf.mxu0 }
 0x181   :  { %13108 = vst [vmem:[#allocation50_spill] sm:$0xff] %v8841_v9  ;;  %v8846_v12 = vpop.f32.mrf.mxu1 }
 0x182   :  { %13109 = vst [vmem:[#allocation51_spill] sm:$0xff] %v8846_v12  ;;  %v8855_v22 = vpop.f32.mrf.mxu0  ;;  %2018 = vmatpush1.bf16.msra.mxu0 %v1720_v35 }
 0x183   :  { %13110 = vst [vmem:[#allocation52_spill] sm:$0xff] %v8855_v22  ;;  %v8857_v43 = vpop.f32.mrf.mxu1  ;;  %7418 = vmatprep.subr.msk.bf16.mxu0 %vm226_vm1, %v2309_v13  ;;  %v8872_v35 = vpop.permute.xlu0 %2262  ;;  %v1731_v22 = vsel %vm1713_vm4, %v8683_v51, %v1712_v47 }
 0x184   :  { %13111 = vst [vmem:[#allocation53_spill] sm:$0xff] %v8857_v43  ;;  %v8860_v38 = vpop.f32.mrf.mxu0  ;;  %7388 = vmatmul.mubr.msk.bf16.gmra.mxu0 %vm213_vm2, %v8777_v30  ;;  %v2259_v13 = vpop.permute.xlu1 %2258 }
 0x185   :  { %13112 = vst [vmem:[#allocation54_spill] sm:$0xff] %v8860_v38  ;;  %v8864_v12 = vpop.f32.mrf.mxu1  ;;  %7385 = vmatmul.mubr.msk.bf16.gmra.mxu1 %vm213_vm2, %v8851_v42  ;;  %1909 = vmatprep.mubr.bf16.mxu0 %v13089_v6  ;;  %v2299_v50 = vsel %vm2298_vm5, %v2259_v13, %v8853_v49 }
 0x186   :  { %13113 = vst [vmem:[#allocation55_spill] sm:$0xff] %v8864_v12  ;;  %v8869_v9 = vpop.f32.mrf.mxu0  ;;  %1962 = vmatprep.mubr.bf16.mxu1 %v13089_v6 }
 0x187   :  { %13114 = vst [vmem:[#allocation56_spill] sm:$0xff] %v8869_v9  ;;  %v8874_v43 = vpop.f32.mrf.mxu1  ;;  %v1779_v9 = vsel %vm226_vm1, %v1731_v22, 0 }
 0x188   :  { %13115 = vst [vmem:[#allocation57_spill] sm:$0xff] %v8874_v43  ;;  %v8876_v38 = vpop.f32.mrf.mxu0  ;;  %v8891_v43 = vpop.permute.xlu0 %2284 }
 0x189   :  { %13116 = vst [vmem:[#allocation58_spill] sm:$0xff] %v8876_v38  ;;  %v8880_v12 = vpop.f32.mrf.mxu1  ;;  %v8898_v51 = vpop.permute.xlu1 %2286 }
 0x18a   :  { %13117 = vst [vmem:[#allocation59_spill] sm:$0xff] %v8880_v12  ;;  %v8882_v55 = vpop.f32.mrf.mxu0 }
 0x18b   :  { %13118 = vst [vmem:[#allocation60_spill] sm:$0xff] %v8882_v55  ;;  %v8884_v18 = vpop.f32.mrf.mxu1  ;;  %v2311_v55 = vsel %vm2298_vm5, %v8891_v43, %v8898_v51 }
 0x18c   :  { %13119 = vst [vmem:[#allocation61_spill] sm:$0xff] %v8884_v18  ;;  %v8887_v45 = vpop.f32.mrf.mxu0  ;;  %7389 = vmatmul.mubr.msk.bf16.gmra.mxu0 %vm213_vm2, %v8812_v58 }
 0x18d   :  { %13120 = vst [vmem:[#allocation62_spill] sm:$0xff] %v8887_v45  ;;  %v8893_v31 = vpop.f32.mrf.mxu1  ;;  %7392 = vmatmul.mubr.msk.bf16.vlgmr.msra.gmra.mxu1 %vm213_vm2, %v8743_v17  ;;  %1919 = vmatprep.mubr.bf16.mxu0 %v13089_v6  ;;  %v1722_v45 = vsel %vm1713_vm4, %v8779_v23, %v1692_v7  ;;  %v8942_v28 = vpop.permute.xlu1 %2266 }
 0x18e   :  { %2089 = vmatpush1.bf16.msra.mxu1 %v1779_v9  ;;  %v8900_v47 = vpop.f32.mrf.mxu0  ;;  %1972 = vmatprep.mubr.bf16.mxu1 %v13089_v6 }
 0x18f   :  { %13121 = vst [vmem:[#allocation63_spill] sm:$0xff] %v8900_v47  ;;  %v8903_v22 = vpop.f32.mrf.mxu1  ;;  %2090 = vmatprep.subr.bf16.mxu1 %v1692_v7 }
 0x190   :  { %v8907_v18 = vpop.f32.mrf.mxu0 }
 0x191   :  { %13122 = vst [vmem:[#allocation64_spill] sm:$0xff] %v8907_v18  ;;  %v8912_v12 = vpop.f32.mrf.mxu1 }
 0x192   :  { %v8914_v38 = vpop.f32.mrf.mxu0  ;;  %2091 = vmatpush1.bf16.msra.mxu1 %v1722_v45 }
 0x193   :  { %13123 = vst [vmem:[#allocation65_spill] sm:$0xff] %v8914_v38  ;;  %v8916_v9 = vpop.f32.mrf.mxu1  ;;  %7423 = vmatprep.subr.msk.bf16.mxu1 %vm226_vm1, %v2311_v55  ;;  %v2308_v55 = vsel %vm2298_vm5, %v8795_v19, %v8827_v61  ;;  %v2300_v19 = vsel %vm2298_vm5, %v8853_v49, %v8872_v35 }
 0x194   :  { %v8919_v47 = vpop.f32.mrf.mxu0  ;;  %7390 = vmatmul.mubr.msk.bf16.gmra.mxu0 %vm213_vm2, %v8851_v42 }
 0x195   :  { %13124 = vst [vmem:[#allocation66_spill] sm:$0xff] %v8919_v47  ;;  %v8923_v23 = vpop.f32.mrf.mxu1  ;;  %7393 = vmatmul.mubr.msk.bf16.gmra.mxu1 %vm213_vm2, %v8777_v30  ;;  %2035 = vmatprep.mubr.bf16.mxu0 %v13089_v6  ;;  %v8938_v47 = vpop.permute.xlu0 %2264 }
 0x196   :  { %v8928_v7 = vpop.f32.mrf.mxu0  ;;  %1982 = vmatprep.mubr.bf16.mxu1 %v13089_v6 }
 0x197   :  { %13125 = vst [vmem:[#allocation67_spill] sm:$0xff] %v8928_v7  ;;  %v8931_v45 = vpop.f32.mrf.mxu1  ;;  %v2340_v7 = vsel %vm226_vm1, %v2308_v55, 0 }
 0x198   :  { %v8933_v38 = vpop.f32.mrf.mxu0 }
 0x199   :  { %13126 = vst [vmem:[#allocation68_spill] sm:$0xff] %v8933_v38  ;;  %v8940_v18 = vpop.f32.mrf.mxu1  ;;  %v8956_v61 = vpop.permute.xlu0 %2288 }
 0x19a   :  { %v8944_v0 = vpop.f32.mrf.mxu0 }
 0x19b   :  { %13127 = vst [vmem:[#allocation69_spill] sm:$0xff] %v8944_v0  ;;  %v8946_v14 = vpop.f32.mrf.mxu1  ;;  %v8963_v0 = vpop.permute.xlu1 %2290 }
 0x19c   :  { %v8949_v52 = vpop.f32.mrf.mxu0  ;;  %7397 = vmatmul.mubr.msk.bf16.vlgmr.msra.gmra.mxu0 %vm213_vm2, %v8743_v17  ;;  %v2313_v63 = vsel %vm2298_vm5, %v8956_v61, %v8963_v0 }
 0x19d   :  { %v8958_v38 = vpop.f32.mrf.mxu1  ;;  %7394 = vmatmul.mubr.msk.bf16.gmra.mxu1 %vm213_vm2, %v8812_v58  ;;  %2045 = vmatprep.mubr.bf16.mxu0 %v13089_v6 }
 0x19e   :  { %v8965_v55 = vpop.f32.mrf.mxu0  ;;  %1992 = vmatprep.mubr.bf16.mxu1 %v13089_v6  ;;  %2382 = vmatpush1.bf16.msra.mxu0 %v2340_v7 }
 0x19f   :  { %v8968_v48 = vpop.f32.mrf.mxu1  ;;  %2383 = vmatprep.subr.bf16.mxu0 %v2300_v19  ;;  %v9002_v19 = vpop.permute.xlu1 %2270 }
 0x1a0   :  { %v8972_v46 = vpop.f32.mrf.mxu0 }
 0x1a1   :  { %v8977_v41 = vpop.f32.mrf.mxu1 }
 0x1a2   :  { %v8979_v60 = vpop.f32.mrf.mxu0  ;;  %2384 = vmatpush1.bf16.msra.mxu0 %v2299_v50  ;;  %v8996_v50 = vpop.permute.xlu0 %2268 }
 0x1a3   :  { %v8981_v39 = vpop.f32.mrf.mxu1  ;;  %7428 = vmatprep.subr.msk.bf16.mxu0 %vm226_vm1, %v2313_v63 }
 0x1a4   :  { %v8984_v7 = vpop.f32.mrf.mxu0  ;;  %7398 = vmatmul.mubr.msk.bf16.gmra.mxu0 %vm213_vm2, %v8777_v30 }
 0x1a5   :  { %13128 = vst [vmem:[#allocation70_spill] sm:$0xff] %v8984_v7  ;;  %v8988_v49 = vpop.f32.mrf.mxu1  ;;  %7395 = vmatmul.mubr.msk.bf16.gmra.mxu1 %vm213_vm2, %v8851_v42  ;;  %2055 = vmatprep.mubr.bf16.mxu0 %v13089_v6 }
 0x1a6   :  { %13129 = vst [vmem:[#allocation71_spill] sm:$0xff] %v8988_v49  ;;  %v8993_v13 = vpop.f32.mrf.mxu0  ;;  %2108 = vmatprep.mubr.bf16.mxu1 %v13089_v6 }
 0x1a7   :  { %13130 = vst [vmem:[#allocation72_spill] sm:$0xff] %v8993_v13  ;;  %v9000_v63 = vpop.f32.mrf.mxu1  ;;  %v2310_v13 = vsel %vm2298_vm5, %v8819_v24, %v8891_v43  ;;  %v2302_v43 = vsel %vm2298_vm5, %v8938_v47, %v8942_v28 }
 0x1a8   :  { %13131 = vst [vmem:[#allocation73_spill] sm:$0xff] %v9000_v63  ;;  %v9006_v57 = vpop.f32.mrf.mxu0  ;;  %v2346_v63 = vsel %vm226_vm1, %v2310_v13, 0 }
 0x1a9   :  { %13132 = vst [vmem:[#allocation74_spill] sm:$0xff] %v9006_v57  ;;  %v9011_v7 = vpop.f32.mrf.mxu1 }
 0x1aa   :  { %13133 = vst [vmem:[#allocation75_spill] sm:$0xff] %v9011_v7  ;;  %v9013_v36 = vpop.f32.mrf.mxu0  ;;  %v2301_v7 = vsel %vm2298_vm5, %v8872_v35, %v8938_v47 }
 0x1ab   :  { %13134 = vst [vmem:[#allocation76_spill] sm:$0xff] %v9013_v36  ;;  %v9017_v49 = vpop.f32.mrf.mxu1  ;;  %v9034_v36 = vpop.permute.xlu0 %2292 }
 0x1ac   :  { %13135 = vst [vmem:[#allocation77_spill] sm:$0xff] %v9017_v49  ;;  %v9027_v24 = vpop.f32.mrf.mxu0  ;;  %7399 = vmatmul.mubr.msk.bf16.gmra.mxu0 %vm213_vm2, %v8812_v58  ;;  %v9041_v49 = vpop.permute.xlu1 %2294 }
 0x1ad   :  { %13136 = vst [vmem:[#allocation78_spill] sm:$0xff] %v9027_v24  ;;  %v9036_v13 = vpop.f32.mrf.mxu1  ;;  %7402 = vmatmul.mubr.msk.bf16.vlgmr.msra.gmra.mxu1 %vm213_vm2, %v8743_v17  ;;  %2065 = vmatprep.mubr.bf16.mxu0 %v13089_v6  ;;  %v9054_v17 = vld [vmem:[%s13039_s0 + $0x8] ss:$40 sps:$4 sm:$0xff]  }
 0x1ae   :  { %13137 = vst [vmem:[#allocation79_spill] sm:$0xff] %v9036_v13  ;;  %2455 = vmatpush1.bf16.msra.mxu1 %v2346_v63  ;;  %v9043_v24 = vpop.f32.mrf.mxu0  ;;  %2118 = vmatprep.mubr.bf16.mxu1 %v13089_v6 }
 0x1af   :  { %13138 = vst [vmem:[#allocation80_spill] sm:$0xff] %v9043_v24  ;;  %v9046_v57 = vpop.f32.mrf.mxu1  ;;  %2456 = vmatprep.subr.bf16.mxu1 %v2302_v43  ;;  %4017 = vrot.lane.b32.xlu0 %v9054_v17, %s7917_s23  ;;  %v2315_v24 = vsel %vm2298_vm5, %v9034_v36, %v9041_v49 }
 0x1b0   :  { %13139 = vst [vmem:[#allocation81_spill] sm:$0xff] %v9046_v57  ;;  %v9058_v63 = vpop.f32.mrf.mxu0  ;;  %v9081_v57 = vld [vmem:[%s13039_s0] ss:$40 sps:$4 sm:$0xff]  }
 0x1b1   :  { %13140 = vst [vmem:[#allocation82_spill] sm:$0xff] %v9058_v63  ;;  %v9065_v43 = vpop.f32.mrf.mxu1  ;;  %4013 = vrot.lane.b32.xlu1 %v9081_v57, %s7917_s23 }
 0x1b2   :  { %13141 = vst [vmem:[#allocation83_spill] sm:$0xff] %v9065_v43  ;;  %v9067_v35 = vpop.f32.mrf.mxu0  ;;  %2457 = vmatpush1.bf16.msra.mxu1 %v2301_v7 }
 0x1b3   :  { %13142 = vst [vmem:[#allocation84_spill] sm:$0xff] %v9067_v35  ;;  %v9069_v47 = vpop.f32.mrf.mxu1  ;;  %7433 = vmatprep.subr.msk.bf16.mxu1 %vm226_vm1, %v2315_v24  ;;  %4041 = vrot.lane.b32.xlu0 %v8009_v11, %s7917_s23  ;;  %v9098_v35 = vld [vmem:[%s13039_s0 + $0xc] ss:$40 sps:$4 sm:$0xff]  }
 0x1b4   :  { %13143 = vst [vmem:[#allocation85_spill] sm:$0xff] %v9069_v47  ;;  %v9074_v63 = vpop.f32.mrf.mxu0  ;;  %7400 = vmatmul.mubr.msk.bf16.gmra.mxu0 %vm213_vm2, %v8851_v42 }
 0x1b5   :  { %13144 = vst [vmem:[#allocation86_spill] sm:$0xff] %v9074_v63  ;;  %v9085_v7 = vpop.f32.mrf.mxu1  ;;  %7403 = vmatmul.mubr.msk.bf16.gmra.mxu1 %vm213_vm2, %v8777_v30  ;;  %2401 = vmatprep.mubr.bf16.mxu0 %v13089_v6  ;;  %v9107_v30 = vld [vmem:[%s13040_s1 + $0x80] sm:$0xff]  }
 0x1b6   :  { %13145 = vst [vmem:[#allocation87_spill] sm:$0xff] %v9085_v7  ;;  %v9090_v24 = vpop.f32.mrf.mxu0  ;;  %2128 = vmatprep.mubr.bf16.mxu1 %v13089_v6 }
 0x1b7   :  { %13146 = vst [vmem:[#allocation88_spill] sm:$0xff] %v9090_v24  ;;  %v9093_v63 = vpop.f32.mrf.mxu1  ;;  %4019 = vrot.lane.b32.xlu0 %v9098_v35, %s7917_s23  ;;  %v2312_v24 = vsel %vm2298_vm5, %v8898_v51, %v8956_v61  ;;  %v2304_v61 = vsel %vm2298_vm5, %v8996_v50, %v9002_v19 }
 0x1b8   :  { %13147 = vst [vmem:[#allocation89_spill] sm:$0xff] %v9093_v63  ;;  %v9102_v7 = vpop.f32.mrf.mxu0  ;;  %v9115_v63 = vld [vmem:[%s13039_s0 + $0x10] ss:$40 sps:$4 sm:$0xff]   ;;  %v2352_v13 = vsel %vm226_vm1, %v2312_v24, 0 }
 0x1b9   :  { %13148 = vst [vmem:[#allocation90_spill] sm:$0xff] %v9102_v7  ;;  %13149 = vst [vmem:[#allocation91_spill] sm:$0xff] %v9115_v63  ;;  %4021 = vrot.lane.b32.xlu1 %v9115_v63, %s7917_s23  ;;  %v9119_v47 = vpop.f32.mrf.mxu1  ;;  %v2273_v63 = vpop.permute.xlu0 %2272 }
 0x1ba   :  { %13150 = vst [vmem:[#allocation92_spill] sm:$0xff] %v9119_v47  ;;  %v9121_v7 = vpop.f32.mrf.mxu0  ;;  %v9206_v47 = vld [vmem:[%s13039_s0 + $0x1c] ss:$40 sps:$4 sm:$0xff]  }
 0x1bb   :  { %13151 = vst [vmem:[#allocation93_spill] sm:$0xff] %v9121_v7  ;;  %v9123_v43 = vpop.f32.mrf.mxu1  ;;  %4043 = vrot.lane.b32.xlu0 %v8032_v15, %s7917_s23  ;;  %13167 = vst [vmem:[#allocation109_spill] sm:$0xff] %v9206_v47 }
 0x1bc   :  { %13152 = vst [vmem:[#allocation94_spill] sm:$0xff] %v9123_v43  ;;  %v9128_v51 = vpop.f32.mrf.mxu0  ;;  %7419 = vmatmul.mubr.msk.bf16.vlgmr.msra.gmra.mxu0 %vm213_vm2, %v9107_v30  ;;  %v2303_v43 = vsel %vm2298_vm5, %v8942_v28, %v8996_v50  ;;  %v9169_v28 = vld [vmem:[%s13039_s0 + $0x18] ss:$40 sps:$4 sm:$0xff]  }
 0x1bd   :  { %13153 = vst [vmem:[#allocation95_spill] sm:$0xff] %v9128_v51  ;;  %4045 = vrot.lane.b32.xlu1 %v8034_v16, %s7917_s23  ;;  %v9137_v7 = vpop.f32.mrf.mxu1  ;;  %7404 = vmatmul.mubr.msk.bf16.gmra.mxu1 %vm213_vm2, %v8812_v58  ;;  %13159 = vst [vmem:[#allocation101_spill] sm:$0xff] %v9169_v28 }
 0x1be   :  { %13154 = vst [vmem:[#allocation96_spill] sm:$0xff] %v9137_v7  ;;  %2411 = vmatprep.mubr.bf16.mxu0 %v13089_v6  ;;  %v9142_v24 = vpop.f32.mrf.mxu0  ;;  %2138 = vmatprep.mubr.bf16.mxu1 %v13089_v6  ;;  %v9153_v7 = vld [vmem:[%s13039_s0 + $0x14] ss:$40 sps:$4 sm:$0xff]  }
 0x1bf   :  { %13155 = vst [vmem:[#allocation97_spill] sm:$0xff] %v9142_v24  ;;  %2528 = vmatpush1.bf16.msra.mxu0 %v2352_v13  ;;  %v9145_v51 = vpop.f32.mrf.mxu1  ;;  %13157 = vst [vmem:[#allocation99_spill] sm:$0xff] %v9153_v7  ;;  %4023 = vrot.lane.b32.xlu0 %v9153_v7, %s7917_s23  ;;  %v9162_v13 = vld [vmem:[%s13040_s1 + $0x88] sm:$0xff]  }
 0x1c0   :  { %13156 = vst [vmem:[#allocation98_spill] sm:$0xff] %v9145_v51  ;;  %2529 = vmatprep.subr.bf16.mxu0 %v2304_v61  ;;  %v9157_v58 = vpop.f32.mrf.mxu0  ;;  %v9164_v61 = vpop.permute.xlu0 %2296 }
 0x1c1   :  { %13158 = vst [vmem:[#allocation100_spill] sm:$0xff] %v9157_v58  ;;  %4025 = vrot.lane.b32.xlu1 %v9169_v28, %s7917_s23  ;;  %v9173_v50 = vpop.f32.mrf.mxu1 }
 0x1c2   :  { %13160 = vst [vmem:[#allocation102_spill] sm:$0xff] %v9173_v50  ;;  %v9175_v24 = vpop.f32.mrf.mxu0 }
 0x1c3   :  { %13161 = vst [vmem:[#allocation103_spill] sm:$0xff] %v9175_v24  ;;  %2530 = vmatpush1.bf16.msra.mxu0 %v2303_v43  ;;  %v9177_v58 = vpop.f32.mrf.mxu1  ;;  %4047 = vrot.lane.b32.xlu0 %v8057_v20, %s7917_s23  ;;  %v9197_v24 = vpop.permute.xlu1 %2274 }
 0x1c4   :  { %13162 = vst [vmem:[#allocation104_spill] sm:$0xff] %v9177_v58  ;;  %7438 = vmatprep.subr.msk.bf16.mxu0 %vm226_vm1, %v9164_v61  ;;  %v9183_v51 = vpop.f32.mrf.mxu0  ;;  %7420 = vmatmul.mubr.msk.bf16.gmra.mxu0 %vm213_vm2, %v9162_v13  ;;  %v9201_v58 = vpop.permute.xlu0 %2863 }
 0x1c5   :  { %13163 = vst [vmem:[#allocation105_spill] sm:$0xff] %v9183_v51  ;;  %4049 = vrot.lane.b32.xlu1 %v8059_v21, %s7917_s23  ;;  %v9189_v50 = vpop.f32.mrf.mxu1  ;;  %7405 = vmatmul.mubr.msk.bf16.gmra.mxu1 %vm213_vm2, %v8851_v42 }
 0x1c6   :  { %13164 = vst [vmem:[#allocation106_spill] sm:$0xff] %v9189_v50  ;;  %2421 = vmatprep.mubr.bf16.mxu0 %v13089_v6  ;;  %v9194_v43 = vpop.f32.mrf.mxu0  ;;  %2474 = vmatprep.mubr.bf16.mxu1 %v13089_v6  ;;  %v9223_v50 = vld [vmem:[%s13039_s0 + $0x20] ss:$40 sps:$4 sm:$0xff]  }
 0x1c7   :  { %13165 = vst [vmem:[#allocation107_spill] sm:$0xff] %v9194_v43  ;;  %v9199_v51 = vpop.f32.mrf.mxu1  ;;  %4027 = vrot.lane.b32.xlu0 %v9206_v47, %s7917_s23  ;;  %v2314_v43 = vsel %vm2298_vm5, %v8963_v0, %v9034_v36  ;;  %13169 = vst [vmem:[#allocation111_spill] sm:$0xff] %v9223_v50  ;;  %v2277_v0 = vpop.permute.xlu1 %2276 }
 0x1c8   :  { %13166 = vst [vmem:[#allocation108_spill] sm:$0xff] %v9199_v51  ;;  %v9210_v42 = vpop.f32.mrf.mxu0  ;;  %v9218_v51 = vld [vmem:[%s13040_s1 + $0x90] sm:$0xff]   ;;  %v2358_v36 = vsel %vm226_vm1, %v2314_v43, 0  ;;  %v9247_v43 = vpop.permute.xlu0 %2867 }
 0x1c9   :  { %13168 = vst [vmem:[#allocation110_spill] sm:$0xff] %v9210_v42  ;;  %4029 = vrot.lane.b32.xlu1 %v9223_v50, %s7917_s23  ;;  %v9227_v47 = vpop.f32.mrf.mxu1  ;;  %v2306_v50 = vsel %vm2298_vm5, %v2273_v63, %v9197_v24 }
 0x1ca   :  { %13170 = vst [vmem:[#allocation112_spill] sm:$0xff] %v9227_v47  ;;  %v9229_v42 = vpop.f32.mrf.mxu0 }
 0x1cb   :  { %13171 = vst [vmem:[#allocation113_spill] sm:$0xff] %v9229_v42  ;;  %v9231_v21 = vpop.f32.mrf.mxu1  ;;  %4051 = vrot.lane.b32.xlu0 %v8084_v25, %s7917_s23  ;;  %v9263_v25 = vld [vmem:[%s13040_s1 + $0x98] sm:$0xff]  }
 0x1cc   :  { %13172 = vst [vmem:[#allocation114_spill] sm:$0xff] %v9231_v21  ;;  %v9236_v20 = vpop.f32.mrf.mxu0  ;;  %7421 = vmatmul.mubr.msk.bf16.gmra.mxu0 %vm213_vm2, %v9218_v51  ;;  %v2305_v21 = vsel %vm2298_vm5, %v9002_v19, %v2273_v63 }
 0x1cd   :  { %13173 = vst [vmem:[#allocation115_spill] sm:$0xff] %v9236_v20  ;;  %v9242_v28 = vpop.f32.mrf.mxu1  ;;  %7424 = vmatmul.mubr.msk.bf16.vlgmr.msra.gmra.mxu1 %vm213_vm2, %v9107_v30  ;;  %2431 = vmatprep.mubr.bf16.mxu0 %v13089_v6 }
 0x1ce   :  { %13174 = vst [vmem:[#allocation116_spill] sm:$0xff] %v9242_v28  ;;  %2601 = vmatpush1.bf16.msra.mxu1 %v2358_v36  ;;  %v9249_v42 = vpop.f32.mrf.mxu0  ;;  %2484 = vmatprep.mubr.bf16.mxu1 %v13089_v6  ;;  %v9256_v28 = vpop.permute.xlu1 %2865 }
 0x1cf   :  { %13175 = vst [vmem:[#allocation117_spill] sm:$0xff] %v9249_v42  ;;  %v9252_v20 = vpop.f32.mrf.mxu1  ;;  %2602 = vmatprep.subr.bf16.mxu1 %v2306_v50  ;;  %v2894_v36 = vsel %vm2883_vm6, %v9256_v28, %v9247_v43  ;;  %4620 = vrot.lane.b32.xlu0 %v7975_v4, %s7918_s29  ;;  %v741_v4 = vadd.f32 %v8931_v45, %v8609_v5 }
 0x1d0   :  { %13176 = vst [vmem:[#allocation118_spill] sm:$0xff] %v9252_v20  ;;  %v9258_v47 = vpop.f32.mrf.mxu0  ;;  %4618 = vrot.lane.b32.xlu1 %v7969_v3, %s7918_s29  ;;  %v743_v5 = vadd.f32 %v8940_v18, %v8617_v29 }
 0x1d1   :  { %13177 = vst [vmem:[#allocation119_spill] sm:$0xff] %v9258_v47  ;;  %v9268_v42 = vpop.f32.mrf.mxu1 }
 0x1d2   :  { %13178 = vst [vmem:[#allocation120_spill] sm:$0xff] %v9268_v42  ;;  %v9270_v20 = vpop.f32.mrf.mxu0  ;;  %2603 = vmatpush1.bf16.msra.mxu1 %v2305_v21  ;;  %v9287_v21 = vpop.permute.xlu1 %2845 }
 0x1d3   :  { %13179 = vst [vmem:[#allocation121_spill] sm:$0xff] %v9270_v20  ;;  %v9272_v50 = vpop.f32.mrf.mxu1  ;;  %7455 = vmatprep.subr.msk.bf16.mxu1 %vm226_vm1, %v2894_v36  ;;  %v9291_v36 = vpop.permute.xlu0 %2847 }
 0x1d4   :  { %13180 = vst [vmem:[#allocation122_spill] sm:$0xff] %v9272_v50  ;;  %v9275_v19 = vpop.f32.mrf.mxu0  ;;  %7422 = vmatmul.mubr.msk.bf16.gmra.mxu0 %vm213_vm2, %v9263_v25  ;;  %4622 = vrot.lane.b32.xlu1 %v7967_v2, %s7918_s29 }
 0x1d5   :  { %13181 = vst [vmem:[#allocation123_spill] sm:$0xff] %v9275_v19  ;;  %v9279_v63 = vpop.f32.mrf.mxu1  ;;  %7425 = vmatmul.mubr.msk.bf16.gmra.mxu1 %vm213_vm2, %v9162_v13  ;;  %2547 = vmatprep.mubr.bf16.mxu0 %v13089_v6 }
 0x1d6   :  { %13182 = vst [vmem:[#allocation124_spill] sm:$0xff] %v9279_v63  ;;  %v9284_v47 = vpop.f32.mrf.mxu0  ;;  %2494 = vmatprep.mubr.bf16.mxu1 %v13089_v6  ;;  %v2316_v63 = vsel %vm2298_vm5, %v9041_v49, %v9164_v61  ;;  %v731_v49 = vadd.f32 %v8903_v22, %v8569_v56 }
 0x1d7   :  { %13183 = vst [vmem:[#allocation125_spill] sm:$0xff] %v9284_v47  ;;  %v9289_v20 = vpop.f32.mrf.mxu1  ;;  %v729_v47 = vadd.f32 %v8893_v31, %v8558_v53  ;;  %v2364_v16 = vsel %vm226_vm1, %v2316_v63, 0  ;;  %v9320_v53 = vpop.permute.xlu0 %2871  ;;  %v733_v63 = vadd.f32 %v8912_v12, %v8580_v59  ;;  %v739_v12 = vadd.f32 %v8923_v23, %v8594_v1 }
 0x1d8   :  { %13184 = vst [vmem:[#allocation126_spill] sm:$0xff] %v9289_v20  ;;  %v9293_v19 = vpop.f32.mrf.mxu0  ;;  %4600 = vrot.lane.b32.xlu1 %v9023_v54, %s7918_s29 }
 0x1d9   :  { %13185 = vst [vmem:[#allocation127_spill] sm:$0xff] %v9293_v19  ;;  %v9298_v50 = vpop.f32.mrf.mxu1  ;;  %v9309_v19 = vpop.permute.xlu1 %2869 }
 0x1da   :  { %13186 = vst [vmem:[#allocation128_spill] sm:$0xff] %v9298_v50  ;;  %v9300_v42 = vpop.f32.mrf.mxu0 }
 0x1db   :  { %13187 = vst [vmem:[#allocation129_spill] sm:$0xff] %v9300_v42  ;;  %v9304_v7 = vpop.f32.mrf.mxu1  ;;  %v9363_v23 = vpop.permute.xlu0 %2849 }
 0x1dc   :  { %v1233_v20 = vpop.f32.mrf.mxu0  ;;  %7429 = vmatmul.mubr.msk.bf16.vlgmr.msra.gmra.mxu0 %vm213_vm2, %v9107_v30  ;;  %4598 = vrot.lane.b32.xlu1 %v9081_v57, %s7918_s29  ;;  %v808_v57 = vadd.f32 %v8979_v60, %v8628_v34  ;;  %v13194_v34 = vld [vmem:[#allocation7_spill] sm:$0xff] }
 0x1dd   :  { %v9313_v61 = vpop.f32.mrf.mxu1  ;;  %v9315_v50 = vadd.f32 %v1233_v20, %v729_v47  ;;  %7426 = vmatmul.mubr.msk.bf16.gmra.mxu1 %vm213_vm2, %v9218_v51  ;;  %2557 = vmatprep.mubr.bf16.mxu0 %v13089_v6  ;;  %v2307_v20 = vsel %vm2298_vm5, %v9197_v24, %v2277_v0  ;;  %v2896_v47 = vsel %vm2883_vm6, %v9309_v19, %v9320_v53 }
 0x1de   :  { %13188 = vst [vmem:[#allocation130_spill] sm:$0xff] %v9313_v61  ;;  %v1235_v31 = vpop.f32.mrf.mxu0  ;;  %2504 = vmatprep.mubr.bf16.mxu1 %v13089_v6  ;;  %2674 = vmatpush1.bf16.msra.mxu0 %v2364_v16 }
 0x1df   :  { %13189 = vst [vmem:[#allocation131_spill] sm:$0xff] %v9315_v50  ;;  %v9325_v42 = vpop.f32.mrf.mxu1  ;;  %v9327_v56 = vadd.f32 %v1235_v31, %v731_v49  ;;  %2675 = vmatprep.subr.bf16.mxu0 %v2277_v0  ;;  %v735_v50 = vadd.f32 %v8916_v9, %v8585_v62  ;;  %v2844_v62 = vpop.permute.xlu1 %2843 }
 0x1e0   :  { %v1237_v22 = vpop.f32.mrf.mxu0  ;;  %4626 = vrot.lane.b32.xlu1 %v8009_v11, %s7918_s29  ;;  %v13196_v11 = vld [vmem:[#allocation11_spill] sm:$0xff] }
 0x1e1   :  { %v9336_v16 = vpop.f32.mrf.mxu1  ;;  %v9338_v61 = vadd.f32 %v1237_v22, %v733_v63  ;;  %v2893_v22 = vsel %vm2883_vm6, %v9201_v58, %v9256_v28 }
 0x1e2   :  { %v1239_v59 = vpop.f32.mrf.mxu0  ;;  %2676 = vmatpush1.bf16.msra.mxu0 %v2307_v20  ;;  %v2925_v58 = vsel %vm226_vm1, %v2893_v22, 0 }
 0x1e3   :  { %v9346_v24 = vpop.f32.mrf.mxu1  ;;  %v9348_v0 = vadd.f32 %v1239_v59, %v735_v50  ;;  %7460 = vmatprep.subr.msk.bf16.mxu0 %vm226_vm1, %v2896_v47  ;;  %v9368_v50 = vld [vmem:[%s13039_s0 + $0x24] ss:$40 sps:$4 sm:$0xff]   ;;  %v9378_v63 = vpop.permute.xlu1 %2851  ;;  %v745_v47 = vadd.f32 %v8946_v14, %v8626_v33  ;;  %v802_v33 = vadd.f32 %v8949_v52, %v8602_v26  ;;  %v804_v26 = vadd.f32 %v8965_v55, %v8612_v27 }
 0x1e4   :  { %v1243_v9 = vpop.f32.mrf.mxu0  ;;  %7430 = vmatmul.mubr.msk.bf16.gmra.mxu0 %vm213_vm2, %v9162_v13  ;;  %4031 = vrot.lane.b32.xlu0 %v9368_v50, %s7917_s23  ;;  %v806_v27 = vadd.f32 %v8972_v46, %v8624_v32 }
 0x1e5   :  { %v9355_v3 = vpop.f32.mrf.mxu1  ;;  %v9357_v49 = vadd.f32 %v1243_v9, %v739_v12  ;;  %7427 = vmatmul.mubr.msk.bf16.gmra.mxu1 %vm213_vm2, %v9263_v25  ;;  %2567 = vmatprep.mubr.bf16.mxu0 %v13089_v6  ;;  %v749_v12 = vadd.f32 %v8958_v38, %v8633_v8  ;;  %v2885_v8 = vsel %vm2883_vm6, %v9287_v21, %v9291_v36  ;;  %v9409_v38 = vpop.permute.xlu0 %2873 }
 0x1e6   :  { %v1245_v1 = vpop.f32.mrf.mxu0  ;;  %2620 = vmatprep.mubr.bf16.mxu1 %v13089_v6 }
 0x1e7   :  { %v9374_v45 = vpop.f32.mrf.mxu1  ;;  %v9376_v31 = vadd.f32 %v1245_v1, %v741_v4  ;;  %v9418_v54 = vpop.permute.xlu1 %2875 }
 0x1e8   :  { %v1247_v20 = vpop.f32.mrf.mxu0  ;;  %4602 = vrot.lane.b32.xlu0 %v9054_v17, %s7918_s29  ;;  %v751_v17 = vadd.f32 %v8968_v48, %v8644_v37  ;;  %v753_v37 = vadd.f32 %v8977_v41, %v8651_v40  ;;  %v2898_v40 = vsel %vm2883_vm6, %v9409_v38, %v9418_v54  ;;  %v755_v41 = vadd.f32 %v8981_v39, %v8662_v44  ;;  %v13193_v39 = vld [vmem:[#allocation70_spill] sm:$0xff] }
 0x1e9   :  { %v9387_v59 = vpop.f32.mrf.mxu1  ;;  %v9389_v29 = vadd.f32 %v1247_v20, %v743_v5  ;;  %v2884_v20 = vsel %vm2883_vm6, %v2844_v62, %v9287_v21 }
 0x1ea   :  { %v1249_v18 = vpop.f32.mrf.mxu0 }
 0x1eb   :  { %v9395_v2 = vpop.f32.mrf.mxu1  ;;  %v9397_v9 = vadd.f32 %v1249_v18, %v745_v47  ;;  %v13190_v47 = vld [vmem:[#allocation6_spill] sm:$0xff]  ;;  %v13191_v18 = vld [vmem:[#allocation71_spill] sm:$0xff] }
 0x1ec   :  { %v1253_v14 = vpop.f32.mrf.mxu0  ;;  %7431 = vmatmul.mubr.msk.bf16.gmra.mxu0 %vm213_vm2, %v9218_v51  ;;  %4624 = vrot.lane.b32.xlu0 %v8007_v10, %s7918_s29  ;;  %v13192_v10 = vld [vmem:[#allocation10_spill] sm:$0xff] }
 0x1ed   :  { %v9413_v28 = vadd.f32 %v1253_v14, %v749_v12  ;;  %v1306_v4 = vpop.f32.mrf.mxu1  ;;  %7434 = vmatmul.mubr.msk.bf16.vlgmr.msra.gmra.mxu1 %vm213_vm2, %v9107_v30  ;;  %2577 = vmatprep.mubr.bf16.mxu0 %v13089_v6  ;;  %v759_v12 = vadd.f32 %v13191_v18, %v13190_v47  ;;  %v812_v44 = vadd.f32 %v13193_v39, %v13192_v10  ;;  %v13203_v10 = vld [vmem:[#allocation9_spill] sm:$0xff] }
 0x1ee   :  { %v9422_v52 = vadd.f32 %v1306_v4, %v802_v33  ;;  %v1255_v1 = vpop.f32.mrf.mxu0  ;;  %2630 = vmatprep.mubr.bf16.mxu1 %v13089_v6  ;;  %2967 = vmatpush1.bf16.msra.mxu1 %v2925_v58  ;;  %v13204_v39 = vld [vmem:[#allocation77_spill] sm:$0xff] }
 0x1ef   :  { %v9427_v48 = vadd.f32 %v1255_v1, %v751_v17  ;;  %v1308_v5 = vpop.f32.mrf.mxu1  ;;  %2968 = vmatprep.subr.bf16.mxu1 %v2885_v8  ;;  %v13195_v8 = vld [vmem:[#allocation73_spill] sm:$0xff]  ;;  %v13197_v1 = vld [vmem:[#allocation72_spill] sm:$0xff] }
 0x1f0   :  { %v9435_v55 = vadd.f32 %v1308_v5, %v804_v26  ;;  %v1257_v22 = vpop.f32.mrf.mxu0  ;;  %4604 = vrot.lane.b32.xlu0 %v9098_v35, %s7918_s29  ;;  %v761_v17 = vadd.f32 %v13195_v8, %v13194_v34  ;;  %v13198_v35 = vld [vmem:[#allocation8_spill] sm:$0xff]  ;;  %v9496_v8 = vpop.permute.xlu1 %2855 }
 0x1f1   :  { %v9444_v21 = vadd.f32 %v1257_v22, %v753_v37  ;;  %v1310_v62 = vpop.f32.mrf.mxu1  ;;  %v814_v37 = vadd.f32 %v13197_v1, %v13196_v11 }
 0x1f2   :  { %v9448_v32 = vadd.f32 %v1310_v62, %v806_v27  ;;  %v1259_v46 = vpop.f32.mrf.mxu0  ;;  %2969 = vmatpush1.bf16.msra.mxu1 %v2884_v20  ;;  %v13199_v27 = vld [vmem:[#allocation75_spill] sm:$0xff] }
 0x1f3   :  { %v9452_v58 = vadd.f32 %v1259_v46, %v755_v41  ;;  %v1312_v33 = vpop.f32.mrf.mxu1  ;;  %7465 = vmatprep.subr.msk.bf16.mxu1 %vm226_vm1, %v2898_v40  ;;  %v763_v22 = vadd.f32 %v13199_v27, %v13198_v35  ;;  %v13200_v62 = vld [vmem:[#allocation91_spill] sm:$0xff]  ;;  %v13202_v46 = vld [vmem:[#allocation74_spill] sm:$0xff] }
 0x1f4   :  { %v9459_v14 = vadd.f32 %v1312_v33, %v808_v57  ;;  %v1263_v60 = vpop.f32.mrf.mxu0  ;;  %7432 = vmatmul.mubr.msk.bf16.gmra.mxu0 %vm213_vm2, %v9263_v25  ;;  %4606 = vrot.lane.b32.xlu1 %v13200_v62, %s7918_s29  ;;  %v13201_v57 = vld [vmem:[#allocation12_spill] sm:$0xff]  ;;  %v2895_v33 = vsel %vm2883_vm6, %v9247_v43, %v9309_v19  ;;  %v13208_v35 = vld [vmem:[#allocation79_spill] sm:$0xff] }
 0x1f5   :  { %v9467_v4 = vadd.f32 %v1263_v60, %v759_v12  ;;  %v1316_v26 = vpop.f32.mrf.mxu1  ;;  %7435 = vmatmul.mubr.msk.bf16.gmra.mxu1 %vm213_vm2, %v9162_v13  ;;  %2693 = vmatprep.mubr.bf16.mxu0 %v13089_v6  ;;  %v816_v47 = vadd.f32 %v13202_v46, %v13201_v57  ;;  %v2931_v27 = vsel %vm226_vm1, %v2895_v33, 0  ;;  %v13211_v62 = vld [vmem:[#allocation15_spill] sm:$0xff]  ;;  %v13212_v57 = vld [vmem:[#allocation78_spill] sm:$0xff] }
 0x1f6   :  { %v9474_v5 = vadd.f32 %v1316_v26, %v812_v44  ;;  %v1265_v20 = vpop.f32.mrf.mxu0  ;;  %2640 = vmatprep.mubr.bf16.mxu1 %v13089_v6  ;;  %4628 = vrot.lane.b32.xlu0 %v8032_v15, %s7918_s29  ;;  %v765_v44 = vadd.f32 %v13204_v39, %v13203_v10  ;;  %v13206_v26 = vld [vmem:[#allocation76_spill] sm:$0xff]  ;;  %v822_v46 = vadd.f32 %v13212_v57, %v13211_v62  ;;  %v13213_v33 = vld [vmem:[#allocation99_spill] sm:$0xff] }
 0x1f7   :  { %v9479_v40 = vadd.f32 %v1265_v20, %v761_v17  ;;  %v1318_v41 = vpop.f32.mrf.mxu1  ;;  %v13205_v17 = vld [vmem:[#allocation13_spill] sm:$0xff]  ;;  %v13207_v20 = vld [vmem:[#allocation14_spill] sm:$0xff]  ;;  %v2887_v10 = vsel %vm2883_vm6, %v9363_v23, %v9378_v63  ;;  %v13214_v39 = vld [vmem:[#allocation16_spill] sm:$0xff] }
 0x1f8   :  { %v9485_v18 = vadd.f32 %v1318_v41, %v814_v37  ;;  %v1267_v12 = vpop.f32.mrf.mxu0  ;;  %v818_v11 = vadd.f32 %v13206_v26, %v13205_v17  ;;  %v875_v43 = vadd.f32 %v13208_v35, %v13207_v20  ;;  %v9507_v41 = vpop.permute.xlu0 %2853  ;;  %v13221_v62 = vld [vmem:[#allocation83_spill] sm:$0xff] }
 0x1f9   :  { %v9494_v60 = vadd.f32 %v1267_v12, %v763_v22  ;;  %v1320_v34 = vpop.f32.mrf.mxu1  ;;  %v13210_v22 = vld [vmem:[#allocation2_spill] sm:$0xff] }
 0x1fa   :  { %v9500_v1 = vadd.f32 %v1320_v34, %v816_v47  ;;  %v1269_v37 = vpop.f32.mrf.mxu0  ;;  %4630 = vrot.lane.b32.xlu1 %v13210_v22, %s7918_s29  ;;  %4608 = vrot.lane.b32.xlu0 %v13213_v33, %s7918_s29  ;;  %v13220_v22 = vld [vmem:[#allocation18_spill] sm:$0xff]  ;;  %v2886_v33 = vsel %vm2883_vm6, %v9291_v36, %v9363_v23  ;;  %v13228_v36 = vld [vmem:[#allocation20_spill] sm:$0xff]  ;;  %v13229_v23 = vld [vmem:[#allocation85_spill] sm:$0xff] }
 0x1fb   :  { %v9504_v19 = vadd.f32 %v1269_v37, %v765_v44  ;;  %v1322_v15 = vpop.f32.mrf.mxu1  ;;  %v13215_v44 = vld [vmem:[#allocation81_spill] sm:$0xff]  ;;  %v13218_v37 = vld [vmem:[#allocation80_spill] sm:$0xff] }
 0x1fc   :  { %v9513_v12 = vadd.f32 %v1322_v15, %v818_v11  ;;  %v1379_v47 = vpop.f32.mrf.mxu0  ;;  %7439 = vmatmul.mubr.msk.bf16.vlgmr.msra.gmra.mxu0 %vm213_vm2, %v9107_v30  ;;  %v877_v34 = vadd.f32 %v13215_v44, %v13214_v39  ;;  %v9529_v11 = vpop.permute.xlu1 %2879  ;;  %v13217_v30 = vld [vmem:[#allocation17_spill] sm:$0xff]  ;;  %v13224_v44 = vld [vmem:[#allocation19_spill] sm:$0xff] }
 0x1fd   :  { %13209 = vst [vmem:[#allocation6_spill] sm:$0xff] %v9504_v19  ;;  %v1326_v17 = vpop.f32.mrf.mxu1  ;;  %v9524_v26 = vadd.f32 %v1379_v47, %v875_v43  ;;  %7436 = vmatmul.mubr.msk.bf16.gmra.mxu1 %vm213_vm2, %v9218_v51  ;;  %2703 = vmatprep.mubr.bf16.mxu0 %v13089_v6  ;;  %v824_v20 = vadd.f32 %v13218_v37, %v13217_v30  ;;  %v9543_v39 = vpop.permute.xlu0 %2877 }
 0x1fe   :  { %v9533_v35 = vadd.f32 %v1326_v17, %v822_v46  ;;  %v1381_v15 = vpop.f32.mrf.mxu0  ;;  %2650 = vmatprep.mubr.bf16.mxu1 %v13089_v6  ;;  %3040 = vmatpush1.bf16.msra.mxu0 %v2931_v27  ;;  %v879_v43 = vadd.f32 %v13221_v62, %v13220_v22  ;;  %v13223_v46 = vld [vmem:[#allocation101_spill] sm:$0xff]  ;;  %v13225_v17 = vld [vmem:[#allocation82_spill] sm:$0xff] }
 0x1ff   :  { %13216 = vst [vmem:[#allocation71_spill] sm:$0xff] %v9524_v26  ;;  %v1328_v57 = vpop.f32.mrf.mxu1  ;;  %v9538_v47 = vadd.f32 %v1381_v15, %v877_v34  ;;  %3041 = vmatprep.subr.bf16.mxu0 %v2887_v10  ;;  %4610 = vrot.lane.b32.xlu1 %v13223_v46, %s7918_s29  ;;  %v826_v30 = vadd.f32 %v13225_v17, %v13224_v44  ;;  %v13227_v15 = vld [vmem:[#allocation3_spill] sm:$0xff]  ;;  %v13231_v46 = vld [vmem:[#allocation21_spill] sm:$0xff] }
 0x200   :  { %13219 = vst [vmem:[#allocation10_spill] sm:$0xff] %v9533_v35  ;;  %v9549_v27 = vadd.f32 %v1328_v57, %v824_v20  ;;  %v1383_v37 = vpop.f32.mrf.mxu0  ;;  %v2900_v34 = vsel %vm2883_vm6, %v9543_v39, %v9529_v11  ;;  %4632 = vrot.lane.b32.xlu0 %v13227_v15, %s7918_s29  ;;  %v881_v10 = vadd.f32 %v13229_v23, %v13228_v36  ;;  %v13234_v57 = vld [vmem:[#allocation22_spill] sm:$0xff]  ;;  %v13235_v17 = vld [vmem:[#allocation87_spill] sm:$0xff]  ;;  %v13237_v15 = vld [vmem:[#allocation4_spill] sm:$0xff] }
 0x201   :  { %13222 = vst [vmem:[#allocation70_spill] sm:$0xff] %v9538_v47  ;;  %v1330_v22 = vpop.f32.mrf.mxu1  ;;  %v9558_v62 = vadd.f32 %v1383_v37, %v879_v43  ;;  %v13232_v47 = vld [vmem:[#allocation84_spill] sm:$0xff]  ;;  %v13238_v43 = vld [vmem:[#allocation23_spill] sm:$0xff]  ;;  %v13239_v37 = vld [vmem:[#allocation86_spill] sm:$0xff] }
 0x202   :  { %13226 = vst [vmem:[#allocation7_spill] sm:$0xff] %v9549_v27  ;;  %v828_v26 = vadd.f32 %v13232_v47, %v13231_v46  ;;  %v9562_v44 = vadd.f32 %v1330_v22, %v826_v30  ;;  %v1385_v20 = vpop.f32.mrf.mxu0  ;;  %3042 = vmatpush1.bf16.msra.mxu0 %v2886_v33  ;;  %v885_v27 = vadd.f32 %v13235_v17, %v13234_v57  ;;  %v13241_v33 = vld [vmem:[#allocation109_spill] sm:$0xff]  ;;  %v13242_v30 = vld [vmem:[#allocation24_spill] sm:$0xff]  ;;  %v13248_v17 = vld [vmem:[#allocation26_spill] sm:$0xff] }
 0x203   :  { %13230 = vst [vmem:[#allocation73_spill] sm:$0xff] %v9558_v62  ;;  %v1332_v35 = vpop.f32.mrf.mxu1  ;;  %v9566_v19 = vadd.f32 %v1385_v20, %v881_v10  ;;  %7470 = vmatprep.subr.msk.bf16.mxu0 %vm226_vm1, %v2900_v34  ;;  %4634 = vrot.lane.b32.xlu1 %v13237_v15, %s7918_s29  ;;  %v832_v36 = vadd.f32 %v13239_v37, %v13238_v43  ;;  %v13243_v10 = vld [vmem:[#allocation89_spill] sm:$0xff]  ;;  %v13249_v15 = vld [vmem:[#allocation92_spill] sm:$0xff] }
 0x204   :  { %13233 = vst [vmem:[#allocation11_spill] sm:$0xff] %v9562_v44  ;;  %v9573_v23 = vadd.f32 %v1332_v35, %v828_v26  ;;  %v1389_v47 = vpop.f32.mrf.mxu0  ;;  %7440 = vmatmul.mubr.msk.bf16.gmra.mxu0 %vm213_vm2, %v9162_v13  ;;  %4612 = vrot.lane.b32.xlu0 %v13241_v33, %s7918_s29  ;;  %v887_v22 = vadd.f32 %v13243_v10, %v13242_v30  ;;  %v13245_v26 = vld [vmem:[#allocation25_spill] sm:$0xff]  ;;  %v13246_v35 = vld [vmem:[#allocation88_spill] sm:$0xff]  ;;  %v13253_v30 = vld [vmem:[#allocation90_spill] sm:$0xff] }
 0x205   :  { %13236 = vst [vmem:[#allocation72_spill] sm:$0xff] %v9566_v19  ;;  %v1336_v46 = vpop.f32.mrf.mxu1  ;;  %v9581_v34 = vadd.f32 %v1389_v47, %v885_v27  ;;  %7437 = vmatmul.mubr.msk.bf16.gmra.mxu1 %vm213_vm2, %v9263_v25  ;;  %2713 = vmatprep.mubr.bf16.mxu0 %v13089_v6  ;;  %v834_v20 = vadd.f32 %v13246_v35, %v13245_v26  ;;  %v13251_v27 = vld [vmem:[#allocation111_spill] sm:$0xff]  ;;  %v13256_v35 = vld [vmem:[#allocation28_spill] sm:$0xff] }
 0x206   :  { %13240 = vst [vmem:[#allocation8_spill] sm:$0xff] %v9573_v23  ;;  %v9588_v57 = vadd.f32 %v1336_v46, %v832_v36  ;;  %v1391_v13 = vpop.f32.mrf.mxu0  ;;  %2986 = vmatprep.mubr.bf16.mxu1 %v13089_v6  ;;  %v889_v43 = vadd.f32 %v13249_v15, %v13248_v17  ;;  %v13252_v47 = vld [vmem:[#allocation27_spill] sm:$0xff]  ;;  %v2897_v36 = vsel %vm2883_vm6, %v9320_v53, %v9409_v38  ;;  %v13255_v46 = vld [vmem:[#allocation5_spill] sm:$0xff]  ;;  %v13257_v17 = vld [vmem:[#allocation94_spill] sm:$0xff] }
 0x207   :  { %13244 = vst [vmem:[#allocation75_spill] sm:$0xff] %v9581_v34  ;;  %v1338_v37 = vpop.f32.mrf.mxu1  ;;  %v9593_v33 = vadd.f32 %v1391_v13, %v887_v22  ;;  %4614 = vrot.lane.b32.xlu1 %v13251_v27, %s7918_s29  ;;  %v836_v10 = vadd.f32 %v13253_v30, %v13252_v47  ;;  %v891_v22 = vadd.f32 %v13257_v17, %v13256_v35  ;;  %v9613_v27 = vld [vmem:[%s13040_s1 + $0xa0] sm:$0xff]  }
 0x208   :  { %13247 = vst [vmem:[#allocation91_spill] sm:$0xff] %v9588_v57  ;;  %v9599_v34 = vadd.f32 %v1338_v37, %v834_v20  ;;  %v1393_v26 = vpop.f32.mrf.mxu0  ;;  %4636 = vrot.lane.b32.xlu0 %v13255_v46, %s7918_s29  ;;  %v13259_v20 = vld [vmem:[#allocation29_spill] sm:$0xff]  ;;  %v13262_v38 = vld [vmem:[#allocation30_spill] sm:$0xff] }
 0x209   :  { %13250 = vst [vmem:[#allocation12_spill] sm:$0xff] %v9593_v33  ;;  %v1340_v13 = vpop.f32.mrf.mxu1  ;;  %v9608_v15 = vadd.f32 %v1393_v26, %v889_v43  ;;  %v13260_v37 = vld [vmem:[#allocation93_spill] sm:$0xff]  ;;  %v13263_v33 = vld [vmem:[#allocation96_spill] sm:$0xff]  ;;  %v13265_v43 = vld [vmem:[#allocation31_spill] sm:$0xff] }
 0x20a   :  { %13254 = vst [vmem:[#allocation74_spill] sm:$0xff] %v9599_v34  ;;  %v838_v47 = vadd.f32 %v13260_v37, %v13259_v20  ;;  %v9617_v30 = vadd.f32 %v1340_v13, %v836_v10  ;;  %v1395_v53 = vpop.f32.mrf.mxu0  ;;  %v895_v46 = vadd.f32 %v13263_v33, %v13262_v38  ;;  %v2937_v34 = vsel %vm226_vm1, %v2897_v36, 0  ;;  %v13266_v26 = vld [vmem:[#allocation95_spill] sm:$0xff]  ;;  %v9635_v10 = vpop.permute.xlu0 %2857  ;;  %v13268_v36 = vld [vmem:[#allocation32_spill] sm:$0xff] }
 0x20b   :  { %13258 = vst [vmem:[#allocation9_spill] sm:$0xff] %v9608_v15  ;;  %v1342_v35 = vpop.f32.mrf.mxu1  ;;  %v9622_v17 = vadd.f32 %v1395_v53, %v891_v22  ;;  %4616 = vrot.lane.b32.xlu1 %v9368_v50, %s7918_s29  ;;  %v948_v15 = vadd.f32 %v13266_v26, %v13265_v43  ;;  %v2889_v33 = vsel %vm2883_vm6, %v9507_v41, %v9496_v8  ;;  %v13269_v22 = vld [vmem:[#allocation98_spill] sm:$0xff]  ;;  %v13272_v53 = vld [vmem:[#allocation97_spill] sm:$0xff] }
 0x20c   :  { %13261 = vst [vmem:[#allocation77_spill] sm:$0xff] %v9617_v30  ;;  %v9628_v57 = vadd.f32 %v1342_v35, %v838_v47  ;;  %v1399_v20 = vpop.f32.mrf.mxu0  ;;  %7441 = vmatmul.mubr.msk.bf16.gmra.mxu0 %vm213_vm2, %v9218_v51  ;;  %v897_v13 = vadd.f32 %v13269_v22, %v13268_v36  ;;  %v13271_v47 = vld [vmem:[#allocation33_spill] sm:$0xff]  ;;  %v13274_v43 = vld [vmem:[#allocation34_spill] sm:$0xff]  ;;  %v2888_v22 = vsel %vm2883_vm6, %v9378_v63, %v9507_v41  ;;  %v13284_v41 = vld [vmem:[#allocation103_spill] sm:$0xff] }
 0x20d   :  { %13264 = vst [vmem:[#allocation13_spill] sm:$0xff] %v9622_v17  ;;  %v9639_v37 = vadd.f32 %v1399_v20, %v895_v46  ;;  %v1452_v50 = vpop.f32.mrf.mxu1  ;;  %7456 = vmatmul.mubr.msk.bf16.vlgmr.msra.gmra.mxu1 %vm213_vm2, %v9613_v27  ;;  %2723 = vmatprep.mubr.bf16.mxu0 %v13089_v6  ;;  %v950_v51 = vadd.f32 %v13272_v53, %v13271_v47  ;;  %v13275_v26 = vld [vmem:[#allocation102_spill] sm:$0xff]  ;;  %v13278_v17 = vld [vmem:[#allocation100_spill] sm:$0xff]  ;;  %v13283_v63 = vld [vmem:[#allocation37_spill] sm:$0xff] }
 0x20e   :  { %13267 = vst [vmem:[#allocation76_spill] sm:$0xff] %v9628_v57  ;;  %v9646_v38 = vadd.f32 %v1452_v50, %v948_v15  ;;  %3113 = vmatpush1.bf16.msra.mxu1 %v2937_v34  ;;  %v1401_v35 = vpop.f32.mrf.mxu0  ;;  %2996 = vmatprep.mubr.bf16.mxu1 %v13089_v6  ;;  %v899_v36 = vadd.f32 %v13275_v26, %v13274_v43  ;;  %v13280_v50 = vld [vmem:[#allocation36_spill] sm:$0xff]  ;;  %v13286_v26 = vld [vmem:[#allocation38_spill] sm:$0xff] }
 0x20f   :  { %13270 = vst [vmem:[#allocation14_spill] sm:$0xff] %v9639_v37  ;;  %v9651_v46 = vadd.f32 %v1401_v35, %v897_v13  ;;  %v1454_v20 = vpop.f32.mrf.mxu1  ;;  %3114 = vmatprep.subr.bf16.mxu1 %v2889_v33  ;;  %v13277_v37 = vld [vmem:[#allocation35_spill] sm:$0xff]  ;;  %v13281_v53 = vld [vmem:[#allocation104_spill] sm:$0xff]  ;;  %v9669_v35 = vpop.permute.xlu1 %2859  ;;  %v954_v33 = vadd.f32 %v13284_v41, %v13283_v63 }
 0x210   :  { %13273 = vst [vmem:[#allocation79_spill] sm:$0xff] %v9646_v38  ;;  %v952_v47 = vadd.f32 %v13278_v17, %v13277_v37  ;;  %v9658_v15 = vadd.f32 %v1454_v20, %v950_v51  ;;  %v1403_v34 = vpop.f32.mrf.mxu0  ;;  %v901_v38 = vadd.f32 %v13281_v53, %v13280_v50  ;;  %v9667_v13 = vld [vmem:[%s13040_s1 + $0xa8] sm:$0xff]   ;;  %v9675_v51 = vpop.permute.xlu0 %2881 }
 0x211   :  { %13276 = vst [vmem:[#allocation2_spill] sm:$0xff] %v9651_v46  ;;  %v9662_v57 = vadd.f32 %v1403_v34, %v899_v36  ;;  %v1456_v43 = vpop.f32.mrf.mxu1  ;;  %v13287_v36 = vld [vmem:[#allocation106_spill] sm:$0xff]  ;;  %v13289_v53 = vld [vmem:[#allocation39_spill] sm:$0xff] }
 0x212   :  { %13279 = vst [vmem:[#allocation15_spill] sm:$0xff] %v9658_v15  ;;  %v9673_v17 = vadd.f32 %v1456_v43, %v952_v47  ;;  %v1405_v37 = vpop.f32.mrf.mxu0  ;;  %3115 = vmatpush1.bf16.msra.mxu1 %v2888_v22  ;;  %v905_v20 = vadd.f32 %v13287_v36, %v13286_v26  ;;  %v13292_v22 = vld [vmem:[#allocation40_spill] sm:$0xff] }
 0x213   :  { %13282 = vst [vmem:[#allocation78_spill] sm:$0xff] %v9662_v57  ;;  %v9679_v34 = vadd.f32 %v1405_v37, %v901_v38  ;;  %v1458_v50 = vpop.f32.mrf.mxu1  ;;  %7475 = vmatprep.subr.msk.bf16.mxu1 %vm226_vm1, %v9675_v51  ;;  %v13290_v57 = vld [vmem:[#allocation105_spill] sm:$0xff]  ;;  %v13293_v43 = vld [vmem:[#allocation108_spill] sm:$0xff]  ;;  %v9696_v37 = vpop.permute.xlu1 %3448 }
 0x214   :  { %13285 = vst [vmem:[#allocation99_spill] sm:$0xff] %v9673_v17  ;;  %v958_v46 = vadd.f32 %v13290_v57, %v13289_v53  ;;  %v9685_v15 = vadd.f32 %v1458_v50, %v954_v33  ;;  %v1409_v47 = vpop.f32.mrf.mxu0  ;;  %7442 = vmatmul.mubr.msk.bf16.gmra.mxu0 %vm213_vm2, %v9263_v25  ;;  %v907_v63 = vadd.f32 %v13293_v43, %v13292_v22  ;;  %v13295_v57 = vld [vmem:[#allocation41_spill] sm:$0xff]  ;;  %v13296_v33 = vld [vmem:[#allocation107_spill] sm:$0xff]  ;;  %v13298_v25 = vld [vmem:[#allocation42_spill] sm:$0xff] }
 0x215   :  { %13288 = vst [vmem:[#allocation16_spill] sm:$0xff] %v9679_v34  ;;  %v9691_v41 = vadd.f32 %v1409_v47, %v905_v20  ;;  %v1462_v38 = vpop.f32.mrf.mxu1  ;;  %7457 = vmatmul.mubr.msk.bf16.gmra.mxu1 %vm213_vm2, %v9667_v13  ;;  %3059 = vmatprep.mubr.bf16.mxu0 %v13089_v6  ;;  %v960_v26 = vadd.f32 %v13296_v33, %v13295_v57  ;;  %v13299_v53 = vld [vmem:[#allocation112_spill] sm:$0xff]  ;;  %v13301_v43 = vld [vmem:[#allocation43_spill] sm:$0xff]  ;;  %v13305_v57 = vld [vmem:[#allocation114_spill] sm:$0xff] }
 0x216   :  { %13291 = vst [vmem:[#allocation81_spill] sm:$0xff] %v9685_v15  ;;  %v9700_v36 = vadd.f32 %v1462_v38, %v958_v46  ;;  %v1411_v50 = vpop.f32.mrf.mxu0  ;;  %3006 = vmatprep.mubr.bf16.mxu1 %v13089_v6  ;;  %v909_v20 = vadd.f32 %v13299_v53, %v13298_v25  ;;  %v2899_v46 = vsel %vm2883_vm6, %v9418_v54, %v9543_v39  ;;  %v13304_v38 = vld [vmem:[#allocation44_spill] sm:$0xff] }
 0x217   :  { %13294 = vst [vmem:[#allocation17_spill] sm:$0xff] %v9691_v41  ;;  %v9705_v47 = vadd.f32 %v1411_v50, %v907_v63  ;;  %v1464_v22 = vpop.f32.mrf.mxu1  ;;  %v13302_v41 = vld [vmem:[#allocation110_spill] sm:$0xff]  ;;  %v911_v33 = vadd.f32 %v13305_v57, %v13304_v38  ;;  %v9721_v63 = vld [vmem:[%s13040_s1 + $0xb0] sm:$0xff]   ;;  %v13307_v50 = vld [vmem:[#allocation45_spill] sm:$0xff] }
 0x218   :  { %13297 = vst [vmem:[#allocation80_spill] sm:$0xff] %v9700_v36  ;;  %v962_v34 = vadd.f32 %v13302_v41, %v13301_v43  ;;  %v9709_v15 = vadd.f32 %v1464_v22, %v960_v26  ;;  %v1413_v17 = vpop.f32.mrf.mxu0  ;;  %v13308_v41 = vld [vmem:[#allocation113_spill] sm:$0xff]  ;;  %v13310_v22 = vld [vmem:[#allocation46_spill] sm:$0xff]  ;;  %v13311_v43 = vld [vmem:[#allocation116_spill] sm:$0xff] }
 0x219   :  { %13300 = vst [vmem:[#allocation18_spill] sm:$0xff] %v9705_v47  ;;  %v9716_v36 = vadd.f32 %v1413_v17, %v909_v20  ;;  %v1466_v30 = vpop.f32.mrf.mxu1  ;;  %v964_v26 = vadd.f32 %v13308_v41, %v13307_v50  ;;  %v1021_v54 = vadd.f32 %v13311_v43, %v13310_v22  ;;  %v2943_v17 = vsel %vm226_vm1, %v2899_v46, 0  ;;  %v9732_v20 = vpop.permute.xlu1 %3452  ;;  %v13313_v57 = vld [vmem:[#allocation47_spill] sm:$0xff]  ;;  %v13317_v50 = vld [vmem:[#allocation118_spill] sm:$0xff] }
 0x21a   :  { %13303 = vst [vmem:[#allocation83_spill] sm:$0xff] %v9709_v15  ;;  %v9725_v25 = vadd.f32 %v1466_v30, %v962_v34  ;;  %v1415_v53 = vpop.f32.mrf.mxu0  ;;  %v2891_v30 = vsel %vm2883_vm6, %v9635_v10, %v9669_v35  ;;  %v9743_v34 = vpop.permute.xlu0 %3450 }
 0x21b   :  { %13306 = vst [vmem:[#allocation101_spill] sm:$0xff] %v9716_v36  ;;  %v9729_v39 = vadd.f32 %v1415_v53, %v911_v33  ;;  %v1468_v38 = vpop.f32.mrf.mxu1  ;;  %v13314_v36 = vld [vmem:[#allocation115_spill] sm:$0xff]  ;;  %v13316_v33 = vld [vmem:[#allocation48_spill] sm:$0xff] }
 0x21c   :  { %13309 = vst [vmem:[#allocation19_spill] sm:$0xff] %v9725_v25  ;;  %v968_v47 = vadd.f32 %v13314_v36, %v13313_v57  ;;  %v9736_v15 = vadd.f32 %v1468_v38, %v964_v26  ;;  %v1525_v19 = vpop.f32.mrf.mxu0  ;;  %7461 = vmatmul.mubr.msk.bf16.vlgmr.msra.gmra.mxu0 %vm213_vm2, %v9613_v27  ;;  %v1023_v46 = vadd.f32 %v13317_v50, %v13316_v33  ;;  %v13319_v36 = vld [vmem:[#allocation49_spill] sm:$0xff]  ;;  %v13322_v57 = vld [vmem:[#allocation50_spill] sm:$0xff]  ;;  %v13323_v33 = vld [vmem:[#allocation120_spill] sm:$0xff] }
 0x21d   :  { %13312 = vst [vmem:[#allocation82_spill] sm:$0xff] %v9729_v39  ;;  %v1472_v41 = vpop.f32.mrf.mxu1  ;;  %v9747_v53 = vadd.f32 %v1525_v19, %v1021_v54  ;;  %7458 = vmatmul.mubr.msk.bf16.gmra.mxu1 %vm213_vm2, %v9721_v63  ;;  %3069 = vmatprep.mubr.bf16.mxu0 %v13089_v6  ;;  %v13320_v26 = vld [vmem:[#allocation117_spill] sm:$0xff]  ;;  %v1025_v50 = vadd.f32 %v13323_v33, %v13322_v57  ;;  %v13325_v39 = vld [vmem:[#allocation51_spill] sm:$0xff]  ;;  %v13329_v57 = vld [vmem:[#allocation122_spill] sm:$0xff] }
 0x21e   :  { %13315 = vst [vmem:[#allocation3_spill] sm:$0xff] %v9736_v15  ;;  %v970_v22 = vadd.f32 %v13320_v26, %v13319_v36  ;;  %v9754_v43 = vadd.f32 %v1472_v41, %v968_v47  ;;  %v1527_v38 = vpop.f32.mrf.mxu0  ;;  %3016 = vmatprep.mubr.bf16.mxu1 %v13089_v6  ;;  %3186 = vmatpush1.bf16.msra.mxu0 %v2943_v17  ;;  %v13326_v15 = vld [vmem:[#allocation119_spill] sm:$0xff]  ;;  %v13328_v26 = vld [vmem:[#allocation52_spill] sm:$0xff] }
 0x21f   :  { %13318 = vst [vmem:[#allocation20_spill] sm:$0xff] %v9747_v53  ;;  %v1474_v19 = vpop.f32.mrf.mxu1  ;;  %v9759_v54 = vadd.f32 %v1527_v38, %v1023_v46  ;;  %v2890_v53 = vsel %vm2883_vm6, %v9496_v8, %v9635_v10  ;;  %3187 = vmatprep.subr.bf16.mxu0 %v2891_v30  ;;  %v972_v36 = vadd.f32 %v13326_v15, %v13325_v39  ;;  %v9778_v8 = vld [vmem:[%s13040_s1 + $0xb8] sm:$0xff]   ;;  %v9780_v10 = vpop.permute.xlu1 %3430 }
 0x220   :  { %13321 = vst [vmem:[#allocation85_spill] sm:$0xff] %v9754_v43  ;;  %v9766_v47 = vadd.f32 %v1474_v19, %v970_v22  ;;  %v1529_v41 = vpop.f32.mrf.mxu0  ;;  %v3479_v17 = vsel %vm3468_vm7, %v9743_v34, %v9732_v20  ;;  %v1027_v33 = vadd.f32 %v13329_v57, %v13328_v26  ;;  %v13331_v15 = vld [vmem:[#allocation53_spill] sm:$0xff]  ;;  %v13335_v26 = vld [vmem:[#allocation124_spill] sm:$0xff]  ;;  %v13338_v43 = vld [vmem:[#allocation123_spill] sm:$0xff] }
 0x221   :  { %13324 = vst [vmem:[#allocation21_spill] sm:$0xff] %v9759_v54  ;;  %v1476_v46 = vpop.f32.mrf.mxu1  ;;  %v9773_v38 = vadd.f32 %v1529_v41, %v1025_v50  ;;  %v13332_v39 = vld [vmem:[#allocation121_spill] sm:$0xff]  ;;  %v2862_v54 = vpop.permute.xlu0 %2861 }
 0x222   :  { %13327 = vst [vmem:[#allocation84_spill] sm:$0xff] %v9766_v47  ;;  %v974_v30 = vadd.f32 %v13332_v39, %v13331_v15  ;;  %v9784_v22 = vadd.f32 %v1476_v46, %v972_v36  ;;  %v1531_v19 = vpop.f32.mrf.mxu0  ;;  %3188 = vmatpush1.bf16.msra.mxu0 %v2890_v53  ;;  %v13334_v47 = vld [vmem:[#allocation54_spill] sm:$0xff]  ;;  %v13340_v36 = vld [vmem:[#allocation56_spill] sm:$0xff] }
 0x223   :  { %13330 = vst [vmem:[#allocation22_spill] sm:$0xff] %v9773_v38  ;;  %v1031_v57 = vadd.f32 %v13335_v26, %v13334_v47  ;;  %v1478_v50 = vpop.f32.mrf.mxu1  ;;  %v9788_v41 = vadd.f32 %v1531_v19, %v1027_v33  ;;  %7492 = vmatprep.subr.msk.bf16.mxu0 %vm226_vm1, %v3479_v17  ;;  %v13337_v38 = vld [vmem:[#allocation55_spill] sm:$0xff]  ;;  %v13341_v53 = vld [vmem:[#allocation126_spill] sm:$0xff]  ;;  %v13343_v47 = vld [vmem:[#allocation57_spill] sm:$0xff] }
 0x224   :  { %13333 = vst [vmem:[#allocation87_spill] sm:$0xff] %v9784_v22  ;;  %v978_v25 = vadd.f32 %v13338_v43, %v13337_v38  ;;  %v9793_v23 = vadd.f32 %v1478_v50, %v974_v30  ;;  %v1535_v62 = vpop.f32.mrf.mxu0  ;;  %7462 = vmatmul.mubr.msk.bf16.gmra.mxu0 %vm213_vm2, %v9667_v13  ;;  %v1033_v46 = vadd.f32 %v13341_v53, %v13340_v36  ;;  %v13344_v17 = vld [vmem:[#allocation125_spill] sm:$0xff]  ;;  %v13346_v19 = vld [vmem:[#allocation58_spill] sm:$0xff]  ;;  %v13347_v26 = vld [vmem:[#allocation128_spill] sm:$0xff]  ;;  %v9815_v36 = vpop.permute.xlu1 %3428 }
 0x225   :  { %13336 = vst [vmem:[#allocation4_spill] sm:$0xff] %v9788_v41  ;;  %v1482_v15 = vpop.f32.mrf.mxu1  ;;  %v9799_v39 = vadd.f32 %v1535_v62, %v1031_v57  ;;  %7459 = vmatmul.mubr.msk.bf16.gmra.mxu1 %vm213_vm2, %v9778_v8  ;;  %3079 = vmatprep.mubr.bf16.mxu0 %v13089_v6  ;;  %v980_v43 = vadd.f32 %v13344_v17, %v13343_v47  ;;  %v9809_v30 = vpop.permute.xlu0 %3432  ;;  %v13349_v53 = vld [vmem:[#allocation59_spill] sm:$0xff]  ;;  %v13352_v47 = vld [vmem:[#allocation60_spill] sm:$0xff] }
 0x226   :  { %13339 = vst [vmem:[#allocation23_spill] sm:$0xff] %v9793_v23  ;;  %v9806_v33 = vadd.f32 %v1482_v15, %v978_v25  ;;  %v1537_v38 = vpop.f32.mrf.mxu0  ;;  %3132 = vmatprep.mubr.bf16.mxu1 %v13089_v6  ;;  %v1035_v50 = vadd.f32 %v13347_v26, %v13346_v19  ;;  %v2901_v15 = vsel %vm2883_vm6, %v9529_v11, %v9675_v51 }
 0x227   :  { %13342 = vst [vmem:[#allocation86_spill] sm:$0xff] %v9799_v39  ;;  %v1484_v62 = vpop.f32.mrf.mxu1  ;;  %v9813_v57 = vadd.f32 %v1537_v38, %v1033_v46  ;;  %v13350_v39 = vld [vmem:[#allocation127_spill] sm:$0xff]  ;;  %v1037_v17 = vadd.f32 %v9304_v7, %v13352_v47  ;;  %v13353_v46 = vld [vmem:[#allocation61_spill] sm:$0xff] }
 0x228   :  { %13345 = vst [vmem:[#allocation109_spill] sm:$0xff] %v9806_v33  ;;  %v982_v41 = vadd.f32 %v13350_v39, %v13349_v53  ;;  %v9819_v23 = vadd.f32 %v1484_v62, %v980_v43  ;;  %v1539_v25 = vpop.f32.mrf.mxu0  ;;  %v13354_v38 = vld [vmem:[#allocation129_spill] sm:$0xff]  ;;  %v13355_v39 = vld [vmem:[#allocation62_spill] sm:$0xff]  ;;  %v2949_v53 = vsel %vm226_vm1, %v2901_v15, 0 }
 0x229   :  { %13348 = vst [vmem:[#allocation24_spill] sm:$0xff] %v9813_v57  ;;  %v1486_v33 = vpop.f32.mrf.mxu1  ;;  %v9826_v19 = vadd.f32 %v1539_v25, %v1035_v50  ;;  %v984_v26 = vadd.f32 %v13354_v38, %v13353_v46  ;;  %v13356_v43 = vld [vmem:[#allocation130_spill] sm:$0xff]  ;;  %v9841_v51 = vpop.permute.xlu0 %3454  ;;  %v13357_v50 = vld [vmem:[#allocation63_spill] sm:$0xff] }
 0x22a   :  { %13351 = vst [vmem:[#allocation89_spill] sm:$0xff] %v9819_v23  ;;  %v9830_v57 = vadd.f32 %v1486_v33, %v982_v41  ;;  %v1541_v22 = vpop.f32.mrf.mxu0  ;;  %v1041_v62 = vadd.f32 %v13356_v43, %v13355_v39  ;;  %v1043_v41 = vadd.f32 %v9325_v42, %v13357_v50 }
 0x22b   :  { %v1488_v23 = vpop.f32.mrf.mxu1  ;;  %v9835_v44 = vadd.f32 %v1541_v22, %v1037_v17  ;;  %v9850_v22 = vpop.permute.xlu1 %3456  ;;  %v13359_v17 = vld [vmem:[#allocation64_spill] sm:$0xff] }
 0x22c   :  { %v9837_v11 = vadd.f32 %v1488_v23, %v984_v26  ;;  %v1545_v7 = vpop.f32.mrf.mxu0  ;;  %7463 = vmatmul.mubr.msk.bf16.gmra.mxu0 %vm213_vm2, %v9721_v63  ;;  %v13358_v23 = vld [vmem:[#allocation131_spill] sm:$0xff]  ;;  %v1045_v42 = vadd.f32 %v9336_v16, %v13359_v17  ;;  %v2892_v26 = vsel %vm2883_vm6, %v9669_v35, %v2862_v54  ;;  %v13361_v35 = vld [vmem:[#allocation66_spill] sm:$0xff] }
 0x22d   :  { %v9845_v33 = vadd.f32 %v1545_v7, %v1041_v62  ;;  %v1818_v25 = vpop.f32.mrf.mxu1  ;;  %7466 = vmatmul.mubr.msk.bf16.vlgmr.msra.gmra.mxu1 %vm213_vm2, %v9613_v27  ;;  %3089 = vmatprep.mubr.bf16.mxu0 %v13089_v6  ;;  %v3481_v62 = vsel %vm3468_vm7, %v9841_v51, %v9850_v22  ;;  %v13362_v17 = vld [vmem:[#allocation67_spill] sm:$0xff] }
 0x22e   :  { %v9853_v15 = vadd.f32 %v1818_v25, %v13358_v23  ;;  %3259 = vmatpush1.bf16.msra.mxu1 %v2949_v53  ;;  %v1547_v47 = vpop.f32.mrf.mxu0  ;;  %3142 = vmatprep.mubr.bf16.mxu1 %v13089_v6  ;;  %v13360_v53 = vld [vmem:[#allocation65_spill] sm:$0xff] }
 0x22f   :  { %v9858_v46 = vadd.f32 %v1547_v47, %v1043_v41  ;;  %v1820_v38 = vpop.f32.mrf.mxu1  ;;  %3260 = vmatprep.subr.bf16.mxu1 %v2862_v54  ;;  %v1047_v7 = vadd.f32 %v9346_v24, %v13360_v53 }
 0x230   :  { %v9863_v39 = vadd.f32 %v1820_v38, %v9327_v56  ;;  %v1549_v43 = vpop.f32.mrf.mxu0  ;;  %v1051_v56 = vadd.f32 %v9355_v3, %v13361_v35 }
 0x231   :  { %v9870_v50 = vadd.f32 %v1549_v43, %v1045_v42  ;;  %v1822_v16 = vpop.f32.mrf.mxu1 }
 0x232   :  { %v9873_v41 = vadd.f32 %v1822_v16, %v9338_v61  ;;  %v1551_v25 = vpop.f32.mrf.mxu0  ;;  %3261 = vmatpush1.bf16.msra.mxu1 %v2892_v26  ;;  %v1053_v61 = vadd.f32 %v9374_v45, %v13362_v17  ;;  %v13363_v26 = vld [vmem:[#allocation68_spill] sm:$0xff]  ;;  %v3478_v16 = vsel %vm3468_vm7, %v9696_v37, %v9743_v34 }
 0x233   :  { %v9877_v54 = vadd.f32 %v1551_v25, %v1047_v7  ;;  %v1824_v23 = vpop.f32.mrf.mxu1  ;;  %7497 = vmatprep.subr.msk.bf16.mxu1 %vm226_vm1, %v3481_v62  ;;  %v1055_v43 = vadd.f32 %v9387_v59, %v13363_v26  ;;  %v9906_v25 = vpop.permute.xlu0 %3434 }
 0x234   :  { %v9881_v47 = vadd.f32 %v1824_v23, %v9348_v0  ;;  %v1555_v24 = vpop.f32.mrf.mxu0  ;;  %7464 = vmatmul.mubr.msk.bf16.gmra.mxu0 %vm213_vm2, %v9778_v8  ;;  %v9912_v59 = vpop.permute.xlu1 %3436 }
 0x235   :  { %v9887_v42 = vadd.f32 %v1555_v24, %v1051_v56  ;;  %v1828_v38 = vpop.f32.mrf.mxu1  ;;  %7467 = vmatmul.mubr.msk.bf16.gmra.mxu1 %vm213_vm2, %v9667_v13  ;;  %3205 = vmatprep.mubr.bf16.mxu0 %v13089_v6 }
 0x236   :  { %v9893_v3 = vadd.f32 %v1828_v38, %v9357_v49  ;;  %v1557_v0 = vpop.f32.mrf.mxu0  ;;  %3152 = vmatprep.mubr.bf16.mxu1 %v13089_v6  ;;  %v13364_v49 = vld [vmem:[#allocation69_spill] sm:$0xff]  ;;  %v3510_v38 = vsel %vm226_vm1, %v3478_v16, 0 }
 0x237   :  { %v9898_v62 = vadd.f32 %v1557_v0, %v1053_v61  ;;  %v1830_v45 = vpop.f32.mrf.mxu1  ;;  %v1057_v35 = vadd.f32 %v9395_v2, %v13364_v49  ;;  %v3470_v2 = vsel %vm3468_vm7, %v9780_v10, %v9809_v30  ;;  %v9928_v0 = vpop.permute.xlu0 %3458 }
 0x238   :  { %v9901_v53 = vadd.f32 %v1830_v45, %v9376_v31  ;;  %v1559_v7 = vpop.f32.mrf.mxu0 }
 0x239   :  { %v9910_v56 = vadd.f32 %v1559_v7, %v1055_v43  ;;  %v1832_v23 = vpop.f32.mrf.mxu1 }
 0x23a   :  { %v9915_v24 = vadd.f32 %v1832_v23, %v9389_v29  ;;  %v1561_v31 = vpop.f32.mrf.mxu0 }
 0x23b   :  { %v9917_v17 = vadd.f32 %v1561_v31, %v1057_v35  ;;  %v1834_v61 = vpop.f32.mrf.mxu1 }
 0x23c   :  { %v9921_v37 = vadd.f32 %v1834_v61, %v9397_v9  ;;  %v1891_v34 = vpop.f32.mrf.mxu0  ;;  %7471 = vmatmul.mubr.msk.bf16.vlgmr.msra.gmra.mxu0 %vm213_vm2, %v9613_v27  ;;  %v9936_v9 = vpop.permute.xlu1 %3460 }
 0x23d   :  { %v1838_v29 = vpop.f32.mrf.mxu1  ;;  %v9931_v26 = vadd.f32 %v1891_v34, %v9422_v52  ;;  %7468 = vmatmul.mubr.msk.bf16.gmra.mxu1 %vm213_vm2, %v9721_v63  ;;  %3215 = vmatprep.mubr.bf16.mxu0 %v13089_v6  ;;  %v3469_v52 = vsel %vm3468_vm7, %v9815_v36, %v9780_v10 }
 0x23e   :  { %v9939_v43 = vadd.f32 %v1838_v29, %v9413_v28  ;;  %v1893_v45 = vpop.f32.mrf.mxu0  ;;  %3162 = vmatprep.mubr.bf16.mxu1 %v13089_v6  ;;  %3552 = vmatpush1.bf16.msra.mxu0 %v3510_v38  ;;  %v3483_v28 = vsel %vm3468_vm7, %v9928_v0, %v9936_v9 }
 0x23f   :  { %v1840_v7 = vpop.f32.mrf.mxu1  ;;  %v9943_v16 = vadd.f32 %v1893_v45, %v9435_v55  ;;  %3553 = vmatprep.subr.bf16.mxu0 %v3470_v2 }
 0x240   :  { %v9949_v49 = vadd.f32 %v1840_v7, %v9427_v48  ;;  %v1895_v35 = vpop.f32.mrf.mxu0  ;;  %v9984_v45 = vpop.permute.xlu1 %3440 }
 0x241   :  { %v1842_v23 = vpop.f32.mrf.mxu1  ;;  %v9955_v31 = vadd.f32 %v1895_v35, %v9448_v32 }
 0x242   :  { %v9958_v55 = vadd.f32 %v1842_v23, %v9444_v21  ;;  %v1897_v61 = vpop.f32.mrf.mxu0  ;;  %3554 = vmatpush1.bf16.msra.mxu0 %v3469_v52 }
 0x243   :  { %v1844_v38 = vpop.f32.mrf.mxu1  ;;  %v9961_v10 = vadd.f32 %v1897_v61, %v9459_v14  ;;  %7502 = vmatprep.subr.msk.bf16.mxu0 %vm226_vm1, %v3483_v28 }
 0x244   :  { %v9965_v48 = vadd.f32 %v1844_v38, %v9452_v58  ;;  %v1901_v36 = vpop.f32.mrf.mxu0  ;;  %7472 = vmatmul.mubr.msk.bf16.gmra.mxu0 %vm213_vm2, %v9667_v13  ;;  %v9979_v58 = vpop.permute.xlu0 %3438 }
 0x245   :  { %v1848_v32 = vpop.f32.mrf.mxu1  ;;  %v9970_v34 = vadd.f32 %v1901_v36, %v9474_v5  ;;  %7469 = vmatmul.mubr.msk.bf16.gmra.mxu1 %vm213_vm2, %v9778_v8  ;;  %3225 = vmatprep.mubr.bf16.mxu0 %v13089_v6 }
 0x246   :  { %v9976_v21 = vadd.f32 %v1848_v32, %v9467_v4  ;;  %v1903_v14 = vpop.f32.mrf.mxu0  ;;  %3278 = vmatprep.mubr.bf16.mxu1 %v13089_v6  ;;  %v3480_v4 = vsel %vm3468_vm7, %v9732_v20, %v9841_v51  ;;  %v13366_v20 = vld [vmem:[#allocation10_spill] sm:$0xff] }
 0x247   :  { %v1850_v2 = vpop.f32.mrf.mxu1  ;;  %v9982_v29 = vadd.f32 %v1903_v14, %v9485_v18  ;;  %v3516_v18 = vsel %vm226_vm1, %v3480_v4, 0 }
 0x248   :  { %v9987_v5 = vadd.f32 %v1850_v2, %v9479_v40  ;;  %v1905_v7 = vpop.f32.mrf.mxu0  ;;  %v13365_v40 = vld [vmem:[#allocation6_spill] sm:$0xff]  ;;  %v13368_v2 = vld [vmem:[#allocation71_spill] sm:$0xff] }
 0x249   :  { %v1852_v52 = vpop.f32.mrf.mxu1  ;;  %v9993_v35 = vadd.f32 %v1905_v7, %v9500_v1  ;;  %v3472_v1 = vsel %vm3468_vm7, %v9906_v25, %v9912_v59 }
 0x24a   :  { %v9996_v28 = vadd.f32 %v1852_v52, %v9494_v60  ;;  %v1907_v23 = vpop.f32.mrf.mxu0  ;;  %v10010_v60 = vpop.permute.xlu0 %3462  ;;  %v13370_v52 = vld [vmem:[#allocation7_spill] sm:$0xff] }
 0x24b   :  { %v1854_v61 = vpop.f32.mrf.mxu1  ;;  %v10000_v38 = vadd.f32 %v1907_v23, %v9513_v12  ;;  %v10018_v12 = vpop.permute.xlu1 %3464 }
 0x24c   :  { %v10003_v36 = vadd.f32 %v1854_v61, %v13365_v40  ;;  %v1911_v32 = vpop.f32.mrf.mxu0  ;;  %7473 = vmatmul.mubr.msk.bf16.gmra.mxu0 %vm213_vm2, %v9721_v63  ;;  %v3471_v40 = vsel %vm3468_vm7, %v9809_v30, %v9906_v25 }
 0x24d   :  { %v10013_v51 = vadd.f32 %v1911_v32, %v13366_v20  ;;  %v1964_v14 = vpop.f32.mrf.mxu1  ;;  %7476 = vmatmul.mubr.msk.bf16.vlgmr.msra.gmra.mxu1 %vm213_vm2, %v9613_v27  ;;  %3235 = vmatprep.mubr.bf16.mxu0 %v13089_v6  ;;  %v13372_v27 = vld [vmem:[#allocation70_spill] sm:$0xff] }
 0x24e   :  { %v10021_v7 = vadd.f32 %v1964_v14, %v13368_v2  ;;  %3625 = vmatpush1.bf16.msra.mxu1 %v3516_v18  ;;  %v1913_v4 = vpop.f32.mrf.mxu0  ;;  %3288 = vmatprep.mubr.bf16.mxu1 %v13089_v6  ;;  %v3485_v18 = vsel %vm3468_vm7, %v10010_v60, %v10018_v12  ;;  %v13373_v14 = vld [vmem:[#allocation11_spill] sm:$0xff] }
 0x24f   :  { %13367 = vst [vmem:[#allocation25_spill] sm:$0xff] %v10013_v51  ;;  %v10025_v23 = vadd.f32 %v1913_v4, %v13370_v52  ;;  %v1966_v61 = vpop.f32.mrf.mxu1  ;;  %3626 = vmatprep.subr.bf16.mxu1 %v3472_v1  ;;  %v13375_v4 = vld [vmem:[#allocation73_spill] sm:$0xff]  ;;  %v13379_v1 = vld [vmem:[#allocation72_spill] sm:$0xff] }
 0x250   :  { %13369 = vst [vmem:[#allocation88_spill] sm:$0xff] %v10021_v7  ;;  %v10031_v32 = vadd.f32 %v1966_v61, %v13372_v27  ;;  %v1915_v20 = vpop.f32.mrf.mxu0  ;;  %v13377_v7 = vld [vmem:[#allocation8_spill] sm:$0xff] }
 0x251   :  { %13371 = vst [vmem:[#allocation26_spill] sm:$0xff] %v10025_v23  ;;  %v10037_v2 = vadd.f32 %v1915_v20, %v13373_v14  ;;  %v1968_v51 = vpop.f32.mrf.mxu1  ;;  %v13381_v20 = vld [vmem:[#allocation91_spill] sm:$0xff] }
 0x252   :  { %v10040_v52 = vadd.f32 %v1968_v51, %v13375_v4  ;;  %v1917_v23 = vpop.f32.mrf.mxu0  ;;  %3627 = vmatpush1.bf16.msra.mxu1 %v3471_v40 }
 0x253   :  { %13374 = vst [vmem:[#allocation92_spill] sm:$0xff] %v10037_v2  ;;  %v10043_v30 = vadd.f32 %v1917_v23, %v13377_v7  ;;  %v1970_v25 = vpop.f32.mrf.mxu1  ;;  %7507 = vmatprep.subr.msk.bf16.mxu1 %vm226_vm1, %v3485_v18  ;;  %v13383_v7 = vld [vmem:[#allocation75_spill] sm:$0xff]  ;;  %v13385_v18 = vld [vmem:[#allocation74_spill] sm:$0xff] }
 0x254   :  { %13376 = vst [vmem:[#allocation111_spill] sm:$0xff] %v10040_v52  ;;  %v10047_v61 = vadd.f32 %v1970_v25, %v13379_v1  ;;  %v1921_v27 = vpop.f32.mrf.mxu0  ;;  %7474 = vmatmul.mubr.msk.bf16.gmra.mxu0 %vm213_vm2, %v9778_v8  ;;  %v13387_v1 = vld [vmem:[#allocation12_spill] sm:$0xff] }
 0x255   :  { %13378 = vst [vmem:[#allocation27_spill] sm:$0xff] %v10043_v30  ;;  %v10052_v14 = vadd.f32 %v1921_v27, %v13381_v20  ;;  %v1974_v51 = vpop.f32.mrf.mxu1  ;;  %7477 = vmatmul.mubr.msk.bf16.gmra.mxu1 %vm213_vm2, %v9667_v13  ;;  %3571 = vmatprep.mubr.bf16.mxu0 %v13089_v6  ;;  %v10070_v13 = vld [vmem:[%s13040_s1 + $0xc0] sm:$0xff]   ;;  %v3482_v20 = vsel %vm3468_vm7, %v9850_v22, %v9928_v0  ;;  %v10093_v0 = vpop.permute.xlu0 %3442 }
 0x256   :  { %13380 = vst [vmem:[#allocation90_spill] sm:$0xff] %v10047_v61  ;;  %v10058_v23 = vadd.f32 %v1974_v51, %v13383_v7  ;;  %v1923_v40 = vpop.f32.mrf.mxu0  ;;  %3298 = vmatprep.mubr.bf16.mxu1 %v13089_v6  ;;  %v13389_v51 = vld [vmem:[#allocation77_spill] sm:$0xff]  ;;  %v3474_v22 = vsel %vm3468_vm7, %v9979_v58, %v9984_v45 }
 0x257   :  { %13382 = vst [vmem:[#allocation5_spill] sm:$0xff] %v10052_v14  ;;  %v10062_v4 = vadd.f32 %v1923_v40, %v13385_v18  ;;  %v1976_v25 = vpop.f32.mrf.mxu1  ;;  %v13391_v40 = vld [vmem:[#allocation9_spill] sm:$0xff] }
 0x258   :  { %13384 = vst [vmem:[#allocation28_spill] sm:$0xff] %v10058_v23  ;;  %v10065_v30 = vadd.f32 %v1976_v25, %v13387_v1  ;;  %v1925_v27 = vpop.f32.mrf.mxu0  ;;  %v13393_v25 = vld [vmem:[#allocation76_spill] sm:$0xff]  ;;  %v3522_v23 = vsel %vm226_vm1, %v3482_v20, 0  ;;  %v13395_v61 = vld [vmem:[#allocation13_spill] sm:$0xff] }
 0x259   :  { %13386 = vst [vmem:[#allocation94_spill] sm:$0xff] %v10062_v4  ;;  %v10076_v7 = vadd.f32 %v1925_v27, %v13389_v51  ;;  %v1978_v14 = vpop.f32.mrf.mxu1  ;;  %v13397_v27 = vld [vmem:[#allocation79_spill] sm:$0xff] }
 0x25a   :  { %13388 = vst [vmem:[#allocation29_spill] sm:$0xff] %v10065_v30  ;;  %v10079_v18 = vadd.f32 %v1978_v14, %v13391_v40  ;;  %v1927_v4 = vpop.f32.mrf.mxu0  ;;  %v13401_v40 = vld [vmem:[#allocation15_spill] sm:$0xff] }
 0x25b   :  { %13390 = vst [vmem:[#allocation93_spill] sm:$0xff] %v10076_v7  ;;  %v10082_v1 = vadd.f32 %v1927_v4, %v13393_v25  ;;  %v1980_v30 = vpop.f32.mrf.mxu1 }
 0x25c   :  { %13392 = vst [vmem:[#allocation30_spill] sm:$0xff] %v10079_v18  ;;  %v10086_v2 = vadd.f32 %v1980_v30, %v13395_v61  ;;  %v2037_v52 = vpop.f32.mrf.mxu0  ;;  %7493 = vmatmul.mubr.msk.bf16.vlgmr.msra.gmra.mxu0 %vm213_vm2, %v10070_v13  ;;  %v13399_v30 = vld [vmem:[#allocation14_spill] sm:$0xff] }
 0x25d   :  { %13394 = vst [vmem:[#allocation96_spill] sm:$0xff] %v10082_v1  ;;  %v1984_v14 = vpop.f32.mrf.mxu1  ;;  %v10096_v4 = vadd.f32 %v2037_v52, %v13397_v27  ;;  %7478 = vmatmul.mubr.msk.bf16.gmra.mxu1 %vm213_vm2, %v9721_v63  ;;  %3581 = vmatprep.mubr.bf16.mxu0 %v13089_v6  ;;  %v3473_v52 = vsel %vm3468_vm7, %v9912_v59, %v9979_v58  ;;  %v13403_v27 = vld [vmem:[#allocation2_spill] sm:$0xff] }
 0x25e   :  { %13396 = vst [vmem:[#allocation31_spill] sm:$0xff] %v10086_v2  ;;  %v10102_v61 = vadd.f32 %v1984_v14, %v13399_v30  ;;  %v2039_v20 = vpop.f32.mrf.mxu0  ;;  %3308 = vmatprep.mubr.bf16.mxu1 %v13089_v6  ;;  %3698 = vmatpush1.bf16.msra.mxu0 %v3522_v23  ;;  %v10117_v14 = vld [vmem:[%s13040_s1 + $0xc8] sm:$0xff]   ;;  %v10119_v30 = vpop.permute.xlu0 %3466 }
 0x25f   :  { %13398 = vst [vmem:[#allocation95_spill] sm:$0xff] %v10096_v4  ;;  %v1986_v51 = vpop.f32.mrf.mxu1  ;;  %v10106_v25 = vadd.f32 %v2039_v20, %v13401_v40  ;;  %3699 = vmatprep.subr.bf16.mxu0 %v3474_v22  ;;  %v13407_v40 = vld [vmem:[#allocation78_spill] sm:$0xff]  ;;  %v13409_v22 = vld [vmem:[#allocation81_spill] sm:$0xff] }
 0x260   :  { %13400 = vst [vmem:[#allocation32_spill] sm:$0xff] %v10102_v61  ;;  %v10112_v63 = vadd.f32 %v1986_v51, %v13403_v27  ;;  %v2041_v4 = vpop.f32.mrf.mxu0  ;;  %v13405_v61 = vld [vmem:[#allocation99_spill] sm:$0xff]  ;;  %v13411_v27 = vld [vmem:[#allocation16_spill] sm:$0xff] }
 0x261   :  { %13402 = vst [vmem:[#allocation98_spill] sm:$0xff] %v10106_v25  ;;  %v1988_v23 = vpop.f32.mrf.mxu1  ;;  %v10122_v20 = vadd.f32 %v2041_v4, %v13405_v61  ;;  %v13413_v61 = vld [vmem:[#allocation80_spill] sm:$0xff] }
 0x262   :  { %13404 = vst [vmem:[#allocation33_spill] sm:$0xff] %v10112_v63  ;;  %v10125_v25 = vadd.f32 %v1988_v23, %v13407_v40  ;;  %v2043_v59 = vpop.f32.mrf.mxu0  ;;  %3700 = vmatpush1.bf16.msra.mxu0 %v3473_v52  ;;  %v13415_v52 = vld [vmem:[#allocation17_spill] sm:$0xff] }
 0x263   :  { %13406 = vst [vmem:[#allocation97_spill] sm:$0xff] %v10122_v20  ;;  %v1990_v58 = vpop.f32.mrf.mxu1  ;;  %v10128_v51 = vadd.f32 %v2043_v59, %v13409_v22  ;;  %7512 = vmatprep.subr.msk.bf16.mxu0 %vm226_vm1, %v10119_v30 }
 0x264   :  { %13408 = vst [vmem:[#allocation34_spill] sm:$0xff] %v10125_v25  ;;  %v10133_v63 = vadd.f32 %v1990_v58, %v13411_v27  ;;  %v2047_v1 = vpop.f32.mrf.mxu0  ;;  %7494 = vmatmul.mubr.msk.bf16.gmra.mxu0 %vm213_vm2, %v10117_v14  ;;  %v10147_v58 = vpop.permute.xlu1 %3444  ;;  %v13417_v27 = vld [vmem:[#allocation83_spill] sm:$0xff] }
 0x265   :  { %13410 = vst [vmem:[#allocation102_spill] sm:$0xff] %v10128_v51  ;;  %v1994_v4 = vpop.f32.mrf.mxu1  ;;  %v10138_v23 = vadd.f32 %v2047_v1, %v13413_v61  ;;  %7479 = vmatmul.mubr.msk.bf16.gmra.mxu1 %vm213_vm2, %v9778_v8  ;;  %3591 = vmatprep.mubr.bf16.mxu0 %v13089_v6  ;;  %v13419_v1 = vld [vmem:[#allocation18_spill] sm:$0xff] }
 0x266   :  { %13412 = vst [vmem:[#allocation35_spill] sm:$0xff] %v10133_v63  ;;  %v10144_v40 = vadd.f32 %v1994_v4, %v13415_v52  ;;  %v2049_v59 = vpop.f32.mrf.mxu0  ;;  %3644 = vmatprep.mubr.bf16.mxu1 %v13089_v6  ;;  %v10152_v63 = vpop.permute.xlu0 %4033  ;;  %v3484_v4 = vsel %vm3468_vm7, %v9936_v9, %v10010_v60  ;;  %v10163_v52 = vld [vmem:[%s13040_s1 + $0xd0] sm:$0xff]   ;;  %v13427_v60 = vld [vmem:[#allocation82_spill] sm:$0xff] }
 0x267   :  { %13414 = vst [vmem:[#allocation100_spill] sm:$0xff] %v10138_v23  ;;  %v1996_v22 = vpop.f32.mrf.mxu1  ;;  %v10150_v51 = vadd.f32 %v2049_v59, %v13417_v27  ;;  %v13423_v59 = vld [vmem:[#allocation101_spill] sm:$0xff] }
 0x268   :  { %13416 = vst [vmem:[#allocation36_spill] sm:$0xff] %v10144_v40  ;;  %v10155_v61 = vadd.f32 %v1996_v22, %v13419_v1  ;;  %v2051_v8 = vpop.f32.mrf.mxu0  ;;  %v13421_v40 = vld [vmem:[#allocation19_spill] sm:$0xff]  ;;  %v3528_v22 = vsel %vm226_vm1, %v3484_v4, 0  ;;  %v10175_v9 = vpop.permute.xlu1 %3446 }
 0x269   :  { %13418 = vst [vmem:[#allocation104_spill] sm:$0xff] %v10150_v51  ;;  %v1998_v23 = vpop.f32.mrf.mxu1  ;;  %v10166_v20 = vadd.f32 %v2051_v8, %v13421_v40  ;;  %v13429_v40 = vld [vmem:[#allocation85_spill] sm:$0xff] }
 0x26a   :  { %13420 = vst [vmem:[#allocation37_spill] sm:$0xff] %v10155_v61  ;;  %v10169_v27 = vadd.f32 %v1998_v23, %v13423_v59  ;;  %v2053_v51 = vpop.f32.mrf.mxu0  ;;  %v13425_v61 = vld [vmem:[#allocation3_spill] sm:$0xff]  ;;  %v3476_v23 = vsel %vm3468_vm7, %v10093_v0, %v10147_v58 }
 0x26b   :  { %13422 = vst [vmem:[#allocation103_spill] sm:$0xff] %v10166_v20  ;;  %v2000_v1 = vpop.f32.mrf.mxu1  ;;  %v10173_v25 = vadd.f32 %v2053_v51, %v13425_v61  ;;  %v10191_v51 = vpop.permute.xlu0 %4037  ;;  %v13431_v61 = vld [vmem:[#allocation20_spill] sm:$0xff] }
 0x26c   :  { %13424 = vst [vmem:[#allocation38_spill] sm:$0xff] %v10169_v27  ;;  %v10178_v2 = vadd.f32 %v2000_v1, %v13427_v60  ;;  %v2057_v7 = vpop.f32.mrf.mxu0  ;;  %7495 = vmatmul.mubr.msk.bf16.gmra.mxu0 %vm213_vm2, %v10163_v52  ;;  %v13433_v60 = vld [vmem:[#allocation84_spill] sm:$0xff] }
 0x26d   :  { %13426 = vst [vmem:[#allocation106_spill] sm:$0xff] %v10173_v25  ;;  %v10186_v8 = vadd.f32 %v2057_v7, %v13429_v40  ;;  %v2110_v4 = vpop.f32.mrf.mxu1  ;;  %7498 = vmatmul.mubr.msk.bf16.vlgmr.msra.gmra.mxu1 %vm213_vm2, %v10070_v13  ;;  %3601 = vmatprep.mubr.bf16.mxu0 %v13089_v6  ;;  %v3475_v40 = vsel %vm3468_vm7, %v9984_v45, %v10093_v0  ;;  %v13438_v0 = vld [vmem:[#allocation22_spill] sm:$0xff] }
 0x26e   :  { %13428 = vst [vmem:[#allocation39_spill] sm:$0xff] %v10178_v2  ;;  %v10194_v59 = vadd.f32 %v2110_v4, %v13431_v61  ;;  %3771 = vmatpush1.bf16.msra.mxu1 %v3528_v22  ;;  %v2059_v1 = vpop.f32.mrf.mxu0  ;;  %3654 = vmatprep.mubr.bf16.mxu1 %v13089_v6  ;;  %v13435_v2 = vld [vmem:[#allocation21_spill] sm:$0xff] }
 0x26f   :  { %13430 = vst [vmem:[#allocation105_spill] sm:$0xff] %v10186_v8  ;;  %v10198_v25 = vadd.f32 %v2059_v1, %v13433_v60  ;;  %v2112_v7 = vpop.f32.mrf.mxu1  ;;  %3772 = vmatprep.subr.bf16.mxu1 %v3476_v23  ;;  %v10203_v8 = vpop.permute.xlu1 %4035  ;;  %v10211_v22 = vld [vmem:[%s13040_s1 + $0xd8] sm:$0xff]   ;;  %v13437_v1 = vld [vmem:[#allocation87_spill] sm:$0xff] }
 0x270   :  { %13432 = vst [vmem:[#allocation40_spill] sm:$0xff] %v10194_v59  ;;  %v10206_v20 = vadd.f32 %v2112_v7, %v13435_v2  ;;  %v2061_v4 = vpop.f32.mrf.mxu0  ;;  %v4064_v61 = vsel %vm4053_vm8, %v10203_v8, %v10191_v51  ;;  %v13439_v2 = vld [vmem:[#allocation23_spill] sm:$0xff]  ;;  %v13441_v59 = vld [vmem:[#allocation4_spill] sm:$0xff] }
 0x271   :  { %13434 = vst [vmem:[#allocation108_spill] sm:$0xff] %v10198_v25  ;;  %v10217_v60 = vadd.f32 %v2061_v4, %v13437_v1  ;;  %v2114_v45 = vpop.f32.mrf.mxu1  ;;  %v13443_v4 = vld [vmem:[#allocation109_spill] sm:$0xff] }
 0x272   :  { %13436 = vst [vmem:[#allocation41_spill] sm:$0xff] %v10206_v20  ;;  %v10220_v23 = vadd.f32 %v2114_v45, %v13438_v0  ;;  %v2063_v25 = vpop.f32.mrf.mxu0  ;;  %3773 = vmatpush1.bf16.msra.mxu1 %v3475_v40 }
 0x273   :  { %v10223_v7 = vadd.f32 %v2063_v25, %v13439_v2  ;;  %v2116_v20 = vpop.f32.mrf.mxu1  ;;  %7529 = vmatprep.subr.msk.bf16.mxu1 %vm226_vm1, %v4064_v61  ;;  %v13445_v25 = vld [vmem:[#allocation86_spill] sm:$0xff] }
 0x274   :  { %v10227_v27 = vadd.f32 %v2116_v20, %v13441_v59  ;;  %v2067_v18 = vpop.f32.mrf.mxu0  ;;  %7496 = vmatmul.mubr.msk.bf16.gmra.mxu0 %vm213_vm2, %v10211_v22  ;;  %v10241_v20 = vpop.permute.xlu1 %4015  ;;  %v13447_v59 = vld [vmem:[#allocation89_spill] sm:$0xff] }
 0x275   :  { %13440 = vst [vmem:[#allocation107_spill] sm:$0xff] %v10223_v7  ;;  %v10232_v1 = vadd.f32 %v2067_v18, %v13443_v4  ;;  %v2120_v45 = vpop.f32.mrf.mxu1  ;;  %7499 = vmatmul.mubr.msk.bf16.gmra.mxu1 %vm213_vm2, %v10117_v14  ;;  %3717 = vmatprep.mubr.bf16.mxu0 %v13089_v6  ;;  %v10246_v18 = vpop.permute.xlu0 %4017  ;;  %v13449_v4 = vld [vmem:[#allocation24_spill] sm:$0xff] }
 0x276   :  { %13442 = vst [vmem:[#allocation42_spill] sm:$0xff] %v10227_v27  ;;  %v10238_v40 = vadd.f32 %v2120_v45, %v13445_v25  ;;  %v2069_v61 = vpop.f32.mrf.mxu0  ;;  %3664 = vmatprep.mubr.bf16.mxu1 %v13089_v6  ;;  %v3486_v45 = vsel %vm3468_vm7, %v10018_v12, %v10119_v30 }
 0x277   :  { %13444 = vst [vmem:[#allocation112_spill] sm:$0xff] %v10232_v1  ;;  %v10244_v0 = vadd.f32 %v2069_v61, %v13447_v59  ;;  %v2122_v2 = vpop.f32.mrf.mxu1 }
 0x278   :  { %13446 = vst [vmem:[#allocation43_spill] sm:$0xff] %v10238_v40  ;;  %v10249_v1 = vadd.f32 %v2122_v2, %v13449_v4  ;;  %v2071_v7 = vpop.f32.mrf.mxu0  ;;  %v3534_v2 = vsel %vm226_vm1, %v3486_v45, 0 }
 0x279   :  { %13448 = vst [vmem:[#allocation110_spill] sm:$0xff] %v10244_v0  ;;  %v10255_v25 = vadd.f32 %v2071_v7, %v9830_v57  ;;  %v2124_v40 = vpop.f32.mrf.mxu1  ;;  %v10269_v57 = vpop.permute.xlu1 %4039 }
 0x27a   :  { %13450 = vst [vmem:[#allocation44_spill] sm:$0xff] %v10249_v1  ;;  %v10258_v27 = vadd.f32 %v2124_v40, %v9826_v19  ;;  %v2073_v61 = vpop.f32.mrf.mxu0 }
 0x27b   :  { %v10261_v59 = vadd.f32 %v2073_v61, %v9837_v11  ;;  %v2126_v0 = vpop.f32.mrf.mxu1  ;;  %v10277_v11 = vpop.permute.xlu0 %4041 }
 0x27c   :  { %v10265_v4 = vadd.f32 %v2126_v0, %v9835_v44  ;;  %v2403_v1 = vpop.f32.mrf.mxu0  ;;  %7503 = vmatmul.mubr.msk.bf16.vlgmr.msra.gmra.mxu0 %vm213_vm2, %v10070_v13 }
 0x27d   :  { %v2130_v12 = vpop.f32.mrf.mxu1  ;;  %v10272_v19 = vadd.f32 %v2403_v1, %v9853_v15  ;;  %7500 = vmatmul.mubr.msk.bf16.gmra.mxu1 %vm213_vm2, %v10163_v52  ;;  %3727 = vmatprep.mubr.bf16.mxu0 %v13089_v6  ;;  %v3477_v15 = vsel %vm3468_vm7, %v10147_v58, %v10175_v9 }
 0x27e   :  { %v10280_v44 = vadd.f32 %v2130_v12, %v9845_v33  ;;  %v2405_v30 = vpop.f32.mrf.mxu0  ;;  %3674 = vmatprep.mubr.bf16.mxu1 %v13089_v6  ;;  %3844 = vmatpush1.bf16.msra.mxu0 %v3534_v2  ;;  %v4066_v33 = vsel %vm4053_vm8, %v10269_v57, %v10277_v11 }
 0x27f   :  { %v2132_v7 = vpop.f32.mrf.mxu1  ;;  %v10284_v40 = vadd.f32 %v2405_v30, %v9863_v39  ;;  %3845 = vmatprep.subr.bf16.mxu0 %v10175_v9 }
 0x280   :  { %v10291_v1 = vadd.f32 %v2132_v7, %v9858_v46  ;;  %v2407_v0 = vpop.f32.mrf.mxu0  ;;  %v4014_v46 = vpop.permute.xlu1 %4013 }
 0x281   :  { %v2134_v45 = vpop.f32.mrf.mxu1  ;;  %v10297_v61 = vadd.f32 %v2407_v0, %v9873_v41 }
 0x282   :  { %v10300_v39 = vadd.f32 %v2134_v45, %v9870_v50  ;;  %v2409_v2 = vpop.f32.mrf.mxu0  ;;  %3846 = vmatpush1.bf16.msra.mxu0 %v3477_v15 }
 0x283   :  { %v2136_v58 = vpop.f32.mrf.mxu1  ;;  %v10303_v9 = vadd.f32 %v2409_v2, %v9881_v47  ;;  %7534 = vmatprep.subr.msk.bf16.mxu0 %vm226_vm1, %v4066_v33 }
 0x284   :  { %v10307_v12 = vadd.f32 %v2136_v58, %v9877_v54  ;;  %v2413_v30 = vpop.f32.mrf.mxu0  ;;  %7504 = vmatmul.mubr.msk.bf16.gmra.mxu0 %vm213_vm2, %v10117_v14  ;;  %v10321_v54 = vpop.permute.xlu0 %4019 }
 0x285   :  { %v2140_v41 = vpop.f32.mrf.mxu1  ;;  %v10312_v50 = vadd.f32 %v2413_v30, %v9893_v3  ;;  %7501 = vmatmul.mubr.msk.bf16.gmra.mxu1 %vm213_vm2, %v10211_v22  ;;  %3737 = vmatprep.mubr.bf16.mxu0 %v13089_v6  ;;  %v10326_v33 = vpop.permute.xlu1 %4021 }
 0x286   :  { %v10318_v47 = vadd.f32 %v2140_v41, %v9887_v42  ;;  %v2415_v7 = vpop.f32.mrf.mxu0  ;;  %3790 = vmatprep.mubr.bf16.mxu1 %v13089_v6  ;;  %v4063_v42 = vsel %vm4053_vm8, %v10152_v63, %v10203_v8 }
 0x287   :  { %v2142_v15 = vpop.f32.mrf.mxu1  ;;  %v10324_v0 = vadd.f32 %v2415_v7, %v9901_v53 }
 0x288   :  { %v10329_v3 = vadd.f32 %v2142_v15, %v9898_v62  ;;  %v2417_v45 = vpop.f32.mrf.mxu0  ;;  %v4095_v62 = vsel %vm226_vm1, %v4063_v42, 0 }
 0x289   :  { %13451 = vst [vmem:[#allocation114_spill] sm:$0xff] %v10324_v0  ;;  %v2144_v2 = vpop.f32.mrf.mxu1  ;;  %v10335_v58 = vadd.f32 %v2417_v45, %v9915_v24  ;;  %v4055_v24 = vsel %vm4053_vm8, %v10241_v20, %v10246_v18 }
 0x28a   :  { %v10338_v30 = vadd.f32 %v2144_v2, %v9910_v56  ;;  %v2419_v41 = vpop.f32.mrf.mxu0  ;;  %v10352_v56 = vpop.permute.xlu0 %4043 }
 0x28b   :  { %v2146_v53 = vpop.f32.mrf.mxu1  ;;  %v10341_v7 = vadd.f32 %v2419_v41, %v9921_v37 }
 0x28c   :  { %v10345_v15 = vadd.f32 %v2146_v53, %v9917_v17  ;;  %v2423_v0 = vpop.f32.mrf.mxu0  ;;  %7505 = vmatmul.mubr.msk.bf16.gmra.mxu0 %vm213_vm2, %v10163_v52  ;;  %v10360_v17 = vpop.permute.xlu1 %4045 }
 0x28d   :  { %v10355_v63 = vadd.f32 %v2423_v0, %v9939_v43  ;;  %v2476_v37 = vpop.f32.mrf.mxu1  ;;  %7508 = vmatmul.mubr.msk.bf16.vlgmr.msra.gmra.mxu1 %vm213_vm2, %v10070_v13  ;;  %3747 = vmatprep.mubr.bf16.mxu0 %v13089_v6  ;;  %v4054_v0 = vsel %vm4053_vm8, %v4014_v46, %v10241_v20 }
 0x28e   :  { %v10363_v8 = vadd.f32 %v2476_v37, %v9931_v26  ;;  %v2425_v45 = vpop.f32.mrf.mxu0  ;;  %3800 = vmatprep.mubr.bf16.mxu1 %v13089_v6  ;;  %4137 = vmatpush1.bf16.msra.mxu1 %v4095_v62  ;;  %v4068_v26 = vsel %vm4053_vm8, %v10352_v56, %v10360_v17 }
 0x28f   :  { %v10367_v42 = vadd.f32 %v2425_v45, %v9949_v49  ;;  %v2478_v43 = vpop.f32.mrf.mxu1  ;;  %4138 = vmatprep.subr.bf16.mxu1 %v4055_v24 }
 0x290   :  { %v10372_v2 = vadd.f32 %v2478_v43, %v9943_v16  ;;  %v2427_v41 = vpop.f32.mrf.mxu0 }
 0x291   :  { %v10378_v53 = vadd.f32 %v2427_v41, %v9958_v55  ;;  %v2480_v62 = vpop.f32.mrf.mxu1  ;;  %v4065_v41 = vsel %vm4053_vm8, %v10191_v51, %v10269_v57 }
 0x292   :  { %v10381_v49 = vadd.f32 %v2480_v62, %v9955_v31  ;;  %v2429_v37 = vpop.f32.mrf.mxu0  ;;  %4139 = vmatpush1.bf16.msra.mxu1 %v4054_v0  ;;  %v10414_v62 = vpop.permute.xlu1 %4025 }
 0x293   :  { %v10384_v20 = vadd.f32 %v2429_v37, %v9965_v48  ;;  %v2482_v46 = vpop.f32.mrf.mxu1  ;;  %7539 = vmatprep.subr.msk.bf16.mxu1 %vm226_vm1, %v4068_v26 }
 0x294   :  { %v10388_v16 = vadd.f32 %v2482_v46, %v9961_v10  ;;  %v2433_v24 = vpop.f32.mrf.mxu0  ;;  %7506 = vmatmul.mubr.msk.bf16.gmra.mxu0 %vm213_vm2, %v10211_v22 }
 0x295   :  { %v10393_v55 = vadd.f32 %v2433_v24, %v9976_v21  ;;  %v2486_v31 = vpop.f32.mrf.mxu1  ;;  %7509 = vmatmul.mubr.msk.bf16.gmra.mxu1 %vm213_vm2, %v10117_v14  ;;  %3863 = vmatprep.mubr.bf16.mxu0 %v13089_v6  ;;  %v4101_v24 = vsel %vm226_vm1, %v4065_v41, 0 }
 0x296   :  { %v10399_v48 = vadd.f32 %v2486_v31, %v9970_v34  ;;  %v2435_v45 = vpop.f32.mrf.mxu0  ;;  %3810 = vmatprep.mubr.bf16.mxu1 %v13089_v6  ;;  %v10423_v31 = vpop.permute.xlu0 %4023 }
 0x297   :  { %v10403_v10 = vadd.f32 %v2435_v45, %v9987_v5  ;;  %v2488_v43 = vpop.f32.mrf.mxu1  ;;  %v13452_v45 = vld [vmem:[#allocation88_spill] sm:$0xff] }
 0x298   :  { %v10406_v0 = vadd.f32 %v2488_v43, %v9982_v29  ;;  %v2437_v21 = vpop.f32.mrf.mxu0  ;;  %v10439_v43 = vpop.permute.xlu1 %4049 }
 0x299   :  { %v10412_v26 = vadd.f32 %v2437_v21, %v9996_v28  ;;  %v2490_v34 = vpop.f32.mrf.mxu1 }
 0x29a   :  { %v10417_v37 = vadd.f32 %v2490_v34, %v9993_v35  ;;  %v2439_v5 = vpop.f32.mrf.mxu0  ;;  %v4057_v35 = vsel %vm4053_vm8, %v10321_v54, %v10326_v33 }
 0x29b   :  { %v10420_v46 = vadd.f32 %v2439_v5, %v10003_v36  ;;  %v2492_v29 = vpop.f32.mrf.mxu1  ;;  %v4056_v5 = vsel %vm4053_vm8, %v10246_v18, %v10321_v54  ;;  %v13462_v54 = vld [vmem:[#allocation90_spill] sm:$0xff] }
 0x29c   :  { %v10426_v51 = vadd.f32 %v2492_v29, %v10000_v38  ;;  %v2549_v28 = vpop.f32.mrf.mxu0  ;;  %7513 = vmatmul.mubr.msk.bf16.vlgmr.msra.gmra.mxu0 %vm213_vm2, %v10070_v13  ;;  %v13454_v38 = vld [vmem:[#allocation25_spill] sm:$0xff]  ;;  %v10451_v29 = vpop.permute.xlu0 %4047 }
 0x29d   :  { %v2496_v57 = vpop.f32.mrf.mxu1  ;;  %v10434_v36 = vadd.f32 %v2549_v28, %v13452_v45  ;;  %7510 = vmatmul.mubr.msk.bf16.gmra.mxu1 %vm213_vm2, %v10163_v52  ;;  %3873 = vmatprep.mubr.bf16.mxu0 %v13089_v6  ;;  %v13457_v28 = vld [vmem:[#allocation26_spill] sm:$0xff] }
 0x29e   :  { %v10442_v21 = vadd.f32 %v2496_v57, %v13454_v38  ;;  %v2551_v41 = vpop.f32.mrf.mxu0  ;;  %3820 = vmatprep.mubr.bf16.mxu1 %v13089_v6  ;;  %4210 = vmatpush1.bf16.msra.mxu0 %v4101_v24  ;;  %v4070_v38 = vsel %vm4053_vm8, %v10451_v29, %v10439_v43 }
 0x29f   :  { %13453 = vst [vmem:[#allocation45_spill] sm:$0xff] %v10434_v36  ;;  %v2498_v13 = vpop.f32.mrf.mxu1  ;;  %v10446_v34 = vadd.f32 %v2551_v41, %v10031_v32  ;;  %4211 = vmatprep.subr.bf16.mxu0 %v4057_v35  ;;  %v13459_v36 = vld [vmem:[#allocation111_spill] sm:$0xff]  ;;  %v13461_v32 = vld [vmem:[#allocation92_spill] sm:$0xff] }
 0x2a0   :  { %13455 = vst [vmem:[#allocation113_spill] sm:$0xff] %v10442_v21  ;;  %v10454_v45 = vadd.f32 %v2498_v13, %v13457_v28  ;;  %v2553_v57 = vpop.f32.mrf.mxu0  ;;  %v13464_v13 = vld [vmem:[#allocation27_spill] sm:$0xff] }
 0x2a1   :  { %13456 = vst [vmem:[#allocation46_spill] sm:$0xff] %v10446_v34  ;;  %v2500_v24 = vpop.f32.mrf.mxu1  ;;  %v10460_v21 = vadd.f32 %v2553_v57, %v13459_v36  ;;  %v13465_v57 = vld [vmem:[#allocation28_spill] sm:$0xff] }
 0x2a2   :  { %13458 = vst [vmem:[#allocation116_spill] sm:$0xff] %v10454_v45  ;;  %v10463_v41 = vadd.f32 %v2500_v24, %v13461_v32  ;;  %v2555_v34 = vpop.f32.mrf.mxu0  ;;  %4212 = vmatpush1.bf16.msra.mxu0 %v4056_v5  ;;  %v13469_v32 = vld [vmem:[#allocation29_spill] sm:$0xff] }
 0x2a3   :  { %13460 = vst [vmem:[#allocation47_spill] sm:$0xff] %v10460_v21  ;;  %v2502_v18 = vpop.f32.mrf.mxu1  ;;  %v10466_v35 = vadd.f32 %v2555_v34, %v13462_v54  ;;  %7544 = vmatprep.subr.msk.bf16.mxu0 %vm226_vm1, %v4070_v38  ;;  %v13467_v34 = vld [vmem:[#allocation5_spill] sm:$0xff] }
 0x2a4   :  { %v10470_v28 = vadd.f32 %v2502_v18, %v13464_v13  ;;  %v2559_v45 = vpop.f32.mrf.mxu0  ;;  %7514 = vmatmul.mubr.msk.bf16.gmra.mxu0 %vm213_vm2, %v10117_v14  ;;  %v13471_v14 = vld [vmem:[#allocation94_spill] sm:$0xff]  ;;  %v4067_v13 = vsel %vm4053_vm8, %v10277_v11, %v10352_v56  ;;  %v13479_v11 = vld [vmem:[#allocation96_spill] sm:$0xff] }
 0x2a5   :  { %13463 = vst [vmem:[#allocation115_spill] sm:$0xff] %v10466_v35  ;;  %v2506_v36 = vpop.f32.mrf.mxu1  ;;  %v10475_v21 = vadd.f32 %v2559_v45, %v13465_v57  ;;  %7511 = vmatmul.mubr.msk.bf16.gmra.mxu1 %vm213_vm2, %v10211_v22  ;;  %3883 = vmatprep.mubr.bf16.mxu0 %v13089_v6 }
 0x2a6   :  { %v10481_v5 = vadd.f32 %v2506_v36, %v13467_v34  ;;  %v2561_v38 = vpop.f32.mrf.mxu0  ;;  %4156 = vmatprep.mubr.bf16.mxu1 %v13089_v6  ;;  %v10499_v36 = vld [vmem:[%s13040_s1 + $0xe0] sm:$0xff]   ;;  %v13475_v34 = vld [vmem:[#allocation93_spill] sm:$0xff] }
 0x2a7   :  { %13466 = vst [vmem:[#allocation48_spill] sm:$0xff] %v10475_v21  ;;  %v2508_v24 = vpop.f32.mrf.mxu1  ;;  %v10485_v18 = vadd.f32 %v2561_v38, %v13469_v32  ;;  %v13473_v21 = vld [vmem:[#allocation30_spill] sm:$0xff] }
 0x2a8   :  { %13468 = vst [vmem:[#allocation118_spill] sm:$0xff] %v10481_v5  ;;  %v10488_v54 = vadd.f32 %v2508_v24, %v13471_v14  ;;  %v2563_v45 = vpop.f32.mrf.mxu0  ;;  %v4107_v24 = vsel %vm226_vm1, %v4067_v13, 0 }
 0x2a9   :  { %13470 = vst [vmem:[#allocation49_spill] sm:$0xff] %v10485_v18  ;;  %v2510_v57 = vpop.f32.mrf.mxu1  ;;  %v10494_v35 = vadd.f32 %v2563_v45, %v13473_v21  ;;  %v13477_v18 = vld [vmem:[#allocation31_spill] sm:$0xff]  ;;  %v4059_v45 = vsel %vm4053_vm8, %v10423_v31, %v10414_v62 }
 0x2aa   :  { %13472 = vst [vmem:[#allocation117_spill] sm:$0xff] %v10488_v54  ;;  %v10502_v38 = vadd.f32 %v2510_v57, %v13475_v34  ;;  %v2565_v32 = vpop.f32.mrf.mxu0  ;;  %v10516_v57 = vpop.permute.xlu0 %4027  ;;  %v13481_v34 = vld [vmem:[#allocation32_spill] sm:$0xff] }
 0x2ab   :  { %13474 = vst [vmem:[#allocation50_spill] sm:$0xff] %v10494_v35  ;;  %v2512_v14 = vpop.f32.mrf.mxu1  ;;  %v10506_v54 = vadd.f32 %v2565_v32, %v13477_v18  ;;  %v13483_v18 = vld [vmem:[#allocation95_spill] sm:$0xff] }
 0x2ac   :  { %13476 = vst [vmem:[#allocation120_spill] sm:$0xff] %v10502_v38  ;;  %v10509_v56 = vadd.f32 %v2512_v14, %v13479_v11  ;;  %v2569_v21 = vpop.f32.mrf.mxu0  ;;  %7515 = vmatmul.mubr.msk.bf16.gmra.mxu0 %vm213_vm2, %v10163_v52  ;;  %v13485_v14 = vld [vmem:[#allocation33_spill] sm:$0xff]  ;;  %v13489_v38 = vld [vmem:[#allocation34_spill] sm:$0xff] }
 0x2ad   :  { %13478 = vst [vmem:[#allocation51_spill] sm:$0xff] %v10506_v54  ;;  %v10519_v35 = vadd.f32 %v2569_v21, %v13481_v34  ;;  %v2622_v13 = vpop.f32.mrf.mxu1  ;;  %7530 = vmatmul.mubr.msk.bf16.vlgmr.msra.gmra.mxu1 %vm213_vm2, %v10499_v36  ;;  %3893 = vmatprep.mubr.bf16.mxu0 %v13089_v6  ;;  %v4058_v21 = vsel %vm4053_vm8, %v10326_v33, %v10423_v31  ;;  %v13487_v34 = vld [vmem:[#allocation98_spill] sm:$0xff] }
 0x2ae   :  { %13480 = vst [vmem:[#allocation119_spill] sm:$0xff] %v10509_v56  ;;  %v10525_v32 = vadd.f32 %v2622_v13, %v13483_v18  ;;  %4283 = vmatpush1.bf16.msra.mxu1 %v4107_v24  ;;  %v2571_v52 = vpop.f32.mrf.mxu0  ;;  %4166 = vmatprep.mubr.bf16.mxu1 %v13089_v6  ;;  %v10543_v18 = vld [vmem:[%s13040_s1 + $0xe8] sm:$0xff]   ;;  %v10550_v31 = vpop.permute.xlu0 %4051 }
 0x2af   :  { %13482 = vst [vmem:[#allocation52_spill] sm:$0xff] %v10519_v35  ;;  %v10529_v11 = vadd.f32 %v2571_v52, %v13485_v14  ;;  %v2624_v54 = vpop.f32.mrf.mxu1  ;;  %4284 = vmatprep.subr.bf16.mxu1 %v4059_v45  ;;  %v10545_v52 = vpop.permute.xlu1 %4029  ;;  %v13491_v14 = vld [vmem:[#allocation97_spill] sm:$0xff] }
 0x2b0   :  { %13484 = vst [vmem:[#allocation122_spill] sm:$0xff] %v10525_v32  ;;  %v10535_v35 = vadd.f32 %v2624_v54, %v13487_v34  ;;  %v2573_v56 = vpop.f32.mrf.mxu0  ;;  %v13493_v54 = vld [vmem:[#allocation35_spill] sm:$0xff] }
 0x2b1   :  { %13486 = vst [vmem:[#allocation53_spill] sm:$0xff] %v10529_v11  ;;  %v10538_v13 = vadd.f32 %v2573_v56, %v13489_v38  ;;  %v2626_v24 = vpop.f32.mrf.mxu1  ;;  %v13495_v56 = vld [vmem:[#allocation102_spill] sm:$0xff] }
 0x2b2   :  { %13488 = vst [vmem:[#allocation121_spill] sm:$0xff] %v10535_v35  ;;  %v10548_v11 = vadd.f32 %v2626_v24, %v13491_v14  ;;  %v2575_v33 = vpop.f32.mrf.mxu0  ;;  %4285 = vmatpush1.bf16.msra.mxu1 %v4058_v21  ;;  %v13497_v24 = vld [vmem:[#allocation36_spill] sm:$0xff] }
 0x2b3   :  { %13490 = vst [vmem:[#allocation54_spill] sm:$0xff] %v10538_v13  ;;  %v10553_v45 = vadd.f32 %v2575_v33, %v13493_v54  ;;  %v2628_v38 = vpop.f32.mrf.mxu1  ;;  %7549 = vmatprep.subr.msk.bf16.mxu1 %vm226_vm1, %v10550_v31  ;;  %v10568_v33 = vpop.permute.xlu1 %4618  ;;  %v13499_v54 = vld [vmem:[#allocation100_spill] sm:$0xff] }
 0x2b4   :  { %13492 = vst [vmem:[#allocation124_spill] sm:$0xff] %v10548_v11  ;;  %v10558_v34 = vadd.f32 %v2628_v38, %v13495_v56  ;;  %v2579_v13 = vpop.f32.mrf.mxu0  ;;  %7516 = vmatmul.mubr.msk.bf16.gmra.mxu0 %vm213_vm2, %v10211_v22  ;;  %v13501_v56 = vld [vmem:[#allocation37_spill] sm:$0xff] }
 0x2b5   :  { %13494 = vst [vmem:[#allocation55_spill] sm:$0xff] %v10553_v45  ;;  %v10563_v14 = vadd.f32 %v2579_v13, %v13497_v24  ;;  %v2632_v21 = vpop.f32.mrf.mxu1  ;;  %7531 = vmatmul.mubr.msk.bf16.gmra.mxu1 %vm213_vm2, %v10543_v18  ;;  %4229 = vmatprep.mubr.bf16.mxu0 %v13089_v6  ;;  %v5161_v13 = vld [vmem:[%s13041_s2 + $0x38] sm:$0xff]  ;;  %v13503_v24 = vld [vmem:[#allocation104_spill] sm:$0xff] }
 0x2b6   :  { %13496 = vst [vmem:[#allocation123_spill] sm:$0xff] %v10558_v34  ;;  %v10571_v45 = vadd.f32 %v2632_v21, %v13499_v54  ;;  %v2581_v38 = vpop.f32.mrf.mxu0  ;;  %4176 = vmatprep.mubr.bf16.mxu1 %v13089_v6  ;;  %v4069_v21 = vsel %vm4053_vm8, %v10360_v17, %v10451_v29  ;;  %5199 = vperm.xlu1 %7711, %v5161_v13   ;;  %v13505_v54 = vld [vmem:[#allocation38_spill] sm:$0xff]  ;;  %v13509_v17 = vld [vmem:[#allocation39_spill] sm:$0xff] }
 0x2b7   :  { %13498 = vst [vmem:[#allocation56_spill] sm:$0xff] %v10563_v14  ;;  %v10575_v34 = vadd.f32 %v2581_v38, %v13501_v56  ;;  %v2634_v22 = vpop.f32.mrf.mxu1  ;;  %v10592_v38 = vld [vmem:[%s13040_s1 + $0xf0] sm:$0xff]   ;;  %v4113_v13 = vsel %vm226_vm1, %v4069_v21, 0 }
 0x2b8   :  { %13500 = vst [vmem:[#allocation126_spill] sm:$0xff] %v10571_v45  ;;  %v10581_v14 = vadd.f32 %v2634_v22, %v13503_v24  ;;  %v2583_v11 = vpop.f32.mrf.mxu0  ;;  %v5160_v56 = vld [vmem:[%s13041_s2 + $0x30] sm:$0xff]  ;;  %v13507_v22 = vld [vmem:[#allocation103_spill] sm:$0xff] }
 0x2b9   :  { %13502 = vst [vmem:[#allocation57_spill] sm:$0xff] %v10575_v34  ;;  %v10587_v45 = vadd.f32 %v2583_v11, %v13505_v54  ;;  %v2636_v35 = vpop.f32.mrf.mxu1  ;;  %5194 = vperm.xlu0 %7710, %v5160_v56   ;;  %v10604_v54 = vpop.permute.xlu1 %4622  ;;  %v13513_v56 = vld [vmem:[#allocation40_spill] sm:$0xff] }
 0x2ba   :  { %13504 = vst [vmem:[#allocation125_spill] sm:$0xff] %v10581_v14  ;;  %v10598_v24 = vadd.f32 %v2636_v35, %v13507_v22  ;;  %v2585_v34 = vpop.f32.mrf.mxu0  ;;  %v13511_v14 = vld [vmem:[#allocation106_spill] sm:$0xff]  ;;  %v4061_v35 = vsel %vm4053_vm8, %v10516_v57, %v10545_v52 }
 0x2bb   :  { %13506 = vst [vmem:[#allocation58_spill] sm:$0xff] %v10587_v45  ;;  %v10601_v29 = vadd.f32 %v2585_v34, %v13509_v17  ;;  %v2638_v11 = vpop.f32.mrf.mxu1  ;;  %v5158_v45 = vld [vmem:[%s13041_s2 + $0x20] sm:$0xff]  ;;  %v10617_v34 = vpop.permute.xlu0 %4620  ;;  %v13515_v17 = vld [vmem:[#allocation105_spill] sm:$0xff] }
 0x2bc   :  { %13508 = vst [vmem:[#allocation128_spill] sm:$0xff] %v10598_v24  ;;  %v10610_v32 = vadd.f32 %v2638_v11, %v13511_v14  ;;  %v2695_v5 = vpop.f32.mrf.mxu0  ;;  %7535 = vmatmul.mubr.msk.bf16.vlgmr.msra.gmra.mxu0 %vm213_vm2, %v10499_v36  ;;  %5184 = vperm.xlu1 %7711, %v5158_v45   ;;  %v5159_v14 = vld [vmem:[%s13041_s2 + $0x28] sm:$0xff] }
 0x2bd   :  { %13510 = vst [vmem:[#allocation59_spill] sm:$0xff] %v10601_v29  ;;  %v2642_v21 = vpop.f32.mrf.mxu1  ;;  %v10620_v22 = vadd.f32 %v2695_v5, %v13513_v56  ;;  %7532 = vmatmul.mubr.msk.bf16.gmra.mxu1 %vm213_vm2, %v10592_v38  ;;  %4239 = vmatprep.mubr.bf16.mxu0 %v13089_v6  ;;  %v13517_v5 = vld [vmem:[#allocation41_spill] sm:$0xff] }
 0x2be   :  { %13512 = vst [vmem:[#allocation127_spill] sm:$0xff] %v10610_v32  ;;  %v10629_v11 = vadd.f32 %v2642_v21, %v13515_v17  ;;  %v2697_v29 = vpop.f32.mrf.mxu0  ;;  %4186 = vmatprep.mubr.bf16.mxu1 %v13089_v6  ;;  %4356 = vmatpush1.bf16.msra.mxu0 %v4113_v13  ;;  %v5156_v32 = vld [vmem:[%s13041_s2 + $0x10] sm:$0xff]  ;;  %v4649_v13 = vsel %vm4638_vm9, %v10617_v34, %v10604_v54 }
 0x2bf   :  { %13514 = vst [vmem:[#allocation60_spill] sm:$0xff] %v10620_v22  ;;  %v2644_v45 = vpop.f32.mrf.mxu1  ;;  %v10633_v56 = vadd.f32 %v2697_v29, %v13517_v5  ;;  %v4060_v22 = vsel %vm4053_vm8, %v10414_v62, %v10516_v57  ;;  %4357 = vmatprep.subr.bf16.mxu0 %v4061_v35  ;;  %5189 = vperm.xlu0 %7710, %v5159_v14   ;;  %v13519_v21 = vld [vmem:[#allocation108_spill] sm:$0xff]  ;;  %v10653_v62 = vld [vmem:[%s13040_s1 + $0xf8] sm:$0xff]   ;;  %v10655_v57 = vpop.permute.xlu1 %4600 }
 0x2c0   :  { %13516 = vst [vmem:[#allocation61_spill] sm:$0xff] %v10629_v11  ;;  %v10642_v17 = vadd.f32 %v2644_v45, %v13519_v21  ;;  %v2699_v11 = vpop.f32.mrf.mxu0  ;;  %5174 = vperm.xlu1 %7711, %v5156_v32   ;;  %v5157_v35 = vld [vmem:[%s13041_s2 + $0x18] sm:$0xff]  ;;  %v4032_v32 = vpop.permute.xlu0 %4031 }
 0x2c1   :  { %13518 = vst [vmem:[#allocation129_spill] sm:$0xff] %v10633_v56  ;;  %v2646_v29 = vpop.f32.mrf.mxu1  ;;  %v10648_v5 = vadd.f32 %v2699_v11, %v10220_v23  ;;  %v13522_v23 = vld [vmem:[#allocation42_spill] sm:$0xff]  ;;  %v13524_v56 = vld [vmem:[#allocation107_spill] sm:$0xff] }
 0x2c2   :  { %13520 = vst [vmem:[#allocation62_spill] sm:$0xff] %v10642_v17  ;;  %v10661_v14 = vadd.f32 %v2646_v29, %v10217_v60  ;;  %v2701_v45 = vpop.f32.mrf.mxu0  ;;  %4358 = vmatpush1.bf16.msra.mxu0 %v4060_v22  ;;  %v13526_v22 = vld [vmem:[#allocation43_spill] sm:$0xff] }
 0x2c3   :  { %13521 = vst [vmem:[#allocation130_spill] sm:$0xff] %v10648_v5  ;;  %v2648_v21 = vpop.f32.mrf.mxu1  ;;  %v10664_v11 = vadd.f32 %v2701_v45, %v13522_v23  ;;  %7566 = vmatprep.subr.msk.bf16.mxu0 %vm226_vm1, %v4649_v13  ;;  %5179 = vperm.xlu0 %7710, %v5157_v35   ;;  %v5154_v5 = vld [vmem:[%s13041_s2] sm:$0xff]  ;;  %v5155_v13 = vld [vmem:[%s13041_s2 + $0x8] sm:$0xff] }
 0x2c4   :  { %v10671_v17 = vadd.f32 %v2648_v21, %v13524_v56  ;;  %v2705_v24 = vpop.f32.mrf.mxu0  ;;  %7536 = vmatmul.mubr.msk.bf16.gmra.mxu0 %vm213_vm2, %v10543_v18  ;;  %5164 = vperm.xlu1 %7711, %v5154_v5   ;;  %v13528_v56 = vld [vmem:[#allocation112_spill] sm:$0xff]  ;;  %v10688_v5 = vpop.permute.xlu0 %4602 }
 0x2c5   :  { %13523 = vst [vmem:[#allocation63_spill] sm:$0xff] %v10664_v11  ;;  %v2652_v60 = vpop.f32.mrf.mxu1  ;;  %v10676_v29 = vadd.f32 %v2705_v24, %v13526_v22  ;;  %7533 = vmatmul.mubr.msk.bf16.gmra.mxu1 %vm213_vm2, %v10653_v62  ;;  %4249 = vmatprep.mubr.bf16.mxu0 %v13089_v6  ;;  %v13530_v24 = vld [vmem:[#allocation44_spill] sm:$0xff]  ;;  %v10693_v22 = vpop.permute.xlu1 %4598 }
 0x2c6   :  { %13525 = vst [vmem:[#allocation131_spill] sm:$0xff] %v10671_v17  ;;  %v10685_v35 = vadd.f32 %v2652_v60, %v13528_v56  ;;  %v2707_v45 = vpop.f32.mrf.mxu0  ;;  %4302 = vmatprep.mubr.bf16.mxu1 %v13089_v6  ;;  %v4071_v60 = vsel %vm4053_vm8, %v10439_v43, %v10550_v31 }
 0x2c7   :  { %13527 = vst [vmem:[#allocation64_spill] sm:$0xff] %v10676_v29  ;;  %v2654_v21 = vpop.f32.mrf.mxu1  ;;  %v10691_v23 = vadd.f32 %v2707_v45, %v13530_v24  ;;  %5169 = vperm.xlu0 %7710, %v5155_v13   ;;  %v13531_v29 = vld [vmem:[#allocation110_spill] sm:$0xff]  ;;  %v5417_v45 = vld [vmem:[%s13042_s4 + $0x38] sm:$0xff]  ;;  %v5416_v13 = vld [vmem:[%s13042_s4 + $0x30] sm:$0xff]  ;;  %v4119_v24 = vsel %vm226_vm1, %v4071_v60, 0 }
 0x2c8   :  { %13529 = vst [vmem:[#allocation65_spill] sm:$0xff] %v10685_v35  ;;  %v10696_v11 = vadd.f32 %v2654_v21, %v13531_v29  ;;  %v2709_v17 = vpop.f32.mrf.mxu0  ;;  %5450 = vperm.xlu1 %7711, %v5416_v13   ;;  %v5414_v60 = vld [vmem:[%s13042_s4 + $0x20] sm:$0xff] }
 0x2c9   :  { %v2656_v56 = vpop.f32.mrf.mxu1  ;;  %v10702_v35 = vadd.f32 %v2709_v17, %v10258_v27 }
 0x2ca   :  { %v10711_v29 = vadd.f32 %v2656_v56, %v10255_v25  ;;  %v2711_v21 = vpop.f32.mrf.mxu0 }
 0x2cb   :  { %13532 = vst [vmem:[#allocation66_spill] sm:$0xff] %v10702_v35  ;;  %v2658_v43 = vpop.f32.mrf.mxu1  ;;  %v10715_v31 = vadd.f32 %v2711_v21, %v10265_v4  ;;  %5455 = vperm.xlu0 %7710, %v5417_v45   ;;  %v10722_v35 = vpop.permute.xlu0 %4624 }
 0x2cc   :  { %v10718_v27 = vadd.f32 %v2658_v43, %v10261_v59  ;;  %v2715_v17 = vpop.f32.mrf.mxu0  ;;  %7537 = vmatmul.mubr.msk.bf16.gmra.mxu0 %vm213_vm2, %v10592_v38  ;;  %v10730_v4 = vpop.permute.xlu1 %4626  ;;  %v5415_v59 = vld [vmem:[%s13042_s4 + $0x28] sm:$0xff]  ;;  %v4062_v43 = vsel %vm4053_vm8, %v10545_v52, %v4032_v32  ;;  %5440 = vperm.xlu1 %7711, %v5414_v60   ;;  %v5412_v52 = vld [vmem:[%s13042_s4 + $0x10] sm:$0xff] }
 0x2cd   :  { %v10725_v25 = vadd.f32 %v2715_v17, %v10280_v44  ;;  %v2988_v56 = vpop.f32.mrf.mxu1  ;;  %7540 = vmatmul.mubr.msk.bf16.vlgmr.msra.gmra.mxu1 %vm213_vm2, %v10499_v36  ;;  %4259 = vmatprep.mubr.bf16.mxu0 %v13089_v6 }
 0x2ce   :  { %v10739_v45 = vadd.f32 %v2988_v56, %v10272_v19  ;;  %4429 = vmatpush1.bf16.msra.mxu1 %v4119_v24  ;;  %v2717_v44 = vpop.f32.mrf.mxu0  ;;  %4312 = vmatprep.mubr.bf16.mxu1 %v13089_v6  ;;  %v4651_v19 = vsel %vm4638_vm9, %v10722_v35, %v10730_v4  ;;  %v5413_v56 = vld [vmem:[%s13042_s4 + $0x18] sm:$0xff] }
 0x2cf   :  { %13533 = vst [vmem:[#allocation67_spill] sm:$0xff] %v10725_v25  ;;  %v10743_v13 = vadd.f32 %v2717_v44, %v10291_v1  ;;  %v2990_v21 = vpop.f32.mrf.mxu1  ;;  %4430 = vmatprep.subr.bf16.mxu1 %v4032_v32  ;;  %5445 = vperm.xlu0 %7710, %v5415_v59  }
 0x2d0   :  { %v10748_v17 = vadd.f32 %v2990_v21, %v10284_v40  ;;  %v2719_v25 = vpop.f32.mrf.mxu0  ;;  %5430 = vperm.xlu1 %7711, %v5412_v52  }
 0x2d1   :  { %v10754_v24 = vadd.f32 %v2719_v25, %v10300_v39  ;;  %v2992_v1 = vpop.f32.mrf.mxu1 }
 0x2d2   :  { %v10763_v40 = vadd.f32 %v2992_v1, %v10297_v61  ;;  %v2721_v32 = vpop.f32.mrf.mxu0  ;;  %4431 = vmatpush1.bf16.msra.mxu1 %v4062_v43  ;;  %v13534_v1 = vld [vmem:[#allocation114_spill] sm:$0xff] }
 0x2d3   :  { %v10766_v59 = vadd.f32 %v2721_v32, %v10307_v12  ;;  %v2994_v60 = vpop.f32.mrf.mxu1  ;;  %7571 = vmatprep.subr.msk.bf16.mxu1 %vm226_vm1, %v4651_v19  ;;  %5435 = vperm.xlu0 %7710, %v5413_v56   ;;  %v5411_v12 = vld [vmem:[%s13042_s4 + $0x8] sm:$0xff]  ;;  %v4648_v32 = vsel %vm4638_vm9, %v10568_v33, %v10617_v34 }
 0x2d4   :  { %v10770_v39 = vadd.f32 %v2994_v60, %v10303_v9  ;;  %v2725_v25 = vpop.f32.mrf.mxu0  ;;  %7538 = vmatmul.mubr.msk.bf16.gmra.mxu0 %vm213_vm2, %v10653_v62  ;;  %v5410_v9 = vld [vmem:[%s13042_s4] sm:$0xff]  ;;  %v10799_v60 = vpop.permute.xlu0 %4604 }
 0x2d5   :  { %v10775_v61 = vadd.f32 %v2725_v25, %v10318_v47  ;;  %v2998_v44 = vpop.f32.mrf.mxu1  ;;  %7541 = vmatmul.mubr.msk.bf16.gmra.mxu1 %vm213_vm2, %v10543_v18  ;;  %4375 = vmatprep.mubr.bf16.mxu0 %v13089_v6 }
 0x2d6   :  { %v10787_v21 = vadd.f32 %v2998_v44, %v10312_v50  ;;  %v2727_v43 = vpop.f32.mrf.mxu0  ;;  %4322 = vmatprep.mubr.bf16.mxu1 %v13089_v6  ;;  %5420 = vperm.xlu1 %7711, %v5410_v9   ;;  %v10804_v44 = vpop.permute.xlu1 %4606  ;;  %v4680_v9 = vsel %vm226_vm1, %v4648_v32, 0  ;;  %v5986_v32 = vld [vmem:[%s13043_s6 + $0x20] sm:$0xff] }
 0x2d7   :  { %v10791_v47 = vadd.f32 %v2727_v43, %v10329_v3  ;;  %v3000_v19 = vpop.f32.mrf.mxu1  ;;  %5425 = vperm.xlu0 %7710, %v5411_v12   ;;  %v5984_v3 = vld [vmem:[%s13043_s6 + $0x10] sm:$0xff]  ;;  %v5983_v12 = vld [vmem:[%s13043_s6 + $0x8] sm:$0xff] }
 0x2d8   :  { %v10794_v56 = vadd.f32 %v3000_v19, %v13534_v1  ;;  %v2729_v52 = vpop.f32.mrf.mxu0 }
 0x2d9   :  { %v10802_v50 = vadd.f32 %v2729_v52, %v10338_v30  ;;  %v3002_v25 = vpop.f32.mrf.mxu1  ;;  %v10827_v52 = vpop.permute.xlu0 %4628 }
 0x2da   :  { %v10813_v43 = vadd.f32 %v3002_v25, %v10335_v58  ;;  %v2731_v33 = vpop.f32.mrf.mxu0  ;;  %v4640_v58 = vsel %vm4638_vm9, %v10655_v57, %v10688_v5  ;;  %5995 = vperm.xlu1 %7711, %v5983_v12  }
 0x2db   :  { %v10816_v34 = vadd.f32 %v2731_v33, %v10345_v15  ;;  %v3004_v30 = vpop.f32.mrf.mxu1  ;;  %6000 = vperm.xlu0 %7710, %v5984_v3   ;;  %v5982_v3 = vld [vmem:[%s13043_s6] sm:$0xff] }
 0x2dc   :  { %v10820_v19 = vadd.f32 %v3004_v30, %v10341_v7  ;;  %v3061_v1 = vpop.f32.mrf.mxu0  ;;  %7545 = vmatmul.mubr.msk.bf16.vlgmr.msra.gmra.mxu0 %vm213_vm2, %v10499_v36  ;;  %v10835_v7 = vpop.permute.xlu1 %4630 }
 0x2dd   :  { %13535 = vst [vmem:[#allocation68_spill] sm:$0xff] %v10816_v34  ;;  %v3008_v15 = vpop.f32.mrf.mxu1  ;;  %v10830_v25 = vadd.f32 %v3061_v1, %v10363_v8  ;;  %7542 = vmatmul.mubr.msk.bf16.gmra.mxu1 %vm213_vm2, %v10592_v38  ;;  %4385 = vmatprep.mubr.bf16.mxu0 %v13089_v6  ;;  %v4639_v1 = vsel %vm4638_vm9, %v10693_v22, %v10655_v57  ;;  %v5987_v57 = vld [vmem:[%s13043_s6 + $0x28] sm:$0x3] }
 0x2de   :  { %v10844_v12 = vadd.f32 %v3008_v15, %v10355_v63  ;;  %v3063_v8 = vpop.f32.mrf.mxu0  ;;  %4332 = vmatprep.mubr.bf16.mxu1 %v13089_v6  ;;  %4722 = vmatpush1.bf16.msra.mxu0 %v4680_v9  ;;  %v4653_v63 = vsel %vm4638_vm9, %v10827_v52, %v10835_v7 }
 0x2df   :  { %13536 = vst [vmem:[#allocation69_spill] sm:$0xff] %v10830_v25  ;;  %v3010_v33 = vpop.f32.mrf.mxu1  ;;  %v10848_v30 = vadd.f32 %v3063_v8, %v10372_v2  ;;  %4723 = vmatprep.subr.bf16.mxu0 %v4640_v58  ;;  %6010 = vperm.xlu0 %7710, %v5986_v32   ;;  %v5985_v2 = vld [vmem:[%s13043_s6 + $0x18] sm:$0xff] }
 0x2e0   :  { %v10854_v25 = vadd.f32 %v3010_v33, %v10367_v42  ;;  %v3065_v34 = vpop.f32.mrf.mxu0  ;;  %5990 = vperm.xlu1 %7711, %v5982_v3  }
 0x2e1   :  { %v3012_v9 = vpop.f32.mrf.mxu1  ;;  %v10860_v15 = vadd.f32 %v3065_v34, %v10381_v49 }
 0x2e2   :  { %v10869_v42 = vadd.f32 %v3012_v9, %v10378_v53  ;;  %v3067_v22 = vpop.f32.mrf.mxu0  ;;  %4724 = vmatpush1.bf16.msra.mxu0 %v4639_v1 }
 0x2e3   :  { %v3014_v58 = vpop.f32.mrf.mxu1  ;;  %v10872_v32 = vadd.f32 %v3067_v22, %v10388_v16  ;;  %7576 = vmatprep.subr.msk.bf16.mxu0 %vm226_vm1, %v4653_v63  ;;  %6005 = vperm.xlu0 %7710, %v5985_v2   ;;  %v10895_v63 = vpop.permute.xlu1 %4610 }
 0x2e4   :  { %v10876_v49 = vadd.f32 %v3014_v58, %v10384_v20  ;;  %v3071_v34 = vpop.f32.mrf.mxu0  ;;  %7546 = vmatmul.mubr.msk.bf16.gmra.mxu0 %vm213_vm2, %v10543_v18  ;;  %6015 = vperm.xlu1 %7711, %v5987_v57   ;;  %v10890_v20 = vpop.permute.xlu0 %4608 }
 0x2e5   :  { %13537 = vst [vmem:[#allocation6_spill] sm:$0xff] %v10872_v32  ;;  %v3018_v3 = vpop.f32.mrf.mxu1  ;;  %v10881_v53 = vadd.f32 %v3071_v34, %v10399_v48  ;;  %7543 = vmatmul.mubr.msk.bf16.gmra.mxu1 %vm213_vm2, %v10653_v62  ;;  %4395 = vmatprep.mubr.bf16.mxu0 %v13089_v6 }
 0x2e6   :  { %v10887_v16 = vadd.f32 %v3018_v3, %v10393_v55  ;;  %v3073_v8 = vpop.f32.mrf.mxu0  ;;  %4448 = vmatprep.mubr.bf16.mxu1 %v13089_v6  ;;  %v4650_v55 = vsel %vm4638_vm9, %v10604_v54, %v10722_v35  ;;  %v13539_v54 = vld [vmem:[#allocation113_spill] sm:$0xff] }
 0x2e7   :  { %v3020_v33 = vpop.f32.mrf.mxu1  ;;  %v10893_v1 = vadd.f32 %v3073_v8, %v10406_v0  ;;  %v4686_v0 = vsel %vm226_vm1, %v4650_v55, 0 }
 0x2e8   :  { %v10898_v48 = vadd.f32 %v3020_v33, %v10403_v10  ;;  %v3075_v9 = vpop.f32.mrf.mxu0 }
 0x2e9   :  { %v3022_v2 = vpop.f32.mrf.mxu1  ;;  %v10904_v57 = vadd.f32 %v3075_v9, %v10417_v37  ;;  %v4642_v37 = vsel %vm4638_vm9, %v10799_v60, %v10804_v44 }
 0x2ea   :  { %v10907_v22 = vadd.f32 %v3022_v2, %v10412_v26  ;;  %v3077_v58 = vpop.f32.mrf.mxu0  ;;  %v10921_v26 = vpop.permute.xlu0 %4632  ;;  %v13541_v2 = vld [vmem:[#allocation116_spill] sm:$0xff] }
 0x2eb   :  { %v3024_v34 = vpop.f32.mrf.mxu1  ;;  %v10911_v3 = vadd.f32 %v3077_v58, %v10426_v51  ;;  %v13540_v51 = vld [vmem:[#allocation45_spill] sm:$0xff] }
 0x2ec   :  { %v10914_v10 = vadd.f32 %v3024_v34, %v10420_v46  ;;  %v3081_v8 = vpop.f32.mrf.mxu0  ;;  %7547 = vmatmul.mubr.msk.bf16.gmra.mxu0 %vm213_vm2, %v10592_v38  ;;  %v10929_v46 = vpop.permute.xlu1 %4634 }
 0x2ed   :  { %13538 = vst [vmem:[#allocation10_spill] sm:$0xff] %v10911_v3  ;;  %v10924_v35 = vadd.f32 %v3081_v8, %v13539_v54  ;;  %v3134_v33 = vpop.f32.mrf.mxu1  ;;  %7550 = vmatmul.mubr.msk.bf16.vlgmr.msra.gmra.mxu1 %vm213_vm2, %v10499_v36  ;;  %4405 = vmatprep.mubr.bf16.mxu0 %v13089_v6  ;;  %v4641_v8 = vsel %vm4638_vm9, %v10688_v5, %v10799_v60  ;;  %v13542_v36 = vld [vmem:[#allocation46_spill] sm:$0xff] }
 0x2ee   :  { %v10932_v9 = vadd.f32 %v3134_v33, %v13540_v51  ;;  %4795 = vmatpush1.bf16.msra.mxu1 %v4686_v0  ;;  %v3083_v55 = vpop.f32.mrf.mxu0  ;;  %4458 = vmatprep.mubr.bf16.mxu1 %v13089_v6  ;;  %v4655_v0 = vsel %vm4638_vm9, %v10921_v26, %v10929_v46 }
 0x2ef   :  { %v10936_v58 = vadd.f32 %v3083_v55, %v13541_v2  ;;  %v3136_v34 = vpop.f32.mrf.mxu1  ;;  %4796 = vmatprep.subr.bf16.mxu1 %v4642_v37  ;;  %v13544_v55 = vld [vmem:[#allocation47_spill] sm:$0xff] }
 0x2f0   :  { %v10942_v54 = vadd.f32 %v3136_v34, %v13542_v36  ;;  %v3085_v3 = vpop.f32.mrf.mxu0  ;;  %v13547_v37 = vld [vmem:[#allocation115_spill] sm:$0xff] }
 0x2f1   :  { %v10948_v33 = vadd.f32 %v3085_v3, %v10463_v41  ;;  %v3138_v51 = vpop.f32.mrf.mxu1  ;;  %v13549_v41 = vld [vmem:[#allocation118_spill] sm:$0xff] }
 0x2f2   :  { %v10951_v2 = vadd.f32 %v3138_v51, %v13544_v55  ;;  %v3087_v32 = vpop.f32.mrf.mxu0  ;;  %4797 = vmatpush1.bf16.msra.mxu1 %v4641_v8 }
 0x2f3   :  { %13543 = vst [vmem:[#allocation71_spill] sm:$0xff] %v10948_v33  ;;  %v10954_v5 = vadd.f32 %v3087_v32, %v10470_v28  ;;  %v3140_v60 = vpop.f32.mrf.mxu1  ;;  %7581 = vmatprep.subr.msk.bf16.mxu1 %vm226_vm1, %v4655_v0  ;;  %v13551_v28 = vld [vmem:[#allocation48_spill] sm:$0xff]  ;;  %v13553_v0 = vld [vmem:[#allocation117_spill] sm:$0xff] }
 0x2f4   :  { %13545 = vst [vmem:[#allocation7_spill] sm:$0xff] %v10951_v2  ;;  %v10958_v34 = vadd.f32 %v3140_v60, %v13547_v37  ;;  %v3091_v36 = vpop.f32.mrf.mxu0  ;;  %7548 = vmatmul.mubr.msk.bf16.gmra.mxu0 %vm213_vm2, %v10653_v62  ;;  %v13555_v37 = vld [vmem:[#allocation49_spill] sm:$0xff] }
 0x2f5   :  { %13546 = vst [vmem:[#allocation70_spill] sm:$0xff] %v10954_v5  ;;  %v10963_v3 = vadd.f32 %v3091_v36, %v13549_v41  ;;  %v3144_v51 = vpop.f32.mrf.mxu1  ;;  %7551 = vmatmul.mubr.msk.bf16.gmra.mxu1 %vm213_vm2, %v10543_v18  ;;  %4741 = vmatprep.mubr.bf16.mxu0 %v13089_v6  ;;  %v10981_v18 = vld [vmem:[%s13040_s1 + $0x100] sm:$0xff]   ;;  %v4652_v41 = vsel %vm4638_vm9, %v10730_v4, %v10827_v52  ;;  %v11004_v52 = vpop.permute.xlu0 %4612 }
 0x2f6   :  { %13548 = vst [vmem:[#allocation11_spill] sm:$0xff] %v10958_v34  ;;  %v10969_v32 = vadd.f32 %v3144_v51, %v13551_v28  ;;  %v3093_v8 = vpop.f32.mrf.mxu0  ;;  %4468 = vmatprep.mubr.bf16.mxu1 %v13089_v6  ;;  %v13557_v51 = vld [vmem:[#allocation120_spill] sm:$0xff]  ;;  %v4644_v4 = vsel %vm4638_vm9, %v10890_v20, %v10895_v63 }
 0x2f7   :  { %13550 = vst [vmem:[#allocation73_spill] sm:$0xff] %v10963_v3  ;;  %v10973_v55 = vadd.f32 %v3093_v8, %v13553_v0  ;;  %v3146_v60 = vpop.f32.mrf.mxu1  ;;  %v13558_v8 = vld [vmem:[#allocation50_spill] sm:$0xff]  ;;  %v4692_v3 = vsel %vm226_vm1, %v4652_v41, 0 }
 0x2f8   :  { %13552 = vst [vmem:[#allocation8_spill] sm:$0xff] %v10969_v32  ;;  %v10976_v5 = vadd.f32 %v3146_v60, %v13555_v37  ;;  %v3095_v36 = vpop.f32.mrf.mxu0  ;;  %v13559_v60 = vld [vmem:[#allocation119_spill] sm:$0xff] }
 0x2f9   :  { %13554 = vst [vmem:[#allocation72_spill] sm:$0xff] %v10973_v55  ;;  %v10987_v28 = vadd.f32 %v3095_v36, %v13557_v51  ;;  %v3148_v34 = vpop.f32.mrf.mxu1  ;;  %v13561_v32 = vld [vmem:[#allocation51_spill] sm:$0xff]  ;;  %v13563_v36 = vld [vmem:[#allocation122_spill] sm:$0xff] }
 0x2fa   :  { %13556 = vst [vmem:[#allocation91_spill] sm:$0xff] %v10976_v5  ;;  %v10990_v0 = vadd.f32 %v3148_v34, %v13558_v8  ;;  %v3097_v55 = vpop.f32.mrf.mxu0  ;;  %v13566_v8 = vld [vmem:[#allocation121_spill] sm:$0xff] }
 0x2fb   :  { %v10993_v37 = vadd.f32 %v3097_v55, %v13559_v60  ;;  %v3150_v5 = vpop.f32.mrf.mxu1 }
 0x2fc   :  { %v10997_v33 = vadd.f32 %v3150_v5, %v13561_v32  ;;  %v3207_v2 = vpop.f32.mrf.mxu0  ;;  %7567 = vmatmul.mubr.msk.bf16.vlgmr.msra.gmra.mxu0 %vm213_vm2, %v10981_v18  ;;  %v13565_v5 = vld [vmem:[#allocation52_spill] sm:$0xff] }
 0x2fd   :  { %13560 = vst [vmem:[#allocation75_spill] sm:$0xff] %v10993_v37  ;;  %v3154_v34 = vpop.f32.mrf.mxu1  ;;  %v11007_v55 = vadd.f32 %v3207_v2, %v13563_v36  ;;  %7552 = vmatmul.mubr.msk.bf16.gmra.mxu1 %vm213_vm2, %v10592_v38  ;;  %4751 = vmatprep.mubr.bf16.mxu0 %v13089_v6  ;;  %v4643_v2 = vsel %vm4638_vm9, %v10804_v44, %v10890_v20  ;;  %v13568_v36 = vld [vmem:[#allocation53_spill] sm:$0xff] }
 0x2fe   :  { %13562 = vst [vmem:[#allocation74_spill] sm:$0xff] %v10997_v33  ;;  %v11013_v32 = vadd.f32 %v3154_v34, %v13565_v5  ;;  %v3209_v41 = vpop.f32.mrf.mxu0  ;;  %4478 = vmatprep.mubr.bf16.mxu1 %v13089_v6  ;;  %4868 = vmatpush1.bf16.msra.mxu0 %v4692_v3  ;;  %v11028_v34 = vld [vmem:[%s13040_s1 + $0x108] sm:$0xff]   ;;  %v11030_v5 = vpop.permute.xlu0 %4636  ;;  %v13570_v33 = vld [vmem:[#allocation124_spill] sm:$0xff] }
 0x2ff   :  { %13564 = vst [vmem:[#allocation12_spill] sm:$0xff] %v11007_v55  ;;  %v3156_v51 = vpop.f32.mrf.mxu1  ;;  %v11017_v60 = vadd.f32 %v3209_v41, %v13566_v8  ;;  %4869 = vmatprep.subr.bf16.mxu0 %v4644_v4  ;;  %v13572_v8 = vld [vmem:[#allocation54_spill] sm:$0xff]  ;;  %v13574_v4 = vld [vmem:[#allocation123_spill] sm:$0xff] }
 0x300   :  { %v11023_v38 = vadd.f32 %v3156_v51, %v13568_v36  ;;  %v3211_v37 = vpop.f32.mrf.mxu0  ;;  %v13576_v36 = vld [vmem:[#allocation55_spill] sm:$0xff] }
 0x301   :  { %13567 = vst [vmem:[#allocation77_spill] sm:$0xff] %v11017_v60  ;;  %v3158_v3 = vpop.f32.mrf.mxu1  ;;  %v11033_v41 = vadd.f32 %v3211_v37, %v13570_v33  ;;  %v13578_v37 = vld [vmem:[#allocation126_spill] sm:$0xff] }
 0x302   :  { %13569 = vst [vmem:[#allocation9_spill] sm:$0xff] %v11023_v38  ;;  %v11036_v60 = vadd.f32 %v3158_v3, %v13572_v8  ;;  %v3213_v44 = vpop.f32.mrf.mxu0  ;;  %4870 = vmatpush1.bf16.msra.mxu0 %v4643_v2  ;;  %v13580_v2 = vld [vmem:[#allocation56_spill] sm:$0xff] }
 0x303   :  { %13571 = vst [vmem:[#allocation76_spill] sm:$0xff] %v11033_v41  ;;  %v3160_v20 = vpop.f32.mrf.mxu1  ;;  %v11039_v51 = vadd.f32 %v3213_v44, %v13574_v4  ;;  %7586 = vmatprep.subr.msk.bf16.mxu0 %vm226_vm1, %v11030_v5  ;;  %v13582_v4 = vld [vmem:[#allocation125_spill] sm:$0xff] }
 0x304   :  { %13573 = vst [vmem:[#allocation13_spill] sm:$0xff] %v11036_v60  ;;  %v11044_v38 = vadd.f32 %v3160_v20, %v13576_v36  ;;  %v3217_v55 = vpop.f32.mrf.mxu0  ;;  %7568 = vmatmul.mubr.msk.bf16.gmra.mxu0 %vm213_vm2, %v11028_v34 }
 0x305   :  { %13575 = vst [vmem:[#allocation79_spill] sm:$0xff] %v11039_v51  ;;  %v3164_v33 = vpop.f32.mrf.mxu1  ;;  %v11049_v3 = vadd.f32 %v3217_v55, %v13578_v37  ;;  %7553 = vmatmul.mubr.msk.bf16.gmra.mxu1 %vm213_vm2, %v10653_v62  ;;  %4761 = vmatprep.mubr.bf16.mxu0 %v13089_v6  ;;  %v13584_v51 = vld [vmem:[#allocation57_spill] sm:$0xff]  ;;  %v4654_v62 = vsel %vm4638_vm9, %v10835_v7, %v10921_v26  ;;  %v13590_v26 = vld [vmem:[#allocation59_spill] sm:$0xff] }
 0x306   :  { %13577 = vst [vmem:[#allocation14_spill] sm:$0xff] %v11044_v38  ;;  %v11055_v8 = vadd.f32 %v3164_v33, %v13580_v2  ;;  %v3219_v44 = vpop.f32.mrf.mxu0  ;;  %4814 = vmatprep.mubr.bf16.mxu1 %v13089_v6  ;;  %v11070_v33 = vld [vmem:[%s13040_s1 + $0x110] sm:$0xff]  }
 0x307   :  { %13579 = vst [vmem:[#allocation15_spill] sm:$0xff] %v11049_v3  ;;  %v3166_v20 = vpop.f32.mrf.mxu1  ;;  %v11059_v36 = vadd.f32 %v3219_v44, %v13582_v4  ;;  %v13586_v2 = vld [vmem:[#allocation128_spill] sm:$0xff]  ;;  %v13587_v44 = vld [vmem:[#allocation58_spill] sm:$0xff] }
 0x308   :  { %13581 = vst [vmem:[#allocation2_spill] sm:$0xff] %v11055_v8  ;;  %v11062_v38 = vadd.f32 %v3166_v20, %v13584_v51  ;;  %v3221_v55 = vpop.f32.mrf.mxu0  ;;  %v11075_v8 = vpop.permute.xlu1 %4614  ;;  %v4698_v20 = vsel %vm226_vm1, %v4654_v62, 0 }
 0x309   :  { %13583 = vst [vmem:[#allocation99_spill] sm:$0xff] %v11059_v36  ;;  %v3168_v37 = vpop.f32.mrf.mxu1  ;;  %v11073_v3 = vadd.f32 %v3221_v55, %v13586_v2  ;;  %v4646_v55 = vsel %vm4638_vm9, %v11004_v52, %v11075_v8 }
 0x30a   :  { %13585 = vst [vmem:[#allocation78_spill] sm:$0xff] %v11062_v38  ;;  %v11078_v4 = vadd.f32 %v3168_v37, %v13587_v44  ;;  %v3223_v51 = vpop.f32.mrf.mxu0  ;;  %v13588_v38 = vld [vmem:[#allocation127_spill] sm:$0xff]  ;;  %v13592_v37 = vld [vmem:[#allocation61_spill] sm:$0xff] }
 0x30b   :  { %v3170_v36 = vpop.f32.mrf.mxu1  ;;  %v11082_v7 = vadd.f32 %v3223_v51, %v13588_v38  ;;  %v13594_v38 = vld [vmem:[#allocation60_spill] sm:$0xff]  ;;  %v13596_v51 = vld [vmem:[#allocation62_spill] sm:$0xff] }
 0x30c   :  { %v11085_v41 = vadd.f32 %v3170_v36, %v13590_v26  ;;  %v3227_v60 = vpop.f32.mrf.mxu0  ;;  %7569 = vmatmul.mubr.msk.bf16.gmra.mxu0 %vm213_vm2, %v11070_v33 }
 0x30d   :  { %13589 = vst [vmem:[#allocation81_spill] sm:$0xff] %v11082_v7  ;;  %v11093_v2 = vadd.f32 %v3227_v60, %v13592_v37  ;;  %v3280_v44 = vpop.f32.mrf.mxu1  ;;  %7572 = vmatmul.mubr.msk.bf16.vlgmr.msra.gmra.mxu1 %vm213_vm2, %v10981_v18  ;;  %4771 = vmatprep.mubr.bf16.mxu0 %v13089_v6  ;;  %v4645_v60 = vsel %vm4638_vm9, %v10895_v63, %v11004_v52  ;;  %v13598_v37 = vld [vmem:[#allocation129_spill] sm:$0xff]  ;;  %v13601_v63 = vld [vmem:[#allocation131_spill] sm:$0xff] }
 0x30e   :  { %13591 = vst [vmem:[#allocation16_spill] sm:$0xff] %v11085_v41  ;;  %v11099_v36 = vadd.f32 %v3280_v44, %v13594_v38  ;;  %4941 = vmatpush1.bf16.msra.mxu1 %v4698_v20  ;;  %v3229_v62 = vpop.f32.mrf.mxu0  ;;  %4824 = vmatprep.mubr.bf16.mxu1 %v13089_v6  ;;  %v11114_v20 = vld [vmem:[%s13040_s1 + $0x118] sm:$0xff]  }
 0x30f   :  { %13593 = vst [vmem:[#allocation80_spill] sm:$0xff] %v11093_v2  ;;  %v11103_v26 = vadd.f32 %v3229_v62, %v13596_v51  ;;  %v3282_v7 = vpop.f32.mrf.mxu1  ;;  %4942 = vmatprep.subr.bf16.mxu1 %v4646_v55  ;;  %v13600_v62 = vld [vmem:[#allocation130_spill] sm:$0xff]  ;;  %v13603_v55 = vld [vmem:[#allocation63_spill] sm:$0xff] }
 0x310   :  { %13595 = vst [vmem:[#allocation17_spill] sm:$0xff] %v11099_v36  ;;  %v11109_v41 = vadd.f32 %v3282_v7, %v13598_v37  ;;  %v3231_v2 = vpop.f32.mrf.mxu0  ;;  %v13605_v36 = vld [vmem:[#allocation65_spill] sm:$0xff] }
 0x311   :  { %13597 = vst [vmem:[#allocation83_spill] sm:$0xff] %v11103_v26  ;;  %v11117_v44 = vadd.f32 %v3231_v2, %v10661_v14  ;;  %v3284_v38 = vpop.f32.mrf.mxu1 }
 0x312   :  { %13599 = vst [vmem:[#allocation18_spill] sm:$0xff] %v11109_v41  ;;  %v11120_v51 = vadd.f32 %v3284_v38, %v13600_v62  ;;  %v3233_v26 = vpop.f32.mrf.mxu0  ;;  %4943 = vmatpush1.bf16.msra.mxu1 %v4645_v60  ;;  %v13606_v60 = vld [vmem:[#allocation64_spill] sm:$0xff] }
 0x313   :  { %v11123_v52 = vadd.f32 %v3233_v26, %v13601_v63  ;;  %v3286_v7 = vpop.f32.mrf.mxu1 }
 0x314   :  { %v11126_v37 = vadd.f32 %v3286_v7, %v13603_v55  ;;  %v3237_v41 = vpop.f32.mrf.mxu0  ;;  %7570 = vmatmul.mubr.msk.bf16.gmra.mxu0 %vm213_vm2, %v11114_v20 }
 0x315   :  { %13602 = vst [vmem:[#allocation19_spill] sm:$0xff] %v11123_v52  ;;  %v11131_v14 = vadd.f32 %v3237_v41, %v13605_v36  ;;  %v3290_v2 = vpop.f32.mrf.mxu1  ;;  %7573 = vmatmul.mubr.msk.bf16.gmra.mxu1 %vm213_vm2, %v11028_v34  ;;  %4887 = vmatprep.mubr.bf16.mxu0 %v13089_v6  ;;  %v4656_v36 = vsel %vm4638_vm9, %v10929_v46, %v11030_v5 }
 0x316   :  { %13604 = vst [vmem:[#allocation101_spill] sm:$0xff] %v11126_v37  ;;  %v11137_v26 = vadd.f32 %v3290_v2, %v13606_v60  ;;  %v3239_v38 = vpop.f32.mrf.mxu0  ;;  %4834 = vmatprep.mubr.bf16.mxu1 %v13089_v6  ;;  %v13608_v60 = vld [vmem:[#allocation66_spill] sm:$0xff] }
 0x317   :  { %v11141_v62 = vadd.f32 %v3239_v38, %v10696_v11  ;;  %v3292_v63 = vpop.f32.mrf.mxu1 }
 0x318   :  { %v11144_v7 = vadd.f32 %v3292_v63, %v10691_v23  ;;  %v3241_v41 = vpop.f32.mrf.mxu0  ;;  %v4704_v23 = vsel %vm226_vm1, %v4656_v36, 0  ;;  %vm6621_vm1 = vcmask 1047554  }
 0x319   :  { %13607 = vst [vmem:[#allocation3_spill] sm:$0xff] %v11141_v62  ;;  %v11150_v55 = vadd.f32 %v3241_v41, %v10711_v29  ;;  %v3294_v2 = vpop.f32.mrf.mxu1  ;;  %v4617_v29 = vpop.permute.xlu1 %4616 }
 0x31a   :  { %v11153_v52 = vadd.f32 %v3294_v2, %v13608_v60  ;;  %v3243_v37 = vpop.f32.mrf.mxu0 }
 0x31b   :  { %v11156_v11 = vadd.f32 %v3243_v37, %v10718_v27  ;;  %v3296_v38 = vpop.f32.mrf.mxu1  ;;  %v13611_v27 = vld [vmem:[#allocation67_spill] sm:$0xff] }
 0x31c   :  { %v11160_v63 = vadd.f32 %v3296_v38, %v10715_v31  ;;  %v3573_v62 = vpop.f32.mrf.mxu0  ;;  %7577 = vmatmul.mubr.msk.bf16.vlgmr.msra.gmra.mxu0 %vm213_vm2, %v10981_v18 }
 0x31d   :  { %13609 = vst [vmem:[#allocation82_spill] sm:$0xff] %v11156_v11  ;;  %v3300_v46 = vpop.f32.mrf.mxu1  ;;  %v11165_v5 = vadd.f32 %v3573_v62, %v10739_v45  ;;  %7574 = vmatmul.mubr.msk.bf16.gmra.mxu1 %vm213_vm2, %v11070_v33  ;;  %4897 = vmatprep.mubr.bf16.mxu0 %v13089_v6  ;;  %v4647_v45 = vsel %vm4638_vm9, %v11075_v8, %v4617_v29 }
 0x31e   :  { %13610 = vst [vmem:[#allocation85_spill] sm:$0xff] %v11160_v63  ;;  %v11171_v37 = vadd.f32 %v3300_v46, %v13611_v27  ;;  %v3575_v41 = vpop.f32.mrf.mxu0  ;;  %4844 = vmatprep.mubr.bf16.mxu1 %v13089_v6  ;;  %5014 = vmatpush1.bf16.msra.mxu0 %v4704_v23 }
 0x31f   :  { %v3302_v31 = vpop.f32.mrf.mxu1  ;;  %v11175_v36 = vadd.f32 %v3575_v41, %v10748_v17  ;;  %5015 = vmatprep.subr.bf16.mxu0 %v4617_v29 }
 0x320   :  { %v11180_v62 = vadd.f32 %v3302_v31, %v10743_v13  ;;  %v3577_v2 = vpop.f32.mrf.mxu0 }
 0x321   :  { %v3304_v60 = vpop.f32.mrf.mxu1  ;;  %v11183_v38 = vadd.f32 %v3577_v2, %v10763_v40 }
 0x322   :  { %v11186_v46 = vadd.f32 %v3304_v60, %v10754_v24  ;;  %v3579_v23 = vpop.f32.mrf.mxu0  ;;  %5016 = vmatpush1.bf16.msra.mxu0 %v4647_v45 }
 0x323   :  { %v3306_v27 = vpop.f32.mrf.mxu1  ;;  %v11189_v17 = vadd.f32 %v3579_v23, %v10770_v39 }
 0x324   :  { %v11192_v8 = vadd.f32 %v3306_v27, %v10766_v59  ;;  %v3583_v29 = vpop.f32.mrf.mxu0  ;;  %7578 = vmatmul.mubr.msk.bf16.gmra.mxu0 %vm213_vm2, %v11028_v34 }
 0x325   :  { %13612 = vst [vmem:[#allocation20_spill] sm:$0xff] %v11189_v17  ;;  %v3310_v13 = vpop.f32.mrf.mxu1  ;;  %v11197_v40 = vadd.f32 %v3583_v29, %v10787_v21  ;;  %7575 = vmatmul.mubr.msk.bf16.gmra.mxu1 %vm213_vm2, %v11114_v20  ;;  %4907 = vmatprep.mubr.bf16.mxu0 %v13089_v6  ;;  %v13615_v29 = vld [vmem:[#allocation68_spill] sm:$0xff] }
 0x326   :  { %13613 = vst [vmem:[#allocation84_spill] sm:$0xff] %v11192_v8  ;;  %v11203_v24 = vadd.f32 %v3310_v13, %v10775_v61  ;;  %v3585_v39 = vpop.f32.mrf.mxu0  ;;  %4960 = vmatprep.mubr.bf16.mxu1 %v13089_v6 }
 0x327   :  { %v3312_v59 = vpop.f32.mrf.mxu1  ;;  %v11207_v41 = vadd.f32 %v3585_v39, %v10794_v56 }
 0x328   :  { %v11210_v31 = vadd.f32 %v3312_v59, %v10791_v47  ;;  %v3587_v21 = vpop.f32.mrf.mxu0 }
 0x329   :  { %v3314_v45 = vpop.f32.mrf.mxu1  ;;  %v11213_v2 = vadd.f32 %v3587_v21, %v10813_v43 }
 0x32a   :  { %v11216_v60 = vadd.f32 %v3314_v45, %v10802_v50  ;;  %v3589_v61 = vpop.f32.mrf.mxu0  ;;  %v13617_v50 = vld [vmem:[#allocation69_spill] sm:$0xff] }
 0x32b   :  { %v3316_v23 = vpop.f32.mrf.mxu1  ;;  %v11219_v27 = vadd.f32 %v3589_v61, %v10820_v19 }
 0x32c   :  { %v11222_v13 = vadd.f32 %v3316_v23, %v13615_v29  ;;  %v3593_v56 = vpop.f32.mrf.mxu0  ;;  %7579 = vmatmul.mubr.msk.bf16.gmra.mxu0 %vm213_vm2, %v11070_v33 }
 0x32d   :  { %13614 = vst [vmem:[#allocation21_spill] sm:$0xff] %v11219_v27  ;;  %v11227_v47 = vadd.f32 %v3593_v56, %v10844_v12  ;;  %v3646_v43 = vpop.f32.mrf.mxu1  ;;  %7582 = vmatmul.mubr.msk.bf16.vlgmr.msra.gmra.mxu1 %vm213_vm2, %v10981_v18  ;;  %4917 = vmatprep.mubr.bf16.mxu0 %v13089_v6  ;;  %v13635_v27 = vld [vmem:[#allocation13_spill] sm:$0xff] }
 0x32e   :  { %13616 = vst [vmem:[#allocation87_spill] sm:$0xff] %v11222_v13  ;;  %v11233_v39 = vadd.f32 %v3646_v43, %v13617_v50  ;;  %v3595_v19 = vpop.f32.mrf.mxu0  ;;  %4970 = vmatprep.mubr.bf16.mxu1 %v13089_v6 }
 0x32f   :  { %v11237_v59 = vadd.f32 %v3595_v19, %v10854_v25  ;;  %v3648_v21 = vpop.f32.mrf.mxu1 }
 0x330   :  { %v11240_v45 = vadd.f32 %v3648_v21, %v10848_v30  ;;  %v3597_v12 = vpop.f32.mrf.mxu0 }
 0x331   :  { %v11243_v61 = vadd.f32 %v3597_v12, %v10869_v42  ;;  %v3650_v23 = vpop.f32.mrf.mxu1 }
 0x332   :  { %v11246_v29 = vadd.f32 %v3650_v23, %v10860_v15  ;;  %v3599_v56 = vpop.f32.mrf.mxu0 }
 0x333   :  { %v11249_v43 = vadd.f32 %v3599_v56, %v10876_v49  ;;  %v11251_v50 = vpop.f32.mrf.mxu1 }
 0x334   :  { %13619 = vst [vmem:[#allocation23_spill] sm:$0xff] %v11251_v50  ;;  %v3603_v25 = vpop.f32.mrf.mxu0  ;;  %7580 = vmatmul.mubr.msk.bf16.gmra.mxu0 %vm213_vm2, %v11114_v20 }
 0x335   :  { %13618 = vst [vmem:[#allocation22_spill] sm:$0xff] %v11249_v43  ;;  %v11256_v30 = vadd.f32 %v3603_v25, %v10887_v16  ;;  %v3656_v19 = vpop.f32.mrf.mxu1  ;;  %7583 = vmatmul.mubr.msk.bf16.gmra.mxu1 %vm213_vm2, %v11028_v34  ;;  %5033 = vmatprep.mubr.bf16.mxu0 %v13089_v6 }
 0x336   :  { %v11262_v15 = vadd.f32 %v3656_v19, %v10881_v53  ;;  %v3605_v42 = vpop.f32.mrf.mxu0  ;;  %4980 = vmatprep.mubr.bf16.mxu1 %v13089_v6 }
 0x337   :  { %v11266_v49 = vadd.f32 %v3605_v42, %v10898_v48  ;;  %v3658_v21 = vpop.f32.mrf.mxu1 }
 0x338   :  { %v11269_v12 = vadd.f32 %v3658_v21, %v10893_v1  ;;  %v3607_v16 = vpop.f32.mrf.mxu0 }
 0x339   :  { %v11272_v23 = vadd.f32 %v3607_v16, %v10907_v22  ;;  %v3660_v56 = vpop.f32.mrf.mxu1 }
 0x33a   :  { %v11275_v25 = vadd.f32 %v3660_v56, %v10904_v57  ;;  %v3609_v53 = vpop.f32.mrf.mxu0  ;;  %v13622_v56 = vld [vmem:[#allocation7_spill] sm:$0xff] }
 0x33b   :  { %v11278_v19 = vadd.f32 %v3609_v53, %v10914_v10  ;;  %v11280_v11 = vpop.f32.mrf.mxu1 }
 0x33c   :  { %13621 = vst [vmem:[#allocation109_spill] sm:$0xff] %v11280_v11  ;;  %v3719_v48 = vpop.f32.mrf.mxu0  ;;  %7587 = vmatmul.mubr.msk.bf16.vlgmr.msra.gmra.mxu0 %vm213_vm2, %v10981_v18 }
 0x33d   :  { %13620 = vst [vmem:[#allocation4_spill] sm:$0xff] %v11278_v19  ;;  %v3666_v1 = vpop.f32.mrf.mxu1  ;;  %v11285_v42 = vadd.f32 %v3719_v48, %v10932_v9  ;;  %7584 = vmatmul.mubr.msk.bf16.gmra.mxu1 %vm213_vm2, %v11070_v33  ;;  %5043 = vmatprep.mubr.bf16.mxu0 %v13089_v6  ;;  %v13623_v48 = vld [vmem:[#allocation71_spill] sm:$0xff] }
 0x33e   :  { %v11291_v57 = vadd.f32 %v3666_v1, %v10924_v35  ;;  %v3721_v22 = vpop.f32.mrf.mxu0  ;;  %4990 = vmatprep.mubr.bf16.mxu1 %v13089_v6 }
 0x33f   :  { %v3668_v10 = vpop.f32.mrf.mxu1  ;;  %v11295_v21 = vadd.f32 %v3721_v22, %v10942_v54  ;;  %v13626_v22 = vld [vmem:[#allocation8_spill] sm:$0xff] }
 0x340   :  { %v11298_v18 = vadd.f32 %v3668_v10, %v10936_v58  ;;  %v3723_v9 = vpop.f32.mrf.mxu0  ;;  %v13627_v10 = vld [vmem:[#allocation73_spill] sm:$0xff] }
 0x341   :  { %v3670_v16 = vpop.f32.mrf.mxu1  ;;  %v11301_v53 = vadd.f32 %v3723_v9, %v13622_v56 }
 0x342   :  { %v11304_v63 = vadd.f32 %v3670_v16, %v13623_v48  ;;  %v11306_v35 = vpop.f32.mrf.mxu0  ;;  %v13628_v48 = vld [vmem:[#allocation91_spill] sm:$0xff] }
 0x343   :  { %13624 = vst [vmem:[#allocation86_spill] sm:$0xff] %v11306_v35  ;;  %v11308_v1 = vpop.f32.mrf.mxu1 }
 0x344   :  { %13625 = vst [vmem:[#allocation89_spill] sm:$0xff] %v11308_v1  ;;  %v3729_v19 = vpop.f32.mrf.mxu0  ;;  %7588 = vmatmul.mubr.msk.bf16.gmra.mxu0 %vm213_vm2, %v11028_v34  ;;  %v13629_v34 = vld [vmem:[#allocation72_spill] sm:$0xff] }
 0x345   :  { %v3676_v54 = vpop.f32.mrf.mxu1  ;;  %v11313_v58 = vadd.f32 %v3729_v19, %v13626_v22  ;;  %7585 = vmatmul.mubr.msk.bf16.gmra.mxu1 %vm213_vm2, %v11114_v20  ;;  %5053 = vmatprep.mubr.bf16.mxu0 %v13089_v6 }
 0x346   :  { %v11319_v9 = vadd.f32 %v3676_v54, %v13627_v10  ;;  %v3731_v16 = vpop.f32.mrf.mxu0  ;;  %5523 = vmatprep.mubr.bf16.mxu1 %v13089_v6 }
 0x347   :  { %v3678_v56 = vpop.f32.mrf.mxu1  ;;  %v11323_v1 = vadd.f32 %v3731_v16, %v13628_v48  ;;  %v13632_v48 = vld [vmem:[#allocation12_spill] sm:$0xff] }
 0x348   :  { %v11326_v43 = vadd.f32 %v3678_v56, %v13629_v34  ;;  %v3733_v19 = vpop.f32.mrf.mxu0 }
 0x349   :  { %v3680_v22 = vpop.f32.mrf.mxu1  ;;  %v11329_v35 = vadd.f32 %v3733_v19, %v10990_v0 }
 0x34a   :  { %v11332_v11 = vadd.f32 %v3680_v22, %v10987_v28  ;;  %v11334_v54 = vpop.f32.mrf.mxu0  ;;  %v13633_v28 = vld [vmem:[#allocation9_spill] sm:$0xff] }
 0x34b   :  { %13630 = vst [vmem:[#allocation24_spill] sm:$0xff] %v11334_v54  ;;  %v11336_v10 = vpop.f32.mrf.mxu1  ;;  %v13634_v54 = vld [vmem:[#allocation77_spill] sm:$0xff] }
 0x34c   :  { %13631 = vst [vmem:[#allocation88_spill] sm:$0xff] %v11336_v10  ;;  %v3739_v50 = vpop.f32.mrf.mxu0  ;;  %7589 = vmatmul.mubr.msk.bf16.gmra.mxu0 %vm213_vm2, %v11070_v33 }
 0x34d   :  { %v11341_v16 = vadd.f32 %v3739_v50, %v11013_v32  ;;  %v3792_v56 = vpop.f32.mrf.mxu1  ;;  %5063 = vmatprep.mubr.bf16.mxu0 %v13089_v6  ;;  %v13637_v50 = vld [vmem:[#allocation76_spill] sm:$0xff] }
 0x34e   :  { %v11345_v0 = vadd.f32 %v3792_v56, %v13632_v48  ;;  %v3741_v34 = vpop.f32.mrf.mxu0 }
 0x34f   :  { %v11348_v19 = vadd.f32 %v3741_v34, %v13633_v28  ;;  %v3794_v22 = vpop.f32.mrf.mxu1  ;;  %v13641_v34 = vld [vmem:[#allocation2_spill] sm:$0xff] }
 0x350   :  { %v11351_v10 = vadd.f32 %v3794_v22, %v13634_v54  ;;  %v3743_v13 = vpop.f32.mrf.mxu0 }
 0x351   :  { %v11354_v33 = vadd.f32 %v3743_v13, %v13635_v27  ;;  %v3796_v32 = vpop.f32.mrf.mxu1  ;;  %v13643_v27 = vld [vmem:[#allocation15_spill] sm:$0xff] }
 0x352   :  { %v11357_v8 = vadd.f32 %v3796_v32, %v13637_v50  ;;  %v11359_v17 = vpop.f32.mrf.mxu0  ;;  %v13644_v32 = vld [vmem:[#allocation78_spill] sm:$0xff] }
 0x353   :  { %13636 = vst [vmem:[#allocation25_spill] sm:$0xff] %v11354_v33  ;;  %13639 = vst [vmem:[#allocation111_spill] sm:$0xff] %v11359_v17  ;;  %v11361_v56 = vpop.f32.mrf.mxu1  ;;  %v13646_v33 = vld [vmem:[#allocation99_spill] sm:$0xff] }
 0x354   :  { %13638 = vst [vmem:[#allocation26_spill] sm:$0xff] %v11357_v8  ;;  %13640 = vst [vmem:[#allocation92_spill] sm:$0xff] %v11361_v56  ;;  %v3749_v48 = vpop.f32.mrf.mxu0  ;;  %7590 = vmatmul.mubr.msk.bf16.gmra.mxu0 %vm213_vm2, %v11114_v20  ;;  %vm6623_vm2 = vcmask 1043456  }
 0x355   :  { %v11366_v28 = vadd.f32 %v3749_v48, %v13641_v34  ;;  %v3802_v54 = vpop.f32.mrf.mxu1  ;;  %5596 = vmatprep.mubr.bf16.mxu0 %v13089_v6 }
 0x356   :  { %v11370_v13 = vadd.f32 %v3802_v54, %v13643_v27  ;;  %v3751_v22 = vpop.f32.mrf.mxu0 }
 0x357   :  { %13642 = vst [vmem:[#allocation90_spill] sm:$0xff] %v11366_v28  ;;  %v11373_v50 = vadd.f32 %v3751_v22, %v13644_v32  ;;  %v3804_v17 = vpop.f32.mrf.mxu1  ;;  %v13652_v22 = vld [vmem:[#allocation17_spill] sm:$0xff] }
 0x358   :  { %v11376_v56 = vadd.f32 %v3804_v17, %v13646_v33  ;;  %v3753_v8 = vpop.f32.mrf.mxu0 }
 0x359   :  { %13645 = vst [vmem:[#allocation27_spill] sm:$0xff] %v11373_v50  ;;  %v11379_v20 = vadd.f32 %v3753_v8, %v11078_v4  ;;  %v3806_v48 = vpop.f32.mrf.mxu1  ;;  %v13653_v50 = vld [vmem:[#allocation80_spill] sm:$0xff]  ;;  %v13654_v4 = vld [vmem:[#allocation18_spill] sm:$0xff] }
 0x35a   :  { %13647 = vst [vmem:[#allocation28_spill] sm:$0xff] %v11376_v56  ;;  %v11382_v34 = vadd.f32 %v3806_v48, %v11073_v3  ;;  %v11384_v6 = vpop.f32.mrf.mxu0 }
 0x35b   :  { %13648 = vst [vmem:[#allocation5_spill] sm:$0xff] %v11379_v20  ;;  %13650 = vst [vmem:[#allocation94_spill] sm:$0xff] %v11384_v6  ;;  %v11386_v54 = vpop.f32.mrf.mxu1  ;;  %v13655_v20 = vld [vmem:[#allocation83_spill] sm:$0xff] }
 0x35c   :  { %13649 = vst [vmem:[#allocation29_spill] sm:$0xff] %v11382_v34  ;;  %13651 = vst [vmem:[#allocation30_spill] sm:$0xff] %v11386_v54  ;;  %v3865_v27 = vpop.f32.mrf.mxu0 }
 0x35d   :  { %v3812_v28 = vpop.f32.mrf.mxu1  ;;  %v11389_v32 = vadd.f32 %v3865_v27, %v13652_v22 }
 0x35e   :  { %v11392_v17 = vadd.f32 %v3812_v28, %v13653_v50  ;;  %v3867_v33 = vpop.f32.mrf.mxu0 }
 0x35f   :  { %v3814_v56 = vpop.f32.mrf.mxu1  ;;  %v11395_v8 = vadd.f32 %v3867_v33, %v13654_v4 }
 0x360   :  { %v11398_v3 = vadd.f32 %v3814_v56, %v13655_v20  ;;  %v3869_v48 = vpop.f32.mrf.mxu0 }
 0x361   :  { %v3816_v6 = vpop.f32.mrf.mxu1  ;;  %v11401_v54 = vadd.f32 %v3869_v48, %v11120_v51  ;;  %v13659_v48 = vld [vmem:[#allocation3_spill] sm:$0xff] }
 0x362   :  { %v11404_v34 = vadd.f32 %v3816_v6, %v11117_v44  ;;  %v11406_v27 = vpop.f32.mrf.mxu0 }
 0x363   :  { %13656 = vst [vmem:[#allocation93_spill] sm:$0xff] %v11401_v54  ;;  %13657 = vst [vmem:[#allocation31_spill] sm:$0xff] %v11406_v27  ;;  %v11408_v28 = vpop.f32.mrf.mxu1 }
 0x364   :  { %13658 = vst [vmem:[#allocation96_spill] sm:$0xff] %v11408_v28  ;;  %v3875_v50 = vpop.f32.mrf.mxu0 }
 0x365   :  { %v3822_v22 = vpop.f32.mrf.mxu1  ;;  %v11411_v33 = vadd.f32 %v3875_v50, %v11137_v26 }
 0x366   :  { %v11414_v56 = vadd.f32 %v3822_v22, %v11131_v14  ;;  %v3877_v20 = vpop.f32.mrf.mxu0 }
 0x367   :  { %v3824_v4 = vpop.f32.mrf.mxu1  ;;  %v11417_v51 = vadd.f32 %v3877_v20, %v11144_v7 }
 0x368   :  { %v11420_v6 = vadd.f32 %v3824_v4, %v13659_v48  ;;  %v3879_v44 = vpop.f32.mrf.mxu0 }
 0x369   :  { %v3826_v27 = vpop.f32.mrf.mxu1  ;;  %v11423_v28 = vadd.f32 %v3879_v44, %v11153_v52 }
 0x36a   :  { %v11426_v54 = vadd.f32 %v3826_v27, %v11150_v55  ;;  %v11428_v26 = vpop.f32.mrf.mxu0 }
 0x36b   :  { %13660 = vst [vmem:[#allocation32_spill] sm:$0xff] %v11428_v26  ;;  %v11430_v14 = vpop.f32.mrf.mxu1 }
 0x36c   :  { %13661 = vst [vmem:[#allocation95_spill] sm:$0xff] %v11430_v14  ;;  %v3885_v50 = vpop.f32.mrf.mxu0 }
 0x36d   :  { %v11433_v22 = vadd.f32 %v3885_v50, %v11171_v37  ;;  %v4158_v7 = vpop.f32.mrf.mxu1 }
 0x36e   :  { %v11436_v20 = vadd.f32 %v4158_v7, %v11165_v5  ;;  %v3887_v4 = vpop.f32.mrf.mxu0 }
 0x36f   :  { %v11439_v48 = vadd.f32 %v3887_v4, %v11180_v62  ;;  %v4160_v52 = vpop.f32.mrf.mxu1 }
 0x370   :  { %v11442_v55 = vadd.f32 %v4160_v52, %v11175_v36  ;;  %v3889_v27 = vpop.f32.mrf.mxu0 }
 0x371   :  { %v11445_v44 = vadd.f32 %v3889_v27, %v11186_v46  ;;  %v4162_v14 = vpop.f32.mrf.mxu1 }
 0x372   :  { %v11448_v37 = vadd.f32 %v4162_v14, %v11183_v38  ;;  %v11450_v50 = vpop.f32.mrf.mxu0 }
 0x373   :  { %13662 = vst [vmem:[#allocation33_spill] sm:$0xff] %v11445_v44  ;;  %v11452_v5 = vpop.f32.mrf.mxu1 }
 0x374   :  { %v3895_v7 = vpop.f32.mrf.mxu0 }
 0x375   :  { %v11455_v62 = vadd.f32 %v3895_v7, %v11203_v24  ;;  %v4168_v4 = vpop.f32.mrf.mxu1 }
 0x376   :  { %v11458_v36 = vadd.f32 %v4168_v4, %v11197_v40  ;;  %v3897_v52 = vpop.f32.mrf.mxu0 }
 0x377   :  { %13663 = vst [vmem:[#allocation98_spill] sm:$0xff] %v11455_v62  ;;  %v11461_v46 = vadd.f32 %v3897_v52, %v11210_v31  ;;  %v4170_v27 = vpop.f32.mrf.mxu1 }
 0x378   :  { %v11464_v38 = vadd.f32 %v4170_v27, %v11207_v41  ;;  %v3899_v14 = vpop.f32.mrf.mxu0 }
 0x379   :  { %v11467_v26 = vadd.f32 %v3899_v14, %v11216_v60  ;;  %v4172_v44 = vpop.f32.mrf.mxu1 }
 0x37a   :  { %v11470_v24 = vadd.f32 %v4172_v44, %v11213_v2  ;;  %v11472_v7 = vpop.f32.mrf.mxu0 }
 0x37b   :  { %13664 = vst [vmem:[#allocation34_spill] sm:$0xff] %v11467_v26  ;;  %13665 = vst [vmem:[#allocation97_spill] sm:$0xff] %v11472_v7  ;;  %v11474_v40 = vpop.f32.mrf.mxu1 }
 0x37c   :  { %v4231_v4 = vpop.f32.mrf.mxu0 }
 0x37d   :  { %v4178_v62 = vpop.f32.mrf.mxu1  ;;  %v11477_v31 = vadd.f32 %v4231_v4, %v11233_v39 }
 0x37e   :  { %v11480_v41 = vadd.f32 %v4178_v62, %v11227_v47  ;;  %v4233_v52 = vpop.f32.mrf.mxu0 }
 0x37f   :  { %v4180_v27 = vpop.f32.mrf.mxu1  ;;  %v11483_v60 = vadd.f32 %v4233_v52, %v11240_v45 }
 0x380   :  { %v11486_v2 = vadd.f32 %v4180_v27, %v11237_v59  ;;  %v4235_v44 = vpop.f32.mrf.mxu0 }
 0x381   :  { %v4182_v14 = vpop.f32.mrf.mxu1  ;;  %v11489_v26 = vadd.f32 %v4235_v44, %v11246_v29 }
 0x382   :  { %v11492_v7 = vadd.f32 %v4182_v14, %v11243_v61  ;;  %v11494_v39 = vpop.f32.mrf.mxu0 }
 0x383   :  { %13666 = vst [vmem:[#allocation35_spill] sm:$0xff] %v11489_v26  ;;  %13667 = vst [vmem:[#allocation102_spill] sm:$0xff] %v11494_v39  ;;  %v11496_v47 = vpop.f32.mrf.mxu1 }
 0x384   :  { %v4241_v62 = vpop.f32.mrf.mxu0 }
 0x385   :  { %v4188_v4 = vpop.f32.mrf.mxu1  ;;  %v11499_v45 = vadd.f32 %v4241_v62, %v11262_v15 }
 0x386   :  { %v11502_v59 = vadd.f32 %v4188_v4, %v11256_v30  ;;  %v4243_v52 = vpop.f32.mrf.mxu0 }
 0x387   :  { %v4190_v27 = vpop.f32.mrf.mxu1  ;;  %v11505_v29 = vadd.f32 %v4243_v52, %v11269_v12 }
 0x388   :  { %v11508_v61 = vadd.f32 %v4190_v27, %v11266_v49  ;;  %v4245_v44 = vpop.f32.mrf.mxu0 }
 0x389   :  { %v4192_v14 = vpop.f32.mrf.mxu1  ;;  %v11511_v26 = vadd.f32 %v4245_v44, %v11275_v25 }
 0x38a   :  { %v11514_v39 = vadd.f32 %v4192_v14, %v11272_v23  ;;  %v11516_v15 = vpop.f32.mrf.mxu0 }
 0x38b   :  { %13668 = vst [vmem:[#allocation36_spill] sm:$0xff] %v11511_v26  ;;  %v11518_v30 = vpop.f32.mrf.mxu1 }
 0x38c   :  { %v4251_v62 = vpop.f32.mrf.mxu0 }
 0x38d   :  { %v11521_v4 = vadd.f32 %v4251_v62, %v11291_v57  ;;  %v4304_v12 = vpop.f32.mrf.mxu1 }
 0x38e   :  { %v11524_v49 = vadd.f32 %v4304_v12, %v11285_v42  ;;  %v4253_v52 = vpop.f32.mrf.mxu0 }
 0x38f   :  { %v11527_v27 = vadd.f32 %v4253_v52, %v11298_v18  ;;  %v4306_v25 = vpop.f32.mrf.mxu1 }
 0x390   :  { %v11530_v23 = vadd.f32 %v4306_v25, %v11295_v21  ;;  %v4255_v44 = vpop.f32.mrf.mxu0 }
 0x391   :  { %v11533_v14 = vadd.f32 %v4255_v44, %v11304_v63  ;;  %v4308_v26 = vpop.f32.mrf.mxu1 }
 0x392   :  { %v11536_v57 = vadd.f32 %v4308_v26, %v11301_v53  ;;  %v11538_v62 = vpop.f32.mrf.mxu0 }
 0x393   :  { %13669 = vst [vmem:[#allocation100_spill] sm:$0xff] %v11533_v14  ;;  %13670 = vst [vmem:[#allocation37_spill] sm:$0xff] %v11538_v62  ;;  %v11540_v42 = vpop.f32.mrf.mxu1 }
 0x394   :  { %v4261_v12 = vpop.f32.mrf.mxu0 }
 0x395   :  { %v11543_v18 = vadd.f32 %v4261_v12, %v11319_v9  ;;  %v4314_v52 = vpop.f32.mrf.mxu1 }
 0x396   :  { %v11546_v21 = vadd.f32 %v4314_v52, %v11313_v58  ;;  %v4263_v25 = vpop.f32.mrf.mxu0 }
 0x397   :  { %13671 = vst [vmem:[#allocation104_spill] sm:$0xff] %v11543_v18  ;;  %v11549_v63 = vadd.f32 %v4263_v25, %v11326_v43  ;;  %v4316_v44 = vpop.f32.mrf.mxu1 }
 0x398   :  { %v11552_v53 = vadd.f32 %v4316_v44, %v11323_v1  ;;  %v4265_v26 = vpop.f32.mrf.mxu0 }
 0x399   :  { %v11555_v14 = vadd.f32 %v4265_v26, %v11332_v11  ;;  %v4318_v62 = vpop.f32.mrf.mxu1 }
 0x39a   :  { %v11558_v9 = vadd.f32 %v4318_v62, %v11329_v35  ;;  %v11560_v12 = vpop.f32.mrf.mxu0 }
 0x39b   :  { %13672 = vst [vmem:[#allocation38_spill] sm:$0xff] %v11555_v14  ;;  %13674 = vst [vmem:[#allocation39_spill] sm:$0xff] %v11560_v12  ;;  %v11562_v58 = vpop.f32.mrf.mxu1  ;;  %v13679_v14 = vld [vmem:[#allocation26_spill] sm:$0xff] }
 0x39c   :  { %13673 = vst [vmem:[#allocation103_spill] sm:$0xff] %v11558_v9  ;;  %13675 = vst [vmem:[#allocation106_spill] sm:$0xff] %v11562_v58  ;;  %v4377_v52 = vpop.f32.mrf.mxu0  ;;  %v13681_v9 = vld [vmem:[#allocation25_spill] sm:$0xff] }
 0x39d   :  { %v4324_v18 = vpop.f32.mrf.mxu1  ;;  %v11565_v43 = vadd.f32 %v4377_v52, %v11345_v0 }
 0x39e   :  { %v11568_v1 = vadd.f32 %v4324_v18, %v11341_v16  ;;  %v4379_v25 = vpop.f32.mrf.mxu0 }
 0x39f   :  { %13676 = vst [vmem:[#allocation40_spill] sm:$0xff] %v11565_v43  ;;  %v4326_v44 = vpop.f32.mrf.mxu1  ;;  %v11571_v11 = vadd.f32 %v4379_v25, %v11351_v10  ;;  %v13685_v25 = vld [vmem:[#allocation90_spill] sm:$0xff] }
 0x3a0   :  { %v11574_v35 = vadd.f32 %v4326_v44, %v11348_v19  ;;  %v4381_v62 = vpop.f32.mrf.mxu0 }
 0x3a1   :  { %13677 = vst [vmem:[#allocation105_spill] sm:$0xff] %v11571_v11  ;;  %v4328_v26 = vpop.f32.mrf.mxu1  ;;  %v11577_v12 = vadd.f32 %v4381_v62, %v13679_v14  ;;  %v13687_v62 = vld [vmem:[#allocation27_spill] sm:$0xff] }
 0x3a2   :  { %13678 = vst [vmem:[#allocation41_spill] sm:$0xff] %v11574_v35  ;;  %v11580_v58 = vadd.f32 %v4328_v26, %v13681_v9  ;;  %v11582_v0 = vpop.f32.mrf.mxu0  ;;  %v13686_v35 = vld [vmem:[#allocation28_spill] sm:$0xff] }
 0x3a3   :  { %13680 = vst [vmem:[#allocation108_spill] sm:$0xff] %v11577_v12  ;;  %13683 = vst [vmem:[#allocation107_spill] sm:$0xff] %v11582_v0  ;;  %v11584_v16 = vpop.f32.mrf.mxu1  ;;  %v13688_v0 = vld [vmem:[#allocation29_spill] sm:$0xff] }
 0x3a4   :  { %13682 = vst [vmem:[#allocation42_spill] sm:$0xff] %v11580_v58  ;;  %13684 = vst [vmem:[#allocation43_spill] sm:$0xff] %v11584_v16  ;;  %v4387_v18 = vpop.f32.mrf.mxu0  ;;  %v13690_v16 = vld [vmem:[#allocation5_spill] sm:$0xff] }
 0x3a5   :  { %v4334_v52 = vpop.f32.mrf.mxu1  ;;  %v11587_v10 = vadd.f32 %v4387_v18, %v11370_v13 }
 0x3a6   :  { %v11590_v19 = vadd.f32 %v4334_v52, %v13685_v25  ;;  %v4389_v44 = vpop.f32.mrf.mxu0  ;;  %v11608_v25 = vpop.permute.xlu1 %5199 }
 0x3a7   :  { %v4336_v11 = vpop.f32.mrf.mxu1  ;;  %v11593_v14 = vadd.f32 %v4389_v44, %v13686_v35 }
 0x3a8   :  { %v11596_v9 = vadd.f32 %v4336_v11, %v13687_v62  ;;  %v4391_v26 = vpop.f32.mrf.mxu0 }
 0x3a9   :  { %v4338_v12 = vpop.f32.mrf.mxu1  ;;  %v11599_v58 = vadd.f32 %v4391_v26, %v13688_v0 }
 0x3aa   :  { %v11602_v43 = vadd.f32 %v4338_v12, %v13690_v16  ;;  %v11604_v13 = vpop.f32.mrf.mxu0 }
 0x3ab   :  { %13689 = vst [vmem:[#allocation112_spill] sm:$0xff] %v11599_v58  ;;  %13691 = vst [vmem:[#allocation44_spill] sm:$0xff] %v11604_v13  ;;  %v11606_v18 = vpop.f32.mrf.mxu1  ;;  %v11622_v58 = vpop.permute.xlu0 %5194 }
 0x3ac   :  { %v4397_v52 = vpop.f32.mrf.mxu0 }
 0x3ad   :  { %v11611_v35 = vadd.f32 %v4397_v52, %v11392_v17  ;;  %v4450_v11 = vpop.f32.mrf.mxu1  ;;  %v13697_v52 = vld [vmem:[#allocation93_spill] sm:$0xff] }
 0x3ae   :  { %v11614_v44 = vadd.f32 %v4450_v11, %v11389_v32  ;;  %v4399_v62 = vpop.f32.mrf.mxu0  ;;  %v11632_v11 = vpop.permute.xlu1 %5184 }
 0x3af   :  { %13692 = vst [vmem:[#allocation110_spill] sm:$0xff] %v11611_v35  ;;  %v11617_v0 = vadd.f32 %v4399_v62, %v11398_v3  ;;  %v4452_v12 = vpop.f32.mrf.mxu1 }
 0x3b0   :  { %13693 = vst [vmem:[#allocation114_spill] sm:$0xff] %v11614_v44  ;;  %v11620_v16 = vadd.f32 %v4452_v12, %v11395_v8  ;;  %v4401_v26 = vpop.f32.mrf.mxu0 }
 0x3b1   :  { %13694 = vst [vmem:[#allocation113_spill] sm:$0xff] %v11617_v0  ;;  %v11625_v13 = vadd.f32 %v4401_v26, %v11404_v34  ;;  %v4454_v17 = vpop.f32.mrf.mxu1  ;;  %v11642_v26 = vpop.permute.xlu0 %5189 }
 0x3b2   :  { %13695 = vst [vmem:[#allocation45_spill] sm:$0xff] %v11620_v16  ;;  %v11628_v35 = vadd.f32 %v4454_v17, %v13697_v52  ;;  %v11630_v32 = vpop.f32.mrf.mxu0  ;;  %v13716_v16 = vld [vmem:[#allocation98_spill] sm:$0xff] }
 0x3b3   :  { %13696 = vst [vmem:[#allocation116_spill] sm:$0xff] %v11625_v13  ;;  %13699 = vst [vmem:[#allocation47_spill] sm:$0xff] %v11630_v32  ;;  %v11634_v3 = vpop.f32.mrf.mxu1 }
 0x3b4   :  { %13698 = vst [vmem:[#allocation46_spill] sm:$0xff] %v11628_v35  ;;  %13700 = vst [vmem:[#allocation115_spill] sm:$0xff] %v11634_v3  ;;  %v4407_v62 = vpop.f32.mrf.mxu0  ;;  %v11650_v35 = vpop.permute.xlu1 %5174 }
 0x3b5   :  { %v11637_v8 = vadd.f32 %v4407_v62, %v11414_v56  ;;  %v4460_v12 = vpop.f32.mrf.mxu1 }
 0x3b6   :  { %v11640_v0 = vadd.f32 %v4460_v12, %v11411_v33  ;;  %v4409_v34 = vpop.f32.mrf.mxu0 }
 0x3b7   :  { %13701 = vst [vmem:[#allocation118_spill] sm:$0xff] %v11637_v8  ;;  %v11645_v17 = vadd.f32 %v4409_v34, %v11420_v6  ;;  %v4462_v52 = vpop.f32.mrf.mxu1  ;;  %v11662_v6 = vpop.permute.xlu0 %5179 }
 0x3b8   :  { %13702 = vst [vmem:[#allocation48_spill] sm:$0xff] %v11640_v0  ;;  %v11648_v13 = vadd.f32 %v4462_v52, %v11417_v51  ;;  %v4411_v32 = vpop.f32.mrf.mxu0 }
 0x3b9   :  { %13703 = vst [vmem:[#allocation117_spill] sm:$0xff] %v11645_v17  ;;  %v11653_v56 = vadd.f32 %v4411_v32, %v11426_v54  ;;  %v4464_v62 = vpop.f32.mrf.mxu1  ;;  %v11668_v54 = vpop.permute.xlu1 %5164 }
 0x3ba   :  { %13704 = vst [vmem:[#allocation49_spill] sm:$0xff] %v11648_v13  ;;  %v11656_v33 = vadd.f32 %v4464_v62, %v11423_v28  ;;  %v11658_v12 = vpop.f32.mrf.mxu0 }
 0x3bb   :  { %13705 = vst [vmem:[#allocation120_spill] sm:$0xff] %v11653_v56  ;;  %13707 = vst [vmem:[#allocation119_spill] sm:$0xff] %v11658_v12  ;;  %v11660_v8 = vpop.f32.mrf.mxu1  ;;  %v13711_v12 = vld [vmem:[#allocation20_spill] sm:$0xff] }
 0x3bc   :  { %13706 = vst [vmem:[#allocation50_spill] sm:$0xff] %v11656_v33  ;;  %13708 = vst [vmem:[#allocation51_spill] sm:$0xff] %v11660_v8  ;;  %v4743_v34 = vpop.f32.mrf.mxu0  ;;  %v4500_v33 = vadd.f32 %v11452_v5, %v13711_v12 }
 0x3bd   :  { %v4470_v17 = vpop.f32.mrf.mxu1  ;;  %v5074_v51 = vadd.f32 %v4743_v34, %v11436_v20  ;;  %v11680_v34 = vpop.permute.xlu0 %5169 }
 0x3be   :  { %v11666_v52 = vadd.f32 %v4470_v17, %v11433_v22  ;;  %v4745_v13 = vpop.f32.mrf.mxu0  ;;  %v13712_v22 = vld [vmem:[#allocation84_spill] sm:$0xff] }
 0x3bf   :  { %v4472_v32 = vpop.f32.mrf.mxu1  ;;  %v5075_v28 = vadd.f32 %v4745_v13, %v11442_v55  ;;  %v5202_v20 = vadd.f32 %v11668_v54, %v5074_v51  ;;  %v3963_v17 = vadd.f32 %v11450_v50, %v13712_v22 }
 0x3c0   :  { %13709 = vst [vmem:[#allocation122_spill] sm:$0xff] %v11666_v52  ;;  %v11672_v62 = vadd.f32 %v4472_v32, %v11439_v48  ;;  %v4747_v56 = vpop.f32.mrf.mxu0  ;;  %v13713_v52 = vld [vmem:[#allocation33_spill] sm:$0xff] }
 0x3c1   :  { %v4474_v8 = vpop.f32.mrf.mxu1  ;;  %v5084_v0 = vadd.f32 %v4747_v56, %v11448_v37  ;;  %v5203_v5 = vadd.f32 %v11668_v54, %v5075_v28  ;;  %v5282_v56 = vmax.f32 %v5202_v20, 0.0 }
 0x3c2   :  { %13710 = vst [vmem:[#allocation52_spill] sm:$0xff] %v11672_v62  ;;  %v11683_v3 = vadd.f32 %v4474_v8, %v13713_v52  ;;  %v4749_v55 = vpop.f32.mrf.mxu0 }
 0x3c3   :  { %v5212_v48 = vadd.f32 %v11680_v34, %v5084_v0  ;;  %v4476_v13 = vpop.f32.mrf.mxu1  ;;  %v5085_v32 = vadd.f32 %v4749_v55, %v4500_v33 }
 0x3c4   :  { %13714 = vst [vmem:[#allocation121_spill] sm:$0xff] %v11683_v3  ;;  %v11687_v12 = vadd.f32 %v4476_v13, %v3963_v17  ;;  %v4753_v37 = vpop.f32.mrf.mxu0  ;;  %v5283_v17 = vmax.f32 %v5203_v5, 0.0 }
 0x3c5   :  { %v5292_v51 = vmax.f32 %v5212_v48, 0.0  ;;  %v5213_v62 = vadd.f32 %v11680_v34, %v5085_v32  ;;  %v4480_v50 = vpop.f32.mrf.mxu1  ;;  %v5094_v22 = vadd.f32 %v4753_v37, %v11458_v36  ;;  %v13719_v48 = vld [vmem:[#allocation21_spill] sm:$0xff] }
 0x3c6   :  { %13715 = vst [vmem:[#allocation53_spill] sm:$0xff] %v11687_v12  ;;  %v11692_v8 = vadd.f32 %v4480_v50, %v13716_v16  ;;  %v4755_v52 = vpop.f32.mrf.mxu0  ;;  %v4520_v13 = vadd.f32 %v11474_v40, %v13719_v48  ;;  %v13722_v50 = vld [vmem:[#allocation34_spill] sm:$0xff] }
 0x3c7   :  { %v11694_v3 = vpack.c.bf16 %v5292_v51, %v5282_v56  ;;  %v5293_v0 = vmax.f32 %v5213_v62, 0.0  ;;  %v4482_v33 = vpop.f32.mrf.mxu1  ;;  %v5095_v28 = vadd.f32 %v4755_v52, %v11464_v38  ;;  %v5222_v36 = vadd.f32 %v11650_v35, %v5094_v22  ;;  %v13720_v56 = vld [vmem:[#allocation87_spill] sm:$0xff]  ;;  %v13721_v62 = vld [vmem:[#allocation97_spill] sm:$0xff] }
 0x3c8   :  { %13717 = vst [vmem:[#allocation124_spill] sm:$0xff] %v11692_v8  ;;  %v11698_v55 = vadd.f32 %v4482_v33, %v11461_v46  ;;  %v4757_v20 = vpop.f32.mrf.mxu0  ;;  %v3983_v51 = vadd.f32 %v13721_v62, %v13720_v56  ;;  %v13736_v8 = vld [vmem:[#allocation74_spill] sm:$0xff] }
 0x3c9   :  { %v4484_v32 = vpop.f32.mrf.mxu1  ;;  %v5104_v16 = vadd.f32 %v4757_v20, %v11470_v24  ;;  %v11704_v37 = vpack.c.bf16 %v5293_v0, %v5283_v17  ;;  %v5223_v46 = vadd.f32 %v11650_v35, %v5095_v28 }
 0x3ca   :  { %13718 = vst [vmem:[#allocation54_spill] sm:$0xff] %v11698_v55  ;;  %v11709_v38 = vadd.f32 %v4484_v32, %v13722_v50  ;;  %v4759_v5 = vpop.f32.mrf.mxu0  ;;  %v5302_v55 = vmax.f32 %v5222_v36, 0.0  ;;  %v13727_v36 = vld [vmem:[#allocation10_spill] sm:$0xff] }
 0x3cb   :  { %v5232_v52 = vadd.f32 %v11662_v6, %v5104_v16  ;;  %v4486_v33 = vpop.f32.mrf.mxu1  ;;  %v5105_v40 = vadd.f32 %v4759_v5, %v4520_v13  ;;  %v5303_v62 = vmax.f32 %v5223_v46, 0.0  ;;  %v13726_v5 = vld [vmem:[#allocation23_spill] sm:$0xff]  ;;  %v13731_v46 = vld [vmem:[#allocation22_spill] sm:$0xff] }
 0x3cc   :  { %13723 = vst [vmem:[#allocation123_spill] sm:$0xff] %v11709_v38  ;;  %v11713_v48 = vadd.f32 %v4486_v33, %v3983_v51  ;;  %v4763_v22 = vpop.f32.mrf.mxu0  ;;  %v13725_v51 = vld [vmem:[#allocation6_spill] sm:$0xff] }
 0x3cd   :  { %v5312_v24 = vmax.f32 %v5232_v52, 0.0  ;;  %v5233_v0 = vadd.f32 %v11662_v6, %v5105_v40  ;;  %v5114_v17 = vadd.f32 %v4763_v22, %v11480_v41  ;;  %v4816_v20 = vpop.f32.mrf.mxu1  ;;  %v3917_v33 = vadd.f32 %v13726_v5, %v13725_v51  ;;  %v13728_v52 = vld [vmem:[#allocation109_spill] sm:$0xff]  ;;  %v13729_v40 = vld [vmem:[#allocation11_spill] sm:$0xff]  ;;  %v13730_v38 = vld [vmem:[#allocation86_spill] sm:$0xff] }
 0x3ce   :  { %13724 = vst [vmem:[#allocation55_spill] sm:$0xff] %v11713_v48  ;;  %v5076_v32 = vadd.f32 %v4816_v20, %v11477_v31  ;;  %v4765_v56 = vpop.f32.mrf.mxu0  ;;  %v3937_v48 = vadd.f32 %v13728_v52, %v13727_v36  ;;  %v11727_v41 = vadd.f32 %v13730_v38, %v13729_v40  ;;  %v13733_v51 = vld [vmem:[#allocation89_spill] sm:$0xff]  ;;  %v13734_v36 = vld [vmem:[#allocation102_spill] sm:$0xff] }
 0x3cf   :  { %v11718_v50 = vpack.c.bf16 %v5312_v24, %v5302_v55  ;;  %v5313_v28 = vmax.f32 %v5233_v0, 0.0  ;;  %v5115_v16 = vadd.f32 %v4765_v56, %v11486_v2  ;;  %v4818_v13 = vpop.f32.mrf.mxu1  ;;  %v4540_v55 = vadd.f32 %v11496_v47, %v13731_v46  ;;  %v13732_v56 = vld [vmem:[#allocation70_spill] sm:$0xff]  ;;  %v13737_v47 = vld [vmem:[#allocation24_spill] sm:$0xff] }
 0x3d0   :  { %v5077_v31 = vadd.f32 %v4818_v13, %v11483_v60  ;;  %v4767_v22 = vpop.f32.mrf.mxu0  ;;  %v5242_v24 = vadd.f32 %v11632_v11, %v5114_v17  ;;  %v11738_v5 = vadd.f32 %v13733_v51, %v13732_v56  ;;  %v4502_v38 = vadd.f32 %v13734_v36, %v3917_v33  ;;  %v13735_v60 = vld [vmem:[#allocation35_spill] sm:$0xff]  ;;  %v13739_v56 = vld [vmem:[#allocation88_spill] sm:$0xff] }
 0x3d1   :  { %v5124_v2 = vadd.f32 %v4767_v22, %v11492_v7  ;;  %v4820_v0 = vpop.f32.mrf.mxu1  ;;  %v11734_v20 = vpack.c.bf16 %v5313_v28, %v5303_v62  ;;  %v5204_v52 = vadd.f32 %v11668_v54, %v5076_v32  ;;  %v11745_v46 = vadd.f32 %v13737_v47, %v13736_v8  ;;  %v13738_v22 = vld [vmem:[#allocation75_spill] sm:$0xff] }
 0x3d2   :  { %v5086_v13 = vadd.f32 %v4820_v0, %v13735_v60  ;;  %v4769_v40 = vpop.f32.mrf.mxu0  ;;  %v5243_v7 = vadd.f32 %v11632_v11, %v5115_v16  ;;  %v11751_v51 = vadd.f32 %v13739_v56, %v13738_v22  ;;  %v5205_v33 = vadd.f32 %v11668_v54, %v5077_v31 }
 0x3d3   :  { %v5252_v17 = vadd.f32 %v11642_v26, %v5124_v2  ;;  %v5125_v62 = vadd.f32 %v4769_v40, %v4540_v55  ;;  %v4822_v28 = vpop.f32.mrf.mxu1  ;;  %v5322_v60 = vmax.f32 %v5242_v24, 0.0  ;;  %v5284_v2 = vmax.f32 %v5204_v52, 0.0 }
 0x3d4   :  { %v5214_v32 = vadd.f32 %v11680_v34, %v5086_v13  ;;  %v5087_v0 = vadd.f32 %v4822_v28, %v4502_v38  ;;  %v4773_v36 = vpop.f32.mrf.mxu0  ;;  %v5323_v44 = vmax.f32 %v5243_v7, 0.0 }
 0x3d5   :  { %v5332_v12 = vmax.f32 %v5252_v17, 0.0  ;;  %v5253_v8 = vadd.f32 %v11642_v26, %v5125_v62  ;;  %v5134_v16 = vadd.f32 %v4773_v36, %v11502_v59  ;;  %v4826_v47 = vpop.f32.mrf.mxu1  ;;  %v5285_v17 = vmax.f32 %v5205_v33, 0.0 }
 0x3d6   :  { %v5294_v55 = vmax.f32 %v5214_v32, 0.0  ;;  %v5215_v40 = vadd.f32 %v11680_v34, %v5087_v0  ;;  %v5096_v22 = vadd.f32 %v4826_v47, %v11499_v45  ;;  %v4775_v56 = vpop.f32.mrf.mxu0  ;;  %v13740_v32 = vld [vmem:[#allocation4_spill] sm:$0xff] }
 0x3d7   :  { %v11759_v31 = vpack.c.bf16 %v5332_v12, %v5322_v60  ;;  %v5333_v13 = vmax.f32 %v5253_v8, 0.0  ;;  %v5135_v38 = vadd.f32 %v4775_v56, %v11508_v61  ;;  %v4828_v24 = vpop.f32.mrf.mxu1  ;;  %v4560_v0 = vadd.f32 %v11518_v30, %v13740_v32  ;;  %v13741_v60 = vld [vmem:[#allocation36_spill] sm:$0xff]  ;;  %v13744_v56 = vld [vmem:[#allocation79_spill] sm:$0xff] }
 0x3d8   :  { %v11762_v28 = vpack.c.bf16 %v5294_v55, %v5284_v2  ;;  %v5295_v62 = vmax.f32 %v5215_v40, 0.0  ;;  %v5097_v59 = vadd.f32 %v4828_v24, %v11505_v29  ;;  %v4777_v52 = vpop.f32.mrf.mxu0  ;;  %v5262_v45 = vadd.f32 %v11622_v58, %v5134_v16  ;;  %v13742_v29 = vld [vmem:[#allocation14_spill] sm:$0xff]  ;;  %v13743_v55 = vld [vmem:[#allocation111_spill] sm:$0xff] }
 0x3d9   :  { %v5144_v7 = vadd.f32 %v4777_v52, %v11514_v39  ;;  %v4830_v12 = vpop.f32.mrf.mxu1  ;;  %v11769_v36 = vpack.c.bf16 %v5333_v13, %v5323_v44  ;;  %v4522_v61 = vadd.f32 %v11516_v15, %v3937_v48  ;;  %v5224_v33 = vadd.f32 %v11650_v35, %v5096_v22  ;;  %v13745_v13 = vld [vmem:[#allocation92_spill] sm:$0xff] }
 0x3da   :  { %v5106_v8 = vadd.f32 %v4830_v12, %v13741_v60  ;;  %v4779_v47 = vpop.f32.mrf.mxu0  ;;  %v11774_v2 = vpack.c.bf16 %v5295_v62, %v5285_v17  ;;  %v11778_v40 = vadd.f32 %v13743_v55, %v13742_v29  ;;  %v5263_v30 = vadd.f32 %v11622_v58, %v5135_v38 }
 0x3db   :  { %v5272_v39 = vadd.f32 %v11608_v25, %v5144_v7  ;;  %v5145_v16 = vadd.f32 %v4779_v47, %v4560_v0  ;;  %v4832_v44 = vpop.f32.mrf.mxu1  ;;  %v11784_v15 = vadd.f32 %v13745_v13, %v13744_v56  ;;  %v5225_v48 = vadd.f32 %v11650_v35, %v5097_v59 }
 0x3dc   :  { %v5234_v22 = vadd.f32 %v11662_v6, %v5106_v8  ;;  %v5107_v24 = vadd.f32 %v4832_v44, %v4522_v61  ;;  %v4889_v17 = vpop.f32.mrf.mxu0  ;;  %v5342_v62 = vmax.f32 %v5262_v45, 0.0  ;;  %v5304_v7 = vmax.f32 %v5224_v33, 0.0 }
 0x3dd   :  { %v5352_v52 = vmax.f32 %v5272_v39, 0.0  ;;  %v5273_v32 = vadd.f32 %v11608_v25, %v5145_v16  ;;  %v4836_v12 = vpop.f32.mrf.mxu1  ;;  %v5078_v38 = vadd.f32 %v4889_v17, %v11524_v49  ;;  %v5343_v55 = vmax.f32 %v5263_v30, 0.0 }
 0x3de   :  { %v5314_v0 = vmax.f32 %v5234_v22, 0.0  ;;  %v5235_v60 = vadd.f32 %v11662_v6, %v5107_v24  ;;  %v5116_v47 = vadd.f32 %v4836_v12, %v11521_v4  ;;  %v4891_v29 = vpop.f32.mrf.mxu0  ;;  %v5305_v45 = vmax.f32 %v5225_v48, 0.0  ;;  %v13746_v24 = vld [vmem:[#allocation37_spill] sm:$0xff]  ;;  %v13747_v48 = vld [vmem:[#allocation100_spill] sm:$0xff]  ;;  %v13749_v12 = vld [vmem:[#allocation94_spill] sm:$0xff] }
 0x3df   :  { %v5400_v59 = vpack.c.bf16 %v5352_v52, %v5342_v62  ;;  %v5353_v56 = vmax.f32 %v5273_v32, 0.0  ;;  %v4838_v8 = vpop.f32.mrf.mxu1  ;;  %v5079_v61 = vadd.f32 %v4891_v29, %v11530_v23  ;;  %v4504_v33 = vadd.f32 %v11540_v42, %v11727_v41 }
 0x3e0   :  { %v11793_v39 = vpack.c.bf16 %v5314_v0, %v5304_v7  ;;  %v5315_v16 = vmax.f32 %v5235_v60, 0.0  ;;  %v5117_v44 = vadd.f32 %v4838_v8, %v11527_v27  ;;  %v4893_v49 = vpop.f32.mrf.mxu0  ;;  %v5206_v13 = vadd.f32 %v11668_v54, %v5078_v38  ;;  %v13748_v27 = vld [vmem:[#allocation16_spill] sm:$0xff]  ;;  %v13750_v0 = vld [vmem:[#allocation81_spill] sm:$0xff] }
 0x3e1   :  { %v4840_v4 = vpop.f32.mrf.mxu1  ;;  %v5088_v30 = vadd.f32 %v4893_v49, %v11536_v57  ;;  %v5401_v22 = vpack.c.bf16 %v5353_v56, %v5343_v55  ;;  %v4542_v17 = vadd.f32 %v13746_v24, %v11738_v5  ;;  %v5244_v23 = vadd.f32 %v11632_v11, %v5116_v47  ;;  %v13751_v5 = vld [vmem:[#allocation30_spill] sm:$0xff] }
 0x3e2   :  { %v5126_v62 = vadd.f32 %v4840_v4, %v13747_v48  ;;  %v4895_v52 = vpop.f32.mrf.mxu0  ;;  %v11804_v32 = vpack.c.bf16 %v5315_v16, %v5305_v45  ;;  %v11808_v7 = vadd.f32 %v13749_v12, %v13748_v27  ;;  %v5207_v42 = vadd.f32 %v11668_v54, %v5079_v61  ;;  %v13753_v12 = vld [vmem:[#allocation106_spill] sm:$0xff] }
 0x3e3   :  { %v5216_v41 = vadd.f32 %v11680_v34, %v5088_v30  ;;  %v4842_v57 = vpop.f32.mrf.mxu1  ;;  %v5089_v38 = vadd.f32 %v4895_v52, %v4504_v33  ;;  %5499 = vmatprep.subr.bf16.mxu1 %v5401_v22  ;;  %v11814_v60 = vadd.f32 %v13751_v5, %v13750_v0  ;;  %v5245_v47 = vadd.f32 %v11632_v11, %v5117_v44  ;;  %v13752_v22 = vld [vmem:[#allocation104_spill] sm:$0xff]  ;;  %v13755_v5 = vld [vmem:[#allocation39_spill] sm:$0xff] }
 0x3e4   :  { %v5254_v29 = vadd.f32 %v11642_v26, %v5126_v62  ;;  %v5127_v55 = vadd.f32 %v4842_v57, %v4542_v17  ;;  %v4899_v56 = vpop.f32.mrf.mxu0  ;;  %5500 = vmatpush1.bf16.msra.mxu1 %v5400_v59  ;;  %v5286_v8 = vmax.f32 %v5206_v13, 0.0  ;;  %v5324_v33 = vmax.f32 %v5244_v23, 0.0 }
 0x3e5   :  { %v5296_v45 = vmax.f32 %v5216_v41, 0.0  ;;  %v5217_v61 = vadd.f32 %v11680_v34, %v5089_v38  ;;  %v4846_v16 = vpop.f32.mrf.mxu1  ;;  %v5098_v49 = vadd.f32 %v4899_v56, %v11546_v21  ;;  %5501 = vmatprep.subr.bf16.mxu1 %v11769_v36  ;;  %v5287_v48 = vmax.f32 %v5207_v42, 0.0  ;;  %v13754_v38 = vld [vmem:[#allocation103_spill] sm:$0xff] }
 0x3e6   :  { %v5334_v4 = vmax.f32 %v5254_v29, 0.0  ;;  %v5255_v30 = vadd.f32 %v11642_v26, %v5127_v55  ;;  %v5136_v44 = vadd.f32 %v4846_v16, %v13752_v22  ;;  %v4901_v24 = vpop.f32.mrf.mxu0  ;;  %v5325_v52 = vmax.f32 %v5245_v47, 0.0  ;;  %v13756_v29 = vld [vmem:[#allocation38_spill] sm:$0xff] }
 0x3e7   :  { %v11823_v17 = vpack.c.bf16 %v5296_v45, %v5286_v8  ;;  %v5297_v59 = vmax.f32 %v5217_v61, 0.0  ;;  %v4848_v13 = vpop.f32.mrf.mxu1  ;;  %v5099_v62 = vadd.f32 %v4901_v24, %v11552_v53  ;;  %v4524_v41 = vadd.f32 %v13753_v12, %v11745_v46  ;;  %v13757_v46 = vld [vmem:[#allocation101_spill] sm:$0xff]  ;;  %v13758_v8 = vld [vmem:[#allocation31_spill] sm:$0xff] }
 0x3e8   :  { %v11826_v27 = vpack.c.bf16 %v5334_v4, %v5324_v33  ;;  %v5335_v21 = vmax.f32 %v5255_v30, 0.0  ;;  %v5137_v36 = vadd.f32 %v4848_v13, %v11549_v63  ;;  %v4903_v23 = vpop.f32.mrf.mxu0  ;;  %5502 = vmatpush1.bf16.msra.mxu1 %v11759_v31  ;;  %v5226_v42 = vadd.f32 %v11650_v35, %v5098_v49 }
 0x3e9   :  { %v4850_v57 = vpop.f32.mrf.mxu1  ;;  %v5108_v0 = vadd.f32 %v4903_v23, %v13754_v38  ;;  %5503 = vmatprep.subr.bf16.mxu1 %v11734_v20  ;;  %v11835_v53 = vpack.c.bf16 %v5297_v59, %v5287_v48  ;;  %v4562_v47 = vadd.f32 %v13755_v5, %v11751_v51  ;;  %v5264_v63 = vadd.f32 %v11622_v58, %v5136_v44 }
 0x3ea   :  { %v5146_v55 = vadd.f32 %v4850_v57, %v13756_v29  ;;  %v4905_v31 = vpop.f32.mrf.mxu0  ;;  %v11841_v56 = vpack.c.bf16 %v5335_v21, %v5325_v52  ;;  %v11845_v45 = vadd.f32 %v13758_v8, %v13757_v46  ;;  %v5227_v61 = vadd.f32 %v11650_v35, %v5099_v62  ;;  %v13759_v21 = vld [vmem:[#allocation40_spill] sm:$0xff]  ;;  %v13763_v8 = vld [vmem:[#allocation42_spill] sm:$0xff] }
 0x3eb   :  { %v5236_v20 = vadd.f32 %v11662_v6, %v5108_v0  ;;  %v4852_v16 = vpop.f32.mrf.mxu1  ;;  %v5109_v49 = vadd.f32 %v4905_v31, %v4524_v41  ;;  %v5265_v33 = vadd.f32 %v11622_v58, %v5137_v36  ;;  %v5306_v22 = vmax.f32 %v5226_v42, 0.0  ;;  %v13760_v42 = vld [vmem:[#allocation41_spill] sm:$0xff] }
 0x3ec   :  { %v5274_v51 = vadd.f32 %v11608_v25, %v5146_v55  ;;  %v5147_v4 = vadd.f32 %v4852_v16, %v4562_v47  ;;  %v4909_v30 = vpop.f32.mrf.mxu0  ;;  %5504 = vmatpush1.bf16.msra.mxu1 %v11718_v50  ;;  %v5344_v13 = vmax.f32 %v5264_v63, 0.0  ;;  %v5307_v12 = vmax.f32 %v5227_v61, 0.0  ;;  %v13761_v47 = vld [vmem:[#allocation105_spill] sm:$0xff]  ;;  %v13762_v55 = vld [vmem:[#allocation43_spill] sm:$0xff] }
 0x3ed   :  { %v5316_v44 = vmax.f32 %v5236_v20, 0.0  ;;  %v5237_v24 = vadd.f32 %v11662_v6, %v5109_v49  ;;  %v5118_v48 = vadd.f32 %v4909_v30, %v11568_v1  ;;  %v4962_v59 = vpop.f32.mrf.mxu1  ;;  %5505 = vmatprep.subr.bf16.mxu1 %v11704_v37  ;;  %v11863_v1 = vld [vmem:[%s13044_s3] sm:$0xff]   ;;  %v5345_v37 = vmax.f32 %v5265_v33, 0.0  ;;  %v13764_v49 = vld [vmem:[#allocation107_spill] sm:$0xff] }
 0x3ee   :  { %v5354_v62 = vmax.f32 %v5274_v51, 0.0  ;;  %v5275_v52 = vadd.f32 %v11608_v25, %v5147_v4  ;;  %v5080_v36 = vadd.f32 %v4962_v59, %v13759_v21  ;;  %v4911_v23 = vpop.f32.mrf.mxu0  ;;  %v4544_v31 = vadd.f32 %v13762_v55, %v11778_v40  ;;  %v13765_v4 = vld [vmem:[#allocation108_spill] sm:$0xff] }
 0x3ef   :  { %v11857_v41 = vpack.c.bf16 %v5316_v44, %v5306_v22  ;;  %v5317_v50 = vmax.f32 %v5237_v24, 0.0  ;;  %v5119_v57 = vadd.f32 %v4911_v23, %v13760_v42  ;;  %v4964_v38 = vpop.f32.mrf.mxu1  ;;  %v5246_v46 = vadd.f32 %v11632_v11, %v5118_v48  ;;  %v13767_v24 = vld [vmem:[#allocation96_spill] sm:$0xff] }
 0x3f0   :  { %v5402_v0 = vpack.c.bf16 %v5354_v62, %v5344_v13  ;;  %v5355_v5 = vmax.f32 %v5275_v52, 0.0  ;;  %v5081_v63 = vadd.f32 %v4964_v38, %v13761_v47  ;;  %v4913_v29 = vpop.f32.mrf.mxu0  ;;  %5506 = vmatpush1.bf16.msra.mxu1 %v11694_v3  ;;  %v4506_v33 = vadd.f32 %v13764_v49, %v11784_v15  ;;  %v13766_v3 = vld [vmem:[#allocation19_spill] sm:$0xff] }
 0x3f1   :  { %v5128_v61 = vadd.f32 %v4913_v29, %v13763_v8  ;;  %v4966_v20 = vpop.f32.mrf.mxu1  ;;  %v11871_v16 = vpack.c.bf16 %v5317_v50, %v5307_v12  ;;  %v5208_v51 = vadd.f32 %v11668_v54, %v5080_v36  ;;  %v11879_v59 = vadd.f32 %v13767_v24, %v13766_v3  ;;  %v13770_v24 = vld [vmem:[#allocation112_spill] sm:$0xff] }
 0x3f2   :  { %v5090_v30 = vadd.f32 %v4966_v20, %v13765_v4  ;;  %v4915_v22 = vpop.f32.mrf.mxu0  ;;  %v5403_v44 = vpack.c.bf16 %v5355_v5, %v5345_v37  ;;  %v5247_v40 = vadd.f32 %v11632_v11, %v5119_v57  ;;  %v5209_v15 = vadd.f32 %v11668_v54, %v5081_v63 }
 0x3f3   :  { %v5256_v48 = vadd.f32 %v11642_v26, %v5128_v61  ;;  %v5129_v13 = vadd.f32 %v4915_v22, %v4544_v31  ;;  %v4968_v62 = vpop.f32.mrf.mxu1  ;;  %7595 = vmatmul.mubr.msk.bf16.vlgmr.msra.gmra.mxu1 %vm5478_vm10, %v11863_v1  ;;  %v13768_v23 = vmov 0   ;;  %v5326_v12 = vmax.f32 %v5246_v46, 0.0  ;;  %v13769_v22 = vld [vmem:[#allocation44_spill] sm:$0xff] }
 0x3f4   :  { %v5218_v52 = vadd.f32 %v11680_v34, %v5090_v30  ;;  %v5091_v21 = vadd.f32 %v4968_v62, %v4506_v33  ;;  %5572 = vmatprep.subr.bf16.mxu0 %v5403_v44  ;;  %v4919_v36 = vpop.f32.mrf.mxu0  ;;  %5533 = vmatprep.mubr.bf16.mxu1 %v13768_v23  ;;  %v5288_v37 = vmax.f32 %v5208_v51, 0.0  ;;  %v5327_v55 = vmax.f32 %v5247_v40, 0.0 }
 0x3f5   :  { %v5336_v50 = vmax.f32 %v5256_v48, 0.0  ;;  %v5257_v42 = vadd.f32 %v11642_v26, %v5129_v13  ;;  %v5138_v57 = vadd.f32 %v4919_v36, %v11590_v19  ;;  %v4972_v38 = vpop.f32.mrf.mxu1  ;;  %5573 = vmatpush1.bf16.msra.mxu0 %v5402_v0  ;;  %v11899_v19 = vld [vmem:[%s13044_s3 + $0x8] sm:$0xff]   ;;  %v5289_v0 = vmax.f32 %v5209_v15, 0.0  ;;  %v13772_v48 = vld [vmem:[#allocation32_spill] sm:$0xff] }
 0x3f6   :  { %v5298_v5 = vmax.f32 %v5218_v52, 0.0  ;;  %v5219_v47 = vadd.f32 %v11680_v34, %v5091_v21  ;;  %v5100_v63 = vadd.f32 %v4972_v38, %v11587_v10  ;;  %5574 = vmatprep.subr.bf16.mxu0 %v11841_v56  ;;  %v4921_v29 = vpop.f32.mrf.mxu0  ;;  %v4564_v33 = vadd.f32 %v11606_v18, %v11808_v7  ;;  %v13771_v7 = vld [vmem:[#allocation85_spill] sm:$0xff]  ;;  %v13774_v52 = vld [vmem:[#allocation95_spill] sm:$0xff] }
 0x3f7   :  { %v11893_v31 = vpack.c.bf16 %v5336_v50, %v5326_v12  ;;  %v5337_v46 = vmax.f32 %v5257_v42, 0.0  ;;  %v5139_v8 = vadd.f32 %v4921_v29, %v11596_v9  ;;  %v4974_v61 = vpop.f32.mrf.mxu1  ;;  %v5266_v51 = vadd.f32 %v11622_v58, %v5138_v57 }
 0x3f8   :  { %v11901_v20 = vpack.c.bf16 %v5298_v5, %v5288_v37  ;;  %v5299_v49 = vmax.f32 %v5219_v47, 0.0  ;;  %v5101_v10 = vadd.f32 %v4974_v61, %v11593_v14  ;;  %v4923_v56 = vpop.f32.mrf.mxu0  ;;  %v4526_v44 = vadd.f32 %v13769_v22, %v11814_v60  ;;  %v13773_v60 = vld [vmem:[#allocation82_spill] sm:$0xff] }
 0x3f9   :  { %v5148_v9 = vadd.f32 %v4923_v56, %v11602_v43  ;;  %v4976_v4 = vpop.f32.mrf.mxu1  ;;  %5575 = vmatpush1.bf16.msra.mxu0 %v11826_v27  ;;  %v11909_v30 = vpack.c.bf16 %v5337_v46, %v5327_v55  ;;  %v5228_v3 = vadd.f32 %v11650_v35, %v5100_v63  ;;  %v11920_v43 = vadd.f32 %v13772_v48, %v13771_v7  ;;  %v13775_v5 = vld [vmem:[#allocation114_spill] sm:$0xff] }
 0x3fa   :  { %v5110_v14 = vadd.f32 %v4976_v4, %v13770_v24  ;;  %5576 = vmatprep.subr.bf16.mxu0 %v11804_v32  ;;  %v4925_v40 = vpop.f32.mrf.mxu0  ;;  %v11916_v18 = vpack.c.bf16 %v5299_v49, %v5289_v0  ;;  %v5267_v27 = vadd.f32 %v11622_v58, %v5139_v8  ;;  %v11928_v21 = vadd.f32 %v13774_v52, %v13773_v60  ;;  %v13776_v46 = vld [vmem:[#allocation110_spill] sm:$0xff]  ;;  %v13782_v52 = vld [vmem:[#allocation116_spill] sm:$0xff] }
 0x3fb   :  { %v5276_v13 = vadd.f32 %v11608_v25, %v5148_v9  ;;  %v5149_v62 = vadd.f32 %v4925_v40, %v4564_v33  ;;  %v4978_v15 = vpop.f32.mrf.mxu1  ;;  %7596 = vmatmul.mubr.msk.bf16.gmra.mxu1 %vm5478_vm10, %v11899_v19  ;;  %v5229_v32 = vadd.f32 %v11650_v35, %v5101_v10  ;;  %v5346_v42 = vmax.f32 %v5266_v51, 0.0  ;;  %v13777_v33 = vld [vmem:[#allocation45_spill] sm:$0xff]  ;;  %v11943_v9 = vld [vmem:[%s13044_s3 + $0x10] sm:$0xff]   ;;  %v13780_v48 = vld [vmem:[#allocation46_spill] sm:$0xff] }
 0x3fc   :  { %v5238_v36 = vadd.f32 %v11662_v6, %v5110_v14  ;;  %v5111_v12 = vadd.f32 %v4978_v15, %v4526_v44  ;;  %v5035_v50 = vpop.f32.mrf.mxu0  ;;  %5543 = vmatprep.mubr.bf16.mxu1 %v13768_v23  ;;  %v5308_v63 = vmax.f32 %v5228_v3, 0.0  ;;  %v5347_v0 = vmax.f32 %v5267_v27, 0.0  ;;  %v13778_v44 = vld [vmem:[#allocation113_spill] sm:$0xff] }
 0x3fd   :  { %v5356_v57 = vmax.f32 %v5276_v13, 0.0  ;;  %v5277_v38 = vadd.f32 %v11608_v25, %v5149_v62  ;;  %v4982_v37 = vpop.f32.mrf.mxu1  ;;  %v5082_v47 = vadd.f32 %v5035_v50, %v13775_v5  ;;  %5577 = vmatpush1.bf16.msra.mxu0 %v11793_v39  ;;  %v5309_v39 = vmax.f32 %v5229_v32, 0.0  ;;  %v13781_v62 = vld [vmem:[#allocation47_spill] sm:$0xff] }
 0x3fe   :  { %v5318_v29 = vmax.f32 %v5238_v36, 0.0  ;;  %v5239_v55 = vadd.f32 %v11662_v6, %v5111_v12  ;;  %v5120_v8 = vadd.f32 %v4982_v37, %v13776_v46  ;;  %5578 = vmatprep.subr.bf16.mxu0 %v11774_v2  ;;  %v5037_v61 = vpop.f32.mrf.mxu0  ;;  %v13779_v2 = vld [vmem:[#allocation115_spill] sm:$0xff]  ;;  %v4546_v15 = vadd.f32 %v13781_v62, %v11879_v59  ;;  %v13788_v62 = vld [vmem:[#allocation50_spill] sm:$0xff] }
 0x3ff   :  { %v5404_v49 = vpack.c.bf16 %v5356_v57, %v5346_v42  ;;  %v5357_v10 = vmax.f32 %v5277_v38, 0.0  ;;  %v4984_v56 = vpop.f32.mrf.mxu1  ;;  %v5083_v51 = vadd.f32 %v5037_v61, %v13777_v33  ;;  %v4508_v14 = vadd.f32 %v13779_v2, %v11845_v45  ;;  %v13786_v2 = vld [vmem:[#allocation117_spill] sm:$0xff] }
 0x400   :  { %v11945_v4 = vpack.c.bf16 %v5318_v29, %v5308_v63  ;;  %v5319_v22 = vmax.f32 %v5239_v55, 0.0  ;;  %v5121_v3 = vadd.f32 %v4984_v56, %v13778_v44  ;;  %v5039_v24 = vpop.f32.mrf.mxu0  ;;  %v5210_v40 = vadd.f32 %v11668_v54, %v5082_v47  ;;  %v13783_v29 = vld [vmem:[#allocation48_spill] sm:$0xff] }
 0x401   :  { %v4986_v7 = vpop.f32.mrf.mxu1  ;;  %v5092_v27 = vadd.f32 %v5039_v24, %v13780_v48  ;;  %5579 = vmatpush1.bf16.msra.mxu0 %v11762_v28  ;;  %v5405_v13 = vpack.c.bf16 %v5357_v10, %v5347_v0  ;;  %v5248_v60 = vadd.f32 %v11632_v11, %v5120_v8  ;;  %v5211_v45 = vadd.f32 %v11668_v54, %v5083_v51  ;;  %v13784_v0 = vld [vmem:[#allocation118_spill] sm:$0xff] }
 0x402   :  { %v5130_v32 = vadd.f32 %v4986_v7, %v13782_v52  ;;  %v5041_v36 = vpop.f32.mrf.mxu0  ;;  %v11957_v12 = vpack.c.bf16 %v5319_v22, %v5309_v39  ;;  %v5249_v28 = vadd.f32 %v11632_v11, %v5121_v3  ;;  %v5290_v5 = vmax.f32 %v5210_v40, 0.0  ;;  %v13785_v39 = vld [vmem:[#allocation49_spill] sm:$0xff]  ;;  %v13787_v7 = vld [vmem:[#allocation51_spill] sm:$0xff] }
 0x403   :  { %v5220_v50 = vadd.f32 %v11680_v34, %v5092_v27  ;;  %v4988_v42 = vpop.f32.mrf.mxu1  ;;  %v5093_v57 = vadd.f32 %v5041_v36, %v4508_v14  ;;  %7597 = vmatmul.mubr.msk.bf16.gmra.mxu1 %vm5478_vm10, %v11943_v9  ;;  %5645 = vmatprep.subr.bf16.mxu1 %v5405_v13  ;;  %v5328_v46 = vmax.f32 %v5248_v60, 0.0  ;;  %v4528_v48 = vadd.f32 %v13787_v7, %v11920_v43  ;;  %v13789_v52 = vld [vmem:[#allocation119_spill] sm:$0xff]  ;;  %v13794_v7 = vld [vmem:[#allocation53_spill] sm:$0xff] }
 0x404   :  { %v5258_v59 = vadd.f32 %v11642_v26, %v5130_v32  ;;  %v5131_v38 = vadd.f32 %v4988_v42, %v4546_v15  ;;  %7599 = vmatmul.mubr.msk.bf16.vlgmr.msra.gmra.mxu0 %vm5478_vm10, %v11863_v1  ;;  %v5045_v37 = vpop.f32.mrf.mxu0  ;;  %5646 = vmatpush1.bf16.msra.mxu1 %v5404_v49  ;;  %v5291_v49 = vmax.f32 %v5211_v45, 0.0  ;;  %v5329_v44 = vmax.f32 %v5249_v28, 0.0  ;;  %v13790_v45 = vld [vmem:[#allocation120_spill] sm:$0xff] }
 0x405   :  { %v5300_v54 = vmax.f32 %v5220_v50, 0.0  ;;  %v5221_v47 = vadd.f32 %v11680_v34, %v5093_v57  ;;  %v4992_v63 = vpop.f32.mrf.mxu1  ;;  %v5102_v55 = vadd.f32 %v5045_v37, %v13783_v29  ;;  %5647 = vmatprep.subr.bf16.mxu1 %v11909_v30  ;;  %5553 = vmatprep.mubr.bf16.mxu1 %v13768_v23  ;;  %v11980_v30 = vld [vmem:[%s13044_s3 + $0x18] sm:$0xff]   ;;  %v4566_v32 = vadd.f32 %v13789_v52, %v11928_v21 }
 0x406   :  { %v5338_v8 = vmax.f32 %v5258_v59, 0.0  ;;  %v5259_v61 = vadd.f32 %v11642_v26, %v5131_v38  ;;  %v5140_v10 = vadd.f32 %v4992_v63, %v13784_v0  ;;  %v5047_v56 = vpop.f32.mrf.mxu0  ;;  %5606 = vmatprep.mubr.bf16.mxu0 %v13768_v23 }
 0x407   :  { %v11974_v33 = vpack.c.bf16 %v5300_v54, %v5290_v5  ;;  %v5301_v34 = vmax.f32 %v5221_v47, 0.0  ;;  %v4994_v51 = vpop.f32.mrf.mxu1  ;;  %v5103_v22 = vadd.f32 %v5047_v56, %v13785_v39  ;;  %v5230_v27 = vadd.f32 %v11650_v35, %v5102_v55  ;;  %v13791_v47 = vld [vmem:[#allocation122_spill] sm:$0xff]  ;;  %v13793_v39 = vld [vmem:[#allocation121_spill] sm:$0xff] }
 0x408   :  { %v11982_v3 = vpack.c.bf16 %v5338_v8, %v5328_v46  ;;  %v5339_v24 = vmax.f32 %v5259_v61, 0.0  ;;  %v5141_v14 = vadd.f32 %v4994_v51, %v13786_v2  ;;  %v5049_v40 = vpop.f32.mrf.mxu0  ;;  %5648 = vmatpush1.bf16.msra.mxu1 %v11893_v31  ;;  %v5268_v36 = vadd.f32 %v11622_v58, %v5140_v10  ;;  %v13792_v10 = vld [vmem:[#allocation52_spill] sm:$0xff] }
 0x409   :  { %v4996_v13 = vpop.f32.mrf.mxu1  ;;  %v5112_v15 = vadd.f32 %v5049_v40, %v13788_v62  ;;  %5649 = vmatprep.subr.bf16.mxu1 %v11871_v16  ;;  %v11991_v60 = vpack.c.bf16 %v5301_v34, %v5291_v49  ;;  %v5231_v43 = vadd.f32 %v11650_v35, %v5103_v22  ;;  %v5310_v5 = vmax.f32 %v5230_v27, 0.0 }
 0x40a   :  { %v5150_v50 = vadd.f32 %v4996_v13, %v13790_v45  ;;  %v5051_v31 = vpop.f32.mrf.mxu0  ;;  %v5397_v42 = vpack.c.bf16 %v5339_v24, %v5329_v44  ;;  %v5269_v16 = vadd.f32 %v11622_v58, %v5141_v14  ;;  %v5348_v29 = vmax.f32 %v5268_v36, 0.0 }
 0x40b   :  { %v5240_v57 = vadd.f32 %v11662_v6, %v5112_v15  ;;  %v4998_v28 = vpop.f32.mrf.mxu1  ;;  %v5113_v59 = vadd.f32 %v5051_v31, %v4528_v48  ;;  %7598 = vmatmul.mubr.msk.bf16.gmra.mxu1 %vm5478_vm10, %v11980_v30  ;;  %v5311_v61 = vmax.f32 %v5231_v43, 0.0  ;;  %v13795_v15 = vld [vmem:[#allocation124_spill] sm:$0xff] }
 0x40c   :  { %v5278_v38 = vadd.f32 %v11608_v25, %v5150_v50  ;;  %v5151_v21 = vadd.f32 %v4998_v28, %v4566_v32  ;;  %7600 = vmatmul.mubr.msk.bf16.gmra.mxu0 %vm5478_vm10, %v11899_v19  ;;  %v5055_v37 = vpop.f32.mrf.mxu0  ;;  %5650 = vmatpush1.bf16.msra.mxu1 %v11857_v41  ;;  %v13796_v50 = vld [vmem:[#allocation54_spill] sm:$0xff]  ;;  %v13797_v28 = vld [vmem:[#allocation123_spill] sm:$0xff] }
 0x40d   :  { %v5320_v35 = vmax.f32 %v5240_v57, 0.0  ;;  %v5241_v54 = vadd.f32 %v11662_v6, %v5113_v59  ;;  %v5122_v63 = vadd.f32 %v5055_v37, %v13791_v47  ;;  %5651 = vmatprep.subr.bf16.mxu1 %v11835_v53  ;;  %5616 = vmatprep.mubr.bf16.mxu0 %v13768_v23  ;;  %v5349_v6 = vmax.f32 %v5269_v16, 0.0 }
 0x40e   :  { %v5358_v55 = vmax.f32 %v5278_v38, 0.0  ;;  %v5279_v46 = vadd.f32 %v11608_v25, %v5151_v21  ;;  %v5057_v8 = vpop.f32.mrf.mxu0  ;;  %5669 = vmatprep.mubr.bf16.mxu1 %v13768_v23  ;;  %v13798_v21 = vld [vmem:[#allocation55_spill] sm:$0xff] }
 0x40f   :  { %v12012_v0 = vpack.c.bf16 %v5320_v35, %v5310_v5  ;;  %v5321_v41 = vmax.f32 %v5241_v54, 0.0  ;;  %v5123_v56 = vadd.f32 %v5057_v8, %v13792_v10  ;;  %v5250_v53 = vadd.f32 %v11632_v11, %v5122_v63 }
 0x410   :  { %v5406_v49 = vpack.c.bf16 %v5358_v55, %v5348_v29  ;;  %v5359_v34 = vmax.f32 %v5279_v46, 0.0  ;;  %v5059_v51 = vpop.f32.mrf.mxu0  ;;  %5652 = vmatpush1.bf16.msra.mxu1 %v11823_v17  ;;  %v12088_v29 = vpop.permute.xlu0 %5455 }
 0x411   :  { %v5132_v22 = vadd.f32 %v5059_v51, %v13793_v39  ;;  %v5389_v44 = vpack.c.bf16 %v5321_v41, %v5311_v61  ;;  %v5251_v14 = vadd.f32 %v11632_v11, %v5123_v56  ;;  %v5330_v27 = vmax.f32 %v5250_v53, 0.0  ;;  %v12092_v46 = vpop.permute.xlu1 %5450 }
 0x412   :  { %v5061_v24 = vpop.f32.mrf.mxu0  ;;  %v5407_v2 = vpack.c.bf16 %v5359_v34, %v5349_v6 }
 0x413   :  { %v5260_v40 = vadd.f32 %v11642_v26, %v5132_v22  ;;  %v5133_v48 = vadd.f32 %v5061_v24, %v13794_v7  ;;  %7603 = vmatmul.mubr.msk.bf16.vlgmr.msra.gmra.mxu1 %vm5478_vm10, %v11863_v1  ;;  %v5331_v32 = vmax.f32 %v5251_v14, 0.0 }
 0x414   :  { %7601 = vmatmul.mubr.msk.bf16.gmra.mxu0 %vm5478_vm10, %v11943_v9  ;;  %5718 = vmatprep.subr.bf16.mxu0 %v5407_v2  ;;  %v5065_v17 = vpop.f32.mrf.mxu0  ;;  %v12098_v10 = vpop.permute.xlu0 %5445 }
 0x415   :  { %v5340_v13 = vmax.f32 %v5260_v40, 0.0  ;;  %v5261_v62 = vadd.f32 %v11642_v26, %v5133_v48  ;;  %v5142_v52 = vadd.f32 %v5065_v17, %v13795_v15  ;;  %5719 = vmatpush1.bf16.msra.mxu0 %v5406_v49  ;;  %5626 = vmatprep.mubr.bf16.mxu0 %v13768_v23  ;;  %v12102_v49 = vpop.permute.xlu1 %5440 }
 0x416   :  { %5720 = vmatprep.subr.bf16.mxu0 %v5397_v42  ;;  %v5067_v11 = vpop.f32.mrf.mxu0  ;;  %5679 = vmatprep.mubr.bf16.mxu1 %v13768_v23 }
 0x417   :  { %v5398_v36 = vpack.c.bf16 %v5340_v13, %v5330_v27  ;;  %v5341_v45 = vmax.f32 %v5261_v62, 0.0  ;;  %v5143_v31 = vadd.f32 %v5067_v11, %v13796_v50  ;;  %v5270_v57 = vadd.f32 %v11622_v58, %v5142_v52 }
 0x418   :  { %v5069_v43 = vpop.f32.mrf.mxu0  ;;  %v12111_v2 = vpop.permute.xlu0 %5435 }
 0x419   :  { %v5152_v59 = vadd.f32 %v5069_v43, %v13797_v28  ;;  %5721 = vmatpush1.bf16.msra.mxu0 %v11982_v3  ;;  %v5399_v26 = vpack.c.bf16 %v5341_v45, %v5331_v32  ;;  %v5271_v42 = vadd.f32 %v11622_v58, %v5143_v31  ;;  %v5350_v5 = vmax.f32 %v5270_v57, 0.0  ;;  %v12118_v27 = vpop.permute.xlu1 %5430 }
 0x41a   :  { %5722 = vmatprep.subr.bf16.mxu0 %v11957_v12  ;;  %v5071_v16 = vpop.f32.mrf.mxu0 }
 0x41b   :  { %v5280_v38 = vadd.f32 %v11608_v25, %v5152_v59  ;;  %v5153_v37 = vadd.f32 %v5071_v16, %v13798_v21  ;;  %7604 = vmatmul.mubr.msk.bf16.gmra.mxu1 %vm5478_vm10, %v11899_v19  ;;  %v5351_v58 = vmax.f32 %v5271_v42, 0.0 }
 0x41c   :  { %7602 = vmatmul.mubr.msk.bf16.gmra.mxu0 %vm5478_vm10, %v11980_v30  ;;  %5689 = vmatprep.mubr.bf16.mxu1 %v13768_v23  ;;  %v12130_v16 = vpop.permute.xlu0 %5425 }
 0x41d   :  { %v5360_v3 = vmax.f32 %v5280_v38, 0.0  ;;  %v5281_v35 = vadd.f32 %v11608_v25, %v5153_v37  ;;  %5723 = vmatpush1.bf16.msra.mxu0 %v11945_v4  ;;  %5742 = vmatprep.mubr.bf16.mxu0 %v13768_v23 }
 0x41e   :  { %5724 = vmatprep.subr.bf16.mxu0 %v11916_v18 }
 0x41f   :  { %v5408_v12 = vpack.c.bf16 %v5360_v3, %v5350_v5  ;;  %v5361_v54 = vmax.f32 %v5281_v35, 0.0 }
 0x421   :  { %5725 = vmatpush1.bf16.msra.mxu0 %v11901_v20  ;;  %v5409_v47 = vpack.c.bf16 %v5361_v54, %v5351_v58 }
 0x423   :  { %7605 = vmatmul.mubr.msk.bf16.gmra.mxu1 %vm5478_vm10, %v11943_v9  ;;  %5791 = vmatprep.subr.bf16.mxu1 %v5409_v47 }
 0x424   :  { %7607 = vmatmul.mubr.msk.bf16.vlgmr.msra.gmra.mxu0 %vm5478_vm10, %v11863_v1  ;;  %5792 = vmatpush1.bf16.msra.mxu1 %v5408_v12  ;;  %v12136_v12 = vpop.permute.xlu1 %5420 }
 0x425   :  { %5793 = vmatprep.subr.bf16.mxu1 %v5399_v26  ;;  %5699 = vmatprep.mubr.bf16.mxu1 %v13768_v23 }
 0x426   :  { %5752 = vmatprep.mubr.bf16.mxu0 %v13768_v23 }
 0x428   :  { %5794 = vmatpush1.bf16.msra.mxu1 %v5398_v36 }
 0x429   :  { %5795 = vmatprep.subr.bf16.mxu1 %v5389_v44 }
 0x42b   :  { %7606 = vmatmul.mubr.msk.bf16.gmra.mxu1 %vm5478_vm10, %v11980_v30 }
 0x42c   :  { %7608 = vmatmul.mubr.msk.bf16.gmra.mxu0 %vm5478_vm10, %v11899_v19  ;;  %5796 = vmatpush1.bf16.msra.mxu1 %v12012_v0 }
 0x42d   :  { %5797 = vmatprep.subr.bf16.mxu1 %v11991_v60  ;;  %5762 = vmatprep.mubr.bf16.mxu0 %v13768_v23 }
 0x42e   :  { %5815 = vmatprep.mubr.bf16.mxu1 %v13768_v23 }
 0x430   :  { %5798 = vmatpush1.bf16.msra.mxu1 %v11974_v33 }
 0x433   :  { %7611 = vmatmul.mubr.msk.bf16.vlgmr.msra.gmra.mxu1 %vm5478_vm10, %v11863_v1 }
 0x434   :  { %7609 = vmatmul.mubr.msk.bf16.gmra.mxu0 %vm5478_vm10, %v11943_v9  ;;  %5825 = vmatprep.mubr.bf16.mxu1 %v13768_v23 }
 0x435   :  { %5772 = vmatprep.mubr.bf16.mxu0 %v13768_v23 }
 0x43b   :  { %7612 = vmatmul.mubr.msk.bf16.gmra.mxu1 %vm5478_vm10, %v11899_v19 }
 0x43c   :  { %7610 = vmatmul.mubr.msk.bf16.gmra.mxu0 %vm5478_vm10, %v11980_v30  ;;  %5835 = vmatprep.mubr.bf16.mxu1 %v13768_v23 }
 0x43d   :  { %6074 = vmatprep.mubr.bf16.mxu0 %v13768_v23 }
 0x443   :  { %7613 = vmatmul.mubr.msk.bf16.gmra.mxu1 %vm5478_vm10, %v11943_v9 }
 0x444   :  { %5845 = vmatprep.mubr.bf16.mxu1 %v13768_v23 }
 0x44b   :  { %7614 = vmatmul.mubr.msk.bf16.gmra.mxu1 %vm5478_vm10, %v11980_v30 }
 0x44c   :  { %6137 = vmatprep.mubr.bf16.mxu1 %v13768_v23 }
 0x4b3   :  { %v12080_v25 = vpop.f32.mrf.mxu1 }
 0x4b5   :  { %v12082_v1 = vpop.f32.mrf.mxu1 }
 0x4b7   :  { %v12084_v19 = vpop.f32.mrf.mxu1 }
 0x4b9   :  { %v5531_v20 = vpop.f32.mrf.mxu1 }
 0x4ba   :  { %v5532_v5 = vadd.f32 %v5531_v20, %v12130_v16  ;;  %v5530_v20 = vadd.f32 %v12084_v19, %v12130_v16 }
 0x4bb   :  { %v5535_v18 = vpop.f32.mrf.mxu1 }
 0x4bc   :  { %v5536_v54 = vadd.f32 %v5535_v18, %v12118_v27 }
 0x4bd   :  { %v5537_v4 = vpop.f32.mrf.mxu1 }
 0x4be   :  { %v5538_v57 = vadd.f32 %v5537_v4, %v12118_v27 }
 0x4bf   :  { %v5539_v33 = vpop.f32.mrf.mxu1 }
 0x4c0   :  { %v5540_v42 = vadd.f32 %v5539_v33, %v12111_v2  ;;  %v5528_v33 = vadd.f32 %v12082_v1, %v12136_v12 }
 0x4c1   :  { %v5541_v60 = vpop.f32.mrf.mxu1 }
 0x4c2   :  { %v5542_v52 = vadd.f32 %v5541_v60, %v12111_v2  ;;  %v5877_v60 = vmax.f32 %v5538_v57, 0.0  ;;  %v5857_v1 = vmax.f32 %v5528_v33, 0.0 }
 0x4c3   :  { %v5545_v63 = vpop.f32.mrf.mxu1 }
 0x4c4   :  { %v12086_v9 = vpop.f32.mrf.mxu0  ;;  %v5546_v50 = vadd.f32 %v5545_v63, %v12102_v49  ;;  %v5887_v3 = vmax.f32 %v5542_v52, 0.0 }
 0x4c5   :  { %v5547_v55 = vpop.f32.mrf.mxu1 }
 0x4c6   :  { %v12090_v30 = vpop.f32.mrf.mxu0  ;;  %v5548_v7 = vadd.f32 %v5547_v55, %v12102_v49  ;;  %v5896_v47 = vmax.f32 %v5546_v50, 0.0  ;;  %v5886_v55 = vmax.f32 %v5540_v42, 0.0 }
 0x4c7   :  { %v5549_v8 = vpop.f32.mrf.mxu1 }
 0x4c8   :  { %v12094_v61 = vpop.f32.mrf.mxu0  ;;  %v5550_v13 = vadd.f32 %v5549_v8, %v12098_v10  ;;  %v5897_v28 = vmax.f32 %v5548_v7, 0.0 }
 0x4c9   :  { %v5551_v0 = vpop.f32.mrf.mxu1 }
 0x4ca   :  { %v12096_v41 = vpop.f32.mrf.mxu0  ;;  %v5552_v39 = vadd.f32 %v5551_v0, %v12098_v10  ;;  %v5906_v38 = vmax.f32 %v5550_v13, 0.0 }
 0x4cb   :  { %v5555_v56 = vpop.f32.mrf.mxu1 }
 0x4cc   :  { %v12100_v6 = vpop.f32.mrf.mxu0  ;;  %v5556_v14 = vadd.f32 %v5555_v56, %v12092_v46  ;;  %v5907_v11 = vmax.f32 %v5552_v39, 0.0  ;;  %v5962_v8 = vpack.c.bf16 %v5906_v38, %v5896_v47  ;;  %v5867_v56 = vmax.f32 %v5532_v5, 0.0 }
 0x4cd   :  { %v5557_v34 = vpop.f32.mrf.mxu1  ;;  %v5876_v39 = vmax.f32 %v5536_v54, 0.0 }
 0x4ce   :  { %v12104_v51 = vpop.f32.mrf.mxu0  ;;  %v5558_v22 = vadd.f32 %v5557_v34, %v12092_v46  ;;  %v5916_v31 = vmax.f32 %v5556_v14, 0.0  ;;  %v5963_v35 = vpack.c.bf16 %v5907_v11, %v5897_v28  ;;  %v5953_v34 = vpack.c.bf16 %v5887_v3, %v5877_v60 }
 0x4cf   :  { %v5559_v53 = vpop.f32.mrf.mxu1  ;;  %v5866_v14 = vmax.f32 %v5530_v20, 0.0  ;;  %v5943_v7 = vpack.c.bf16 %v5867_v56, %v5857_v1  ;;  %v5611_v60 = vadd.f32 %v12104_v51, %v12118_v27 }
 0x4d0   :  { %v5560_v44 = vadd.f32 %v5559_v53, %v12088_v29  ;;  %v12109_v24 = vpop.f32.mrf.mxu0  ;;  %v5917_v32 = vmax.f32 %v5558_v22, 0.0  ;;  %v5526_v53 = vadd.f32 %v12080_v25, %v12136_v12 }
 0x4d1   :  { %v5561_v40 = vpop.f32.mrf.mxu1 }
 0x4d2   :  { %v5562_v48 = vadd.f32 %v5561_v40, %v12088_v29  ;;  %v12116_v17 = vpop.f32.mrf.mxu0  ;;  %v5926_v62 = vmax.f32 %v5560_v44, 0.0  ;;  %v5952_v40 = vpack.c.bf16 %v5886_v55, %v5876_v39  ;;  %v5856_v13 = vmax.f32 %v5526_v53, 0.0 }
 0x4d3   :  { %v12121_v15 = vpop.f32.mrf.mxu1  ;;  %v5615_v5 = vadd.f32 %v12116_v17, %v12111_v2  ;;  %v5613_v17 = vadd.f32 %v12109_v24, %v12111_v2  ;;  %v5609_v39 = vadd.f32 %v12100_v6, %v12118_v27  ;;  %v12201_v6 = vld [vmem:[%s13045_s5 + $0x8] sm:$0xff]  }
 0x4d4   :  { %v5927_v36 = vmax.f32 %v5562_v48, 0.0  ;;  %v12124_v45 = vpop.f32.mrf.mxu0  ;;  %v5972_v21 = vpack.c.bf16 %v5926_v62, %v5916_v31  ;;  %v5942_v50 = vpack.c.bf16 %v5866_v14, %v5856_v13  ;;  %v5603_v14 = vadd.f32 %v12094_v61, %v12130_v16 }
 0x4d5   :  { %v12127_v43 = vpop.f32.mrf.mxu1  ;;  %v5619_v47 = vadd.f32 %v12124_v45, %v12102_v49  ;;  %v5605_v45 = vadd.f32 %v12096_v41, %v12130_v16  ;;  %v5879_v41 = vmax.f32 %v5611_v60, 0.0 }
 0x4d6   :  { %v5973_v59 = vpack.c.bf16 %v5927_v36, %v5917_v32  ;;  %v5620_v26 = vpop.f32.mrf.mxu0 }
 0x4d7   :  { %v12133_v37 = vpop.f32.mrf.mxu1  ;;  %v5621_v31 = vadd.f32 %v5620_v26, %v12102_v49  ;;  %v5898_v24 = vmax.f32 %v5619_v47, 0.0 }
 0x4d8   :  { %v5622_v58 = vpop.f32.mrf.mxu0  ;;  %6050 = vmatprep.subr.bf16.mxu0 %v5973_v59 }
 0x4d9   :  { %v12139_v4 = vpop.f32.mrf.mxu1  ;;  %6051 = vmatpush1.bf16.msra.mxu0 %v5972_v21  ;;  %v5623_v59 = vadd.f32 %v5622_v58, %v12098_v10  ;;  %v12169_v21 = vld [vmem:[%s13045_s5] sm:$0xff]  }
 0x4da   :  { %v5624_v63 = vpop.f32.mrf.mxu0  ;;  %6052 = vmatprep.subr.bf16.mxu0 %v5963_v35 }
 0x4db   :  { %v12145_v0 = vpop.f32.mrf.mxu1  ;;  %v5625_v62 = vadd.f32 %v5624_v63, %v12098_v10  ;;  %v5899_v63 = vmax.f32 %v5621_v31, 0.0 }
 0x4dc   :  { %v5628_v18 = vpop.f32.mrf.mxu0 }
 0x4dd   :  { %v12149_v22 = vpop.f32.mrf.mxu1  ;;  %6053 = vmatpush1.bf16.msra.mxu0 %v5962_v8  ;;  %v5629_v32 = vadd.f32 %v5628_v18, %v12092_v46  ;;  %v5909_v3 = vmax.f32 %v5625_v62, 0.0  ;;  %v5908_v8 = vmax.f32 %v5623_v59, 0.0  ;;  %v5889_v18 = vmax.f32 %v5615_v5, 0.0 }
 0x4de   :  { %v5630_v44 = vpop.f32.mrf.mxu0  ;;  %6054 = vmatprep.subr.bf16.mxu0 %v5953_v34  ;;  %v5599_v62 = vadd.f32 %v12086_v9, %v12136_v12 }
 0x4df   :  { %v12151_v19 = vpop.f32.mrf.mxu1  ;;  %v5631_v52 = vadd.f32 %v5630_v44, %v12092_v46  ;;  %v5918_v58 = vmax.f32 %v5629_v32, 0.0  ;;  %v5965_v53 = vpack.c.bf16 %v5909_v3, %v5899_v63  ;;  %v5601_v44 = vadd.f32 %v12090_v30, %v12136_v12 }
 0x4e0   :  { %v5632_v48 = vpop.f32.mrf.mxu0  ;;  %v5955_v30 = vpack.c.bf16 %v5889_v18, %v5879_v41  ;;  %v5878_v32 = vmax.f32 %v5609_v39, 0.0  ;;  %v5858_v9 = vmax.f32 %v5599_v62, 0.0 }
 0x4e1   :  { %v5633_v25 = vadd.f32 %v5632_v48, %v12088_v29  ;;  %v12156_v11 = vpop.f32.mrf.mxu1  ;;  %6055 = vmatpush1.bf16.msra.mxu0 %v5952_v40  ;;  %v5919_v35 = vmax.f32 %v5631_v52, 0.0  ;;  %v5964_v48 = vpack.c.bf16 %v5908_v8, %v5898_v24  ;;  %v5869_v52 = vmax.f32 %v5605_v45, 0.0 }
 0x4e2   :  { %v5634_v36 = vpop.f32.mrf.mxu0  ;;  %6056 = vmatprep.subr.bf16.mxu0 %v5943_v7  ;;  %v5888_v7 = vmax.f32 %v5613_v17, 0.0  ;;  %v5688_v45 = vadd.f32 %v12156_v11, %v12111_v2 }
 0x4e3   :  { %v5635_v57 = vadd.f32 %v5634_v36, %v12088_v29  ;;  %v12161_v28 = vpop.f32.mrf.mxu1  ;;  %v5928_v42 = vmax.f32 %v5633_v25, 0.0  ;;  %v5859_v36 = vmax.f32 %v5601_v44, 0.0 }
 0x4e4   :  { %v12164_v38 = vpop.f32.mrf.mxu0 }
 0x4e5   :  { %v5929_v26 = vmax.f32 %v5635_v57, 0.0  ;;  %v5693_v54 = vpop.f32.mrf.mxu1  ;;  %6057 = vmatpush1.bf16.msra.mxu0 %v5942_v50  ;;  %v5974_v56 = vpack.c.bf16 %v5928_v42, %v5918_v58  ;;  %v5868_v50 = vmax.f32 %v5603_v14, 0.0  ;;  %v5954_v57 = vpack.c.bf16 %v5888_v7, %v5878_v32 }
 0x4e6   :  { %v12175_v33 = vpop.f32.mrf.mxu0  ;;  %v5694_v58 = vadd.f32 %v5693_v54, %v12102_v49  ;;  %v12230_v54 = vld [vmem:[%s13045_s5 + $0x10] sm:$0x1f]   ;;  %v5684_v14 = vadd.f32 %v12149_v22, %v12118_v27  ;;  %v5686_v7 = vadd.f32 %v12151_v19, %v12111_v2  ;;  %v5682_v22 = vadd.f32 %v12145_v0, %v12118_v27 }
 0x4e7   :  { %v5975_v20 = vpack.c.bf16 %v5929_v26, %v5919_v35  ;;  %v5695_v55 = vpop.f32.mrf.mxu1  ;;  %v5945_v35 = vpack.c.bf16 %v5869_v52, %v5859_v36 }
 0x4e8   :  { %v12181_v34 = vpop.f32.mrf.mxu0  ;;  %7618 = vmatmul.mubr.msk.bf16.vlgmr.msra.gmra.mxu0 %vm5478_vm10, %v12169_v21  ;;  %v5696_v17 = vadd.f32 %v5695_v55, %v12098_v10  ;;  %v5692_v55 = vadd.f32 %v12161_v28, %v12102_v49  ;;  %v5901_v11 = vmax.f32 %v5694_v58, 0.0  ;;  %v5678_v28 = vadd.f32 %v12139_v4, %v12130_v16 }
 0x4e9   :  { %6113 = vmatprep.subr.bf16.mxu1 %v5975_v20  ;;  %v5697_v51 = vpop.f32.mrf.mxu1  ;;  %6084 = vmatprep.mubr.bf16.mxu0 %v13768_v23  ;;  %v5944_v20 = vpack.c.bf16 %v5868_v50, %v5858_v9  ;;  %v5674_v4 = vadd.f32 %v12127_v43, %v12136_v12  ;;  %v5881_v50 = vmax.f32 %v5684_v14, 0.0  ;;  %v5672_v43 = vadd.f32 %v12121_v15, %v12136_v12 }
 0x4ea   :  { %v12190_v1 = vpop.f32.mrf.mxu0  ;;  %6114 = vmatpush1.bf16.msra.mxu1 %v5974_v56  ;;  %v5698_v59 = vadd.f32 %v5697_v51, %v12098_v10  ;;  %v5900_v36 = vmax.f32 %v5692_v55, 0.0 }
 0x4eb   :  { %6115 = vmatprep.subr.bf16.mxu1 %v5965_v53  ;;  %v5701_v40 = vpop.f32.mrf.mxu1  ;;  %v5861_v58 = vmax.f32 %v5674_v4, 0.0 }
 0x4ec   :  { %v12196_v13 = vpop.f32.mrf.mxu0  ;;  %v5702_v26 = vadd.f32 %v5701_v40, %v12092_v46  ;;  %v5911_v18 = vmax.f32 %v5698_v59, 0.0  ;;  %v5890_v59 = vmax.f32 %v5686_v7, 0.0 }
 0x4ed   :  { %v5703_v25 = vpop.f32.mrf.mxu1 }
 0x4ee   :  { %v12205_v61 = vpop.f32.mrf.mxu0  ;;  %6116 = vmatpush1.bf16.msra.mxu1 %v5964_v48  ;;  %v5704_v42 = vadd.f32 %v5703_v25, %v12092_v46  ;;  %v5920_v24 = vmax.f32 %v5702_v26, 0.0  ;;  %v5910_v48 = vmax.f32 %v5696_v17, 0.0  ;;  %v5967_v25 = vpack.c.bf16 %v5911_v18, %v5901_v11 }
 0x4ef   :  { %6117 = vmatprep.subr.bf16.mxu1 %v5955_v30  ;;  %v5705_v31 = vpop.f32.mrf.mxu1  ;;  %v5891_v30 = vmax.f32 %v5688_v45, 0.0  ;;  %v5880_v26 = vmax.f32 %v5682_v22, 0.0  ;;  %v5860_v18 = vmax.f32 %v5672_v43, 0.0  ;;  %v5755_v43 = vadd.f32 %v12196_v13, %v12118_v27 }
 0x4f0   :  { %v5706_v5 = vadd.f32 %v5705_v31, %v12088_v29  ;;  %v12210_v3 = vpop.f32.mrf.mxu0  ;;  %7619 = vmatmul.mubr.msk.bf16.gmra.mxu0 %vm5478_vm10, %v12201_v6  ;;  %v5921_v53 = vmax.f32 %v5704_v42, 0.0  ;;  %v5966_v0 = vpack.c.bf16 %v5910_v48, %v5900_v36  ;;  %v5745_v13 = vadd.f32 %v12164_v38, %v12136_v12 }
 0x4f1   :  { %v5707_v47 = vpop.f32.mrf.mxu1  ;;  %6094 = vmatprep.mubr.bf16.mxu0 %v13768_v23  ;;  %v5957_v9 = vpack.c.bf16 %v5891_v30, %v5881_v50 }
 0x4f2   :  { %v5708_v60 = vadd.f32 %v5707_v47, %v12088_v29  ;;  %v12218_v63 = vpop.f32.mrf.mxu0  ;;  %6118 = vmatpush1.bf16.msra.mxu1 %v5954_v57  ;;  %v5930_v8 = vmax.f32 %v5706_v5, 0.0  ;;  %v5676_v57 = vadd.f32 %v12133_v37, %v12130_v16  ;;  %v5871_v5 = vmax.f32 %v5678_v28, 0.0 }
 0x4f3   :  { %6119 = vmatprep.subr.bf16.mxu1 %v5945_v35  ;;  %v12221_v56 = vpop.f32.mrf.mxu1  ;;  %v5761_v30 = vadd.f32 %v12218_v63, %v12111_v2  ;;  %v5862_v38 = vmax.f32 %v5745_v13, 0.0 }
 0x4f4   :  { %v5931_v51 = vmax.f32 %v5708_v60, 0.0  ;;  %v12225_v39 = vpop.f32.mrf.mxu0  ;;  %v5976_v62 = vpack.c.bf16 %v5930_v8, %v5920_v24  ;;  %v5870_v37 = vmax.f32 %v5676_v57, 0.0  ;;  %v5947_v8 = vpack.c.bf16 %v5871_v5, %v5861_v58 }
 0x4f5   :  { %v12234_v44 = vpop.f32.mrf.mxu1  ;;  %v5765_v50 = vadd.f32 %v12225_v39, %v12102_v49 }
 0x4f6   :  { %v5977_v41 = vpack.c.bf16 %v5931_v51, %v5921_v53  ;;  %v5766_v40 = vpop.f32.mrf.mxu0  ;;  %6120 = vmatpush1.bf16.msra.mxu1 %v5944_v20  ;;  %v5956_v20 = vpack.c.bf16 %v5890_v59, %v5880_v26  ;;  %v5946_v11 = vpack.c.bf16 %v5870_v37, %v5860_v18 }
 0x4f7   :  { %v12240_v52 = vpop.f32.mrf.mxu1  ;;  %v5902_v26 = vmax.f32 %v5765_v50, 0.0 }
 0x4f8   :  { %v5768_v32 = vpop.f32.mrf.mxu0  ;;  %7620 = vmatmul.mubr.msk.bf16.gmra.mxu0 %vm5478_vm10, %v12230_v54  ;;  %6176 = vmatprep.subr.bf16.mxu0 %v5977_v41  ;;  %v5767_v41 = vadd.f32 %v5766_v40, %v12102_v49  ;;  %v5757_v40 = vadd.f32 %v12205_v61, %v12118_v27 }
 0x4f9   :  { %7621 = vmatmul.mubr.msk.bf16.vlgmr.msra.gmra.mxu1 %vm5478_vm10, %v12169_v21  ;;  %v12250_v19 = vpop.f32.mrf.mxu1  ;;  %6177 = vmatpush1.bf16.msra.mxu0 %v5976_v62  ;;  %v5769_v62 = vadd.f32 %v5768_v32, %v12098_v10  ;;  %v5759_v32 = vadd.f32 %v12210_v3, %v12111_v2  ;;  %v5747_v3 = vadd.f32 %v12175_v33, %v12136_v12 }
 0x4fa   :  { %v5770_v31 = vpop.f32.mrf.mxu0  ;;  %6178 = vmatprep.subr.bf16.mxu0 %v5967_v25  ;;  %6147 = vmatprep.mubr.bf16.mxu1 %v13768_v23  ;;  %v5903_v57 = vmax.f32 %v5767_v41, 0.0  ;;  %v5883_v58 = vmax.f32 %v5757_v40, 0.0 }
 0x4fb   :  { %v12257_v42 = vpop.f32.mrf.mxu1  ;;  %6200 = vmatprep.mubr.bf16.mxu0 %v13768_v23  ;;  %v5771_v53 = vadd.f32 %v5770_v31, %v12098_v10  ;;  %v5912_v5 = vmax.f32 %v5769_v62, 0.0  ;;  %v5892_v37 = vmax.f32 %v5759_v32, 0.0 }
 0x4fc   :  { %v5774_v35 = vpop.f32.mrf.mxu0 }
 0x4fd   :  { %v12262_v47 = vpop.f32.mrf.mxu1  ;;  %6179 = vmatpush1.bf16.msra.mxu0 %v5966_v0  ;;  %v5775_v24 = vadd.f32 %v5774_v35, %v12092_v46  ;;  %v5913_v25 = vmax.f32 %v5771_v53, 0.0  ;;  %v5893_v35 = vmax.f32 %v5761_v30, 0.0  ;;  %v5882_v53 = vmax.f32 %v5755_v43, 0.0 }
 0x4fe   :  { %v5776_v60 = vpop.f32.mrf.mxu0  ;;  %6180 = vmatprep.subr.bf16.mxu0 %v5957_v9  ;;  %v5751_v9 = vadd.f32 %v12190_v1, %v12130_v16  ;;  %v5749_v1 = vadd.f32 %v12181_v34, %v12130_v16 }
 0x4ff   :  { %v12264_v17 = vpop.f32.mrf.mxu1  ;;  %v5777_v51 = vadd.f32 %v5776_v60, %v12092_v46  ;;  %v5922_v31 = vmax.f32 %v5775_v24, 0.0  ;;  %v5969_v39 = vpack.c.bf16 %v5913_v25, %v5903_v57  ;;  %v5958_v34 = vpack.c.bf16 %v5892_v37, %v5882_v53 }
 0x500   :  { %v5778_v45 = vpop.f32.mrf.mxu0  ;;  %v5872_v33 = vmax.f32 %v5749_v1, 0.0 }
 0x501   :  { %v5779_v15 = vadd.f32 %v5778_v45, %v12088_v29  ;;  %7622 = vmatmul.mubr.msk.bf16.gmra.mxu1 %vm5478_vm10, %v12201_v6  ;;  %v12271_v55 = vpop.f32.mrf.mxu1  ;;  %6181 = vmatpush1.bf16.msra.mxu0 %v5956_v20  ;;  %v5923_v22 = vmax.f32 %v5777_v51, 0.0  ;;  %v5968_v20 = vpack.c.bf16 %v5912_v5, %v5902_v26  ;;  %v5959_v45 = vpack.c.bf16 %v5893_v35, %v5883_v58 }
 0x502   :  { %v5780_v14 = vpop.f32.mrf.mxu0  ;;  %6182 = vmatprep.subr.bf16.mxu0 %v5947_v8  ;;  %6157 = vmatprep.mubr.bf16.mxu1 %v13768_v23  ;;  %v5873_v8 = vmax.f32 %v5751_v9, 0.0  ;;  %v5863_v51 = vmax.f32 %v5747_v3, 0.0  ;;  %v5948_v25 = vpack.c.bf16 %v5872_v33, %v5862_v38  ;;  %v5834_v50 = vadd.f32 %v12271_v55, %v12111_v2 }
 0x503   :  { %v5781_v7 = vadd.f32 %v5780_v14, %v12088_v29  ;;  %v12277_v48 = vpop.f32.mrf.mxu1  ;;  %v5932_v28 = vmax.f32 %v5779_v15, 0.0  ;;  %v5824_v55 = vadd.f32 %v12250_v19, %v12130_v16  ;;  %v5822_v19 = vadd.f32 %v12240_v52, %v12130_v16 }
 0x504   :  { %v5949_v41 = vpack.c.bf16 %v5873_v8, %v5863_v51 }
 0x505   :  { %v5933_v36 = vmax.f32 %v5781_v7, 0.0  ;;  %v5839_v4 = vpop.f32.mrf.mxu1  ;;  %6183 = vmatpush1.bf16.msra.mxu0 %v5946_v11  ;;  %v5978_v63 = vpack.c.bf16 %v5932_v28, %v5922_v31 }
 0x506   :  { %v5840_v28 = vadd.f32 %v5839_v4, %v12102_v49  ;;  %v5830_v4 = vadd.f32 %v12262_v47, %v12118_v27 }
 0x507   :  { %v5979_v59 = vpack.c.bf16 %v5933_v36, %v5923_v22  ;;  %v5841_v0 = vpop.f32.mrf.mxu1 }
 0x508   :  { %7624 = vmatmul.mubr.msk.bf16.vlgmr.msra.gmra.mxu0 %vm5478_vm10, %v12169_v21  ;;  %v5842_v22 = vadd.f32 %v5841_v0, %v12098_v10 }
 0x509   :  { %7623 = vmatmul.mubr.msk.bf16.gmra.mxu1 %vm5478_vm10, %v12230_v54  ;;  %6239 = vmatprep.subr.bf16.mxu1 %v5979_v59  ;;  %v5843_v61 = vpop.f32.mrf.mxu1 }
 0x50a   :  { %6240 = vmatpush1.bf16.msra.mxu1 %v5978_v63  ;;  %6210 = vmatprep.mubr.bf16.mxu0 %v13768_v23  ;;  %v5844_v24 = vadd.f32 %v5843_v61, %v12098_v10  ;;  %v5832_v10 = vadd.f32 %v12264_v17, %v12111_v2  ;;  %v5914_v0 = vmax.f32 %v5842_v22, 0.0  ;;  %v5895_v63 = vmax.f32 %v5834_v50, 0.0 }
 0x50b   :  { %6241 = vmatprep.subr.bf16.mxu1 %v5969_v39  ;;  %v5847_v60 = vpop.f32.mrf.mxu1  ;;  %6263 = vmatprep.mubr.bf16.mxu1 %v13768_v23  ;;  %v5820_v2 = vadd.f32 %v12234_v44, %v12136_v12  ;;  %v5885_v17 = vmax.f32 %v5830_v4, 0.0  ;;  %v5818_v39 = vadd.f32 %v12221_v56, %v12136_v12  ;;  %v5874_v44 = vmax.f32 %v5822_v19, 0.0 }
 0x50c   :  { %v5848_v7 = vadd.f32 %v5847_v60, %v12092_v46  ;;  %v5915_v31 = vmax.f32 %v5844_v24, 0.0  ;;  %v7919_v12 = vmov 0.0  }
 0x50d   :  { %v5849_v18 = vpop.f32.mrf.mxu1  ;;  %v5865_v43 = vmax.f32 %v5820_v2, 0.0  ;;  %v5864_v1 = vmax.f32 %v5818_v39, 0.0  ;;  %7232 = vst [vmem:[%s13046_s7 + $0x190] sm:$0xfc] %v7919_v12  ;;  %7233 = vst [vmem:[%s13046_s7 + $0x198] sm:$0xfc] %v7919_v12 }
 0x50e   :  { %6242 = vmatpush1.bf16.msra.mxu1 %v5968_v20  ;;  %v5850_v14 = vadd.f32 %v5849_v18, %v12092_v46  ;;  %v5838_v46 = vadd.f32 %v12277_v48, %v12102_v49  ;;  %v5924_v59 = vmax.f32 %v5848_v7, 0.0  ;;  %v5828_v49 = vadd.f32 %v12257_v42, %v12118_v27  ;;  %7234 = vst [vmem:[%s13046_s7 + $0x1a0] sm:$0xfc] %v7919_v12 }
 0x50f   :  { %6243 = vmatprep.subr.bf16.mxu1 %v5959_v45  ;;  %v5851_v15 = vpop.f32.mrf.mxu1  ;;  %v5894_v48 = vmax.f32 %v5832_v10, 0.0  ;;  %v5875_v27 = vmax.f32 %v5824_v55, 0.0  ;;  %v5961_v42 = vpack.c.bf16 %v5895_v63, %v5885_v17  ;;  %v5950_v16 = vpack.c.bf16 %v5874_v44, %v5864_v1  ;;  %7235 = vst [vmem:[%s13046_s7 + $0x1a8] sm:$0xfc] %v7919_v12  ;;  %7236 = vst [vmem:[%s13046_s7 + $0x1b0] sm:$0xfc] %v7919_v12 }
 0x510   :  { %v5852_v11 = vadd.f32 %v5851_v15, %v12088_v29  ;;  %7625 = vmatmul.mubr.msk.bf16.gmra.mxu0 %vm5478_vm10, %v12201_v6  ;;  %v5925_v40 = vmax.f32 %v5850_v14, 0.0  ;;  %v5904_v47 = vmax.f32 %v5838_v46, 0.0  ;;  %v5884_v61 = vmax.f32 %v5828_v49, 0.0  ;;  %7237 = vst [vmem:[%s13046_s7 + $0x1b8] sm:$0xfc] %v7919_v12 }
 0x511   :  { %v5853_v62 = vpop.f32.mrf.mxu1  ;;  %6220 = vmatprep.mubr.bf16.mxu0 %v13768_v23  ;;  %v5951_v3 = vpack.c.bf16 %v5875_v27, %v5865_v43  ;;  %7238 = vst [vmem:[%s13046_s7 + $0x1c0] sm:$0xfc] %v7919_v12  ;;  %7239 = vst [vmem:[%s13046_s7 + $0x1c8] sm:$0xfc] %v7919_v12 }
 0x512   :  { %v5854_v30 = vadd.f32 %v5853_v62, %v12088_v29  ;;  %6244 = vmatpush1.bf16.msra.mxu1 %v5958_v34  ;;  %v5934_v36 = vmax.f32 %v5852_v11, 0.0  ;;  %v5905_v29 = vmax.f32 %v5840_v28, 0.0  ;;  %v5970_v35 = vpack.c.bf16 %v5914_v0, %v5904_v47  ;;  %7240 = vst [vmem:[%s13046_s7 + $0x1d0] sm:$0xfc] %v7919_v12  ;;  %7241 = vst.msk [vmem:[%s13046_s7 + $0x1d8] sm:$0xfc] %vm6704_vm11, %v7919_v12 }
 0x513   :  { %6245 = vmatprep.subr.bf16.mxu1 %v5949_v41  ;;  %v5960_v26 = vpack.c.bf16 %v5894_v48, %v5884_v61 }
 0x514   :  { %v5935_v57 = vmax.f32 %v5854_v30, 0.0  ;;  %v5980_v5 = vpack.c.bf16 %v5934_v36, %v5924_v59  ;;  %v5971_v9 = vpack.c.bf16 %v5915_v31, %v5905_v29 }
 0x516   :  { %v5981_v32 = vpack.c.bf16 %v5935_v57, %v5925_v40  ;;  %6246 = vmatpush1.bf16.msra.mxu1 %v5948_v25 }
 0x518   :  { %7626 = vmatmul.mubr.msk.bf16.gmra.mxu0 %vm5478_vm10, %v12230_v54  ;;  %6302 = vmatprep.subr.bf16.mxu0 %v5981_v32 }
 0x519   :  { %7627 = vmatmul.mubr.msk.bf16.vlgmr.msra.gmra.mxu1 %vm5478_vm10, %v12169_v21  ;;  %6303 = vmatpush1.bf16.msra.mxu0 %v5980_v5 }
 0x51a   :  { %6304 = vmatprep.subr.bf16.mxu0 %v5971_v9  ;;  %6273 = vmatprep.mubr.bf16.mxu1 %v13768_v23 }
 0x51b   :  { %6326 = vmatprep.mubr.bf16.mxu0 %v13768_v23 }
 0x51d   :  { %6305 = vmatpush1.bf16.msra.mxu0 %v5970_v35 }
 0x51e   :  { %6306 = vmatprep.subr.bf16.mxu0 %v5961_v42 }
 0x521   :  { %7628 = vmatmul.mubr.msk.bf16.gmra.mxu1 %vm5478_vm10, %v12201_v6  ;;  %6307 = vmatpush1.bf16.msra.mxu0 %v5960_v26 }
 0x522   :  { %6308 = vmatprep.subr.bf16.mxu0 %v5951_v3  ;;  %6283 = vmatprep.mubr.bf16.mxu1 %v13768_v23 }
 0x525   :  { %6309 = vmatpush1.bf16.msra.mxu0 %v5950_v16 }
 0x528   :  { %7630 = vmatmul.mubr.msk.bf16.vlgmr.msra.gmra.mxu0 %vm5478_vm10, %v12169_v21  ;;  %v12389_v21 = vpop.permute.xlu0 %6000 }
 0x529   :  { %7629 = vmatmul.mubr.msk.bf16.gmra.mxu1 %vm5478_vm10, %v12230_v54  ;;  %6336 = vmatprep.mubr.bf16.mxu0 %v13768_v23 }
 0x52c   :  { %v12401_v8 = vpop.permute.xlu0 %6010 }
 0x530   :  { %7631 = vmatmul.mubr.msk.bf16.gmra.mxu0 %vm5478_vm10, %v12201_v6  ;;  %v12409_v11 = vpop.permute.xlu0 %6005 }
 0x531   :  { %6346 = vmatprep.mubr.bf16.mxu0 %v13768_v23  ;;  %v12387_v23 = vpop.permute.xlu1 %5995 }
 0x535   :  { %v12391_v6 = vpop.permute.xlu1 %5990 }
 0x538   :  { %7632 = vmatmul.mubr.msk.bf16.gmra.mxu0 %vm5478_vm10, %v12230_v54 }
 0x539   :  { %v12429_v0 = vpop.permute.xlu1 %6015 }
 0x5a8   :  { %v6076_v56 = vpop.f32.mrf.mxu0 }
 0x5a9   :  { %v6077_v54 = vadd.f32 %v6076_v56, %v12391_v6 }
 0x5aa   :  { %v6078_v52 = vpop.f32.mrf.mxu0 }
 0x5ab   :  { %v7633_v58 = vmul.f32 -1.442695, %v6077_v54  ;;  %v6079_v60 = vadd.f32 %v6078_v52, %v12391_v6 }
 0x5ac   :  { %v6080_v37 = vpop.f32.mrf.mxu0 }
 0x5ad   :  { %7780 = vpow2.f32 %v7633_v58  ;;  %v7634_v20 = vmul.f32 -1.442695, %v6079_v60  ;;  %v6081_v13 = vadd.f32 %v6080_v37, %v12387_v23 }
 0x5ae   :  { %v6082_v45 = vpop.f32.mrf.mxu0 }
 0x5af   :  { %7782 = vpow2.f32 %v7634_v20  ;;  %v7643_v18 = vmul.f32 -1.442695, %v6081_v13  ;;  %v6083_v53 = vadd.f32 %v6082_v45, %v12387_v23 }
 0x5b0   :  { %v6086_v51 = vpop.f32.mrf.mxu0 }
 0x5b1   :  { %7784 = vpow2.f32 %v7643_v18  ;;  %v7644_v33 = vmul.f32 -1.442695, %v6083_v53  ;;  %v6087_v15 = vadd.f32 %v6086_v51, %v12389_v21 }
 0x5b2   :  { %v6088_v34 = vpop.f32.mrf.mxu0 }
 0x5b3   :  { %7786 = vpow2.f32 %v7644_v33  ;;  %v7653_v24 = vmul.f32 -1.442695, %v6087_v15  ;;  %6865 = vst [vmem:[%s13046_s7 + $0xa0] sm:$0xf0] %v6087_v15  ;;  %v6089_v14 = vadd.f32 %v6088_v34, %v12389_v21 }
 0x5b4   :  { %v6090_v38 = vpop.f32.mrf.mxu0 }
 0x5b5   :  { %7788 = vpow2.f32 %v7653_v24  ;;  %v7654_v41 = vmul.f32 -1.442695, %v6089_v14  ;;  %6866 = vst [vmem:[%s13046_s7 + $0xa8] sm:$0xf0] %v6089_v14  ;;  %v6091_v7 = vadd.f32 %v6090_v38, %v12409_v11 }
 0x5b6   :  { %v6092_v62 = vpop.f32.mrf.mxu0 }
 0x5b7   :  { %7790 = vpow2.f32 %v7654_v41  ;;  %6876 = vst [vmem:[%s13046_s7 + $0xf0] sm:$0xff] %v6091_v7  ;;  %v6093_v28 = vadd.f32 %v6092_v62, %v12409_v11 }
 0x5b8   :  { %v6096_v30 = vpop.f32.mrf.mxu0 }
 0x5b9   :  { %6877 = vst [vmem:[%s13046_s7 + $0xf8] sm:$0xff] %v6093_v28  ;;  %v6097_v25 = vadd.f32 %v6096_v30, %v12401_v8  ;;  %v6139_v22 = vpop.f32.mrf.mxu1 }
 0x5ba   :  { %v7781_v36 = vpop.eup %7780  ;;  %v6140_v50 = vadd.f32 %v6139_v22, %v12391_v6  ;;  %v6098_v31 = vpop.f32.mrf.mxu0 }
 0x5bb   :  { %v6447_v40 = vadd.f32 1.0, %v7781_v36  ;;  %v6725_v57 = vrot.slane %v6097_v25, 7  ;;  %6886 = vst [vmem:[%s13046_s7 + $0x140] sm:$0x3f] %v6097_v25  ;;  %v6099_v46 = vadd.f32 %v6098_v31, %v12401_v8  ;;  %v6141_v59 = vpop.f32.mrf.mxu1 }
 0x5bc   :  { %v7783_v4 = vpop.eup %7782  ;;  %v7635_v29 = vmul.f32 -1.442695, %v6140_v50  ;;  %v6142_v32 = vadd.f32 %v6141_v59, %v12391_v6  ;;  %v6100_v10 = vpop.f32.mrf.mxu0 }
 0x5bd   :  { %7792 = vrcp.f32 %v6447_v40  ;;  %v6448_v5 = vadd.f32 1.0, %v7783_v4  ;;  %vm6745_vm12 = vcmp.gt.f32.partialorder %v6097_v25, %v6725_v57  ;;  %v6726_v55 = vrot.slane %v6099_v46, 7  ;;  %6887 = vst [vmem:[%s13046_s7 + $0x148] sm:$0x3f] %v6099_v46  ;;  %v6143_v63 = vpop.f32.mrf.mxu1 }
 0x5be   :  { %v7785_v9 = vpop.eup %7784  ;;  %v12435_v49 = vsel %vm6745_vm12, 1.0, %v7919_v12  ;;  %7794 = vpow2.f32 %v7635_v29  ;;  %v7636_v47 = vmul.f32 -1.442695, %v6142_v32  ;;  %v6101_v2 = vadd.f32 %v6100_v10, %v12429_v0  ;;  %v6102_v17 = vpop.f32.mrf.mxu0 }
 0x5bf   :  { %7796 = vrcp.f32 %v6448_v5  ;;  %v6457_v19 = vadd.f32 1.0, %v7785_v9  ;;  %vm6746_vm13 = vcmp.gt.f32.partialorder %v6099_v46, %v6726_v55  ;;  %v6144_v48 = vadd.f32 %v6143_v63, %v12387_v23  ;;  %v6145_v35 = vpop.f32.mrf.mxu1 }
 0x5c0   :  { %v7787_v27 = vpop.eup %7786  ;;  %v12440_v42 = vsel %vm6746_vm13, 1.0, %v7919_v12  ;;  %7798 = vpow2.f32 %v7636_v47  ;;  %v6785_v39 = vrot.slane %v6101_v2, 7  ;;  %v6103_v61 = vadd.f32 %v6102_v17, %v12429_v0 }
 0x5c1   :  { %7800 = vrcp.f32 %v6457_v19  ;;  %v6458_v43 = vadd.f32 1.0, %v7787_v27  ;;  %v6907_v44 = vcombine.high %v12435_v49, %v12440_v42  ;;  %v7645_v26 = vmul.f32 -1.442695, %v6144_v48  ;;  %v6149_v3 = vpop.f32.mrf.mxu1 }
 0x5c2   :  { %v7789_v1 = vpop.eup %7788  ;;  %vm6805_vm14 = vcmp.gt.f32.partialorder %v6101_v2, %v6785_v39  ;;  %v6786_v16 = vrot.slane %v6103_v61, 7  ;;  %v6146_v56 = vadd.f32 %v6145_v35, %v12387_v23  ;;  %v6150_v54 = vadd.f32 %v6149_v3, %v12389_v21 }
 0x5c3   :  { %7802 = vrcp.f32 %v6458_v43  ;;  %v6467_v52 = vadd.f32 1.0, %v7789_v1  ;;  %v12448_v58 = vsel %vm6805_vm14, 1.0, %v7919_v12  ;;  %v6151_v60 = vpop.f32.mrf.mxu1  ;;  %v7920_v4 = vmov 1966171168  }
 0x5c4   :  { %v7791_v37 = vpop.eup %7790  ;;  %7804 = vpow2.f32 %v7645_v26  ;;  %vm6806_vm15 = vcmp.gt.f32.partialorder %v6103_v61, %v6786_v16  ;;  %v7646_v20 = vmul.f32 -1.442695, %v6146_v56  ;;  %v7655_v13 = vmul.f32 -1.442695, %v6150_v54  ;;  %6867 = vst [vmem:[%s13046_s7 + $0xb0] sm:$0xf0] %v6150_v54 }
 0x5c5   :  { %7806 = vrcp.f32 %v6467_v52  ;;  %v6468_v45 = vadd.f32 1.0, %v7791_v37  ;;  %v12454_v18 = vsel %vm6806_vm15, 1.0, %v7919_v12  ;;  %v6152_v53 = vadd.f32 %v6151_v60, %v12389_v21  ;;  %v6153_v51 = vpop.f32.mrf.mxu1 }
 0x5c6   :  { %v6995_v33 = vcombine.low %v12448_v58, %v12454_v18  ;;  %7808 = vpow2.f32 %v7646_v20  ;;  %v6154_v15 = vadd.f32 %v6153_v51, %v12409_v11  ;;  %v12483_v29 = vunpack.c.l.s4 %v7920_v4 }
 0x5c7   :  { %7810 = vrcp.f32 %v6468_v45  ;;  %v7656_v34 = vmul.f32 -1.442695, %v6152_v53  ;;  %6868 = vst [vmem:[%s13046_s7 + $0xb8] sm:$0xf0] %v6152_v53  ;;  %v6155_v24 = vpop.f32.mrf.mxu1  ;;  %v6914_v55 = vlaneseq  ;;  %vm6874_vm14 = vcmask 31748  }
 0x5c8   :  { %7812 = vpow2.f32 %v7655_v13  ;;  %6878 = vst [vmem:[%s13046_s7 + $0x100] sm:$0xff] %v6154_v15  ;;  %v6156_v14 = vadd.f32 %v6155_v24, %v12409_v11  ;;  %v6202_v38 = vpop.f32.mrf.mxu0  ;;  %v6913_v39 = vunpack.c.0.s8 %v12483_v29 }
 0x5c9   :  { %7814 = vpow2.f32 %v7656_v34  ;;  %v6159_v41 = vpop.f32.mrf.mxu1  ;;  %v6203_v7 = vadd.f32 %v6202_v38, %v12391_v6  ;;  %v6915_v16 = vshrl.u32 %v6914_v55, 7 }
 0x5ca   :  { %v7793_v62 = vpop.eup %7792  ;;  %6879 = vst [vmem:[%s13046_s7 + $0x108] sm:$0xff] %v6156_v14  ;;  %v6160_v28 = vadd.f32 %v6159_v41, %v12401_v8  ;;  %v6204_v30 = vpop.f32.mrf.mxu0 }
 0x5cb   :  { %v7795_v25 = vpop.eup %7794  ;;  %6835 = vst [vmem:[%s13046_s7] sm:$0xff] %v7793_v62  ;;  %v7637_v22 = vmul.f32 -1.442695, %v6203_v7  ;;  %v6161_v36 = vpop.f32.mrf.mxu1  ;;  %v6205_v50 = vadd.f32 %v6204_v30, %v12391_v6 }
 0x5cc   :  { %v7797_v31 = vpop.eup %7796  ;;  %v6449_v40 = vadd.f32 1.0, %v7795_v25  ;;  %6888 = vst [vmem:[%s13046_s7 + $0x150] sm:$0x3f] %v6160_v28  ;;  %v6162_v57 = vadd.f32 %v6161_v36, %v12401_v8  ;;  %v6206_v46 = vpop.f32.mrf.mxu0  ;;  %v6727_v2 = vrot.slane %v6160_v28, 7 }
 0x5cd   :  { %v7799_v59 = vpop.eup %7798  ;;  %6836 = vst [vmem:[%s13046_s7 + $0x8] sm:$0xff] %v7797_v31  ;;  %7816 = vpow2.f32 %v7637_v22  ;;  %v7638_v32 = vmul.f32 -1.442695, %v6205_v50  ;;  %v6207_v10 = vadd.f32 %v6206_v46, %v12387_v23  ;;  %v6163_v54 = vpop.f32.mrf.mxu1 }
 0x5ce   :  { %v7801_v5 = vpop.eup %7800  ;;  %7818 = vrcp.f32 %v6449_v40  ;;  %v6450_v63 = vadd.f32 1.0, %v7799_v59  ;;  %6889 = vst [vmem:[%s13046_s7 + $0x158] sm:$0x3f] %v6162_v57  ;;  %v12489_v9 = vpop.f32.mrf.mxu0  ;;  %v6728_v61 = vrot.slane %v6162_v57, 7  ;;  %vm12510_vm3 = vcmp.gt.f32.partialorder %v6160_v28, %v6727_v2 }
 0x5cf   :  { %v6538_v47 = vsel %vm6537_vm0, %v7801_v5, -inf  ;;  %6845 = vst [vmem:[%s13046_s7 + $0x50] sm:$0xff] %v7801_v5  ;;  %7820 = vpow2.f32 %v7638_v32  ;;  %v7647_v43 = vmul.f32 -1.442695, %v6207_v10  ;;  %v6622_v37 = vsel %vm6621_vm1, %v7801_v5, -inf  ;;  %v6165_v36 = vpop.f32.mrf.mxu1 }
 0x5d0   :  { %v7803_v17 = vpop.eup %7802  ;;  %v6539_v19 = vmax.f32 %v7793_v62, %v6538_v47  ;;  %7822 = vrcp.f32 %v6450_v63  ;;  %v12495_v48 = vpop.f32.mrf.mxu0  ;;  %vm12519_vm4 = vcmp.gt.f32.partialorder %v6162_v57, %v6728_v61  ;;  %v12526_v46 = vadd.f32 %v6163_v54, %v12429_v0 }
 0x5d1   :  { %v7805_v35 = vpop.eup %7804  ;;  %v6546_v27 = vsel %vm6537_vm0, %v7803_v17, -inf  ;;  %6846 = vst [vmem:[%s13046_s7 + $0x58] sm:$0xff] %v7803_v17  ;;  %7824 = vpow2.f32 %v7647_v43  ;;  %v6632_v14 = vsel %vm6621_vm1, %v7803_v17, -inf  ;;  %v12528_v32 = vsub.s32 %v6913_v39, %v6915_v16 }
 0x5d2   :  { %v7807_v26 = vpop.eup %7806  ;;  %v6540_v3 = vrot.slane %v6539_v19, 4  ;;  %v6547_v1 = vmax.f32 %v7797_v31, %v6546_v27  ;;  %v6459_v56 = vadd.f32 1.0, %v7805_v35  ;;  %v12503_v52 = vpop.f32.mrf.mxu0  ;;  %v12533_v10 = vsel %vm12510_vm3, 1.0, %v7919_v12 }
 0x5d3   :  { %v7809_v60 = vpop.eup %7808  ;;  %v6624_v20 = vsel %vm6623_vm2, %v7807_v26, -inf  ;;  %6855 = vst [vmem:[%s13046_s7 + $0xa0] sm:$0xf] %v7807_v26  ;;  %v6166_v5 = vadd.f32 %v6165_v36, %v12429_v0  ;;  %v7666_v43 = vsel %vm12519_vm4, 1.0, %v7919_v12  ;;  %v6209_v26 = vadd.f32 %v12489_v9, %v12387_v23 }
 0x5d4   :  { %v7811_v45 = vpop.eup %7810  ;;  %v6541_v53 = vmax.f32 %v6539_v19, %v6540_v3  ;;  %v6548_v51 = vrot.slane %v6547_v1, 4  ;;  %v6625_v15 = vmax.f32 %v6622_v37, %v6624_v20  ;;  %7826 = vrcp.f32 %v6459_v56  ;;  %v6216_v34 = vpop.f32.mrf.mxu0 }
 0x5d5   :  { %v7813_v24 = vpop.eup %7812  ;;  %v6633_v38 = vsel %vm6623_vm2, %v7811_v45, -inf  ;;  %6856 = vst [vmem:[%s13046_s7 + $0xa8] sm:$0xf] %v7811_v45  ;;  %v6460_v41 = vadd.f32 1.0, %v7809_v60  ;;  %v6787_v60 = vrot.slane %v12526_v46, 7  ;;  %v6788_v13 = vrot.slane %v6166_v5, 7 }
 0x5d6   :  { %v7815_v62 = vpop.eup %7814  ;;  %v6542_v28 = vrot.slane %v6541_v53, 2  ;;  %v6549_v30 = vmax.f32 %v6547_v1, %v6548_v51  ;;  %v6626_v25 = vrot.slane %v6625_v15, 4  ;;  %v6634_v22 = vmax.f32 %v6632_v14, %v6633_v38  ;;  %v12523_v50 = vpop.f32.mrf.mxu0 }
 0x5d7   :  { %7828 = vrcp.f32 %v6460_v41  ;;  %v6469_v31 = vadd.f32 1.0, %v7813_v24  ;;  %v6470_v40 = vadd.f32 1.0, %v7815_v62  ;;  %v7648_v45 = vmul.f32 -1.442695, %v6209_v26 }
 0x5d8   :  { %v6543_v59 = vmax.f32 %v6541_v53, %v6542_v28  ;;  %v6550_v4 = vrot.slane %v6549_v30, 2  ;;  %v6627_v57 = vmax.f32 %v6625_v15, %v6626_v25  ;;  %v6635_v29 = vrot.slane %v6634_v22, 4  ;;  %v6222_v27 = vpop.f32.mrf.mxu0 }
 0x5d9   :  { %7830 = vrcp.f32 %v6469_v31  ;;  %v12536_v63 = vpop.f32.mrf.mxu1  ;;  %v6213_v38 = vadd.f32 %v12495_v48, %v12389_v21  ;;  %v6215_v41 = vadd.f32 %v12503_v52, %v12389_v21  ;;  %v6217_v7 = vadd.f32 %v6216_v34, %v12409_v11 }
 0x5da   :  { %v7817_v47 = vpop.eup %7816  ;;  %v6544_v2 = vrot.slane %v6543_v59, 1  ;;  %v6551_v17 = vmax.f32 %v6549_v30, %v6550_v4  ;;  %v6628_v19 = vrot.slane %v6627_v57, 2  ;;  %v6636_v35 = vmax.f32 %v6634_v22, %v6635_v29  ;;  %v6224_v14 = vpop.f32.mrf.mxu0 }
 0x5db   :  { %v7819_v61 = vpop.eup %7818  ;;  %7832 = vrcp.f32 %v6470_v40  ;;  %v6451_v39 = vadd.f32 1.0, %v7817_v47  ;;  %v12543_v3 = vpop.f32.mrf.mxu1  ;;  %v12571_v22 = vrot.slane %v6907_v44, %v12528_v32  ;;  %v6908_v48 = vcombine.high %v12533_v10, %v7666_v43  ;;  %6869 = vst [vmem:[%s13046_s7 + $0xc0] sm:$0xf0] %v6213_v38  ;;  %6870 = vst [vmem:[%s13046_s7 + $0xc8] sm:$0xf0] %v6215_v41 }
 0x5dc   :  { %v7821_v1 = vpop.eup %7820  ;;  %v6552_v16 = vrot.slane %v6551_v17, 1  ;;  %v6629_v56 = vmax.f32 %v6627_v57, %v6628_v19  ;;  %v6637_v54 = vrot.slane %v6636_v35, 2  ;;  %6837 = vst [vmem:[%s13046_s7 + $0x10] sm:$0xff] %v7819_v61  ;;  %v12551_v9 = vmax.f32 %v6543_v59, %v6544_v2  ;;  %6880 = vst [vmem:[%s13046_s7 + $0x110] sm:$0xff] %v6217_v7  ;;  %v12595_v59 = vpop.f32.mrf.mxu0 }
 0x5dd   :  { %v7823_v37 = vpop.eup %7822  ;;  %7834 = vrcp.f32 %v6451_v39  ;;  %v6452_v20 = vadd.f32 1.0, %v7821_v1  ;;  %v12549_v53 = vpop.f32.mrf.mxu1  ;;  %vm12574_vm5 = vcmp.gt.f32.partialorder %v6166_v5, %v6788_v13  ;;  %v7657_v34 = vmul.f32 -1.442695, %v6213_v38 }
 0x5de   :  { %v12553_v51 = vmax.f32 %v6551_v17, %v6552_v16  ;;  %v6630_v15 = vrot.slane %v6629_v56, 1  ;;  %v6638_v24 = vmax.f32 %v6636_v35, %v6637_v54  ;;  %6838 = vst [vmem:[%s13046_s7 + $0x18] sm:$0xff] %v7823_v37  ;;  %v7825_v28 = vpop.eup %7824  ;;  %v7658_v40 = vmul.f32 -1.442695, %v6215_v41  ;;  %v12632_v43 = vpop.f32.mrf.mxu0 }
 0x5df   :  { %7836 = vrcp.f32 %v6452_v20  ;;  %v12563_v62 = vpop.f32.mrf.mxu1  ;;  %v6461_v31 = vadd.f32 1.0, %v7825_v28  ;;  %vm12598_vm6 = vcmp.gt.f32.partialorder %v12526_v46, %v6787_v60  ;;  %v6219_v29 = vadd.f32 %v12523_v50, %v12409_v11 }
 0x5e0   :  { %v7078_v30 = vcombine.low %v12551_v9, %v12553_v51  ;;  %v6639_v25 = vrot.slane %v6638_v24, 1  ;;  %7838 = vpow2.f32 %v7648_v45  ;;  %v12587_v49 = vmax.f32 %v6629_v56, %v6630_v15 }
 0x5e1   :  { %v7827_v36 = vpop.eup %7826  ;;  %7840 = vrcp.f32 %v6461_v31  ;;  %v12604_v10 = vpop.f32.mrf.mxu1  ;;  %v12609_v2 = vadd.f32 %v6222_v27, %v12401_v8  ;;  %v6266_v46 = vadd.f32 %v12536_v63, %v12391_v6  ;;  %v6924_v50 = vrot.slane %v6908_v48, %v12528_v32  ;;  %6881 = vst [vmem:[%s13046_s7 + $0x118] sm:$0xff] %v6219_v29 }
 0x5e2   :  { %v12589_v42 = vmax.f32 %v6638_v24, %v6639_v25  ;;  %v6554_v44 = vsel %vm6537_vm0, %v7827_v36, -inf  ;;  %6847 = vst [vmem:[%s13046_s7 + $0x60] sm:$0xff] %v7827_v36  ;;  %7842 = vpow2.f32 %v7657_v34  ;;  %v7676_v35 = vsel %vm12574_vm5, 1.0, %v7919_v12 }
 0x5e3   :  { %v6555_v4 = vmax.f32 %v7819_v61, %v6554_v44  ;;  %v6641_v63 = vsel %vm6621_vm1, %v7827_v36, -inf  ;;  %v7675_v39 = vsel %vm12598_vm6, 1.0, %v7919_v12  ;;  %7844 = vpow2.f32 %v7658_v40  ;;  %6890 = vst [vmem:[%s13046_s7 + $0x160] sm:$0x3f] %v12609_v2  ;;  %v12639_v54 = vpop.f32.mrf.mxu1 }
 0x5e4   :  { %v7829_v5 = vpop.eup %7828  ;;  %v7160_v47 = vcombine.low %v12587_v49, %v12589_v42  ;;  %v7639_v16 = vmul.f32 -1.442695, %v6266_v46  ;;  %v6225_v56 = vadd.f32 %v6224_v14, %v12401_v8  ;;  %v6996_v13 = vcombine.low %v7675_v39, %v7676_v35 }
 0x5e5   :  { %v6556_v17 = vrot.slane %v6555_v4, 4  ;;  %v6562_v19 = vsel %vm6537_vm0, %v7829_v5, -inf  ;;  %6848 = vst [vmem:[%s13046_s7 + $0x68] sm:$0xff] %v7829_v5  ;;  %v6268_v45 = vadd.f32 %v12543_v3, %v12391_v6  ;;  %v6650_v38 = vsel %vm6621_vm1, %v7829_v5, -inf  ;;  %v12664_v34 = vpop.f32.mrf.mxu1 }
 0x5e6   :  { %v7831_v27 = vpop.eup %7830  ;;  %v6563_v61 = vmax.f32 %v7823_v37, %v6562_v19  ;;  %7846 = vpow2.f32 %v7639_v16  ;;  %6891 = vst [vmem:[%s13046_s7 + $0x168] sm:$0x3f] %v6225_v56  ;;  %v6939_v36 = vcombine.high %v12571_v22, %v6924_v50  ;;  %v6270_v52 = vadd.f32 %v12549_v53, %v12387_v23 }
 0x5e7   :  { %v6557_v26 = vmax.f32 %v6555_v4, %v6556_v17  ;;  %v6642_v1 = vsel %vm6623_vm2, %v7831_v27, -inf  ;;  %6857 = vst [vmem:[%s13046_s7 + $0xb0] sm:$0xf] %v7831_v27  ;;  %v7640_v31 = vmul.f32 -1.442695, %v6268_v45  ;;  %v12672_v29 = vrot.slane %v6995_v33, %v12528_v32 }
 0x5e8   :  { %v7833_v60 = vpop.eup %7832  ;;  %v6564_v37 = vrot.slane %v6563_v61, 4  ;;  %v6643_v20 = vmax.f32 %v6641_v63, %v6642_v1  ;;  %v12643_v15 = vpop.f32.mrf.mxu0  ;;  %v12679_v53 = vrot.slane %v6996_v13, %v12528_v32  ;;  %v6730_v22 = vrot.slane %v6225_v56, 7 }
 0x5e9   :  { %v6558_v24 = vrot.slane %v6557_v26, 2  ;;  %v6651_v41 = vsel %vm6623_vm2, %v7833_v60, -inf  ;;  %6858 = vst [vmem:[%s13046_s7 + $0xb8] sm:$0xf] %v7833_v60  ;;  %7848 = vpow2.f32 %v7640_v31  ;;  %v12684_v58 = vrot.slane %v6939_v36, %v12528_v32 }
 0x5ea   :  { %v12653_v14 = vpop.eup %7834  ;;  %v6565_v7 = vmax.f32 %v6563_v61, %v6564_v37  ;;  %v6644_v3 = vrot.slane %v6643_v20, 4  ;;  %v6652_v28 = vmax.f32 %v6650_v38, %v6651_v41  ;;  %v12655_v25 = vpop.f32.mrf.mxu0  ;;  %v6729_v33 = vrot.slane %v12609_v2, 7 }
 0x5eb   :  { %v6559_v48 = vmax.f32 %v6557_v26, %v6558_v24  ;;  %6839 = vst [vmem:[%s13046_s7 + $0x20] sm:$0xff] %v12653_v14  ;;  %v7649_v27 = vmul.f32 -1.442695, %v6270_v52  ;;  %v12687_v61 = vpop.f32.mrf.mxu1  ;;  %v12695_v39 = vrot.slane %v7078_v30, %v12528_v32  ;;  %v7027_v37 = vcombine.high %v12672_v29, %v12679_v53 }
 0x5ec   :  { %v12666_v44 = vpop.eup %7836  ;;  %v6566_v40 = vrot.slane %v6565_v7, 2  ;;  %v6645_v4 = vmax.f32 %v6643_v20, %v6644_v3  ;;  %v6653_v57 = vrot.slane %v6652_v28, 4  ;;  %v12681_v5 = vpop.f32.mrf.mxu0  ;;  %vm12703_vm7 = vcmp.gt.f32.partialorder %v6225_v56, %v6730_v22 }
 0x5ed   :  { %6840 = vst [vmem:[%s13046_s7 + $0x28] sm:$0xff] %v12666_v44  ;;  %v7839_v46 = vpop.eup %7838  ;;  %v6560_v17 = vrot.slane %v6559_v48, 1  ;;  %v6227_v9 = vadd.f32 %v12595_v59, %v12429_v0  ;;  %vm12712_vm8 = vcmp.gt.f32.partialorder %v12609_v2, %v6729_v33  ;;  %v6272_v56 = vadd.f32 %v12563_v62, %v12387_v23  ;;  %v6285_v3 = vpop.f32.mrf.mxu1 }
 0x5ee   :  { %v6567_v19 = vmax.f32 %v6565_v7, %v6566_v40  ;;  %v6646_v50 = vrot.slane %v6645_v4, 2  ;;  %v6654_v35 = vmax.f32 %v6652_v28, %v6653_v57  ;;  %v6462_v18 = vadd.f32 1.0, %v7839_v46  ;;  %v12689_v63 = vpop.eup %7840  ;;  %v12709_v51 = vpop.f32.mrf.mxu0 }
 0x5ef   :  { %v7843_v60 = vpop.eup %7842  ;;  %6849 = vst [vmem:[%s13046_s7 + $0x70] sm:$0xff] %v12689_v63  ;;  %v6561_v30 = vmax.f32 %v6559_v48, %v6560_v17  ;;  %v6570_v48 = vsel %vm6537_vm0, %v12689_v63, -inf  ;;  %v7668_v36 = vsel %vm12703_vm7, 1.0, %v7919_v12  ;;  %v6789_v52 = vrot.slane %v6227_v9, 7 }
 0x5f0   :  { %v6568_v26 = vrot.slane %v6567_v19, 1  ;;  %v6647_v1 = vmax.f32 %v6645_v4, %v6646_v50  ;;  %v6655_v16 = vrot.slane %v6654_v35, 2  ;;  %7850 = vrcp.f32 %v6462_v18  ;;  %v7845_v38 = vpop.eup %7844  ;;  %v12723_v40 = vpop.f32.mrf.mxu0 }
 0x5f1   :  { %v6471_v41 = vadd.f32 1.0, %v7843_v60  ;;  %7852 = vpow2.f32 %v7649_v27  ;;  %v6472_v2 = vadd.f32 1.0, %v7845_v38  ;;  %v7650_v22 = vmul.f32 -1.442695, %v6272_v56 }
 0x5f2   :  { %v6569_v13 = vmax.f32 %v6567_v19, %v6568_v26  ;;  %v6648_v45 = vrot.slane %v6647_v1, 1  ;;  %v6656_v24 = vmax.f32 %v6654_v35, %v6655_v16  ;;  %v6276_v46 = vadd.f32 %v12604_v10, %v12389_v21  ;;  %v6287_v35 = vpop.f32.mrf.mxu1  ;;  %v12752_v42 = vpop.f32.mrf.mxu0 }
 0x5f3   :  { %7854 = vrcp.f32 %v6471_v41  ;;  %v7847_v4 = vpop.eup %7846  ;;  %v6571_v17 = vmax.f32 %v12653_v14, %v6570_v48  ;;  %v6278_v50 = vadd.f32 %v12639_v54, %v12389_v21  ;;  %v12737_v18 = vrot.slane %v7160_v47, %v12528_v32 }
 0x5f4   :  { %v7079_v28 = vcombine.low %v6561_v30, %v6569_v13  ;;  %v6657_v59 = vrot.slane %v6656_v24, 1  ;;  %v6649_v31 = vmax.f32 %v6647_v1, %v6648_v45  ;;  %7856 = vrcp.f32 %v6472_v2  ;;  %6871 = vst [vmem:[%s13046_s7 + $0xd0] sm:$0xf0] %v6276_v46  ;;  %v6289_v30 = vpop.f32.mrf.mxu1  ;;  %v12774_v41 = vpop.f32.mrf.mxu0 }
 0x5f5   :  { %v6453_v19 = vadd.f32 1.0, %v7847_v4  ;;  %v6229_v10 = vadd.f32 %v12632_v43, %v12429_v0  ;;  %v7667_v54 = vsel %vm12712_vm8, 1.0, %v7919_v12  ;;  %v7659_v14 = vmul.f32 -1.442695, %v6276_v46  ;;  %6872 = vst [vmem:[%s13046_s7 + $0xd8] sm:$0xf0] %v6278_v50 }
 0x5f6   :  { %v12726_v57 = vrot.slane %v7079_v28, %v12528_v32  ;;  %v6658_v62 = vmax.f32 %v6656_v24, %v6657_v59  ;;  %v7660_v49 = vmul.f32 -1.442695, %v6278_v50  ;;  %v7849_v47 = vpop.eup %7848  ;;  %v6909_v26 = vcombine.high %v7667_v54, %v7668_v36 }
 0x5f7   :  { %7858 = vrcp.f32 %v6453_v19  ;;  %vm12757_vm9 = vcmp.gt.f32.partialorder %v6227_v9, %v6789_v52  ;;  %v6572_v16 = vrot.slane %v6571_v17, 4  ;;  %v6454_v60 = vadd.f32 1.0, %v7849_v47 }
 0x5f8   :  { %v7110_v33 = vcombine.low %v12695_v39, %v12726_v57  ;;  %v7161_v27 = vcombine.low %v6649_v31, %v6658_v62  ;;  %7860 = vpow2.f32 %v7650_v22  ;;  %v6280_v20 = vadd.f32 %v12664_v34, %v12409_v11  ;;  %v12806_v62 = vpop.f32.mrf.mxu0 }
 0x5f9   :  { %7862 = vpow2.f32 %v7659_v14  ;;  %v6790_v45 = vrot.slane %v6229_v10, 7  ;;  %v6282_v24 = vadd.f32 %v12687_v61, %v12409_v11  ;;  %v6286_v9 = vadd.f32 %v6285_v3, %v12401_v8 }
 0x5fa   :  { %v12755_v43 = vrot.slane %v7161_v27, %v12528_v32  ;;  %7864 = vpow2.f32 %v7660_v49  ;;  %6882 = vst [vmem:[%s13046_s7 + $0x120] sm:$0xff] %v6280_v20  ;;  %v6329_v38 = vadd.f32 %v12643_v15, %v12391_v6  ;;  %v6288_v34 = vadd.f32 %v6287_v35, %v12401_v8 }
 0x5fb   :  { %7866 = vrcp.f32 %v6454_v60  ;;  %v6659_v56 = vsel %vm6621_vm1, %v12689_v63, -inf  ;;  %v12779_v61 = vrot.slane %v6909_v26, %v12528_v32  ;;  %6883 = vst [vmem:[%s13046_s7 + $0x128] sm:$0xff] %v6282_v24  ;;  %v6331_v3 = vadd.f32 %v12655_v25, %v12391_v6  ;;  %6892 = vst [vmem:[%s13046_s7 + $0x170] sm:$0x3f] %v6286_v9  ;;  %v12824_v60 = vpop.f32.mrf.mxu0 }
 0x5fc   :  { %v7192_v13 = vcombine.low %v12737_v18, %v12755_v43  ;;  %v6290_v15 = vadd.f32 %v6289_v30, %v12429_v0  ;;  %v12787_v28 = vmax.f32 %v6571_v17, %v6572_v16  ;;  %v6731_v63 = vrot.slane %v6286_v9, 7  ;;  %6893 = vst [vmem:[%s13046_s7 + $0x178] sm:$0x3f] %v6288_v34 }
 0x5fd   :  { %v7851_v7 = vpop.eup %7850  ;;  %v7641_v48 = vmul.f32 -1.442695, %v6329_v38  ;;  %vm12800_vm10 = vcmp.gt.f32.partialorder %v6229_v10, %v6790_v45  ;;  %v6732_v31 = vrot.slane %v6288_v34, 7  ;;  %v7642_v2 = vmul.f32 -1.442695, %v6331_v3 }
 0x5fe   :  { %v6578_v59 = vsel %vm6537_vm0, %v7851_v7, -inf  ;;  %6850 = vst [vmem:[%s13046_s7 + $0x78] sm:$0xff] %v7851_v7  ;;  %v7853_v6 = vpop.eup %7852  ;;  %vm6751_vm12 = vcmp.gt.f32.partialorder %v6286_v9, %v6731_v63  ;;  %v6333_v4 = vadd.f32 %v12681_v5, %v12387_v23  ;;  %v6791_v17 = vrot.slane %v6290_v15, 7 }
 0x5ff   :  { %v6579_v25 = vmax.f32 %v12666_v44, %v6578_v59  ;;  %v6463_v52 = vadd.f32 1.0, %v7853_v6  ;;  %7868 = vpow2.f32 %v7641_v48  ;;  %vm6752_vm13 = vcmp.gt.f32.partialorder %v6288_v34, %v6732_v31  ;;  %v6291_v44 = vpop.f32.mrf.mxu1 }
 0x600   :  { %v7855_v22 = vpop.eup %7854  ;;  %7870 = vpow2.f32 %v7642_v2  ;;  %v7669_v50 = vsel %vm6751_vm12, 1.0, %v7919_v12  ;;  %v7670_v35 = vsel %vm6752_vm13, 1.0, %v7919_v12  ;;  %v7677_v54 = vsel %vm12757_vm9, 1.0, %v7919_v12 }
 0x601   :  { %v6580_v46 = vrot.slane %v6579_v25, 4  ;;  %v6660_v19 = vsel %vm6623_vm2, %v7855_v22, -inf  ;;  %6859 = vst [vmem:[%s13046_s7 + $0xc0] sm:$0xf] %v7855_v22  ;;  %7872 = vrcp.f32 %v6463_v52  ;;  %v7857_v5 = vpop.eup %7856  ;;  %v6910_v14 = vcombine.high %v7669_v50, %v7670_v35 }
 0x602   :  { %v6661_v10 = vmax.f32 %v6659_v56, %v6660_v19  ;;  %v6574_v49 = vrot.slane %v12787_v28, 2  ;;  %6860 = vst [vmem:[%s13046_s7 + $0xc8] sm:$0xf] %v7857_v5  ;;  %v7651_v47 = vmul.f32 -1.442695, %v6333_v4  ;;  %v6292_v26 = vadd.f32 %v6291_v44, %v12429_v0 }
 0x603   :  { %v6581_v27 = vmax.f32 %v6579_v25, %v6580_v46  ;;  %v6335_v16 = vadd.f32 %v12709_v51, %v12387_v23  ;;  %v6669_v1 = vsel %vm6623_vm2, %v7857_v5, -inf  ;;  %v7678_v30 = vsel %vm12800_vm10, 1.0, %v7919_v12  ;;  %v6350_v25 = vpop.f32.mrf.mxu0 }
 0x604   :  { %v12826_v20 = vpop.eup %7858  ;;  %v6938_v45 = vrot.slane %v6910_v14, %v12528_v32  ;;  %vm12833_vm15 = vcmp.gt.f32.partialorder %v6290_v15, %v6791_v17  ;;  %7874 = vpow2.f32 %v7651_v47  ;;  %v6792_v23 = vrot.slane %v6292_v26, 7 }
 0x605   :  { %v7861_v9 = vpop.eup %7860  ;;  %6841 = vst [vmem:[%s13046_s7 + $0x30] sm:$0xff] %v12826_v20  ;;  %v7652_v51 = vmul.f32 -1.442695, %v6335_v16  ;;  %v6339_v38 = vadd.f32 %v12723_v40, %v12389_v21  ;;  %v6582_v56 = vrot.slane %v6581_v27, 2  ;;  %v6662_v3 = vrot.slane %v6661_v10, 4  ;;  %v6352_v35 = vpop.f32.mrf.mxu0 }
 0x606   :  { %v7863_v34 = vpop.eup %7862  ;;  %v6668_v15 = vsel %vm6621_vm1, %v7851_v7, -inf  ;;  %v6464_v59 = vadd.f32 1.0, %v7861_v9  ;;  %v6940_v6 = vcombine.high %v12779_v61, %v6938_v45  ;;  %vm6812_vm3 = vcmp.gt.f32.partialorder %v6292_v26, %v6792_v23 }
 0x607   :  { %v7865_v63 = vpop.eup %7864  ;;  %v6473_v48 = vadd.f32 1.0, %v7863_v34  ;;  %7876 = vpow2.f32 %v7652_v51  ;;  %6873 = vst [vmem:[%s13046_s7 + $0xe0] sm:$0xf0] %v6339_v38  ;;  %vm6610_vm4 = vcmask 31744   ;;  %v6670_v40 = vmax.f32 %v6668_v15, %v6669_v1  ;;  %v6354_v45 = vpop.f32.mrf.mxu0 }
 0x608   :  { %v12848_v36 = vpop.eup %7866  ;;  %v6997_v31 = vcombine.low %v7677_v54, %v7678_v30  ;;  %7878 = vrcp.f32 %v6464_v59  ;;  %v7679_v7 = vsel %vm12833_vm15, 1.0, %v7919_v12  ;;  %v6474_v61 = vadd.f32 1.0, %v7865_v63 }
 0x609   :  { %6842 = vst [vmem:[%s13046_s7 + $0x38] sm:$0xff] %v12848_v36  ;;  %7880 = vrcp.f32 %v6473_v48  ;;  %v6954_v2 = vrot.slane %v6940_v6, %v12528_v32  ;;  %v7680_v52 = vsel %vm6812_vm3, 1.0, %v7919_v12  ;;  %v12860_v4 = vmax.f32 %v12787_v28, %v6574_v49 }
 0x60a   :  { %v6583_v22 = vmax.f32 %v6581_v27, %v6582_v56  ;;  %v12862_v46 = vmax.f32 %v6661_v10, %v6662_v3  ;;  %v6998_v17 = vcombine.low %v7679_v7, %v7680_v52  ;;  %7882 = vrcp.f32 %v6474_v61 }
 0x60b   :  { %v6955_v44 = vcombine.high %v12684_v58, %v6954_v2  ;;  %v7661_v19 = vmul.f32 -1.442695, %v6339_v38  ;;  %v6341_v50 = vadd.f32 %v12752_v42, %v12389_v21  ;;  %v6671_v54 = vrot.slane %v6670_v40, 4 }
 0x60c   :  { %v7869_v5 = vpop.eup %7868  ;;  %v7019_v14 = vrot.slane %v6997_v31, %v12528_v32  ;;  %v7026_v47 = vrot.slane %v6998_v17, %v12528_v32  ;;  %vm6895_vm5 = vcmask 29696   ;;  %v6343_v58 = vadd.f32 %v12774_v41, %v12409_v11 }
 0x60d   :  { %v7871_v28 = vpop.eup %7870  ;;  %v6455_v27 = vadd.f32 1.0, %v7869_v5  ;;  %7683 = vst [vmem:[%s13046_s7 + $0x146] ss:$8 sm:$0xf] %v6955_v44  ;;  %7884 = vpow2.f32 %v7661_v19  ;;  %v7662_v21 = vmul.f32 -1.442695, %v6341_v50  ;;  %v7035_v49 = vrot.slane %v7027_v37, %v12528_v32 }
 0x60e   :  { %7684 = vst [vmem:[%s13046_s7 + $0x146] ss:$8 sm:$0xf0] %v6955_v44  ;;  %6875 = vst.msk [vmem:[%s13046_s7 + $0xe8] sm:$0xf0] %vm6874_vm14, %v6341_v50  ;;  %v7873_v42 = vpop.eup %7872  ;;  %v6576_v10 = vrot.slane %v12860_v4, 1  ;;  %v7028_v41 = vcombine.high %v7019_v14, %v7026_v47  ;;  %v6672_v24 = vmax.f32 %v6670_v40, %v6671_v54  ;;  %v6345_v53 = vadd.f32 %v12806_v62, %v12409_v11 }
 0x60f   :  { %v6584_v26 = vrot.slane %v6583_v22, 1  ;;  %v6456_v16 = vadd.f32 1.0, %v7871_v28  ;;  %v6664_v1 = vrot.slane %v12862_v46, 2  ;;  %v6586_v30 = vsel %vm6537_vm0, %v7873_v42, -inf  ;;  %6851 = vst [vmem:[%s13046_s7 + $0x80] sm:$0xff] %v7873_v42  ;;  %6884 = vst [vmem:[%s13046_s7 + $0x130] sm:$0xff] %v6343_v58 }
 0x610   :  { %7886 = vrcp.f32 %v6455_v27  ;;  %v6587_v29 = vmax.f32 %v12826_v20, %v6586_v30  ;;  %v7042_v37 = vrot.slane %v7028_v41, %v12528_v32  ;;  %v6349_v9 = vadd.f32 %v12824_v60, %v12401_v8  ;;  %6885 = vst.msk [vmem:[%s13046_s7 + $0x138] sm:$0xff] %vm6610_vm4, %v6345_v53 }
 0x611   :  { %7888 = vrcp.f32 %v6456_v16  ;;  %v6351_v23 = vadd.f32 %v6350_v25, %v12401_v8  ;;  %v7875_v51 = vpop.eup %7874  ;;  %v12901_v38 = vmax.f32 %v6583_v22, %v6584_v26  ;;  %v6353_v20 = vadd.f32 %v6352_v35, %v12429_v0 }
 0x612   :  { %7890 = vpow2.f32 %v7662_v21  ;;  %v6588_v34 = vrot.slane %v6587_v29, 4  ;;  %v6355_v11 = vadd.f32 %v6354_v45, %v12429_v0  ;;  %v6465_v62 = vadd.f32 1.0, %v7875_v51  ;;  %6894 = vst [vmem:[%s13046_s7 + $0x180] sm:$0x3f] %v6349_v9 }
 0x613   :  { %v7043_v56 = vcombine.low %v7035_v49, %v7042_v37  ;;  %v6733_v3 = vrot.slane %v6349_v9, 7  ;;  %v6734_v8 = vrot.slane %v6351_v23, 7  ;;  %6896 = vst.msk [vmem:[%s13046_s7 + $0x188] sm:$0x3f] %vm6895_vm5, %v6351_v23  ;;  %v6673_v15 = vrot.slane %v6672_v24, 2 }
 0x614   :  { %v7877_v60 = vpop.eup %7876  ;;  %v6589_v59 = vmax.f32 %v6587_v29, %v6588_v34  ;;  %v6793_v63 = vrot.slane %v6353_v20, 7  ;;  %v6794_v48 = vrot.slane %v6355_v11, 7  ;;  %7892 = vrcp.f32 %v6465_v62 }
 0x615   :  { %v7879_v6 = vpop.eup %7878  ;;  %7686 = vst [vmem:[%s13046_s7 + $0x147] ss:$8 sm:$0xf] %v7043_v56  ;;  %7687 = vst [vmem:[%s13046_s7 + $0x147] ss:$8 sm:$0xf0] %v7043_v56  ;;  %vm6753_vm6 = vcmp.gt.f32.partialorder %v6349_v9, %v6733_v3  ;;  %vm6754_vm7 = vcmp.gt.f32.partialorder %v6351_v23, %v6734_v8  ;;  %v6674_v19 = vmax.f32 %v6672_v24, %v6673_v15 }
 0x616   :  { %v6466_v0 = vadd.f32 1.0, %v7877_v60  ;;  %v7881_v25 = vpop.eup %7880  ;;  %v6590_v40 = vrot.slane %v6589_v59, 2  ;;  %v6594_v31 = vsel %vm6537_vm0, %v7879_v6, -inf  ;;  %6852 = vst [vmem:[%s13046_s7 + $0x88] sm:$0xff] %v7879_v6  ;;  %v6677_v7 = vsel %vm6621_vm1, %v7873_v42, -inf }
 0x617   :  { %v7671_v61 = vsel %vm6753_vm6, 1.0, %v7919_v12  ;;  %v6595_v2 = vmax.f32 %v12848_v36, %v6594_v31  ;;  %v6678_v52 = vsel %vm6623_vm2, %v7881_v25, -inf  ;;  %6861 = vst [vmem:[%s13046_s7 + $0xd0] sm:$0xf] %v7881_v25  ;;  %v7672_v22 = vsel %vm6754_vm7, 1.0, %v7919_v12  ;;  %v7883_v44 = vpop.eup %7882 }
 0x618   :  { %7894 = vrcp.f32 %v6466_v0  ;;  %vm12935_vm8 = vcmp.lt.s32.totalorder %v6914_v55, 132  ;;  %v6679_v50 = vmax.f32 %v6677_v7, %v6678_v52  ;;  %v6686_v35 = vsel %vm6621_vm1, %v7879_v6, -inf  ;;  %6862 = vst [vmem:[%s13046_s7 + $0xd8] sm:$0xf] %v7883_v44 }
 0x619   :  { %v6956_v36 = vcombine.high %v7671_v61, %v7672_v22  ;;  %v6596_v5 = vrot.slane %v6595_v2, 4  ;;  %v6687_v54 = vsel %vm6623_vm2, %v7883_v44, -inf  ;;  %vm12944_vm9 = vcmp.gt.f32.partialorder %v6353_v20, %v6793_v63 }
 0x61a   :  { %vm6814_vm10 = vcmp.gt.f32.partialorder %v6355_v11, %v6794_v48  ;;  %v7885_v55 = vpop.eup %7884  ;;  %v6665_v47 = vmax.f32 %v12862_v46, %v6664_v1  ;;  %v6680_v28 = vrot.slane %v6679_v50, 4  ;;  %v6688_v27 = vmax.f32 %v6686_v35, %v6687_v54 }
 0x61b   :  { %vm6612_vm12 = vcmask 25600   ;;  %v6963_v21 = vrot.slane %v6956_v36, %v12528_v32  ;;  %v6591_v58 = vmax.f32 %v6589_v59, %v6590_v40  ;;  %v6597_v42 = vmax.f32 %v6595_v2, %v6596_v5 }
 0x61c   :  { %v6475_v49 = vadd.f32 1.0, %v7885_v55  ;;  %v7682_v26 = vsel %vm6814_vm10, 1.0, %v7919_v12  ;;  %v6681_v30 = vmax.f32 %v6679_v50, %v6680_v28  ;;  %v6689_v41 = vrot.slane %v6688_v27, 4 }
 0x61d   :  { %v7887_v16 = vpop.eup %7886  ;;  %v6964_v45 = vcombine.high %v6963_v21, %v6963_v21  ;;  %v7681_v24 = vsel %vm12944_vm9, 1.0, %v7919_v12  ;;  %v6675_v46 = vrot.slane %v6674_v19, 1  ;;  %v6598_v1 = vrot.slane %v6597_v42, 2 }
 0x61e   :  { %v7889_v29 = vpop.eup %7888  ;;  %6843 = vst [vmem:[%s13046_s7 + $0x40] sm:$0xff] %v7887_v16  ;;  %7896 = vrcp.f32 %v6475_v49  ;;  %v7044_v53 = vcombine.low %v7681_v24, %v7682_v26  ;;  %v6666_v9 = vrot.slane %v6665_v47, 1  ;;  %v6682_v23 = vrot.slane %v6681_v30, 2 }
 0x61f   :  { %v7891_v37 = vpop.eup %7890  ;;  %v6690_v51 = vmax.f32 %v6688_v27, %v6689_v41  ;;  %6844 = vst.msk [vmem:[%s13046_s7 + $0x48] sm:$0xff] %vm6610_vm4, %v7889_v29  ;;  %v6971_v12 = vrot.slane %v6964_v45, %v12528_v32  ;;  %v6592_v34 = vrot.slane %v6591_v58, 1  ;;  %v6599_v20 = vmax.f32 %v6597_v42, %v6598_v1 }
 0x620   :  { %v6476_v11 = vadd.f32 1.0, %v7891_v37  ;;  %v7051_v62 = vrot.slane %v7044_v53, %v12528_v32  ;;  %v6577_v56 = vmax.f32 %v12860_v4, %v6576_v10  ;;  %v6683_v3 = vmax.f32 %v6681_v30, %v6682_v23 }
 0x621   :  { %v6691_v8 = vrot.slane %v6690_v51, 2  ;;  %v6972_v60 = vcombine.high %v6971_v12, %v6971_v12  ;;  %v6676_v15 = vmax.f32 %v6674_v19, %v6675_v46  ;;  %v6600_v59 = vrot.slane %v6599_v20, 1  ;;  %v7893_v48 = vpop.eup %7892 }
 0x622   :  { %7898 = vrcp.f32 %v6476_v11  ;;  %v7052_v63 = vcombine.high %v7051_v62, %v7051_v62  ;;  %v7080_v6 = vcombine.low %v6577_v56, %v12901_v38  ;;  %v6667_v0 = vmax.f32 %v6665_v47, %v6666_v9  ;;  %6853 = vst [vmem:[%s13046_s7 + $0x90] sm:$0xff] %v7893_v48 }
 0x623   :  { %v6684_v25 = vrot.slane %v6683_v3, 1  ;;  %v6692_v40 = vmax.f32 %v6690_v51, %v6691_v8  ;;  %7685 = vst.msk [vmem:[%s13046_s7 + $0x186] ss:$8 sm:$0x3] %vm12935_vm8, %v6972_v60  ;;  %v6593_v4 = vmax.f32 %v6591_v58, %v6592_v34  ;;  %v6601_v10 = vmax.f32 %v6599_v20, %v6600_v59 }
 0x624   :  { %v6602_v31 = vsel %vm6537_vm0, %v7893_v48, -inf  ;;  %v7059_v7 = vrot.slane %v7052_v63, %v12528_v32  ;;  %v7162_v52 = vcombine.low %v6667_v0, %v6676_v15  ;;  %v6611_v44 = vsel %vm6610_vm4, %v7889_v29, -inf }
 0x625   :  { %v7895_v38 = vpop.eup %7894  ;;  %v6693_v61 = vrot.slane %v6692_v40, 1  ;;  %v6603_v2 = vmax.f32 %v7887_v16, %v6602_v31  ;;  %v7081_v22 = vcombine.low %v6593_v4, %v6601_v10  ;;  %v6685_v50 = vmax.f32 %v6683_v3, %v6684_v25 }
 0x626   :  { %v6613_v19 = vsel %vm6612_vm12, %v7895_v38, -inf  ;;  %6854 = vst.msk [vmem:[%s13046_s7 + $0x98] sm:$0xff] %vm6610_vm4, %v7895_v38  ;;  %v7102_v54 = vrot.slane %v7080_v6, %v12528_v32  ;;  %vm6706_vm0 = vcmask 27648   ;;  %v7184_v58 = vrot.slane %v7162_v52, %v12528_v32 }
 0x627   :  { %7688 = vst.msk [vmem:[%s13046_s7 + $0x187] ss:$8 sm:$0x3] %vm12935_vm8, %v7059_v7  ;;  %v6694_v35 = vmax.f32 %v6692_v40, %v6693_v61  ;;  %v6604_v36 = vrot.slane %v6603_v2, 4  ;;  %v6614_v5 = vmax.f32 %v6611_v44, %v6613_v19  ;;  %v7109_v14 = vrot.slane %v7081_v22, %v12528_v32 }
 0x628   :  { %v7118_v16 = vrot.slane %v7110_v33, %v12528_v32  ;;  %v6695_v41 = vsel %vm6621_vm1, %v7893_v48, -inf  ;;  %v7200_v39 = vrot.slane %v7192_v13, %v12528_v32  ;;  %v6705_v23 = vsel %vm6704_vm11, %v7895_v38, -inf }
 0x629   :  { %v7163_v55 = vcombine.low %v6685_v50, %v6694_v35  ;;  %v6605_v47 = vmax.f32 %v6603_v2, %v6604_v36  ;;  %v6615_v28 = vrot.slane %v6614_v5, 4  ;;  %v7111_v27 = vcombine.low %v7102_v54, %v7109_v14 }
 0x62b   :  { %v7897_v21 = vpop.eup %7896  ;;  %v7191_v42 = vrot.slane %v7163_v55, %v12528_v32  ;;  %v6606_v49 = vrot.slane %v6605_v47, 2  ;;  %v6616_v26 = vmax.f32 %v6614_v5, %v6615_v28  ;;  %v7125_v30 = vrot.slane %v7111_v27, %v12528_v32 }
 0x62c   :  { %v6696_v45 = vsel %vm6623_vm2, %v7897_v21, -inf  ;;  %6863 = vst [vmem:[%s13046_s7 + $0xe0] sm:$0xf] %v7897_v21 }
 0x62d   :  { %v7193_v24 = vcombine.low %v7184_v58, %v7191_v42  ;;  %v6697_v29 = vmax.f32 %v6695_v41, %v6696_v45  ;;  %v6607_v46 = vmax.f32 %v6605_v47, %v6606_v49  ;;  %v6617_v1 = vrot.slane %v6616_v26, 2 }
 0x62e   :  { %v7126_v53 = vcombine.low %v7118_v16, %v7125_v30 }
 0x62f   :  { %v7899_v37 = vpop.eup %7898  ;;  %v7207_v57 = vrot.slane %v7193_v24, %v12528_v32  ;;  %v6698_v33 = vrot.slane %v6697_v29, 4  ;;  %v6618_v9 = vmax.f32 %v6616_v26, %v6617_v1  ;;  %v6608_v18 = vrot.slane %v6607_v46, 1 }
 0x630   :  { %7689 = vst [vmem:[%s13046_s7 + $0x190] ss:$8 sm:$0xf] %v7126_v53  ;;  %7690 = vst [vmem:[%s13046_s7 + $0x190] ss:$8 sm:$0xf0] %v7126_v53 }
 0x631   :  { %v6707_v51 = vsel %vm6706_vm0, %v7899_v37, -inf  ;;  %6864 = vst.msk [vmem:[%s13046_s7 + $0xe8] sm:$0xf] %vm6706_vm0, %v7899_v37  ;;  %v7208_v43 = vcombine.low %v7200_v39, %v7207_v57  ;;  %v6699_v13 = vmax.f32 %v6697_v29, %v6698_v33  ;;  %v6619_v34 = vrot.slane %v6618_v9, 1 }
 0x632   :  { %v6708_v12 = vmax.f32 %v6705_v23, %v6707_v51  ;;  %v6609_v62 = vmax.f32 %v6607_v46, %v6608_v18 }
 0x633   :  { %7692 = vst [vmem:[%s13046_s7 + $0x191] ss:$8 sm:$0xf] %v7208_v43  ;;  %7693 = vst [vmem:[%s13046_s7 + $0x191] ss:$8 sm:$0xf0] %v7208_v43  ;;  %v6620_v56 = vmax.f32 %v6618_v9, %v6619_v34 }
 0x634   :  { %v6700_v20 = vrot.slane %v6699_v13, 2  ;;  %v6709_v11 = vrot.slane %v6708_v12, 4 }
 0x635   :  { %v7127_v60 = vcombine.low %v6609_v62, %v6620_v56 }
 0x636   :  { %v6701_v3 = vmax.f32 %v6699_v13, %v6700_v20  ;;  %v6710_v8 = vmax.f32 %v6708_v12, %v6709_v11 }
 0x637   :  { %v7134_v59 = vrot.slane %v7127_v60, %v12528_v32 }
 0x638   :  { %v6711_v15 = vrot.slane %v6710_v8, 2  ;;  %v6702_v63 = vrot.slane %v6701_v3, 1 }
 0x639   :  { %v7141_v6 = vrot.slane %v7134_v59, %v12528_v32 }
 0x63a   :  { %v6712_v48 = vmax.f32 %v6710_v8, %v6711_v15  ;;  %v6703_v25 = vmax.f32 %v6701_v3, %v6702_v63 }
 0x63b   :  { %7691 = vst.msk [vmem:[%s13046_s7 + $0x1d0] ss:$8 sm:$0x3] %vm12935_vm8, %v7141_v6 }
 0x63c   :  { %v6713_v0 = vrot.slane %v6712_v48, 1 }
 0x63e   :  { %v6714_v40 = vmax.f32 %v6712_v48, %v6713_v0 }
 0x640   :  { %v7209_v4 = vcombine.low %v6703_v25, %v6714_v40 }
 0x642   :  { %v7216_v10 = vrot.slane %v7209_v4, %v12528_v32 }
 0x644   :  { %v7223_v31 = vrot.slane %v7216_v10, %v12528_v32 }
 0x646   :  { %7694 = vst.msk [vmem:[%s13046_s7 + $0x1d1] ss:$8 sm:$0x3] %vm12935_vm8, %v7223_v31 }

</bundles_post_ra>
